<compile_context>
chip_gen: v7x
topology: tpu7x:2x2x1
jax: 0.10.0
libtpu: 0.0.40
codegen_flags: <defaults>
</compile_context>

<pallas_src>
import functools

import jax
import jax.numpy as jnp
from jax.experimental import pallas as pl
from jax.experimental.pallas import tpu as pltpu

RRELU_SLOPE = (1.0 / 8.0 + 1.0 / 3.0) / 2.0   # nn.RReLU(1/8, 1/3) eval-mode slope
GN_EPS = 1e-5                                  # PyTorch GroupNorm default eps


def _round_up(x, m):
    return (x + m - 1) // m * m


def _conv_gn_act_kernel(x_ref, w_ref, b_ref, g_ref, be_ref, mask_ref, o_ref, *,
                        offsets, n_valid, apply_rrelu):
    """Fused 3x3x3 conv (27 shifted matmuls) + bias + GroupNorm(C,C) [+ RReLU].

    x_ref:   [1, Cin, Pin]   bf16   zero-padded sample, flat padded spatial on lanes
    w_ref:   [27, Cout, Cin] bf16   per-tap weights (tap order matches `offsets`)
    b/g/be:  [Cout, 1]       f32
    mask:    [1, Pcc]        f32    1.0 on the S = D*H*W valid output positions
    o_ref:   [1, Cout, Pcc]  f32
    """
    x = x_ref[0]                              # [Cin, Pin] (bf16)
    cout = o_ref.shape[1]
    pcc = o_ref.shape[2]

    # Conv as 27 shifted windows of the flat padded volume; output position q reads
    # flat input position q + off(kd,kh,kw).  Large spatial axis is the MXU N dim.
    acc = jnp.zeros((cout, pcc), jnp.float32)
    for t, off in enumerate(offsets):                      # 27 static taps (unrolled)
        xs = x[:, off:off + pcc]                            # shifted window (lanes)
        acc = acc + jnp.dot(w_ref[t], xs, preferred_element_type=jnp.float32)
    acc = acc + b_ref[...]                                  # conv bias

    # GroupNorm(num_groups == num_channels): per-sample, per-channel stats over the
    # S valid spatial positions, single masked pass; biased variance, eps=1e-5.
    mask = mask_ref[...]
    inv_n = 1.0 / float(n_valid)
    mean = jnp.sum(acc * mask, axis=1, keepdims=True) * inv_n
    ex2 = jnp.sum(acc * acc * mask, axis=1, keepdims=True) * inv_n
    var = jnp.maximum(ex2 - mean * mean, 0.0)               # clamp tiny negatives
    y = (acc - mean) * jax.lax.rsqrt(var + GN_EPS)
    y = y * g_ref[...] + be_ref[...]

    if apply_rrelu:
        y = jnp.where(y >= 0.0, y, RRELU_SLOPE * y)

    o_ref[0] = y.astype(o_ref.dtype)


def conv3x3x3_gn_act(x_ncdhw, w_taps, b, g, be, *, apply_rrelu):
    """One Conv3d(k=3, s=1, p=1) + GroupNorm(C,C) [+ RReLU] stage, Pallas-fused.

    x_ncdhw: [N, Cin, D, H, W] float32 (PyTorch layout)
    w_taps:  [27, Cout, Cin_p] bfloat16  (prepared once by prepare_double_conv_params)
    b/g/be:  [Cout, 1] float32
    """
    n, cin, d, h, w = x_ncdhw.shape
    cout = w_taps.shape[1]
    cin_p = w_taps.shape[2]                   # channel dim padded to a multiple of 8
    dp, hp, wp = d + 2, h + 2, w + 2

    # Flat (row-major d,h,w) offsets of the 27 taps inside the padded volume.
    offsets = tuple(kd * hp * wp + kh * wp + kw
                    for kd in range(3) for kh in range(3) for kw in range(3))
    pc = (d - 1) * hp * wp + (h - 1) * wp + w        # last valid output index + 1
    pcc = _round_up(pc, 128)                         # lane-aligned working width
    pin = pcc + _round_up(offsets[-1], 128)          # input flat width (>= pc+maxoff)

    # Zero-pad spatially, pad channels to cin_p, flatten, pad flat axis, cast bf16.
    xp = jnp.pad(x_ncdhw, ((0, 0), (0, cin_p - cin), (1, 1), (1, 1), (1, 1)))
    xf = xp.reshape(n, cin_p, dp * hp * wp)
    xf = jnp.pad(xf, ((0, 0), (0, 0), (0, pin - dp * hp * wp)))
    xf = xf.astype(jnp.bfloat16)

    # Mask of valid (non-halo, non-wraparound) flat output positions.
    q = jnp.arange(pcc, dtype=jnp.int32)
    qd = q // (hp * wp)
    qh = (q // wp) % hp
    qw = q % wp
    mask = ((qd < d) & (qh < h) & (qw < w)).astype(jnp.float32).reshape(1, pcc)

    kern = functools.partial(_conv_gn_act_kernel, offsets=offsets,
                             n_valid=d * h * w, apply_rrelu=apply_rrelu)
    out_flat = pl.pallas_call(
        kern,
        out_shape=jax.ShapeDtypeStruct((n, cout, pcc), jnp.float32),
        grid_spec=pltpu.PrefetchScalarGridSpec(
            num_scalar_prefetch=0,
            grid=(n,),                 # one sample per step (GroupNorm is per-sample)
            in_specs=[
                pl.BlockSpec((1, cin_p, pin), lambda i: (i, 0, 0)),
                pl.BlockSpec((27, cout, cin_p), lambda i: (0, 0, 0)),
                pl.BlockSpec((cout, 1), lambda i: (0, 0)),
                pl.BlockSpec((cout, 1), lambda i: (0, 0)),
                pl.BlockSpec((cout, 1), lambda i: (0, 0)),
                pl.BlockSpec((1, pcc), lambda i: (0, 0)),
            ],
            out_specs=pl.BlockSpec((1, cout, pcc), lambda i: (i, 0, 0)),
        ),
        compiler_params=pltpu.CompilerParams(dimension_semantics=("parallel",)),
    )(xf, w_taps, b, g, be, mask)

    # Un-flatten: valid outputs live at q = qd*Hp*Wp + qh*Wp + qw with qd<D,qh<H,qw<W.
    need = d * hp * wp
    if pcc < need:
        out_flat = jnp.pad(out_flat, ((0, 0), (0, 0), (0, need - pcc)))
    else:
        out_flat = out_flat[:, :, :need]
    return out_flat.reshape(n, cout, d, hp, wp)[:, :, :, :h, :w]   # NCDHW


def prepare_double_conv_params(params):
    """One-time conversion of PyTorch-layout parameters to the kernel layout."""
    def prep(w_oidhw, b, g, be):
        cout, cin = w_oidhw.shape[0], w_oidhw.shape[1]
        cin_p = _round_up(cin, 8)
        w_taps = jnp.transpose(w_oidhw, (2, 3, 4, 0, 1)).reshape(27, cout, cin)
        w_taps = jnp.pad(w_taps, ((0, 0), (0, 0), (0, cin_p - cin)))
        return (w_taps.astype(jnp.bfloat16),
                b.reshape(cout, 1).astype(jnp.float32),
                g.reshape(cout, 1).astype(jnp.float32),
                be.reshape(cout, 1).astype(jnp.float32))
    return {"c1": prep(params["w1"], params["b1"], params["g1"], params["be1"]),
            "c2": prep(params["w2"], params["b2"], params["g2"], params["be2"])}


def double_conv_block(x_ncdhw, kparams):
    """Forward pass of DoubleConvBlock; input/output in PyTorch NCDHW layout."""
    w1, b1, g1, be1 = kparams["c1"]
    w2, b2, g2, be2 = kparams["c2"]
    x = conv3x3x3_gn_act(x_ncdhw, w1, b1, g1, be1, apply_rrelu=True)
    x = conv3x3x3_gn_act(x, w2, b2, g2, be2, apply_rrelu=False)
    return x


def _reference(x_ncdhw, params):
    """Plain-JAX (XLA conv) reference with the same bf16 operand cast, for checking."""
    def stage(x, wo, b, g, be, act):
        wq = jnp.transpose(wo, (2, 3, 4, 1, 0)).astype(jnp.bfloat16)  # OIDHW -> DHWIO
        y = jax.lax.conv_general_dilated(
            x.astype(jnp.bfloat16), wq, window_strides=(1, 1, 1),
            padding=((1, 1), (1, 1), (1, 1)),
            dimension_numbers=("NDHWC", "DHWIO", "NDHWC"),
            preferred_element_type=jnp.float32)
        y = y + b
        mean = jnp.mean(y, axis=(1, 2, 3), keepdims=True)
        var = jnp.mean(jnp.square(y - mean), axis=(1, 2, 3), keepdims=True)
        y = (y - mean) * jax.lax.rsqrt(var + GN_EPS)
        y = y * g + be
        if act:
            y = jnp.where(y >= 0.0, y, RRELU_SLOPE * y)
        return y

    x = jnp.transpose(x_ncdhw, (0, 2, 3, 4, 1))
    x = stage(x, params["w1"], params["b1"], params["g1"], params["be1"], True)
    x = stage(x, params["w2"], params["b2"], params["g2"], params["be2"], False)
    return jnp.transpose(x, (0, 4, 1, 2, 3))


if __name__ == "__main__":
    key = jax.random.PRNGKey(0)
    in_ch, out_ch = 4, 8
    N, D, H, W = 2, 8, 8, 8

    ks = jax.random.split(key, 9)
    fan1 = in_ch * 27
    fan2 = out_ch * 27
    params = {
        "w1": jax.random.normal(ks[0], (out_ch, in_ch, 3, 3, 3), jnp.float32) / jnp.sqrt(fan1),
        "b1": 0.1 * jax.random.normal(ks[1], (out_ch,), jnp.float32),
        "g1": 1.0 + 0.1 * jax.random.normal(ks[2], (out_ch,), jnp.float32),
        "be1": 0.1 * jax.random.normal(ks[3], (out_ch,), jnp.float32),
        "w2": jax.random.normal(ks[4], (out_ch, out_ch, 3, 3, 3), jnp.float32) / jnp.sqrt(fan2),
        "b2": 0.1 * jax.random.normal(ks[5], (out_ch,), jnp.float32),
        "g2": 1.0 + 0.1 * jax.random.normal(ks[6], (out_ch,), jnp.float32),
        "be2": 0.1 * jax.random.normal(ks[7], (out_ch,), jnp.float32),
    }
    x = jax.random.normal(ks[8], (N, in_ch, D, H, W), jnp.float32)

    kparams = prepare_double_conv_params(params)   # hoisted weight relayout (one time)
    out = jax.jit(double_conv_block)(x, kparams)
    out = jax.block_until_ready(out)

    assert out.shape == (N, out_ch, D, H, W), out.shape
    ref = _reference(x, params)
    max_err = float(jnp.max(jnp.abs(out - ref)))
    # Both sides use bf16 conv operands with f32 accumulation; the remaining gap is
    # accumulation order plus independent bf16 rounding of the stage-1 activations.
    assert max_err < 3e-2, f"mismatch vs reference: {max_err}"

    print("KERNEL_OK")
</pallas_src>

<mosaic_0001>
module attributes {stable_mosaic.version = 11 : i64} {
  func.func @_conv_gn_act_kernel(%arg0: i32, %arg1: memref<1x8x1152xbf16, #tpu.memory_space<vmem>>, %arg2: memref<27x8x8xbf16, #tpu.memory_space<vmem>>, %arg3: memref<8x1xf32, #tpu.memory_space<vmem>>, %arg4: memref<8x1xf32, #tpu.memory_space<vmem>>, %arg5: memref<8x1xf32, #tpu.memory_space<vmem>>, %arg6: memref<1x896xf32, #tpu.memory_space<vmem>>, %arg7: memref<1x8x896xf32, #tpu.memory_space<vmem>>) attributes {dimension_semantics = [#tpu.dimension_semantics<parallel>], iteration_bounds = array<i64: 2>, scalar_prefetch = 0 : i64, scratch_operands = 0 : i64, tpu.core_type = #tpu.core_type<tc>, window_params = [{transform_indices = @transform_0, window_bounds = array<i64: 1, 8, 1152>}, {pipeline_mode = #tpu.pipeline_mode<synchronous>, transform_indices = @transform_1, window_bounds = array<i64: 27, 8, 8>}, {pipeline_mode = #tpu.pipeline_mode<synchronous>, transform_indices = @transform_2, window_bounds = array<i64: 8, 1>}, {pipeline_mode = #tpu.pipeline_mode<synchronous>, transform_indices = @transform_3, window_bounds = array<i64: 8, 1>}, {pipeline_mode = #tpu.pipeline_mode<synchronous>, transform_indices = @transform_4, window_bounds = array<i64: 8, 1>}, {pipeline_mode = #tpu.pipeline_mode<synchronous>, transform_indices = @transform_5, window_bounds = array<i64: 1, 896>}, {transform_indices = @transform_6, window_bounds = array<i64: 1, 8, 896>}]} {
    %c0 = arith.constant 0 : index
    %c0_0 = arith.constant 0 : index
    %c0_1 = arith.constant 0 : index
    %0 = vector.load %arg1[%c0, %c0_0, %c0_1] : memref<1x8x1152xbf16, #tpu.memory_space<vmem>>, vector<1x8x1152xbf16>
    %1 = vector.shape_cast %0 : vector<1x8x1152xbf16> to vector<8x1152xbf16>
    %cst = arith.constant 0.000000e+00 : f32
    %2 = vector.broadcast %cst : f32 to vector<8x896xf32>
    %3 = vector.extract_strided_slice %1 {offsets = [0, 0], sizes = [8, 896], strides = [1, 1]} : vector<8x1152xbf16> to vector<8x896xbf16>
    %c0_2 = arith.constant 0 : index
    %c0_3 = arith.constant 0 : index
    %c0_4 = arith.constant 0 : index
    %4 = vector.load %arg2[%c0_2, %c0_3, %c0_4] : memref<27x8x8xbf16, #tpu.memory_space<vmem>>, vector<1x8x8xbf16>
    %5 = vector.shape_cast %4 : vector<1x8x8xbf16> to vector<8x8xbf16>
    %cst_5 = arith.constant dense<0.000000e+00> : vector<8x896xf32>
    %6 = tpu.matmul %5, %3, %cst_5 {dimension_numbers = #tpu.dot_dimension_numbers<[1], [0], [0], [1], [0, 0, 1, 1], [], []>} : vector<8x8xbf16>, vector<8x896xbf16>, vector<8x896xf32> -> vector<8x896xf32>
    %7 = arith.addf %2, %6 : vector<8x896xf32>
    %8 = vector.extract_strided_slice %1 {offsets = [0, 1], sizes = [8, 896], strides = [1, 1]} : vector<8x1152xbf16> to vector<8x896xbf16>
    %c1 = arith.constant 1 : index
    %c0_6 = arith.constant 0 : index
    %c0_7 = arith.constant 0 : index
    %9 = vector.load %arg2[%c1, %c0_6, %c0_7] : memref<27x8x8xbf16, #tpu.memory_space<vmem>>, vector<1x8x8xbf16>
    %10 = vector.shape_cast %9 : vector<1x8x8xbf16> to vector<8x8xbf16>
    %cst_8 = arith.constant dense<0.000000e+00> : vector<8x896xf32>
    %11 = tpu.matmul %10, %8, %cst_8 {dimension_numbers = #tpu.dot_dimension_numbers<[1], [0], [0], [1], [0, 0, 1, 1], [], []>} : vector<8x8xbf16>, vector<8x896xbf16>, vector<8x896xf32> -> vector<8x896xf32>
    %12 = arith.addf %7, %11 : vector<8x896xf32>
    %13 = vector.extract_strided_slice %1 {offsets = [0, 2], sizes = [8, 896], strides = [1, 1]} : vector<8x1152xbf16> to vector<8x896xbf16>
    %c2 = arith.constant 2 : index
    %c0_9 = arith.constant 0 : index
    %c0_10 = arith.constant 0 : index
    %14 = vector.load %arg2[%c2, %c0_9, %c0_10] : memref<27x8x8xbf16, #tpu.memory_space<vmem>>, vector<1x8x8xbf16>
    %15 = vector.shape_cast %14 : vector<1x8x8xbf16> to vector<8x8xbf16>
    %cst_11 = arith.constant dense<0.000000e+00> : vector<8x896xf32>
    %16 = tpu.matmul %15, %13, %cst_11 {dimension_numbers = #tpu.dot_dimension_numbers<[1], [0], [0], [1], [0, 0, 1, 1], [], []>} : vector<8x8xbf16>, vector<8x896xbf16>, vector<8x896xf32> -> vector<8x896xf32>
    %17 = arith.addf %12, %16 : vector<8x896xf32>
    %18 = vector.extract_strided_slice %1 {offsets = [0, 10], sizes = [8, 896], strides = [1, 1]} : vector<8x1152xbf16> to vector<8x896xbf16>
    %c3 = arith.constant 3 : index
    %c0_12 = arith.constant 0 : index
    %c0_13 = arith.constant 0 : index
    %19 = vector.load %arg2[%c3, %c0_12, %c0_13] : memref<27x8x8xbf16, #tpu.memory_space<vmem>>, vector<1x8x8xbf16>
    %20 = vector.shape_cast %19 : vector<1x8x8xbf16> to vector<8x8xbf16>
    %cst_14 = arith.constant dense<0.000000e+00> : vector<8x896xf32>
    %21 = tpu.matmul %20, %18, %cst_14 {dimension_numbers = #tpu.dot_dimension_numbers<[1], [0], [0], [1], [0, 0, 1, 1], [], []>} : vector<8x8xbf16>, vector<8x896xbf16>, vector<8x896xf32> -> vector<8x896xf32>
    %22 = arith.addf %17, %21 : vector<8x896xf32>
    %23 = vector.extract_strided_slice %1 {offsets = [0, 11], sizes = [8, 896], strides = [1, 1]} : vector<8x1152xbf16> to vector<8x896xbf16>
    %c4 = arith.constant 4 : index
    %c0_15 = arith.constant 0 : index
    %c0_16 = arith.constant 0 : index
    %24 = vector.load %arg2[%c4, %c0_15, %c0_16] : memref<27x8x8xbf16, #tpu.memory_space<vmem>>, vector<1x8x8xbf16>
    %25 = vector.shape_cast %24 : vector<1x8x8xbf16> to vector<8x8xbf16>
    %cst_17 = arith.constant dense<0.000000e+00> : vector<8x896xf32>
    %26 = tpu.matmul %25, %23, %cst_17 {dimension_numbers = #tpu.dot_dimension_numbers<[1], [0], [0], [1], [0, 0, 1, 1], [], []>} : vector<8x8xbf16>, vector<8x896xbf16>, vector<8x896xf32> -> vector<8x896xf32>
    %27 = arith.addf %22, %26 : vector<8x896xf32>
    %28 = vector.extract_strided_slice %1 {offsets = [0, 12], sizes = [8, 896], strides = [1, 1]} : vector<8x1152xbf16> to vector<8x896xbf16>
    %c5 = arith.constant 5 : index
    %c0_18 = arith.constant 0 : index
    %c0_19 = arith.constant 0 : index
    %29 = vector.load %arg2[%c5, %c0_18, %c0_19] : memref<27x8x8xbf16, #tpu.memory_space<vmem>>, vector<1x8x8xbf16>
    %30 = vector.shape_cast %29 : vector<1x8x8xbf16> to vector<8x8xbf16>
    %cst_20 = arith.constant dense<0.000000e+00> : vector<8x896xf32>
    %31 = tpu.matmul %30, %28, %cst_20 {dimension_numbers = #tpu.dot_dimension_numbers<[1], [0], [0], [1], [0, 0, 1, 1], [], []>} : vector<8x8xbf16>, vector<8x896xbf16>, vector<8x896xf32> -> vector<8x896xf32>
    %32 = arith.addf %27, %31 : vector<8x896xf32>
    %33 = vector.extract_strided_slice %1 {offsets = [0, 20], sizes = [8, 896], strides = [1, 1]} : vector<8x1152xbf16> to vector<8x896xbf16>
    %c6 = arith.constant 6 : index
    %c0_21 = arith.constant 0 : index
    %c0_22 = arith.constant 0 : index
    %34 = vector.load %arg2[%c6, %c0_21, %c0_22] : memref<27x8x8xbf16, #tpu.memory_space<vmem>>, vector<1x8x8xbf16>
    %35 = vector.shape_cast %34 : vector<1x8x8xbf16> to vector<8x8xbf16>
    %cst_23 = arith.constant dense<0.000000e+00> : vector<8x896xf32>
    %36 = tpu.matmul %35, %33, %cst_23 {dimension_numbers = #tpu.dot_dimension_numbers<[1], [0], [0], [1], [0, 0, 1, 1], [], []>} : vector<8x8xbf16>, vector<8x896xbf16>, vector<8x896xf32> -> vector<8x896xf32>
    %37 = arith.addf %32, %36 : vector<8x896xf32>
    %38 = vector.extract_strided_slice %1 {offsets = [0, 21], sizes = [8, 896], strides = [1, 1]} : vector<8x1152xbf16> to vector<8x896xbf16>
    %c7 = arith.constant 7 : index
    %c0_24 = arith.constant 0 : index
    %c0_25 = arith.constant 0 : index
    %39 = vector.load %arg2[%c7, %c0_24, %c0_25] : memref<27x8x8xbf16, #tpu.memory_space<vmem>>, vector<1x8x8xbf16>
    %40 = vector.shape_cast %39 : vector<1x8x8xbf16> to vector<8x8xbf16>
    %cst_26 = arith.constant dense<0.000000e+00> : vector<8x896xf32>
    %41 = tpu.matmul %40, %38, %cst_26 {dimension_numbers = #tpu.dot_dimension_numbers<[1], [0], [0], [1], [0, 0, 1, 1], [], []>} : vector<8x8xbf16>, vector<8x896xbf16>, vector<8x896xf32> -> vector<8x896xf32>
    %42 = arith.addf %37, %41 : vector<8x896xf32>
    %43 = vector.extract_strided_slice %1 {offsets = [0, 22], sizes = [8, 896], strides = [1, 1]} : vector<8x1152xbf16> to vector<8x896xbf16>
    %c8 = arith.constant 8 : index
    %c0_27 = arith.constant 0 : index
    %c0_28 = arith.constant 0 : index
    %44 = vector.load %arg2[%c8, %c0_27, %c0_28] : memref<27x8x8xbf16, #tpu.memory_space<vmem>>, vector<1x8x8xbf16>
    %45 = vector.shape_cast %44 : vector<1x8x8xbf16> to vector<8x8xbf16>
    %cst_29 = arith.constant dense<0.000000e+00> : vector<8x896xf32>
    %46 = tpu.matmul %45, %43, %cst_29 {dimension_numbers = #tpu.dot_dimension_numbers<[1], [0], [0], [1], [0, 0, 1, 1], [], []>} : vector<8x8xbf16>, vector<8x896xbf16>, vector<8x896xf32> -> vector<8x896xf32>
    %47 = arith.addf %42, %46 : vector<8x896xf32>
    %48 = vector.extract_strided_slice %1 {offsets = [0, 100], sizes = [8, 896], strides = [1, 1]} : vector<8x1152xbf16> to vector<8x896xbf16>
    %c9 = arith.constant 9 : index
    %c0_30 = arith.constant 0 : index
    %c0_31 = arith.constant 0 : index
    %49 = vector.load %arg2[%c9, %c0_30, %c0_31] : memref<27x8x8xbf16, #tpu.memory_space<vmem>>, vector<1x8x8xbf16>
    %50 = vector.shape_cast %49 : vector<1x8x8xbf16> to vector<8x8xbf16>
    %cst_32 = arith.constant dense<0.000000e+00> : vector<8x896xf32>
    %51 = tpu.matmul %50, %48, %cst_32 {dimension_numbers = #tpu.dot_dimension_numbers<[1], [0], [0], [1], [0, 0, 1, 1], [], []>} : vector<8x8xbf16>, vector<8x896xbf16>, vector<8x896xf32> -> vector<8x896xf32>
    %52 = arith.addf %47, %51 : vector<8x896xf32>
    %53 = vector.extract_strided_slice %1 {offsets = [0, 101], sizes = [8, 896], strides = [1, 1]} : vector<8x1152xbf16> to vector<8x896xbf16>
    %c10 = arith.constant 10 : index
    %c0_33 = arith.constant 0 : index
    %c0_34 = arith.constant 0 : index
    %54 = vector.load %arg2[%c10, %c0_33, %c0_34] : memref<27x8x8xbf16, #tpu.memory_space<vmem>>, vector<1x8x8xbf16>
    %55 = vector.shape_cast %54 : vector<1x8x8xbf16> to vector<8x8xbf16>
    %cst_35 = arith.constant dense<0.000000e+00> : vector<8x896xf32>
    %56 = tpu.matmul %55, %53, %cst_35 {dimension_numbers = #tpu.dot_dimension_numbers<[1], [0], [0], [1], [0, 0, 1, 1], [], []>} : vector<8x8xbf16>, vector<8x896xbf16>, vector<8x896xf32> -> vector<8x896xf32>
    %57 = arith.addf %52, %56 : vector<8x896xf32>
    %58 = vector.extract_strided_slice %1 {offsets = [0, 102], sizes = [8, 896], strides = [1, 1]} : vector<8x1152xbf16> to vector<8x896xbf16>
    %c11 = arith.constant 11 : index
    %c0_36 = arith.constant 0 : index
    %c0_37 = arith.constant 0 : index
    %59 = vector.load %arg2[%c11, %c0_36, %c0_37] : memref<27x8x8xbf16, #tpu.memory_space<vmem>>, vector<1x8x8xbf16>
    %60 = vector.shape_cast %59 : vector<1x8x8xbf16> to vector<8x8xbf16>
    %cst_38 = arith.constant dense<0.000000e+00> : vector<8x896xf32>
    %61 = tpu.matmul %60, %58, %cst_38 {dimension_numbers = #tpu.dot_dimension_numbers<[1], [0], [0], [1], [0, 0, 1, 1], [], []>} : vector<8x8xbf16>, vector<8x896xbf16>, vector<8x896xf32> -> vector<8x896xf32>
    %62 = arith.addf %57, %61 : vector<8x896xf32>
    %63 = vector.extract_strided_slice %1 {offsets = [0, 110], sizes = [8, 896], strides = [1, 1]} : vector<8x1152xbf16> to vector<8x896xbf16>
    %c12 = arith.constant 12 : index
    %c0_39 = arith.constant 0 : index
    %c0_40 = arith.constant 0 : index
    %64 = vector.load %arg2[%c12, %c0_39, %c0_40] : memref<27x8x8xbf16, #tpu.memory_space<vmem>>, vector<1x8x8xbf16>
    %65 = vector.shape_cast %64 : vector<1x8x8xbf16> to vector<8x8xbf16>
    %cst_41 = arith.constant dense<0.000000e+00> : vector<8x896xf32>
    %66 = tpu.matmul %65, %63, %cst_41 {dimension_numbers = #tpu.dot_dimension_numbers<[1], [0], [0], [1], [0, 0, 1, 1], [], []>} : vector<8x8xbf16>, vector<8x896xbf16>, vector<8x896xf32> -> vector<8x896xf32>
    %67 = arith.addf %62, %66 : vector<8x896xf32>
    %68 = vector.extract_strided_slice %1 {offsets = [0, 111], sizes = [8, 896], strides = [1, 1]} : vector<8x1152xbf16> to vector<8x896xbf16>
    %c13 = arith.constant 13 : index
    %c0_42 = arith.constant 0 : index
    %c0_43 = arith.constant 0 : index
    %69 = vector.load %arg2[%c13, %c0_42, %c0_43] : memref<27x8x8xbf16, #tpu.memory_space<vmem>>, vector<1x8x8xbf16>
    %70 = vector.shape_cast %69 : vector<1x8x8xbf16> to vector<8x8xbf16>
    %cst_44 = arith.constant dense<0.000000e+00> : vector<8x896xf32>
    %71 = tpu.matmul %70, %68, %cst_44 {dimension_numbers = #tpu.dot_dimension_numbers<[1], [0], [0], [1], [0, 0, 1, 1], [], []>} : vector<8x8xbf16>, vector<8x896xbf16>, vector<8x896xf32> -> vector<8x896xf32>
    %72 = arith.addf %67, %71 : vector<8x896xf32>
    %73 = vector.extract_strided_slice %1 {offsets = [0, 112], sizes = [8, 896], strides = [1, 1]} : vector<8x1152xbf16> to vector<8x896xbf16>
    %c14 = arith.constant 14 : index
    %c0_45 = arith.constant 0 : index
    %c0_46 = arith.constant 0 : index
    %74 = vector.load %arg2[%c14, %c0_45, %c0_46] : memref<27x8x8xbf16, #tpu.memory_space<vmem>>, vector<1x8x8xbf16>
    %75 = vector.shape_cast %74 : vector<1x8x8xbf16> to vector<8x8xbf16>
    %cst_47 = arith.constant dense<0.000000e+00> : vector<8x896xf32>
    %76 = tpu.matmul %75, %73, %cst_47 {dimension_numbers = #tpu.dot_dimension_numbers<[1], [0], [0], [1], [0, 0, 1, 1], [], []>} : vector<8x8xbf16>, vector<8x896xbf16>, vector<8x896xf32> -> vector<8x896xf32>
    %77 = arith.addf %72, %76 : vector<8x896xf32>
    %78 = vector.extract_strided_slice %1 {offsets = [0, 120], sizes = [8, 896], strides = [1, 1]} : vector<8x1152xbf16> to vector<8x896xbf16>
    %c15 = arith.constant 15 : index
    %c0_48 = arith.constant 0 : index
    %c0_49 = arith.constant 0 : index
    %79 = vector.load %arg2[%c15, %c0_48, %c0_49] : memref<27x8x8xbf16, #tpu.memory_space<vmem>>, vector<1x8x8xbf16>
    %80 = vector.shape_cast %79 : vector<1x8x8xbf16> to vector<8x8xbf16>
    %cst_50 = arith.constant dense<0.000000e+00> : vector<8x896xf32>
    %81 = tpu.matmul %80, %78, %cst_50 {dimension_numbers = #tpu.dot_dimension_numbers<[1], [0], [0], [1], [0, 0, 1, 1], [], []>} : vector<8x8xbf16>, vector<8x896xbf16>, vector<8x896xf32> -> vector<8x896xf32>
    %82 = arith.addf %77, %81 : vector<8x896xf32>
    %83 = vector.extract_strided_slice %1 {offsets = [0, 121], sizes = [8, 896], strides = [1, 1]} : vector<8x1152xbf16> to vector<8x896xbf16>
    %c16 = arith.constant 16 : index
    %c0_51 = arith.constant 0 : index
    %c0_52 = arith.constant 0 : index
    %84 = vector.load %arg2[%c16, %c0_51, %c0_52] : memref<27x8x8xbf16, #tpu.memory_space<vmem>>, vector<1x8x8xbf16>
    %85 = vector.shape_cast %84 : vector<1x8x8xbf16> to vector<8x8xbf16>
    %cst_53 = arith.constant dense<0.000000e+00> : vector<8x896xf32>
    %86 = tpu.matmul %85, %83, %cst_53 {dimension_numbers = #tpu.dot_dimension_numbers<[1], [0], [0], [1], [0, 0, 1, 1], [], []>} : vector<8x8xbf16>, vector<8x896xbf16>, vector<8x896xf32> -> vector<8x896xf32>
    %87 = arith.addf %82, %86 : vector<8x896xf32>
    %88 = vector.extract_strided_slice %1 {offsets = [0, 122], sizes = [8, 896], strides = [1, 1]} : vector<8x1152xbf16> to vector<8x896xbf16>
    %c17 = arith.constant 17 : index
    %c0_54 = arith.constant 0 : index
    %c0_55 = arith.constant 0 : index
    %89 = vector.load %arg2[%c17, %c0_54, %c0_55] : memref<27x8x8xbf16, #tpu.memory_space<vmem>>, vector<1x8x8xbf16>
    %90 = vector.shape_cast %89 : vector<1x8x8xbf16> to vector<8x8xbf16>
    %cst_56 = arith.constant dense<0.000000e+00> : vector<8x896xf32>
    %91 = tpu.matmul %90, %88, %cst_56 {dimension_numbers = #tpu.dot_dimension_numbers<[1], [0], [0], [1], [0, 0, 1, 1], [], []>} : vector<8x8xbf16>, vector<8x896xbf16>, vector<8x896xf32> -> vector<8x896xf32>
    %92 = arith.addf %87, %91 : vector<8x896xf32>
    %93 = vector.extract_strided_slice %1 {offsets = [0, 200], sizes = [8, 896], strides = [1, 1]} : vector<8x1152xbf16> to vector<8x896xbf16>
    %c18 = arith.constant 18 : index
    %c0_57 = arith.constant 0 : index
    %c0_58 = arith.constant 0 : index
    %94 = vector.load %arg2[%c18, %c0_57, %c0_58] : memref<27x8x8xbf16, #tpu.memory_space<vmem>>, vector<1x8x8xbf16>
    %95 = vector.shape_cast %94 : vector<1x8x8xbf16> to vector<8x8xbf16>
    %cst_59 = arith.constant dense<0.000000e+00> : vector<8x896xf32>
    %96 = tpu.matmul %95, %93, %cst_59 {dimension_numbers = #tpu.dot_dimension_numbers<[1], [0], [0], [1], [0, 0, 1, 1], [], []>} : vector<8x8xbf16>, vector<8x896xbf16>, vector<8x896xf32> -> vector<8x896xf32>
    %97 = arith.addf %92, %96 : vector<8x896xf32>
    %98 = vector.extract_strided_slice %1 {offsets = [0, 201], sizes = [8, 896], strides = [1, 1]} : vector<8x1152xbf16> to vector<8x896xbf16>
    %c19 = arith.constant 19 : index
    %c0_60 = arith.constant 0 : index
    %c0_61 = arith.constant 0 : index
    %99 = vector.load %arg2[%c19, %c0_60, %c0_61] : memref<27x8x8xbf16, #tpu.memory_space<vmem>>, vector<1x8x8xbf16>
    %100 = vector.shape_cast %99 : vector<1x8x8xbf16> to vector<8x8xbf16>
    %cst_62 = arith.constant dense<0.000000e+00> : vector<8x896xf32>
    %101 = tpu.matmul %100, %98, %cst_62 {dimension_numbers = #tpu.dot_dimension_numbers<[1], [0], [0], [1], [0, 0, 1, 1], [], []>} : vector<8x8xbf16>, vector<8x896xbf16>, vector<8x896xf32> -> vector<8x896xf32>
    %102 = arith.addf %97, %101 : vector<8x896xf32>
    %103 = vector.extract_strided_slice %1 {offsets = [0, 202], sizes = [8, 896], strides = [1, 1]} : vector<8x1152xbf16> to vector<8x896xbf16>
    %c20 = arith.constant 20 : index
    %c0_63 = arith.constant 0 : index
    %c0_64 = arith.constant 0 : index
    %104 = vector.load %arg2[%c20, %c0_63, %c0_64] : memref<27x8x8xbf16, #tpu.memory_space<vmem>>, vector<1x8x8xbf16>
    %105 = vector.shape_cast %104 : vector<1x8x8xbf16> to vector<8x8xbf16>
    %cst_65 = arith.constant dense<0.000000e+00> : vector<8x896xf32>
    %106 = tpu.matmul %105, %103, %cst_65 {dimension_numbers = #tpu.dot_dimension_numbers<[1], [0], [0], [1], [0, 0, 1, 1], [], []>} : vector<8x8xbf16>, vector<8x896xbf16>, vector<8x896xf32> -> vector<8x896xf32>
    %107 = arith.addf %102, %106 : vector<8x896xf32>
    %108 = vector.extract_strided_slice %1 {offsets = [0, 210], sizes = [8, 896], strides = [1, 1]} : vector<8x1152xbf16> to vector<8x896xbf16>
    %c21 = arith.constant 21 : index
    %c0_66 = arith.constant 0 : index
    %c0_67 = arith.constant 0 : index
    %109 = vector.load %arg2[%c21, %c0_66, %c0_67] : memref<27x8x8xbf16, #tpu.memory_space<vmem>>, vector<1x8x8xbf16>
    %110 = vector.shape_cast %109 : vector<1x8x8xbf16> to vector<8x8xbf16>
    %cst_68 = arith.constant dense<0.000000e+00> : vector<8x896xf32>
    %111 = tpu.matmul %110, %108, %cst_68 {dimension_numbers = #tpu.dot_dimension_numbers<[1], [0], [0], [1], [0, 0, 1, 1], [], []>} : vector<8x8xbf16>, vector<8x896xbf16>, vector<8x896xf32> -> vector<8x896xf32>
    %112 = arith.addf %107, %111 : vector<8x896xf32>
    %113 = vector.extract_strided_slice %1 {offsets = [0, 211], sizes = [8, 896], strides = [1, 1]} : vector<8x1152xbf16> to vector<8x896xbf16>
    %c22 = arith.constant 22 : index
    %c0_69 = arith.constant 0 : index
    %c0_70 = arith.constant 0 : index
    %114 = vector.load %arg2[%c22, %c0_69, %c0_70] : memref<27x8x8xbf16, #tpu.memory_space<vmem>>, vector<1x8x8xbf16>
    %115 = vector.shape_cast %114 : vector<1x8x8xbf16> to vector<8x8xbf16>
    %cst_71 = arith.constant dense<0.000000e+00> : vector<8x896xf32>
    %116 = tpu.matmul %115, %113, %cst_71 {dimension_numbers = #tpu.dot_dimension_numbers<[1], [0], [0], [1], [0, 0, 1, 1], [], []>} : vector<8x8xbf16>, vector<8x896xbf16>, vector<8x896xf32> -> vector<8x896xf32>
    %117 = arith.addf %112, %116 : vector<8x896xf32>
    %118 = vector.extract_strided_slice %1 {offsets = [0, 212], sizes = [8, 896], strides = [1, 1]} : vector<8x1152xbf16> to vector<8x896xbf16>
    %c23 = arith.constant 23 : index
    %c0_72 = arith.constant 0 : index
    %c0_73 = arith.constant 0 : index
    %119 = vector.load %arg2[%c23, %c0_72, %c0_73] : memref<27x8x8xbf16, #tpu.memory_space<vmem>>, vector<1x8x8xbf16>
    %120 = vector.shape_cast %119 : vector<1x8x8xbf16> to vector<8x8xbf16>
    %cst_74 = arith.constant dense<0.000000e+00> : vector<8x896xf32>
    %121 = tpu.matmul %120, %118, %cst_74 {dimension_numbers = #tpu.dot_dimension_numbers<[1], [0], [0], [1], [0, 0, 1, 1], [], []>} : vector<8x8xbf16>, vector<8x896xbf16>, vector<8x896xf32> -> vector<8x896xf32>
    %122 = arith.addf %117, %121 : vector<8x896xf32>
    %123 = vector.extract_strided_slice %1 {offsets = [0, 220], sizes = [8, 896], strides = [1, 1]} : vector<8x1152xbf16> to vector<8x896xbf16>
    %c24 = arith.constant 24 : index
    %c0_75 = arith.constant 0 : index
    %c0_76 = arith.constant 0 : index
    %124 = vector.load %arg2[%c24, %c0_75, %c0_76] : memref<27x8x8xbf16, #tpu.memory_space<vmem>>, vector<1x8x8xbf16>
    %125 = vector.shape_cast %124 : vector<1x8x8xbf16> to vector<8x8xbf16>
    %cst_77 = arith.constant dense<0.000000e+00> : vector<8x896xf32>
    %126 = tpu.matmul %125, %123, %cst_77 {dimension_numbers = #tpu.dot_dimension_numbers<[1], [0], [0], [1], [0, 0, 1, 1], [], []>} : vector<8x8xbf16>, vector<8x896xbf16>, vector<8x896xf32> -> vector<8x896xf32>
    %127 = arith.addf %122, %126 : vector<8x896xf32>
    %128 = vector.extract_strided_slice %1 {offsets = [0, 221], sizes = [8, 896], strides = [1, 1]} : vector<8x1152xbf16> to vector<8x896xbf16>
    %c25 = arith.constant 25 : index
    %c0_78 = arith.constant 0 : index
    %c0_79 = arith.constant 0 : index
    %129 = vector.load %arg2[%c25, %c0_78, %c0_79] : memref<27x8x8xbf16, #tpu.memory_space<vmem>>, vector<1x8x8xbf16>
    %130 = vector.shape_cast %129 : vector<1x8x8xbf16> to vector<8x8xbf16>
    %cst_80 = arith.constant dense<0.000000e+00> : vector<8x896xf32>
    %131 = tpu.matmul %130, %128, %cst_80 {dimension_numbers = #tpu.dot_dimension_numbers<[1], [0], [0], [1], [0, 0, 1, 1], [], []>} : vector<8x8xbf16>, vector<8x896xbf16>, vector<8x896xf32> -> vector<8x896xf32>
    %132 = arith.addf %127, %131 : vector<8x896xf32>
    %133 = vector.extract_strided_slice %1 {offsets = [0, 222], sizes = [8, 896], strides = [1, 1]} : vector<8x1152xbf16> to vector<8x896xbf16>
    %c26 = arith.constant 26 : index
    %c0_81 = arith.constant 0 : index
    %c0_82 = arith.constant 0 : index
    %134 = vector.load %arg2[%c26, %c0_81, %c0_82] : memref<27x8x8xbf16, #tpu.memory_space<vmem>>, vector<1x8x8xbf16>
    %135 = vector.shape_cast %134 : vector<1x8x8xbf16> to vector<8x8xbf16>
    %cst_83 = arith.constant dense<0.000000e+00> : vector<8x896xf32>
    %136 = tpu.matmul %135, %133, %cst_83 {dimension_numbers = #tpu.dot_dimension_numbers<[1], [0], [0], [1], [0, 0, 1, 1], [], []>} : vector<8x8xbf16>, vector<8x896xbf16>, vector<8x896xf32> -> vector<8x896xf32>
    %137 = arith.addf %132, %136 : vector<8x896xf32>
    %c0_84 = arith.constant 0 : index
    %c0_85 = arith.constant 0 : index
    %138 = vector.load %arg3[%c0_84, %c0_85] : memref<8x1xf32, #tpu.memory_space<vmem>>, vector<8x1xf32>
    %139 = vector.broadcast %138 : vector<8x1xf32> to vector<8x896xf32>
    %140 = arith.addf %137, %139 : vector<8x896xf32>
    %c0_86 = arith.constant 0 : index
    %c0_87 = arith.constant 0 : index
    %141 = vector.load %arg6[%c0_86, %c0_87] : memref<1x896xf32, #tpu.memory_space<vmem>>, vector<1x896xf32>
    %142 = vector.broadcast %141 : vector<1x896xf32> to vector<8x896xf32>
    %143 = arith.mulf %140, %142 : vector<8x896xf32>
    %cst_88 = arith.constant dense<0.000000e+00> : vector<8xf32>
    %144 = vector.multi_reduction <add>, %143, %cst_88 [1] : vector<8x896xf32> to vector<8xf32>
    %145 = vector.shape_cast %144 : vector<8xf32> to vector<8x1xf32>
    %cst_89 = arith.constant 0.001953125 : f32
    %146 = vector.broadcast %cst_89 : f32 to vector<8x1xf32>
    %147 = arith.mulf %145, %146 : vector<8x1xf32>
    %148 = arith.mulf %140, %140 : vector<8x896xf32>
    %149 = vector.broadcast %141 : vector<1x896xf32> to vector<8x896xf32>
    %150 = arith.mulf %148, %149 : vector<8x896xf32>
    %cst_90 = arith.constant dense<0.000000e+00> : vector<8xf32>
    %151 = vector.multi_reduction <add>, %150, %cst_90 [1] : vector<8x896xf32> to vector<8xf32>
    %152 = vector.shape_cast %151 : vector<8xf32> to vector<8x1xf32>
    %cst_91 = arith.constant 0.001953125 : f32
    %153 = vector.broadcast %cst_91 : f32 to vector<8x1xf32>
    %154 = arith.mulf %152, %153 : vector<8x1xf32>
    %155 = arith.mulf %147, %147 : vector<8x1xf32>
    %156 = arith.subf %154, %155 : vector<8x1xf32>
    %cst_92 = arith.constant 0.000000e+00 : f32
    %157 = vector.broadcast %cst_92 : f32 to vector<8x1xf32>
    %158 = arith.maximumf %156, %157 : vector<8x1xf32>
    %159 = vector.broadcast %147 : vector<8x1xf32> to vector<8x896xf32>
    %160 = arith.subf %140, %159 : vector<8x896xf32>
    %cst_93 = arith.constant 9.99999974E-6 : f32
    %161 = vector.broadcast %cst_93 : f32 to vector<8x1xf32>
    %162 = arith.addf %158, %161 : vector<8x1xf32>
    %163 = math.rsqrt %162 : vector<8x1xf32>
    %164 = vector.broadcast %163 : vector<8x1xf32> to vector<8x896xf32>
    %165 = arith.mulf %160, %164 : vector<8x896xf32>
    %c0_94 = arith.constant 0 : index
    %c0_95 = arith.constant 0 : index
    %166 = vector.load %arg4[%c0_94, %c0_95] : memref<8x1xf32, #tpu.memory_space<vmem>>, vector<8x1xf32>
    %167 = vector.broadcast %166 : vector<8x1xf32> to vector<8x896xf32>
    %168 = arith.mulf %165, %167 : vector<8x896xf32>
    %c0_96 = arith.constant 0 : index
    %c0_97 = arith.constant 0 : index
    %169 = vector.load %arg5[%c0_96, %c0_97] : memref<8x1xf32, #tpu.memory_space<vmem>>, vector<8x1xf32>
    %170 = vector.broadcast %169 : vector<8x1xf32> to vector<8x896xf32>
    %171 = arith.addf %168, %170 : vector<8x896xf32>
    %cst_98 = arith.constant 0.000000e+00 : f32
    %172 = vector.broadcast %cst_98 : f32 to vector<8x896xf32>
    %173 = arith.cmpf oge, %171, %172 : vector<8x896xf32>
    %cst_99 = arith.constant 0.229166672 : f32
    %174 = vector.broadcast %cst_99 : f32 to vector<8x896xf32>
    %175 = arith.mulf %174, %171 : vector<8x896xf32>
    %176 = arith.select %173, %171, %175 : vector<8x896xi1>, vector<8x896xf32>
    %c0_100 = arith.constant 0 : index
    %c0_101 = arith.constant 0 : index
    %c0_102 = arith.constant 0 : index
    %177 = vector.load %arg7[%c0_100, %c0_101, %c0_102] : memref<1x8x896xf32, #tpu.memory_space<vmem>>, vector<1x8x896xf32>
    %178 = vector.shape_cast %177 : vector<1x8x896xf32> to vector<8x896xf32>
    %179 = vector.shape_cast %176 : vector<8x896xf32> to vector<1x8x896xf32>
    tpu.vector_store %arg7[%c0_100, %c0_101, %c0_102], %179 {strides = array<i32>} : memref<1x8x896xf32, #tpu.memory_space<vmem>>, vector<1x8x896xf32>,
    return
  }
  func.func @transform_0(%arg0: i32) -> (i32, i32, i32) {
    %c0_i32 = arith.constant 0 : i32
    %c0_i32_0 = arith.constant 0 : i32
    %c0_i32_1 = arith.constant 0 : i32
    return %arg0, %c0_i32, %c0_i32_0 : i32, i32, i32
  }
  func.func @transform_1(%arg0: i32) -> (i32, i32, i32) {
    %c0_i32 = arith.constant 0 : i32
    %c0_i32_0 = arith.constant 0 : i32
    %c0_i32_1 = arith.constant 0 : i32
    %c0_i32_2 = arith.constant 0 : i32
    return %c0_i32, %c0_i32_0, %c0_i32_1 : i32, i32, i32
  }
  func.func @transform_2(%arg0: i32) -> (i32, i32) {
    %c0_i32 = arith.constant 0 : i32
    %c0_i32_0 = arith.constant 0 : i32
    %c0_i32_1 = arith.constant 0 : i32
    return %c0_i32, %c0_i32_0 : i32, i32
  }
  func.func @transform_3(%arg0: i32) -> (i32, i32) {
    %c0_i32 = arith.constant 0 : i32
    %c0_i32_0 = arith.constant 0 : i32
    %c0_i32_1 = arith.constant 0 : i32
    return %c0_i32, %c0_i32_0 : i32, i32
  }
  func.func @transform_4(%arg0: i32) -> (i32, i32) {
    %c0_i32 = arith.constant 0 : i32
    %c0_i32_0 = arith.constant 0 : i32
    %c0_i32_1 = arith.constant 0 : i32
    return %c0_i32, %c0_i32_0 : i32, i32
  }
  func.func @transform_5(%arg0: i32) -> (i32, i32) {
    %c0_i32 = arith.constant 0 : i32
    %c0_i32_0 = arith.constant 0 : i32
    %c0_i32_1 = arith.constant 0 : i32
    return %c0_i32, %c0_i32_0 : i32, i32
  }
  func.func @transform_6(%arg0: i32) -> (i32, i32, i32) {
    %c0_i32 = arith.constant 0 : i32
    %c0_i32_0 = arith.constant 0 : i32
    %c0_i32_1 = arith.constant 0 : i32
    return %arg0, %c0_i32, %c0_i32_0 : i32, i32, i32
  }
}

module attributes {stable_mosaic.version = 11 : i64} {
  func.func @_conv_gn_act_kernel(%arg0: i32, %arg1: memref<1x8x1152xbf16, #tpu.memory_space<vmem>>, %arg2: memref<27x8x8xbf16, #tpu.memory_space<vmem>>, %arg3: memref<8x1xf32, #tpu.memory_space<vmem>>, %arg4: memref<8x1xf32, #tpu.memory_space<vmem>>, %arg5: memref<8x1xf32, #tpu.memory_space<vmem>>, %arg6: memref<1x896xf32, #tpu.memory_space<vmem>>, %arg7: memref<1x8x896xf32, #tpu.memory_space<vmem>>) attributes {dimension_semantics = [#tpu.dimension_semantics<parallel>], iteration_bounds = array<i64: 2>, scalar_prefetch = 0 : i64, scratch_operands = 0 : i64, tpu.core_type = #tpu.core_type<tc>, window_params = [{transform_indices = @transform_0, window_bounds = array<i64: 1, 8, 1152>}, {pipeline_mode = #tpu.pipeline_mode<synchronous>, transform_indices = @transform_1, window_bounds = array<i64: 27, 8, 8>}, {pipeline_mode = #tpu.pipeline_mode<synchronous>, transform_indices = @transform_2, window_bounds = array<i64: 8, 1>}, {pipeline_mode = #tpu.pipeline_mode<synchronous>, transform_indices = @transform_3, window_bounds = array<i64: 8, 1>}, {pipeline_mode = #tpu.pipeline_mode<synchronous>, transform_indices = @transform_4, window_bounds = array<i64: 8, 1>}, {pipeline_mode = #tpu.pipeline_mode<synchronous>, transform_indices = @transform_5, window_bounds = array<i64: 1, 896>}, {transform_indices = @transform_6, window_bounds = array<i64: 1, 8, 896>}]} {
    %c0 = arith.constant 0 : index
    %c0_0 = arith.constant 0 : index
    %c0_1 = arith.constant 0 : index
    %0 = vector.load %arg1[%c0, %c0_0, %c0_1] : memref<1x8x1152xbf16, #tpu.memory_space<vmem>>, vector<1x8x1152xbf16>
    %1 = vector.shape_cast %0 : vector<1x8x1152xbf16> to vector<8x1152xbf16>
    %cst = arith.constant 0.000000e+00 : f32
    %2 = vector.broadcast %cst : f32 to vector<8x896xf32>
    %3 = vector.extract_strided_slice %1 {offsets = [0, 0], sizes = [8, 896], strides = [1, 1]} : vector<8x1152xbf16> to vector<8x896xbf16>
    %c0_2 = arith.constant 0 : index
    %c0_3 = arith.constant 0 : index
    %c0_4 = arith.constant 0 : index
    %4 = vector.load %arg2[%c0_2, %c0_3, %c0_4] : memref<27x8x8xbf16, #tpu.memory_space<vmem>>, vector<1x8x8xbf16>
    %5 = vector.shape_cast %4 : vector<1x8x8xbf16> to vector<8x8xbf16>
    %cst_5 = arith.constant dense<0.000000e+00> : vector<8x896xf32>
    %6 = tpu.matmul %5, %3, %cst_5 {dimension_numbers = #tpu.dot_dimension_numbers<[1], [0], [0], [1], [0, 0, 1, 1], [], []>} : vector<8x8xbf16>, vector<8x896xbf16>, vector<8x896xf32> -> vector<8x896xf32>
    %7 = arith.addf %2, %6 : vector<8x896xf32>
    %8 = vector.extract_strided_slice %1 {offsets = [0, 1], sizes = [8, 896], strides = [1, 1]} : vector<8x1152xbf16> to vector<8x896xbf16>
    %c1 = arith.constant 1 : index
    %c0_6 = arith.constant 0 : index
    %c0_7 = arith.constant 0 : index
    %9 = vector.load %arg2[%c1, %c0_6, %c0_7] : memref<27x8x8xbf16, #tpu.memory_space<vmem>>, vector<1x8x8xbf16>
    %10 = vector.shape_cast %9 : vector<1x8x8xbf16> to vector<8x8xbf16>
    %cst_8 = arith.constant dense<0.000000e+00> : vector<8x896xf32>
    %11 = tpu.matmul %10, %8, %cst_8 {dimension_numbers = #tpu.dot_dimension_numbers<[1], [0], [0], [1], [0, 0, 1, 1], [], []>} : vector<8x8xbf16>, vector<8x896xbf16>, vector<8x896xf32> -> vector<8x896xf32>
    %12 = arith.addf %7, %11 : vector<8x896xf32>
    %13 = vector.extract_strided_slice %1 {offsets = [0, 2], sizes = [8, 896], strides = [1, 1]} : vector<8x1152xbf16> to vector<8x896xbf16>
    %c2 = arith.constant 2 : index
    %c0_9 = arith.constant 0 : index
    %c0_10 = arith.constant 0 : index
    %14 = vector.load %arg2[%c2, %c0_9, %c0_10] : memref<27x8x8xbf16, #tpu.memory_space<vmem>>, vector<1x8x8xbf16>
    %15 = vector.shape_cast %14 : vector<1x8x8xbf16> to vector<8x8xbf16>
    %cst_11 = arith.constant dense<0.000000e+00> : vector<8x896xf32>
    %16 = tpu.matmul %15, %13, %cst_11 {dimension_numbers = #tpu.dot_dimension_numbers<[1], [0], [0], [1], [0, 0, 1, 1], [], []>} : vector<8x8xbf16>, vector<8x896xbf16>, vector<8x896xf32> -> vector<8x896xf32>
    %17 = arith.addf %12, %16 : vector<8x896xf32>
    %18 = vector.extract_strided_slice %1 {offsets = [0, 10], sizes = [8, 896], strides = [1, 1]} : vector<8x1152xbf16> to vector<8x896xbf16>
    %c3 = arith.constant 3 : index
    %c0_12 = arith.constant 0 : index
    %c0_13 = arith.constant 0 : index
    %19 = vector.load %arg2[%c3, %c0_12, %c0_13] : memref<27x8x8xbf16, #tpu.memory_space<vmem>>, vector<1x8x8xbf16>
    %20 = vector.shape_cast %19 : vector<1x8x8xbf16> to vector<8x8xbf16>
    %cst_14 = arith.constant dense<0.000000e+00> : vector<8x896xf32>
    %21 = tpu.matmul %20, %18, %cst_14 {dimension_numbers = #tpu.dot_dimension_numbers<[1], [0], [0], [1], [0, 0, 1, 1], [], []>} : vector<8x8xbf16>, vector<8x896xbf16>, vector<8x896xf32> -> vector<8x896xf32>
    %22 = arith.addf %17, %21 : vector<8x896xf32>
    %23 = vector.extract_strided_slice %1 {offsets = [0, 11], sizes = [8, 896], strides = [1, 1]} : vector<8x1152xbf16> to vector<8x896xbf16>
    %c4 = arith.constant 4 : index
    %c0_15 = arith.constant 0 : index
    %c0_16 = arith.constant 0 : index
    %24 = vector.load %arg2[%c4, %c0_15, %c0_16] : memref<27x8x8xbf16, #tpu.memory_space<vmem>>, vector<1x8x8xbf16>
    %25 = vector.shape_cast %24 : vector<1x8x8xbf16> to vector<8x8xbf16>
    %cst_17 = arith.constant dense<0.000000e+00> : vector<8x896xf32>
    %26 = tpu.matmul %25, %23, %cst_17 {dimension_numbers = #tpu.dot_dimension_numbers<[1], [0], [0], [1], [0, 0, 1, 1], [], []>} : vector<8x8xbf16>, vector<8x896xbf16>, vector<8x896xf32> -> vector<8x896xf32>
    %27 = arith.addf %22, %26 : vector<8x896xf32>
    %28 = vector.extract_strided_slice %1 {offsets = [0, 12], sizes = [8, 896], strides = [1, 1]} : vector<8x1152xbf16> to vector<8x896xbf16>
    %c5 = arith.constant 5 : index
    %c0_18 = arith.constant 0 : index
    %c0_19 = arith.constant 0 : index
    %29 = vector.load %arg2[%c5, %c0_18, %c0_19] : memref<27x8x8xbf16, #tpu.memory_space<vmem>>, vector<1x8x8xbf16>
    %30 = vector.shape_cast %29 : vector<1x8x8xbf16> to vector<8x8xbf16>
    %cst_20 = arith.constant dense<0.000000e+00> : vector<8x896xf32>
    %31 = tpu.matmul %30, %28, %cst_20 {dimension_numbers = #tpu.dot_dimension_numbers<[1], [0], [0], [1], [0, 0, 1, 1], [], []>} : vector<8x8xbf16>, vector<8x896xbf16>, vector<8x896xf32> -> vector<8x896xf32>
    %32 = arith.addf %27, %31 : vector<8x896xf32>
    %33 = vector.extract_strided_slice %1 {offsets = [0, 20], sizes = [8, 896], strides = [1, 1]} : vector<8x1152xbf16> to vector<8x896xbf16>
    %c6 = arith.constant 6 : index
    %c0_21 = arith.constant 0 : index
    %c0_22 = arith.constant 0 : index
    %34 = vector.load %arg2[%c6, %c0_21, %c0_22] : memref<27x8x8xbf16, #tpu.memory_space<vmem>>, vector<1x8x8xbf16>
    %35 = vector.shape_cast %34 : vector<1x8x8xbf16> to vector<8x8xbf16>
    %cst_23 = arith.constant dense<0.000000e+00> : vector<8x896xf32>
    %36 = tpu.matmul %35, %33, %cst_23 {dimension_numbers = #tpu.dot_dimension_numbers<[1], [0], [0], [1], [0, 0, 1, 1], [], []>} : vector<8x8xbf16>, vector<8x896xbf16>, vector<8x896xf32> -> vector<8x896xf32>
    %37 = arith.addf %32, %36 : vector<8x896xf32>
    %38 = vector.extract_strided_slice %1 {offsets = [0, 21], sizes = [8, 896], strides = [1, 1]} : vector<8x1152xbf16> to vector<8x896xbf16>
    %c7 = arith.constant 7 : index
    %c0_24 = arith.constant 0 : index
    %c0_25 = arith.constant 0 : index
    %39 = vector.load %arg2[%c7, %c0_24, %c0_25] : memref<27x8x8xbf16, #tpu.memory_space<vmem>>, vector<1x8x8xbf16>
    %40 = vector.shape_cast %39 : vector<1x8x8xbf16> to vector<8x8xbf16>
    %cst_26 = arith.constant dense<0.000000e+00> : vector<8x896xf32>
    %41 = tpu.matmul %40, %38, %cst_26 {dimension_numbers = #tpu.dot_dimension_numbers<[1], [0], [0], [1], [0, 0, 1, 1], [], []>} : vector<8x8xbf16>, vector<8x896xbf16>, vector<8x896xf32> -> vector<8x896xf32>
    %42 = arith.addf %37, %41 : vector<8x896xf32>
    %43 = vector.extract_strided_slice %1 {offsets = [0, 22], sizes = [8, 896], strides = [1, 1]} : vector<8x1152xbf16> to vector<8x896xbf16>
    %c8 = arith.constant 8 : index
    %c0_27 = arith.constant 0 : index
    %c0_28 = arith.constant 0 : index
    %44 = vector.load %arg2[%c8, %c0_27, %c0_28] : memref<27x8x8xbf16, #tpu.memory_space<vmem>>, vector<1x8x8xbf16>
    %45 = vector.shape_cast %44 : vector<1x8x8xbf16> to vector<8x8xbf16>
    %cst_29 = arith.constant dense<0.000000e+00> : vector<8x896xf32>
    %46 = tpu.matmul %45, %43, %cst_29 {dimension_numbers = #tpu.dot_dimension_numbers<[1], [0], [0], [1], [0, 0, 1, 1], [], []>} : vector<8x8xbf16>, vector<8x896xbf16>, vector<8x896xf32> -> vector<8x896xf32>
    %47 = arith.addf %42, %46 : vector<8x896xf32>
    %48 = vector.extract_strided_slice %1 {offsets = [0, 100], sizes = [8, 896], strides = [1, 1]} : vector<8x1152xbf16> to vector<8x896xbf16>
    %c9 = arith.constant 9 : index
    %c0_30 = arith.constant 0 : index
    %c0_31 = arith.constant 0 : index
    %49 = vector.load %arg2[%c9, %c0_30, %c0_31] : memref<27x8x8xbf16, #tpu.memory_space<vmem>>, vector<1x8x8xbf16>
    %50 = vector.shape_cast %49 : vector<1x8x8xbf16> to vector<8x8xbf16>
    %cst_32 = arith.constant dense<0.000000e+00> : vector<8x896xf32>
    %51 = tpu.matmul %50, %48, %cst_32 {dimension_numbers = #tpu.dot_dimension_numbers<[1], [0], [0], [1], [0, 0, 1, 1], [], []>} : vector<8x8xbf16>, vector<8x896xbf16>, vector<8x896xf32> -> vector<8x896xf32>
    %52 = arith.addf %47, %51 : vector<8x896xf32>
    %53 = vector.extract_strided_slice %1 {offsets = [0, 101], sizes = [8, 896], strides = [1, 1]} : vector<8x1152xbf16> to vector<8x896xbf16>
    %c10 = arith.constant 10 : index
    %c0_33 = arith.constant 0 : index
    %c0_34 = arith.constant 0 : index
    %54 = vector.load %arg2[%c10, %c0_33, %c0_34] : memref<27x8x8xbf16, #tpu.memory_space<vmem>>, vector<1x8x8xbf16>
    %55 = vector.shape_cast %54 : vector<1x8x8xbf16> to vector<8x8xbf16>
    %cst_35 = arith.constant dense<0.000000e+00> : vector<8x896xf32>
    %56 = tpu.matmul %55, %53, %cst_35 {dimension_numbers = #tpu.dot_dimension_numbers<[1], [0], [0], [1], [0, 0, 1, 1], [], []>} : vector<8x8xbf16>, vector<8x896xbf16>, vector<8x896xf32> -> vector<8x896xf32>
    %57 = arith.addf %52, %56 : vector<8x896xf32>
    %58 = vector.extract_strided_slice %1 {offsets = [0, 102], sizes = [8, 896], strides = [1, 1]} : vector<8x1152xbf16> to vector<8x896xbf16>
    %c11 = arith.constant 11 : index
    %c0_36 = arith.constant 0 : index
    %c0_37 = arith.constant 0 : index
    %59 = vector.load %arg2[%c11, %c0_36, %c0_37] : memref<27x8x8xbf16, #tpu.memory_space<vmem>>, vector<1x8x8xbf16>
    %60 = vector.shape_cast %59 : vector<1x8x8xbf16> to vector<8x8xbf16>
    %cst_38 = arith.constant dense<0.000000e+00> : vector<8x896xf32>
    %61 = tpu.matmul %60, %58, %cst_38 {dimension_numbers = #tpu.dot_dimension_numbers<[1], [0], [0], [1], [0, 0, 1, 1], [], []>} : vector<8x8xbf16>, vector<8x896xbf16>, vector<8x896xf32> -> vector<8x896xf32>
    %62 = arith.addf %57, %61 : vector<8x896xf32>
    %63 = vector.extract_strided_slice %1 {offsets = [0, 110], sizes = [8, 896], strides = [1, 1]} : vector<8x1152xbf16> to vector<8x896xbf16>
    %c12 = arith.constant 12 : index
    %c0_39 = arith.constant 0 : index
    %c0_40 = arith.constant 0 : index
    %64 = vector.load %arg2[%c12, %c0_39, %c0_40] : memref<27x8x8xbf16, #tpu.memory_space<vmem>>, vector<1x8x8xbf16>
    %65 = vector.shape_cast %64 : vector<1x8x8xbf16> to vector<8x8xbf16>
    %cst_41 = arith.constant dense<0.000000e+00> : vector<8x896xf32>
    %66 = tpu.matmul %65, %63, %cst_41 {dimension_numbers = #tpu.dot_dimension_numbers<[1], [0], [0], [1], [0, 0, 1, 1], [], []>} : vector<8x8xbf16>, vector<8x896xbf16>, vector<8x896xf32> -> vector<8x896xf32>
    %67 = arith.addf %62, %66 : vector<8x896xf32>
    %68 = vector.extract_strided_slice %1 {offsets = [0, 111], sizes = [8, 896], strides = [1, 1]} : vector<8x1152xbf16> to vector<8x896xbf16>
    %c13 = arith.constant 13 : index
    %c0_42 = arith.constant 0 : index
    %c0_43 = arith.constant 0 : index
    %69 = vector.load %arg2[%c13, %c0_42, %c0_43] : memref<27x8x8xbf16, #tpu.memory_space<vmem>>, vector<1x8x8xbf16>
    %70 = vector.shape_cast %69 : vector<1x8x8xbf16> to vector<8x8xbf16>
    %cst_44 = arith.constant dense<0.000000e+00> : vector<8x896xf32>
    %71 = tpu.matmul %70, %68, %cst_44 {dimension_numbers = #tpu.dot_dimension_numbers<[1], [0], [0], [1], [0, 0, 1, 1], [], []>} : vector<8x8xbf16>, vector<8x896xbf16>, vector<8x896xf32> -> vector<8x896xf32>
    %72 = arith.addf %67, %71 : vector<8x896xf32>
    %73 = vector.extract_strided_slice %1 {offsets = [0, 112], sizes = [8, 896], strides = [1, 1]} : vector<8x1152xbf16> to vector<8x896xbf16>
    %c14 = arith.constant 14 : index
    %c0_45 = arith.constant 0 : index
    %c0_46 = arith.constant 0 : index
    %74 = vector.load %arg2[%c14, %c0_45, %c0_46] : memref<27x8x8xbf16, #tpu.memory_space<vmem>>, vector<1x8x8xbf16>
    %75 = vector.shape_cast %74 : vector<1x8x8xbf16> to vector<8x8xbf16>
    %cst_47 = arith.constant dense<0.000000e+00> : vector<8x896xf32>
    %76 = tpu.matmul %75, %73, %cst_47 {dimension_numbers = #tpu.dot_dimension_numbers<[1], [0], [0], [1], [0, 0, 1, 1], [], []>} : vector<8x8xbf16>, vector<8x896xbf16>, vector<8x896xf32> -> vector<8x896xf32>
    %77 = arith.addf %72, %76 : vector<8x896xf32>
    %78 = vector.extract_strided_slice %1 {offsets = [0, 120], sizes = [8, 896], strides = [1, 1]} : vector<8x1152xbf16> to vector<8x896xbf16>
    %c15 = arith.constant 15 : index
    %c0_48 = arith.constant 0 : index
    %c0_49 = arith.constant 0 : index
    %79 = vector.load %arg2[%c15, %c0_48, %c0_49] : memref<27x8x8xbf16, #tpu.memory_space<vmem>>, vector<1x8x8xbf16>
    %80 = vector.shape_cast %79 : vector<1x8x8xbf16> to vector<8x8xbf16>
    %cst_50 = arith.constant dense<0.000000e+00> : vector<8x896xf32>
    %81 = tpu.matmul %80, %78, %cst_50 {dimension_numbers = #tpu.dot_dimension_numbers<[1], [0], [0], [1], [0, 0, 1, 1], [], []>} : vector<8x8xbf16>, vector<8x896xbf16>, vector<8x896xf32> -> vector<8x896xf32>
    %82 = arith.addf %77, %81 : vector<8x896xf32>
    %83 = vector.extract_strided_slice %1 {offsets = [0, 121], sizes = [8, 896], strides = [1, 1]} : vector<8x1152xbf16> to vector<8x896xbf16>
    %c16 = arith.constant 16 : index
    %c0_51 = arith.constant 0 : index
    %c0_52 = arith.constant 0 : index
    %84 = vector.load %arg2[%c16, %c0_51, %c0_52] : memref<27x8x8xbf16, #tpu.memory_space<vmem>>, vector<1x8x8xbf16>
    %85 = vector.shape_cast %84 : vector<1x8x8xbf16> to vector<8x8xbf16>
    %cst_53 = arith.constant dense<0.000000e+00> : vector<8x896xf32>
    %86 = tpu.matmul %85, %83, %cst_53 {dimension_numbers = #tpu.dot_dimension_numbers<[1], [0], [0], [1], [0, 0, 1, 1], [], []>} : vector<8x8xbf16>, vector<8x896xbf16>, vector<8x896xf32> -> vector<8x896xf32>
    %87 = arith.addf %82, %86 : vector<8x896xf32>
    %88 = vector.extract_strided_slice %1 {offsets = [0, 122], sizes = [8, 896], strides = [1, 1]} : vector<8x1152xbf16> to vector<8x896xbf16>
    %c17 = arith.constant 17 : index
    %c0_54 = arith.constant 0 : index
    %c0_55 = arith.constant 0 : index
    %89 = vector.load %arg2[%c17, %c0_54, %c0_55] : memref<27x8x8xbf16, #tpu.memory_space<vmem>>, vector<1x8x8xbf16>
    %90 = vector.shape_cast %89 : vector<1x8x8xbf16> to vector<8x8xbf16>
    %cst_56 = arith.constant dense<0.000000e+00> : vector<8x896xf32>
    %91 = tpu.matmul %90, %88, %cst_56 {dimension_numbers = #tpu.dot_dimension_numbers<[1], [0], [0], [1], [0, 0, 1, 1], [], []>} : vector<8x8xbf16>, vector<8x896xbf16>, vector<8x896xf32> -> vector<8x896xf32>
    %92 = arith.addf %87, %91 : vector<8x896xf32>
    %93 = vector.extract_strided_slice %1 {offsets = [0, 200], sizes = [8, 896], strides = [1, 1]} : vector<8x1152xbf16> to vector<8x896xbf16>
    %c18 = arith.constant 18 : index
    %c0_57 = arith.constant 0 : index
    %c0_58 = arith.constant 0 : index
    %94 = vector.load %arg2[%c18, %c0_57, %c0_58] : memref<27x8x8xbf16, #tpu.memory_space<vmem>>, vector<1x8x8xbf16>
    %95 = vector.shape_cast %94 : vector<1x8x8xbf16> to vector<8x8xbf16>
    %cst_59 = arith.constant dense<0.000000e+00> : vector<8x896xf32>
    %96 = tpu.matmul %95, %93, %cst_59 {dimension_numbers = #tpu.dot_dimension_numbers<[1], [0], [0], [1], [0, 0, 1, 1], [], []>} : vector<8x8xbf16>, vector<8x896xbf16>, vector<8x896xf32> -> vector<8x896xf32>
    %97 = arith.addf %92, %96 : vector<8x896xf32>
    %98 = vector.extract_strided_slice %1 {offsets = [0, 201], sizes = [8, 896], strides = [1, 1]} : vector<8x1152xbf16> to vector<8x896xbf16>
    %c19 = arith.constant 19 : index
    %c0_60 = arith.constant 0 : index
    %c0_61 = arith.constant 0 : index
    %99 = vector.load %arg2[%c19, %c0_60, %c0_61] : memref<27x8x8xbf16, #tpu.memory_space<vmem>>, vector<1x8x8xbf16>
    %100 = vector.shape_cast %99 : vector<1x8x8xbf16> to vector<8x8xbf16>
    %cst_62 = arith.constant dense<0.000000e+00> : vector<8x896xf32>
    %101 = tpu.matmul %100, %98, %cst_62 {dimension_numbers = #tpu.dot_dimension_numbers<[1], [0], [0], [1], [0, 0, 1, 1], [], []>} : vector<8x8xbf16>, vector<8x896xbf16>, vector<8x896xf32> -> vector<8x896xf32>
    %102 = arith.addf %97, %101 : vector<8x896xf32>
    %103 = vector.extract_strided_slice %1 {offsets = [0, 202], sizes = [8, 896], strides = [1, 1]} : vector<8x1152xbf16> to vector<8x896xbf16>
    %c20 = arith.constant 20 : index
    %c0_63 = arith.constant 0 : index
    %c0_64 = arith.constant 0 : index
    %104 = vector.load %arg2[%c20, %c0_63, %c0_64] : memref<27x8x8xbf16, #tpu.memory_space<vmem>>, vector<1x8x8xbf16>
    %105 = vector.shape_cast %104 : vector<1x8x8xbf16> to vector<8x8xbf16>
    %cst_65 = arith.constant dense<0.000000e+00> : vector<8x896xf32>
    %106 = tpu.matmul %105, %103, %cst_65 {dimension_numbers = #tpu.dot_dimension_numbers<[1], [0], [0], [1], [0, 0, 1, 1], [], []>} : vector<8x8xbf16>, vector<8x896xbf16>, vector<8x896xf32> -> vector<8x896xf32>
    %107 = arith.addf %102, %106 : vector<8x896xf32>
    %108 = vector.extract_strided_slice %1 {offsets = [0, 210], sizes = [8, 896], strides = [1, 1]} : vector<8x1152xbf16> to vector<8x896xbf16>
    %c21 = arith.constant 21 : index
    %c0_66 = arith.constant 0 : index
    %c0_67 = arith.constant 0 : index
    %109 = vector.load %arg2[%c21, %c0_66, %c0_67] : memref<27x8x8xbf16, #tpu.memory_space<vmem>>, vector<1x8x8xbf16>
    %110 = vector.shape_cast %109 : vector<1x8x8xbf16> to vector<8x8xbf16>
    %cst_68 = arith.constant dense<0.000000e+00> : vector<8x896xf32>
    %111 = tpu.matmul %110, %108, %cst_68 {dimension_numbers = #tpu.dot_dimension_numbers<[1], [0], [0], [1], [0, 0, 1, 1], [], []>} : vector<8x8xbf16>, vector<8x896xbf16>, vector<8x896xf32> -> vector<8x896xf32>
    %112 = arith.addf %107, %111 : vector<8x896xf32>
    %113 = vector.extract_strided_slice %1 {offsets = [0, 211], sizes = [8, 896], strides = [1, 1]} : vector<8x1152xbf16> to vector<8x896xbf16>
    %c22 = arith.constant 22 : index
    %c0_69 = arith.constant 0 : index
    %c0_70 = arith.constant 0 : index
    %114 = vector.load %arg2[%c22, %c0_69, %c0_70] : memref<27x8x8xbf16, #tpu.memory_space<vmem>>, vector<1x8x8xbf16>
    %115 = vector.shape_cast %114 : vector<1x8x8xbf16> to vector<8x8xbf16>
    %cst_71 = arith.constant dense<0.000000e+00> : vector<8x896xf32>
    %116 = tpu.matmul %115, %113, %cst_71 {dimension_numbers = #tpu.dot_dimension_numbers<[1], [0], [0], [1], [0, 0, 1, 1], [], []>} : vector<8x8xbf16>, vector<8x896xbf16>, vector<8x896xf32> -> vector<8x896xf32>
    %117 = arith.addf %112, %116 : vector<8x896xf32>
    %118 = vector.extract_strided_slice %1 {offsets = [0, 212], sizes = [8, 896], strides = [1, 1]} : vector<8x1152xbf16> to vector<8x896xbf16>
    %c23 = arith.constant 23 : index
    %c0_72 = arith.constant 0 : index
    %c0_73 = arith.constant 0 : index
    %119 = vector.load %arg2[%c23, %c0_72, %c0_73] : memref<27x8x8xbf16, #tpu.memory_space<vmem>>, vector<1x8x8xbf16>
    %120 = vector.shape_cast %119 : vector<1x8x8xbf16> to vector<8x8xbf16>
    %cst_74 = arith.constant dense<0.000000e+00> : vector<8x896xf32>
    %121 = tpu.matmul %120, %118, %cst_74 {dimension_numbers = #tpu.dot_dimension_numbers<[1], [0], [0], [1], [0, 0, 1, 1], [], []>} : vector<8x8xbf16>, vector<8x896xbf16>, vector<8x896xf32> -> vector<8x896xf32>
    %122 = arith.addf %117, %121 : vector<8x896xf32>
    %123 = vector.extract_strided_slice %1 {offsets = [0, 220], sizes = [8, 896], strides = [1, 1]} : vector<8x1152xbf16> to vector<8x896xbf16>
    %c24 = arith.constant 24 : index
    %c0_75 = arith.constant 0 : index
    %c0_76 = arith.constant 0 : index
    %124 = vector.load %arg2[%c24, %c0_75, %c0_76] : memref<27x8x8xbf16, #tpu.memory_space<vmem>>, vector<1x8x8xbf16>
    %125 = vector.shape_cast %124 : vector<1x8x8xbf16> to vector<8x8xbf16>
    %cst_77 = arith.constant dense<0.000000e+00> : vector<8x896xf32>
    %126 = tpu.matmul %125, %123, %cst_77 {dimension_numbers = #tpu.dot_dimension_numbers<[1], [0], [0], [1], [0, 0, 1, 1], [], []>} : vector<8x8xbf16>, vector<8x896xbf16>, vector<8x896xf32> -> vector<8x896xf32>
    %127 = arith.addf %122, %126 : vector<8x896xf32>
    %128 = vector.extract_strided_slice %1 {offsets = [0, 221], sizes = [8, 896], strides = [1, 1]} : vector<8x1152xbf16> to vector<8x896xbf16>
    %c25 = arith.constant 25 : index
    %c0_78 = arith.constant 0 : index
    %c0_79 = arith.constant 0 : index
    %129 = vector.load %arg2[%c25, %c0_78, %c0_79] : memref<27x8x8xbf16, #tpu.memory_space<vmem>>, vector<1x8x8xbf16>
    %130 = vector.shape_cast %129 : vector<1x8x8xbf16> to vector<8x8xbf16>
    %cst_80 = arith.constant dense<0.000000e+00> : vector<8x896xf32>
    %131 = tpu.matmul %130, %128, %cst_80 {dimension_numbers = #tpu.dot_dimension_numbers<[1], [0], [0], [1], [0, 0, 1, 1], [], []>} : vector<8x8xbf16>, vector<8x896xbf16>, vector<8x896xf32> -> vector<8x896xf32>
    %132 = arith.addf %127, %131 : vector<8x896xf32>
    %133 = vector.extract_strided_slice %1 {offsets = [0, 222], sizes = [8, 896], strides = [1, 1]} : vector<8x1152xbf16> to vector<8x896xbf16>
    %c26 = arith.constant 26 : index
    %c0_81 = arith.constant 0 : index
    %c0_82 = arith.constant 0 : index
    %134 = vector.load %arg2[%c26, %c0_81, %c0_82] : memref<27x8x8xbf16, #tpu.memory_space<vmem>>, vector<1x8x8xbf16>
    %135 = vector.shape_cast %134 : vector<1x8x8xbf16> to vector<8x8xbf16>
    %cst_83 = arith.constant dense<0.000000e+00> : vector<8x896xf32>
    %136 = tpu.matmul %135, %133, %cst_83 {dimension_numbers = #tpu.dot_dimension_numbers<[1], [0], [0], [1], [0, 0, 1, 1], [], []>} : vector<8x8xbf16>, vector<8x896xbf16>, vector<8x896xf32> -> vector<8x896xf32>
    %137 = arith.addf %132, %136 : vector<8x896xf32>
    %c0_84 = arith.constant 0 : index
    %c0_85 = arith.constant 0 : index
    %138 = vector.load %arg3[%c0_84, %c0_85] : memref<8x1xf32, #tpu.memory_space<vmem>>, vector<8x1xf32>
    %139 = vector.broadcast %138 : vector<8x1xf32> to vector<8x896xf32>
    %140 = arith.addf %137, %139 : vector<8x896xf32>
    %c0_86 = arith.constant 0 : index
    %c0_87 = arith.constant 0 : index
    %141 = vector.load %arg6[%c0_86, %c0_87] : memref<1x896xf32, #tpu.memory_space<vmem>>, vector<1x896xf32>
    %142 = vector.broadcast %141 : vector<1x896xf32> to vector<8x896xf32>
    %143 = arith.mulf %140, %142 : vector<8x896xf32>
    %cst_88 = arith.constant dense<0.000000e+00> : vector<8xf32>
    %144 = vector.multi_reduction <add>, %143, %cst_88 [1] : vector<8x896xf32> to vector<8xf32>
    %145 = vector.shape_cast %144 : vector<8xf32> to vector<8x1xf32>
    %cst_89 = arith.constant 0.001953125 : f32
    %146 = vector.broadcast %cst_89 : f32 to vector<8x1xf32>
    %147 = arith.mulf %145, %146 : vector<8x1xf32>
    %148 = arith.mulf %140, %140 : vector<8x896xf32>
    %149 = vector.broadcast %141 : vector<1x896xf32> to vector<8x896xf32>
    %150 = arith.mulf %148, %149 : vector<8x896xf32>
    %cst_90 = arith.constant dense<0.000000e+00> : vector<8xf32>
    %151 = vector.multi_reduction <add>, %150, %cst_90 [1] : vector<8x896xf32> to vector<8xf32>
    %152 = vector.shape_cast %151 : vector<8xf32> to vector<8x1xf32>
    %cst_91 = arith.constant 0.001953125 : f32
    %153 = vector.broadcast %cst_91 : f32 to vector<8x1xf32>
    %154 = arith.mulf %152, %153 : vector<8x1xf32>
    %155 = arith.mulf %147, %147 : vector<8x1xf32>
    %156 = arith.subf %154, %155 : vector<8x1xf32>
    %cst_92 = arith.constant 0.000000e+00 : f32
    %157 = vector.broadcast %cst_92 : f32 to vector<8x1xf32>
    %158 = arith.maximumf %156, %157 : vector<8x1xf32>
    %159 = vector.broadcast %147 : vector<8x1xf32> to vector<8x896xf32>
    %160 = arith.subf %140, %159 : vector<8x896xf32>
    %cst_93 = arith.constant 9.99999974E-6 : f32
    %161 = vector.broadcast %cst_93 : f32 to vector<8x1xf32>
    %162 = arith.addf %158, %161 : vector<8x1xf32>
    %163 = math.rsqrt %162 : vector<8x1xf32>
    %164 = vector.broadcast %163 : vector<8x1xf32> to vector<8x896xf32>
    %165 = arith.mulf %160, %164 : vector<8x896xf32>
    %c0_94 = arith.constant 0 : index
    %c0_95 = arith.constant 0 : index
    %166 = vector.load %arg4[%c0_94, %c0_95] : memref<8x1xf32, #tpu.memory_space<vmem>>, vector<8x1xf32>
    %167 = vector.broadcast %166 : vector<8x1xf32> to vector<8x896xf32>
    %168 = arith.mulf %165, %167 : vector<8x896xf32>
    %c0_96 = arith.constant 0 : index
    %c0_97 = arith.constant 0 : index
    %169 = vector.load %arg5[%c0_96, %c0_97] : memref<8x1xf32, #tpu.memory_space<vmem>>, vector<8x1xf32>
    %170 = vector.broadcast %169 : vector<8x1xf32> to vector<8x896xf32>
    %171 = arith.addf %168, %170 : vector<8x896xf32>
    %c0_98 = arith.constant 0 : index
    %c0_99 = arith.constant 0 : index
    %c0_100 = arith.constant 0 : index
    %172 = vector.load %arg7[%c0_98, %c0_99, %c0_100] : memref<1x8x896xf32, #tpu.memory_space<vmem>>, vector<1x8x896xf32>
    %173 = vector.shape_cast %172 : vector<1x8x896xf32> to vector<8x896xf32>
    %174 = vector.shape_cast %171 : vector<8x896xf32> to vector<1x8x896xf32>
    tpu.vector_store %arg7[%c0_98, %c0_99, %c0_100], %174 {strides = array<i32>} : memref<1x8x896xf32, #tpu.memory_space<vmem>>, vector<1x8x896xf32>,
    return
  }
  func.func @transform_0(%arg0: i32) -> (i32, i32, i32) {
    %c0_i32 = arith.constant 0 : i32
    %c0_i32_0 = arith.constant 0 : i32
    %c0_i32_1 = arith.constant 0 : i32
    return %arg0, %c0_i32, %c0_i32_0 : i32, i32, i32
  }
  func.func @transform_1(%arg0: i32) -> (i32, i32, i32) {
    %c0_i32 = arith.constant 0 : i32
    %c0_i32_0 = arith.constant 0 : i32
    %c0_i32_1 = arith.constant 0 : i32
    %c0_i32_2 = arith.constant 0 : i32
    return %c0_i32, %c0_i32_0, %c0_i32_1 : i32, i32, i32
  }
  func.func @transform_2(%arg0: i32) -> (i32, i32) {
    %c0_i32 = arith.constant 0 : i32
    %c0_i32_0 = arith.constant 0 : i32
    %c0_i32_1 = arith.constant 0 : i32
    return %c0_i32, %c0_i32_0 : i32, i32
  }
  func.func @transform_3(%arg0: i32) -> (i32, i32) {
    %c0_i32 = arith.constant 0 : i32
    %c0_i32_0 = arith.constant 0 : i32
    %c0_i32_1 = arith.constant 0 : i32
    return %c0_i32, %c0_i32_0 : i32, i32
  }
  func.func @transform_4(%arg0: i32) -> (i32, i32) {
    %c0_i32 = arith.constant 0 : i32
    %c0_i32_0 = arith.constant 0 : i32
    %c0_i32_1 = arith.constant 0 : i32
    return %c0_i32, %c0_i32_0 : i32, i32
  }
  func.func @transform_5(%arg0: i32) -> (i32, i32) {
    %c0_i32 = arith.constant 0 : i32
    %c0_i32_0 = arith.constant 0 : i32
    %c0_i32_1 = arith.constant 0 : i32
    return %c0_i32, %c0_i32_0 : i32, i32
  }
  func.func @transform_6(%arg0: i32) -> (i32, i32, i32) {
    %c0_i32 = arith.constant 0 : i32
    %c0_i32_0 = arith.constant 0 : i32
    %c0_i32_1 = arith.constant 0 : i32
    return %arg0, %c0_i32, %c0_i32_0 : i32, i32, i32
  }
}

</mosaic_0001>

<bundles_post_ra>
// kernel: double_conv_block.2
= control target key start
LH: loop header
LB: loop body
LE: loop exit
PB: predicated region body
PF: predicated region fallthrough
CT: control target
= control target key end

     0   :  { %s6974_s21 = smov 0   ;;  %s8312_s0 = inlined_call_operand.vmem [shape: bf16[2,8,1152], index: 0, kind: input, shape index: {}]   ;;  %s8313_s1 = inlined_call_operand.vmem [shape: bf16[27,8,8], index: 1, kind: input, shape index: {}]   ;;  %s8314_s2 = inlined_call_operand.vmem [shape: f32[8,1], index: 2, kind: input, shape index: {}]   ;;  %s8315_s3 = inlined_call_operand.vmem [shape: f32[8,1], index: 3, kind: input, shape index: {}]   ;;  %s8316_s4 = inlined_call_operand.vmem [shape: f32[8,1], index: 4, kind: input, shape index: {}]   ;;  %s8317_s5 = inlined_call_operand.vmem [shape: f32[1,896], index: 5, kind: input, shape index: {}]   ;;  %s8318_s6 = inlined_call_operand.vmem [shape: f32[2,8,896], index: 6, kind: output, shape index: {}]  }
   0x1 LB: > { %s6401_s22 = sadd.s32 4294967295, %s6908_s21   ;;  %p6405_p0 = scmp.ge.s32.totalorder %s6908_s21, 1  ;;  %s6908_s21 = sphi %s6974_s21, %s16_s21  }
   0x2   : > { %p212_p1 = scmp.lt.s32.totalorder %s6908_s21, 3 }
   0x4   : > { %p213_p2 = pnand %p6405_p0, %p212_p1 }
   0x5   : > { %p242_p3 = scmp.lt.s32.totalorder (!%p213_p2), %s6401_s22, 1  ;;  %v6910_v0 = vmov (!%p213_p2), 0   ;;  %s6911_s27 = smov (!%p213_p2), 127   ;;  %vm297_vm0 = vcmask (!%p213_p2), 1039360   ;;  %vm309_vm1 = vcmask (!%p213_p2), 1043456   ;;  %vm305_vm2 = vcmask (!%p213_p2), 64512  }
   0x6   : > { %216 = sbr.rel (%p213_p2) target bundleno = 970 (0x3ca), region = 44  ;;  %363 = vmatprep.mubr.bf16.mxu0 (!%p213_p2), %v6910_v0  ;;  %404 = vmatprep.mubr.bf16.mxu1 (!%p213_p2), %v6910_v0  ;;  %s6912_s28 = smov (!%p213_p2), 126   ;;  %v6408_v20 = vld [vmem:[%s8313_s1 + $0x4] sm:$0xf] (!%p213_p2)  ;;  %v6919_v29 = vmov (!%p213_p2), 0.0   ;;  %vm6920_vm3 = vmmov (!%p213_p2), 0  }
   0x7   : > { %6889 = vset.pattern.permute.xlu0 (!%p213_p2), %v6910_v0  ;;  %6890 = vset.pattern.permute.xlu1 (!%p213_p2), %v6910_v0  ;;  %s6913_s29 = smov (!%p213_p2), 118   ;;  %s6914_s30 = smov (!%p213_p2), 117   ;;  %vm699_vm4 = vcmask (!%p213_p2), 1031168   ;;  %v258_v40 = vld [vmem:[%s8313_s1] sm:$0xf] (!%p213_p2)  ;;  %vm919_vm5 = vcmask (!%p213_p2), 965632  }
   0x8   : > { %s6915_s7 = smov (!%p213_p2), 116   ;;  %s6916_s8 = smov (!%p213_p2), 108   ;;  %v6431_v59 = vld [vmem:[%s8313_s1 + $0x8] sm:$0xf] (!%p213_p2)  ;;  %vm1139_vm6 = vcmask (!%p213_p2), 957440   ;;  %vm1359_vm7 = vcmask (!%p213_p2), 949248  }
   0x9   : > { %s6917_s9 = smov (!%p213_p2), 107   ;;  %s6918_s10 = smov (!%p213_p2), 106   ;;  %vm1579_vm8 = vcmask (!%p213_p2), 883712   ;;  %vm1799_vm9 = vcmask (!%p213_p2), 875520   ;;  %vm2019_vm10 = vcmask (!%p213_p2), 867328   ;;  %vm2239_vm11 = vcmask (!%p213_p2), 228352  }
   0xa   : > { %s6921_s13 = smov (!%p213_p2), 28   ;;  %s6922_s16 = smov (!%p213_p2), 27   ;;  %vm2459_vm12 = vcmask (!%p213_p2), 220160   ;;  %vm2679_vm13 = vcmask (!%p213_p2), 211968   ;;  %vm2899_vm14 = vcmask (!%p213_p2), 146432   ;;  %vm3119_vm15 = vcmask (!%p213_p2), 138240  }
   0xb   : > { %s6923_s19 = smov (!%p213_p2), 26   ;;  %s6924_s24 = smov (!%p213_p2), 18  }
   0xc   : > { %s6935_s12 = smov (!%p213_p2), 44   ;;  %s6936_s15 = smov (!%p213_p2), 36  }
   0xd   : > { %s8320_s22 = smov (!%p242_p3, %s6401_s22), 1  ;;  %s6937_s18 = smov 35  }
   0xe   : > { %s6850_s23 = smul.u32 36, %s8320_s22 }
  0x10   : > { %s6990_s26 = scalar_lea.vmem %s8312_s0, %s6850_s23  ;;  %s6938_s23 = smov 34  }
  0x11   : > { %v254_v1 = vld [vmem:[%s6990_s26 + $0x8] sm:$0xff]  ;;  %v253_v2 = vld [vmem:[%s6990_s26] sm:$0xff]  ;;  %v255_v7 = vld [vmem:[%s6990_s26 + $0x10] sm:$0xff] }
  0x12   : > { %v6996_v3 = vcombine.low %v254_v1, %v254_v1  ;;  %v6998_v4 = vcombine.low %v253_v2, %v253_v2  ;;  %v7001_v5 = vcombine.high %v253_v2, %v253_v2  ;;  %v7004_v6 = vcombine.high %v254_v1, %v254_v1  ;;  %v256_v10 = vld [vmem:[%s6990_s26 + $0x18] sm:$0xff] }
  0x13   : > { %v7009_v8 = vcombine.high %v255_v7, %v255_v7  ;;  %v7011_v9 = vcombine.low %v255_v7, %v255_v7  ;;  %v7016_v11 = vcombine.low %v256_v10, %v256_v10  ;;  %v7018_v12 = vcombine.high %v256_v10, %v256_v10 }
  0x14   : > { %285 = vrot.lane.b32.xlu1 %v6996_v3, %s6911_s27  ;;  %281 = vrot.lane.b32.xlu0 %v6998_v4, %s6911_s27  ;;  %v498_v34 = vsel %vm309_vm1, %v6998_v4, 0  ;;  %v504_v37 = vsel %vm309_vm1, %v6996_v3, 0 }
  0x15   : > { %v510_v41 = vsel %vm309_vm1, %v7011_v9, 0  ;;  %v516_v45 = vsel %vm309_vm1, %v7016_v11, 0 }
  0x18   : > { %287 = vrot.lane.b32.xlu1 %v7004_v6, %s6911_s27  ;;  %283 = vrot.lane.b32.xlu0 %v7001_v5, %s6911_s27 }
  0x1c   : > { %291 = vrot.lane.b32.xlu1 %v7009_v8, %s6911_s27  ;;  %289 = vrot.lane.b32.xlu0 %v7011_v9, %s6911_s27 }
  0x20   : > { %295 = vrot.lane.b32.xlu1 %v7018_v12, %s6911_s27  ;;  %293 = vrot.lane.b32.xlu0 %v7016_v11, %s6911_s27  ;;  %s6932_s27 = smov 54  }
  0x24   : > { %683 = vrot.lane.b32.xlu0 %v6998_v4, %s6912_s28  ;;  %685 = vrot.lane.b32.xlu1 %v7001_v5, %s6912_s28 }
  0x28   : > { %687 = vrot.lane.b32.xlu0 %v6996_v3, %s6912_s28  ;;  %689 = vrot.lane.b32.xlu1 %v7004_v6, %s6912_s28 }
  0x2c   : > { %691 = vrot.lane.b32.xlu0 %v7011_v9, %s6912_s28  ;;  %693 = vrot.lane.b32.xlu1 %v7009_v8, %s6912_s28 }
  0x30   : > { %695 = vrot.lane.b32.xlu0 %v7016_v11, %s6912_s28  ;;  %697 = vrot.lane.b32.xlu1 %v7018_v12, %s6912_s28  ;;  %s6925_s28 = smov 17  }
  0x34   : > { %903 = vrot.lane.b32.xlu0 %v6998_v4, %s6913_s29  ;;  %905 = vrot.lane.b32.xlu1 %v7001_v5, %s6913_s29 }
  0x38   : > { %907 = vrot.lane.b32.xlu0 %v6996_v3, %s6913_s29  ;;  %909 = vrot.lane.b32.xlu1 %v7004_v6, %s6913_s29 }
  0x3c   : > { %911 = vrot.lane.b32.xlu0 %v7011_v9, %s6913_s29  ;;  %913 = vrot.lane.b32.xlu1 %v7009_v8, %s6913_s29 }
  0x40   : > { %915 = vrot.lane.b32.xlu0 %v7016_v11, %s6913_s29  ;;  %917 = vrot.lane.b32.xlu1 %v7018_v12, %s6913_s29 }
  0x44   : > { %1123 = vrot.lane.b32.xlu0 %v6998_v4, %s6914_s30  ;;  %1125 = vrot.lane.b32.xlu1 %v7001_v5, %s6914_s30 }
  0x48   : > { %1127 = vrot.lane.b32.xlu0 %v6996_v3, %s6914_s30  ;;  %1129 = vrot.lane.b32.xlu1 %v7004_v6, %s6914_s30 }
  0x4c   : > { %1131 = vrot.lane.b32.xlu0 %v7011_v9, %s6914_s30  ;;  %1133 = vrot.lane.b32.xlu1 %v7009_v8, %s6914_s30 }
  0x50   : > { %1135 = vrot.lane.b32.xlu0 %v7016_v11, %s6914_s30  ;;  %1137 = vrot.lane.b32.xlu1 %v7018_v12, %s6914_s30  ;;  %s6933_s30 = smov 46  }
  0x54   : > { %1343 = vrot.lane.b32.xlu0 %v6998_v4, %s6915_s7  ;;  %1345 = vrot.lane.b32.xlu1 %v7001_v5, %s6915_s7 }
  0x58   : > { %1347 = vrot.lane.b32.xlu0 %v6996_v3, %s6915_s7  ;;  %1349 = vrot.lane.b32.xlu1 %v7004_v6, %s6915_s7 }
  0x5c   : > { %1351 = vrot.lane.b32.xlu0 %v7011_v9, %s6915_s7  ;;  %1353 = vrot.lane.b32.xlu1 %v7009_v8, %s6915_s7 }
  0x60   : > { %1355 = vrot.lane.b32.xlu0 %v7016_v11, %s6915_s7  ;;  %1357 = vrot.lane.b32.xlu1 %v7018_v12, %s6915_s7  ;;  %s6926_s7 = smov 16  }
  0x64   : > { %1563 = vrot.lane.b32.xlu0 %v6998_v4, %s6916_s8  ;;  %1565 = vrot.lane.b32.xlu1 %v7001_v5, %s6916_s8 }
  0x68   : > { %1567 = vrot.lane.b32.xlu0 %v6996_v3, %s6916_s8  ;;  %1569 = vrot.lane.b32.xlu1 %v7004_v6, %s6916_s8 }
  0x6c   : > { %1571 = vrot.lane.b32.xlu0 %v7011_v9, %s6916_s8  ;;  %1573 = vrot.lane.b32.xlu1 %v7009_v8, %s6916_s8 }
  0x70   : > { %1575 = vrot.lane.b32.xlu0 %v7016_v11, %s6916_s8  ;;  %1577 = vrot.lane.b32.xlu1 %v7018_v12, %s6916_s8 }
  0x74   : > { %1783 = vrot.lane.b32.xlu0 %v6998_v4, %s6917_s9  ;;  %1785 = vrot.lane.b32.xlu1 %v7001_v5, %s6917_s9 }
  0x78   : > { %1787 = vrot.lane.b32.xlu0 %v6996_v3, %s6917_s9  ;;  %1789 = vrot.lane.b32.xlu1 %v7004_v6, %s6917_s9 }
  0x7c   : > { %1791 = vrot.lane.b32.xlu0 %v7011_v9, %s6917_s9  ;;  %1793 = vrot.lane.b32.xlu1 %v7009_v8, %s6917_s9 }
  0x80   : > { %1795 = vrot.lane.b32.xlu0 %v7016_v11, %s6917_s9  ;;  %1797 = vrot.lane.b32.xlu1 %v7018_v12, %s6917_s9  ;;  %s6934_s9 = smov 45  }
  0x84   : > { %2003 = vrot.lane.b32.xlu0 %v6998_v4, %s6918_s10  ;;  %2005 = vrot.lane.b32.xlu1 %v7001_v5, %s6918_s10 }
  0x86   : > { %v286_v13 = vpop.permute.xlu1 %285  ;;  %v282_v14 = vpop.permute.xlu0 %281 }
  0x88   : > { %2007 = vrot.lane.b32.xlu0 %v6996_v3, %s6918_s10  ;;  %2009 = vrot.lane.b32.xlu1 %v7004_v6, %s6918_s10 }
  0x8a   : > { %v288_v15 = vpop.permute.xlu1 %287  ;;  %v284_v16 = vpop.permute.xlu0 %283 }
  0x8b   : > { %v299_v17 = vsel %vm297_vm0, %v284_v16, %v286_v13  ;;  %v298_v18 = vsel %vm297_vm0, %v282_v14, %v284_v16  ;;  %v300_v21 = vsel %vm297_vm0, %v286_v13, %v288_v15 }
  0x8c   : > { %6417 = vmatprep.subr.msk.bf16.mxu0 %vm309_vm1, %v299_v17  ;;  %v311_v19 = vsel %vm309_vm1, %v298_v18, 0  ;;  %2011 = vrot.lane.b32.xlu0 %v7011_v9, %s6918_s10  ;;  %v317_v25 = vsel %vm309_vm1, %v300_v21, 0 }
  0x8d   : > { %332 = vmatpush1.bf16.msra.mxu0 %v311_v19  ;;  %2013 = vrot.lane.b32.xlu1 %v7009_v8, %s6918_s10 }
  0x8e   : > { %v292_v22 = vpop.permute.xlu1 %291  ;;  %v290_v23 = vpop.permute.xlu0 %289 }
  0x8f   : > { %v301_v24 = vsel %vm297_vm0, %v288_v15, %v290_v23  ;;  %v302_v26 = vsel %vm297_vm0, %v290_v23, %v292_v22 }
  0x90   : > { %6418 = vmatmul.mubr.msk.bf16.vlgmr.msra.gmra.mrb[0].mxu0 %vm305_vm2, %v6408_v20  ;;  %6419 = vmatprep.subr.msk.bf16.mxu1 %vm309_vm1, %v301_v24  ;;  %v323_v32 = vsel %vm309_vm1, %v302_v26, 0  ;;  %v6439_v24 = vld [vmem:[%s8313_s1 + $0xc] sm:$0xf] }
  0x91   : > { %373 = vmatpush1.bf16.msra.mxu1 %v317_v25  ;;  %445 = vmatprep.mubr.bf16.mxu0 %v6910_v0 }
  0x92   : > { %v296_v27 = vpop.permute.xlu1 %295  ;;  %v294_v28 = vpop.permute.xlu0 %293  ;;  %6688 = vmatprep.subr.bf16.mxu1 %v6919_v29  ;;  %2015 = vrot.lane.b32.xlu0 %v7016_v11, %s6918_s10 }
  0x93   : > { %v304_v30 = vsel %vm297_vm0, %v294_v28, %v296_v27  ;;  %v303_v31 = vsel %vm297_vm0, %v292_v22, %v294_v28  ;;  %2017 = vrot.lane.b32.xlu1 %v7018_v12, %s6918_s10  ;;  %s6927_s10 = smov 8   ;;  %vm3339_vm0 = vcmask 130048  }
  0x94   : > { %6420 = vmatmul.mubr.msk.bf16.vlgmr.msra.gmra.mrb[0].mxu1 %vm305_vm2, %v6408_v20  ;;  %6421 = vmatprep.subr.msk.bf16.mxu0 %vm309_vm1, %v303_v31  ;;  %v329_v33 = vsel %vm309_vm1, %v304_v30, 0 }
  0x95   : > { %414 = vmatpush1.bf16.msra.mxu0 %v323_v32  ;;  %6689 = vmatpush3.bf16.msra.mxu1 %v329_v33 }
  0x96   : > { %6690 = vmatprep.mubr.msk.bf16.mxu1 %vm6920_vm3, %v6919_v29  ;;  %6424 = vmatprep.subr.msk.bf16.mxu0 %vm309_vm1, %v7001_v5  ;;  %v684_v35 = vpop.permute.xlu0 %683  ;;  %v686_v36 = vpop.permute.xlu1 %685 }
  0x97   : > { %2223 = vrot.lane.b32.xlu0 %v6998_v4, %s6921_s13  ;;  %6426 = vmatprep.subr.msk.bf16.mxu1 %vm309_vm1, %v7004_v6  ;;  %v700_v48 = vsel %vm699_vm4, %v684_v35, %v686_v36 }
  0x98   : > { %6422 = vmatmul.mubr.msk.bf16.vlgmr.msra.gmra.mrb[4].mxu0 %vm305_vm2, %v6408_v20  ;;  %2225 = vrot.lane.b32.xlu1 %v7001_v5, %s6921_s13  ;;  %v711_v50 = vsel %vm309_vm1, %v700_v48, 0 }
  0x99   : > { %519 = vmatpush1.bf16.msra.mxu0 %v498_v34  ;;  %550 = vmatprep.mubr.bf16.mxu0 %v6910_v0 }
  0x9a   : > { %6428 = vmatprep.subr.msk.bf16.mxu0 %vm309_vm1, %v7009_v8  ;;  %v688_v38 = vpop.permute.xlu0 %687  ;;  %v690_v39 = vpop.permute.xlu1 %689 }
  0x9b   : > { %2227 = vrot.lane.b32.xlu0 %v6996_v3, %s6921_s13  ;;  %v701_v44 = vsel %vm699_vm4, %v686_v36, %v688_v38  ;;  %v702_v53 = vsel %vm699_vm4, %v688_v38, %v690_v39 }
  0x9c   : > { %6691 = vmatmul.mubr.msk.bf16.vlgmr.msra.gmra.mrb[4].mxu1 %vm305_vm2, %v6408_v20  ;;  %2229 = vrot.lane.b32.xlu1 %v7004_v6, %s6921_s13  ;;  %v717_v55 = vsel %vm309_vm1, %v702_v53, 0 }
  0x9d   : > { %560 = vmatpush1.bf16.msra.mxu1 %v504_v37  ;;  %591 = vmatprep.mubr.bf16.mxu1 %v6910_v0 }
  0x9e   : > { %6694 = vmatprep.subr.bf16.mxu1 %v6919_v29  ;;  %v692_v42 = vpop.permute.xlu0 %691  ;;  %v694_v43 = vpop.permute.xlu1 %693 }
  0x9f   : > { %2231 = vrot.lane.b32.xlu0 %v7011_v9, %s6921_s13  ;;  %v703_v49 = vsel %vm699_vm4, %v690_v39, %v692_v42  ;;  %v704_v58 = vsel %vm699_vm4, %v692_v42, %v694_v43 }
  0xa0   : > { %6425 = vmatmul.mubr.msk.bf16.vlgmr.msra.gmra.mrb[8].mxu0 %vm305_vm2, %v258_v40  ;;  %2233 = vrot.lane.b32.xlu1 %v7009_v8, %s6921_s13  ;;  %v723_v60 = vsel %vm309_vm1, %v704_v58, 0 }
  0xa1   : > { %601 = vmatpush1.bf16.msra.mxu0 %v510_v41  ;;  %632 = vmatprep.mubr.bf16.mxu0 %v6910_v0 }
  0xa2   : > { %6432 = vmatprep.subr.msk.bf16.mxu0 %vm309_vm1, %v701_v44  ;;  %v696_v46 = vpop.permute.xlu0 %695  ;;  %v698_v47 = vpop.permute.xlu1 %697 }
  0xa3   : > { %2235 = vrot.lane.b32.xlu0 %v7016_v11, %s6921_s13  ;;  %v705_v54 = vsel %vm699_vm4, %v694_v43, %v696_v46  ;;  %v706_v63 = vsel %vm699_vm4, %v696_v46, %v698_v47  ;;  %vm3779_vm4 = vcmask 56320  }
  0xa4   : > { %6427 = vmatmul.mubr.msk.bf16.vlgmr.msra.gmra.mrb[8].mxu1 %vm305_vm2, %v258_v40  ;;  %2237 = vrot.lane.b32.xlu1 %v7018_v12, %s6921_s13  ;;  %v729_v2 = vsel %vm309_vm1, %v706_v63, 0  ;;  %s6928_s13 = smov 7  }
  0xa5   : > { %6695 = vmatpush3.bf16.msra.mxu1 %v516_v45  ;;  %6696 = vmatprep.mubr.msk.bf16.mxu1 %vm6920_vm3, %v6919_v29  ;;  %v6447_v45 = vld [vmem:[%s8313_s1 + $0x10] sm:$0xf] }
  0xa6   : > { %6434 = vmatprep.subr.msk.bf16.mxu1 %vm309_vm1, %v703_v49  ;;  %v904_v51 = vpop.permute.xlu0 %903  ;;  %v906_v52 = vpop.permute.xlu1 %905 }
  0xa7   : > { %2443 = vrot.lane.b32.xlu0 %v6998_v4, %s6922_s16  ;;  %v920_v13 = vsel %vm919_vm5, %v904_v51, %v906_v52 }
  0xa8   : > { %6429 = vmatmul.mubr.msk.bf16.vlgmr.msra.gmra.mrb[12].mxu0 %vm305_vm2, %v258_v40  ;;  %2445 = vrot.lane.b32.xlu1 %v7001_v5, %s6922_s16  ;;  %v931_v15 = vsel %vm309_vm1, %v920_v13, 0 }
  0xa9   : > { %732 = vmatpush1.bf16.msra.mxu0 %v711_v50  ;;  %763 = vmatprep.mubr.bf16.mxu0 %v6910_v0 }
  0xaa   : > { %6436 = vmatprep.subr.msk.bf16.mxu0 %vm309_vm1, %v705_v54  ;;  %v908_v56 = vpop.permute.xlu0 %907  ;;  %v910_v57 = vpop.permute.xlu1 %909 }
  0xab   : > { %2447 = vrot.lane.b32.xlu0 %v6996_v3, %s6922_s16  ;;  %v921_v1 = vsel %vm919_vm5, %v906_v52, %v908_v56  ;;  %v922_v18 = vsel %vm919_vm5, %v908_v56, %v910_v57 }
  0xac   : > { %6697 = vmatmul.mubr.msk.bf16.vlgmr.msra.gmra.mrb[12].mxu1 %vm305_vm2, %v258_v40  ;;  %2449 = vrot.lane.b32.xlu1 %v7004_v6, %s6922_s16  ;;  %v937_v20 = vsel %vm309_vm1, %v922_v18, 0 }
  0xad   : > { %773 = vmatpush1.bf16.msra.mxu1 %v717_v55  ;;  %804 = vmatprep.mubr.bf16.mxu1 %v6910_v0 }
  0xae   : > { %6700 = vmatprep.subr.bf16.mxu1 %v6919_v29  ;;  %v912_v61 = vpop.permute.xlu0 %911  ;;  %v914_v62 = vpop.permute.xlu1 %913 }
  0xaf   : > { %2451 = vrot.lane.b32.xlu0 %v7011_v9, %s6922_s16  ;;  %v923_v14 = vsel %vm919_vm5, %v910_v57, %v912_v61  ;;  %v924_v23 = vsel %vm919_vm5, %v912_v61, %v914_v62 }
  0xb0   : > { %6433 = vmatmul.mubr.msk.bf16.vlgmr.msra.gmra.mrb[16].mxu0 %vm305_vm2, %v6431_v59  ;;  %2453 = vrot.lane.b32.xlu1 %v7009_v8, %s6922_s16  ;;  %v943_v25 = vsel %vm309_vm1, %v924_v23, 0 }
  0xb1   : > { %814 = vmatpush1.bf16.msra.mxu0 %v723_v60  ;;  %845 = vmatprep.mubr.bf16.mxu0 %v6910_v0 }
  0xb2   : > { %6440 = vmatprep.subr.msk.bf16.mxu0 %vm309_vm1, %v921_v1  ;;  %v916_v7 = vpop.permute.xlu0 %915  ;;  %v918_v10 = vpop.permute.xlu1 %917 }
  0xb3   : > { %2455 = vrot.lane.b32.xlu0 %v7016_v11, %s6922_s16  ;;  %v925_v19 = vsel %vm919_vm5, %v914_v62, %v916_v7  ;;  %v926_v28 = vsel %vm919_vm5, %v916_v7, %v918_v10  ;;  %vm3999_vm5 = vcmask 48128  }
  0xb4   : > { %6435 = vmatmul.mubr.msk.bf16.vlgmr.msra.gmra.mrb[16].mxu1 %vm305_vm2, %v6431_v59  ;;  %2457 = vrot.lane.b32.xlu1 %v7018_v12, %s6922_s16  ;;  %v949_v31 = vsel %vm309_vm1, %v926_v28, 0  ;;  %s6929_s16 = smov 6  }
  0xb5   : > { %6701 = vmatpush3.bf16.msra.mxu1 %v729_v2  ;;  %6702 = vmatprep.mubr.msk.bf16.mxu1 %vm6920_vm3, %v6919_v29  ;;  %v6455_v2 = vld [vmem:[%s8313_s1 + $0x14] sm:$0xf] }
  0xb6   : > { %6442 = vmatprep.subr.msk.bf16.mxu1 %vm309_vm1, %v923_v14  ;;  %v1124_v16 = vpop.permute.xlu0 %1123  ;;  %v1126_v17 = vpop.permute.xlu1 %1125 }
  0xb7   : > { %2663 = vrot.lane.b32.xlu0 %v6998_v4, %s6923_s19  ;;  %v1140_v34 = vsel %vm1139_vm6, %v1124_v16, %v1126_v17 }
  0xb8   : > { %6437 = vmatmul.mubr.msk.bf16.vlgmr.msra.gmra.mrb[20].mxu0 %vm305_vm2, %v6431_v59  ;;  %2665 = vrot.lane.b32.xlu1 %v7001_v5, %s6923_s19  ;;  %v1151_v36 = vsel %vm309_vm1, %v1140_v34, 0 }
  0xb9   : > { %952 = vmatpush1.bf16.msra.mxu0 %v931_v15  ;;  %983 = vmatprep.mubr.bf16.mxu0 %v6910_v0 }
  0xba   : > { %6444 = vmatprep.subr.msk.bf16.mxu0 %vm309_vm1, %v925_v19  ;;  %v1128_v21 = vpop.permute.xlu0 %1127  ;;  %v1130_v22 = vpop.permute.xlu1 %1129 }
  0xbb   : > { %2667 = vrot.lane.b32.xlu0 %v6996_v3, %s6923_s19  ;;  %v1141_v30 = vsel %vm1139_vm6, %v1126_v17, %v1128_v21  ;;  %v1142_v39 = vsel %vm1139_vm6, %v1128_v21, %v1130_v22 }
  0xbc   : > { %6703 = vmatmul.mubr.msk.bf16.vlgmr.msra.gmra.mrb[20].mxu1 %vm305_vm2, %v6431_v59  ;;  %2669 = vrot.lane.b32.xlu1 %v7004_v6, %s6923_s19  ;;  %v1157_v41 = vsel %vm309_vm1, %v1142_v39, 0 }
  0xbd   : > { %993 = vmatpush1.bf16.msra.mxu1 %v937_v20  ;;  %1024 = vmatprep.mubr.bf16.mxu1 %v6910_v0 }
  0xbe   : > { %6706 = vmatprep.subr.bf16.mxu1 %v6919_v29  ;;  %v1132_v26 = vpop.permute.xlu0 %1131  ;;  %v1134_v27 = vpop.permute.xlu1 %1133 }
  0xbf   : > { %2671 = vrot.lane.b32.xlu0 %v7011_v9, %s6923_s19  ;;  %v1143_v35 = vsel %vm1139_vm6, %v1130_v22, %v1132_v26  ;;  %v1144_v44 = vsel %vm1139_vm6, %v1132_v26, %v1134_v27 }
  0xc0   : > { %6441 = vmatmul.mubr.msk.bf16.vlgmr.msra.gmra.mrb[24].mxu0 %vm305_vm2, %v6439_v24  ;;  %2673 = vrot.lane.b32.xlu1 %v7009_v8, %s6923_s19  ;;  %v1163_v46 = vsel %vm309_vm1, %v1144_v44, 0 }
  0xc1   : > { %1034 = vmatpush1.bf16.msra.mxu0 %v943_v25  ;;  %1065 = vmatprep.mubr.bf16.mxu0 %v6910_v0 }
  0xc2   : > { %6448 = vmatprep.subr.msk.bf16.mxu0 %vm309_vm1, %v1141_v30  ;;  %v1136_v32 = vpop.permute.xlu0 %1135  ;;  %v1138_v33 = vpop.permute.xlu1 %1137 }
  0xc3   : > { %2675 = vrot.lane.b32.xlu0 %v7016_v11, %s6923_s19  ;;  %v1145_v40 = vsel %vm1139_vm6, %v1134_v27, %v1136_v32  ;;  %v1146_v49 = vsel %vm1139_vm6, %v1136_v32, %v1138_v33  ;;  %vm4222_vm6 = vcmask 457728  }
  0xc4   : > { %6443 = vmatmul.mubr.msk.bf16.vlgmr.msra.gmra.mrb[24].mxu1 %vm305_vm2, %v6439_v24  ;;  %2677 = vrot.lane.b32.xlu1 %v7018_v12, %s6923_s19  ;;  %v1169_v51 = vsel %vm309_vm1, %v1146_v49, 0  ;;  %s6930_s19 = smov 56  }
  0xc5   : > { %6707 = vmatpush3.bf16.msra.mxu1 %v949_v31  ;;  %6708 = vmatprep.mubr.msk.bf16.mxu1 %vm6920_vm3, %v6919_v29  ;;  %v6463_v31 = vld [vmem:[%s8313_s1 + $0x18] sm:$0xf] }
  0xc6   : > { %6450 = vmatprep.subr.msk.bf16.mxu1 %vm309_vm1, %v1143_v35  ;;  %v1344_v37 = vpop.permute.xlu0 %1343  ;;  %v1346_v38 = vpop.permute.xlu1 %1345 }
  0xc7   : > { %2883 = vrot.lane.b32.xlu0 %v6998_v4, %s6924_s24  ;;  %v1360_v54 = vsel %vm1359_vm7, %v1344_v37, %v1346_v38 }
  0xc8   : > { %6445 = vmatmul.mubr.msk.bf16.vlgmr.msra.gmra.mrb[28].mxu0 %vm305_vm2, %v6439_v24  ;;  %2885 = vrot.lane.b32.xlu1 %v7001_v5, %s6924_s24  ;;  %v1371_v56 = vsel %vm309_vm1, %v1360_v54, 0 }
  0xc9   : > { %1172 = vmatpush1.bf16.msra.mxu0 %v1151_v36  ;;  %1203 = vmatprep.mubr.bf16.mxu0 %v6910_v0 }
  0xca   : > { %6452 = vmatprep.subr.msk.bf16.mxu0 %vm309_vm1, %v1145_v40  ;;  %v1348_v42 = vpop.permute.xlu0 %1347  ;;  %v1350_v43 = vpop.permute.xlu1 %1349 }
  0xcb   : > { %2887 = vrot.lane.b32.xlu0 %v6996_v3, %s6924_s24  ;;  %v1361_v50 = vsel %vm1359_vm7, %v1346_v38, %v1348_v42  ;;  %v1362_v59 = vsel %vm1359_vm7, %v1348_v42, %v1350_v43 }
  0xcc   : > { %6709 = vmatmul.mubr.msk.bf16.vlgmr.msra.gmra.mrb[28].mxu1 %vm305_vm2, %v6439_v24  ;;  %2889 = vrot.lane.b32.xlu1 %v7004_v6, %s6924_s24  ;;  %v1377_v61 = vsel %vm309_vm1, %v1362_v59, 0 }
  0xcd   : > { %1213 = vmatpush1.bf16.msra.mxu1 %v1157_v41  ;;  %1244 = vmatprep.mubr.bf16.mxu1 %v6910_v0 }
  0xce   : > { %6712 = vmatprep.subr.bf16.mxu1 %v6919_v29  ;;  %v1352_v47 = vpop.permute.xlu0 %1351  ;;  %v1354_v48 = vpop.permute.xlu1 %1353 }
  0xcf   : > { %2891 = vrot.lane.b32.xlu0 %v7011_v9, %s6924_s24  ;;  %v1363_v55 = vsel %vm1359_vm7, %v1350_v43, %v1352_v47  ;;  %v1364_v1 = vsel %vm1359_vm7, %v1352_v47, %v1354_v48 }
  0xd0   : > { %6449 = vmatmul.mubr.msk.bf16.vlgmr.msra.gmra.mrb[32].mxu0 %vm305_vm2, %v6447_v45  ;;  %2893 = vrot.lane.b32.xlu1 %v7009_v8, %s6924_s24  ;;  %v1383_v7 = vsel %vm309_vm1, %v1364_v1, 0 }
  0xd1   : > { %1254 = vmatpush1.bf16.msra.mxu0 %v1163_v46  ;;  %1285 = vmatprep.mubr.bf16.mxu0 %v6910_v0 }
  0xd2   : > { %6456 = vmatprep.subr.msk.bf16.mxu0 %vm309_vm1, %v1361_v50  ;;  %v1356_v52 = vpop.permute.xlu0 %1355  ;;  %v1358_v53 = vpop.permute.xlu1 %1357 }
  0xd3   : > { %2895 = vrot.lane.b32.xlu0 %v7016_v11, %s6924_s24  ;;  %v1365_v60 = vsel %vm1359_vm7, %v1354_v48, %v1356_v52  ;;  %v1366_v14 = vsel %vm1359_vm7, %v1356_v52, %v1358_v53  ;;  %vm4442_vm7 = vcmask 449536  }
  0xd4   : > { %6451 = vmatmul.mubr.msk.bf16.vlgmr.msra.gmra.mrb[32].mxu1 %vm305_vm2, %v6447_v45  ;;  %2897 = vrot.lane.b32.xlu1 %v7018_v12, %s6924_s24  ;;  %v1389_v16 = vsel %vm309_vm1, %v1366_v14, 0  ;;  %v6479_v14 = vld [vmem:[%s8313_s1 + $0x20] sm:$0xf] }
  0xd5   : > { %6713 = vmatpush3.bf16.msra.mxu1 %v1169_v51  ;;  %6714 = vmatprep.mubr.msk.bf16.mxu1 %vm6920_vm3, %v6919_v29  ;;  %v6471_v51 = vld [vmem:[%s8313_s1 + $0x1c] sm:$0xf] }
  0xd6   : > { %6458 = vmatprep.subr.msk.bf16.mxu1 %vm309_vm1, %v1363_v55  ;;  %v1564_v57 = vpop.permute.xlu0 %1563  ;;  %v1566_v58 = vpop.permute.xlu1 %1565 }
  0xd7   : > { %3103 = vrot.lane.b32.xlu0 %v6998_v4, %s6925_s28  ;;  %v1580_v19 = vsel %vm1579_vm8, %v1564_v57, %v1566_v58 }
  0xd8   : > { %6453 = vmatmul.mubr.msk.bf16.vlgmr.msra.gmra.mrb[36].mxu0 %vm305_vm2, %v6447_v45  ;;  %3105 = vrot.lane.b32.xlu1 %v7001_v5, %s6925_s28  ;;  %v1591_v21 = vsel %vm309_vm1, %v1580_v19, 0 }
  0xd9   : > { %1392 = vmatpush1.bf16.msra.mxu0 %v1371_v56  ;;  %1423 = vmatprep.mubr.bf16.mxu0 %v6910_v0 }
  0xda   : > { %6460 = vmatprep.subr.msk.bf16.mxu0 %vm309_vm1, %v1365_v60  ;;  %v1568_v62 = vpop.permute.xlu0 %1567  ;;  %v1570_v63 = vpop.permute.xlu1 %1569 }
  0xdb   : > { %3107 = vrot.lane.b32.xlu0 %v6996_v3, %s6925_s28  ;;  %v1581_v15 = vsel %vm1579_vm8, %v1566_v58, %v1568_v62  ;;  %v1582_v24 = vsel %vm1579_vm8, %v1568_v62, %v1570_v63 }
  0xdc   : > { %6715 = vmatmul.mubr.msk.bf16.vlgmr.msra.gmra.mrb[36].mxu1 %vm305_vm2, %v6447_v45  ;;  %3109 = vrot.lane.b32.xlu1 %v7004_v6, %s6925_s28  ;;  %v1597_v26 = vsel %vm309_vm1, %v1582_v24, 0 }
  0xdd   : > { %1433 = vmatpush1.bf16.msra.mxu1 %v1377_v61  ;;  %1464 = vmatprep.mubr.bf16.mxu1 %v6910_v0 }
  0xde   : > { %6718 = vmatprep.subr.bf16.mxu1 %v6919_v29  ;;  %v1572_v10 = vpop.permute.xlu0 %1571  ;;  %v1574_v13 = vpop.permute.xlu1 %1573 }
  0xdf   : > { %3111 = vrot.lane.b32.xlu0 %v7011_v9, %s6925_s28  ;;  %v1583_v20 = vsel %vm1579_vm8, %v1570_v63, %v1572_v10  ;;  %v1584_v30 = vsel %vm1579_vm8, %v1572_v10, %v1574_v13 }
  0xe0   : > { %6457 = vmatmul.mubr.msk.bf16.vlgmr.msra.gmra.mrb[40].mxu0 %vm305_vm2, %v6455_v2  ;;  %3113 = vrot.lane.b32.xlu1 %v7009_v8, %s6925_s28  ;;  %v1603_v32 = vsel %vm309_vm1, %v1584_v30, 0 }
  0xe1   : > { %1474 = vmatpush1.bf16.msra.mxu0 %v1383_v7  ;;  %1505 = vmatprep.mubr.bf16.mxu0 %v6910_v0 }
  0xe2   : > { %6464 = vmatprep.subr.msk.bf16.mxu0 %vm309_vm1, %v1581_v15  ;;  %v1576_v17 = vpop.permute.xlu0 %1575  ;;  %v1578_v18 = vpop.permute.xlu1 %1577 }
  0xe3   : > { %3115 = vrot.lane.b32.xlu0 %v7016_v11, %s6925_s28  ;;  %v1585_v25 = vsel %vm1579_vm8, %v1574_v13, %v1576_v17  ;;  %v1586_v35 = vsel %vm1579_vm8, %v1576_v17, %v1578_v18  ;;  %vm4662_vm8 = vcmask 441344  }
  0xe4   : > { %6459 = vmatmul.mubr.msk.bf16.vlgmr.msra.gmra.mrb[40].mxu1 %vm305_vm2, %v6455_v2  ;;  %3117 = vrot.lane.b32.xlu1 %v7018_v12, %s6925_s28  ;;  %v1609_v37 = vsel %vm309_vm1, %v1586_v35, 0  ;;  %s6851_s28 = smul.u32 56, %s8320_s22 }
  0xe5   : > { %6719 = vmatpush3.bf16.msra.mxu1 %v1389_v16  ;;  %6720 = vmatprep.mubr.msk.bf16.mxu1 %vm6920_vm3, %v6919_v29 }
  0xe6   : > { %6466 = vmatprep.subr.msk.bf16.mxu1 %vm309_vm1, %v1583_v20  ;;  %v1784_v22 = vpop.permute.xlu0 %1783  ;;  %v1786_v23 = vpop.permute.xlu1 %1785 }
  0xe7   : > { %3323 = vrot.lane.b32.xlu0 %v6998_v4, %s6926_s7  ;;  %v1800_v40 = vsel %vm1799_vm9, %v1784_v22, %v1786_v23 }
  0xe8   : > { %6461 = vmatmul.mubr.msk.bf16.vlgmr.msra.gmra.mrb[44].mxu0 %vm305_vm2, %v6455_v2  ;;  %3325 = vrot.lane.b32.xlu1 %v7001_v5, %s6926_s7  ;;  %v1811_v42 = vsel %vm309_vm1, %v1800_v40, 0 }
  0xe9   : > { %1612 = vmatpush1.bf16.msra.mxu0 %v1591_v21  ;;  %1643 = vmatprep.mubr.bf16.mxu0 %v6910_v0 }
  0xea   : > { %6468 = vmatprep.subr.msk.bf16.mxu0 %vm309_vm1, %v1585_v25  ;;  %v1788_v27 = vpop.permute.xlu0 %1787  ;;  %v1790_v28 = vpop.permute.xlu1 %1789 }
  0xeb   : > { %3327 = vrot.lane.b32.xlu0 %v6996_v3, %s6926_s7  ;;  %v1801_v36 = vsel %vm1799_vm9, %v1786_v23, %v1788_v27  ;;  %v1802_v45 = vsel %vm1799_vm9, %v1788_v27, %v1790_v28 }
  0xec   : > { %6721 = vmatmul.mubr.msk.bf16.vlgmr.msra.gmra.mrb[44].mxu1 %vm305_vm2, %v6455_v2  ;;  %3329 = vrot.lane.b32.xlu1 %v7004_v6, %s6926_s7  ;;  %v1817_v47 = vsel %vm309_vm1, %v1802_v45, 0 }
  0xed   : > { %1653 = vmatpush1.bf16.msra.mxu1 %v1597_v26  ;;  %1684 = vmatprep.mubr.bf16.mxu1 %v6910_v0 }
  0xee   : > { %6724 = vmatprep.subr.bf16.mxu1 %v6919_v29  ;;  %v1792_v33 = vpop.permute.xlu0 %1791  ;;  %v1794_v34 = vpop.permute.xlu1 %1793 }
  0xef   : > { %3331 = vrot.lane.b32.xlu0 %v7011_v9, %s6926_s7  ;;  %v1803_v41 = vsel %vm1799_vm9, %v1790_v28, %v1792_v33  ;;  %v1804_v50 = vsel %vm1799_vm9, %v1792_v33, %v1794_v34 }
  0xf0   : > { %6465 = vmatmul.mubr.msk.bf16.vlgmr.msra.gmra.mrb[48].mxu0 %vm305_vm2, %v6463_v31  ;;  %3333 = vrot.lane.b32.xlu1 %v7009_v8, %s6926_s7  ;;  %v1823_v52 = vsel %vm309_vm1, %v1804_v50, 0 }
  0xf1   : > { %1694 = vmatpush1.bf16.msra.mxu0 %v1603_v32  ;;  %1725 = vmatprep.mubr.bf16.mxu0 %v6910_v0 }
  0xf2   : > { %6472 = vmatprep.subr.msk.bf16.mxu0 %vm309_vm1, %v1801_v36  ;;  %v1796_v38 = vpop.permute.xlu0 %1795  ;;  %v1798_v39 = vpop.permute.xlu1 %1797 }
  0xf3   : > { %3335 = vrot.lane.b32.xlu0 %v7016_v11, %s6926_s7  ;;  %v1805_v46 = vsel %vm1799_vm9, %v1794_v34, %v1796_v38  ;;  %v1806_v54 = vsel %vm1799_vm9, %v1796_v38, %v1798_v39  ;;  %vm4882_vm9 = vcmask 375808  }
  0xf4   : > { %6467 = vmatmul.mubr.msk.bf16.vlgmr.msra.gmra.mrb[48].mxu1 %vm305_vm2, %v6463_v31  ;;  %3337 = vrot.lane.b32.xlu1 %v7018_v12, %s6926_s7  ;;  %v1829_v57 = vsel %vm309_vm1, %v1806_v54, 0  ;;  %v6495_v54 = vld [vmem:[%s8313_s1 + $0x28] sm:$0xf]  ;;  %s251_s7 = scalar_lea.vmem %s8318_s6, %s6851_s28 }
  0xf5   : > { %6725 = vmatpush3.bf16.msra.mxu1 %v1609_v37  ;;  %6726 = vmatprep.mubr.msk.bf16.mxu1 %vm6920_vm3, %v6919_v29 }
  0xf6   : > { %6474 = vmatprep.subr.msk.bf16.mxu1 %vm309_vm1, %v1803_v41  ;;  %v2004_v43 = vpop.permute.xlu0 %2003  ;;  %v2006_v44 = vpop.permute.xlu1 %2005 }
  0xf7   : > { %3543 = vrot.lane.b32.xlu0 %v6998_v4, %s6927_s10  ;;  %v2020_v58 = vsel %vm2019_vm10, %v2004_v43, %v2006_v44 }
  0xf8   : > { %6469 = vmatmul.mubr.msk.bf16.vlgmr.msra.gmra.mrb[52].mxu0 %vm305_vm2, %v6463_v31  ;;  %3545 = vrot.lane.b32.xlu1 %v7001_v5, %s6927_s10  ;;  %v2031_v62 = vsel %vm309_vm1, %v2020_v58, 0 }
  0xf9   : > { %1832 = vmatpush1.bf16.msra.mxu0 %v1811_v42  ;;  %1863 = vmatprep.mubr.bf16.mxu0 %v6910_v0 }
  0xfa   : > { %6476 = vmatprep.subr.msk.bf16.mxu0 %vm309_vm1, %v1805_v46  ;;  %v2008_v48 = vpop.permute.xlu0 %2007  ;;  %v2010_v49 = vpop.permute.xlu1 %2009 }
  0xfb   : > { %3547 = vrot.lane.b32.xlu0 %v6996_v3, %s6927_s10  ;;  %v2021_v55 = vsel %vm2019_vm10, %v2006_v44, %v2008_v48  ;;  %v2022_v63 = vsel %vm2019_vm10, %v2008_v48, %v2010_v49 }
  0xfc   : > { %6727 = vmatmul.mubr.msk.bf16.vlgmr.msra.gmra.mrb[52].mxu1 %vm305_vm2, %v6463_v31  ;;  %3549 = vrot.lane.b32.xlu1 %v7004_v6, %s6927_s10  ;;  %v2037_v7 = vsel %vm309_vm1, %v2022_v63, 0 }
  0xfd   : > { %1873 = vmatpush1.bf16.msra.mxu1 %v1817_v47  ;;  %1904 = vmatprep.mubr.bf16.mxu1 %v6910_v0 }
  0xfe   : > { %6730 = vmatprep.subr.bf16.mxu1 %v6919_v29  ;;  %v2012_v53 = vpop.permute.xlu0 %2011 }
  0xff   : > { %3551 = vrot.lane.b32.xlu0 %v7011_v9, %s6927_s10  ;;  %v2014_v56 = vpop.permute.xlu1 %2013  ;;  %v2023_v59 = vsel %vm2019_vm10, %v2010_v49, %v2012_v53 }
 0x100   : > { %6473 = vmatmul.mubr.msk.bf16.vlgmr.msra.gmra.mrb[56].mxu0 %vm305_vm2, %v6471_v51  ;;  %3553 = vrot.lane.b32.xlu1 %v7009_v8, %s6927_s10  ;;  %v2024_v13 = vsel %vm2019_vm10, %v2012_v53, %v2014_v56 }
 0x101   : > { %1914 = vmatpush1.bf16.msra.mxu0 %v1823_v52  ;;  %1945 = vmatprep.mubr.bf16.mxu0 %v6910_v0  ;;  %v2043_v16 = vsel %vm309_vm1, %v2024_v13, 0 }
 0x102   : > { %6480 = vmatprep.subr.msk.bf16.mxu0 %vm309_vm1, %v2021_v55 }
 0x103   : > { %3555 = vrot.lane.b32.xlu0 %v7016_v11, %s6927_s10 }
 0x104   : > { %6475 = vmatmul.mubr.msk.bf16.vlgmr.msra.gmra.mrb[56].mxu1 %vm305_vm2, %v6471_v51  ;;  %v2016_v60 = vpop.permute.xlu0 %2015  ;;  %3557 = vrot.lane.b32.xlu1 %v7018_v12, %s6927_s10 }
 0x105   : > { %6731 = vmatpush3.bf16.msra.mxu1 %v1829_v57  ;;  %6732 = vmatprep.mubr.msk.bf16.mxu1 %vm6920_vm3, %v6919_v29  ;;  %v2018_v61 = vpop.permute.xlu1 %2017  ;;  %v2025_v1 = vsel %vm2019_vm10, %v2014_v56, %v2016_v60 }
 0x106   : > { %6482 = vmatprep.subr.msk.bf16.mxu1 %vm309_vm1, %v2023_v59  ;;  %v2026_v18 = vsel %vm2019_vm10, %v2016_v60, %v2018_v61  ;;  %v7532_v60 = vld [vmem:[%s6990_s26 + $0x20] ss:$0 sps:$4 sm:$0xff]   ;;  %s6931_s26 = smov 55   ;;  %vm5102_vm10 = vcmask 367616  }
 0x107   : > { %3763 = vrot.lane.b32.xlu0 %v6998_v4, %s6928_s13  ;;  %v2049_v21 = vsel %vm309_vm1, %v2026_v18, 0 }
 0x108   : > { %6477 = vmatmul.mubr.msk.bf16.vlgmr.msra.gmra.mrb[60].mxu0 %vm305_vm2, %v6471_v51  ;;  %3765 = vrot.lane.b32.xlu1 %v7001_v5, %s6928_s13 }
 0x109   : > { %2052 = vmatpush1.bf16.msra.mxu0 %v2031_v62  ;;  %2083 = vmatprep.mubr.bf16.mxu0 %v6910_v0  ;;  %v2224_v2 = vpop.permute.xlu0 %2223 }
 0x10a   : > { %6484 = vmatprep.subr.msk.bf16.mxu0 %vm309_vm1, %v2025_v1  ;;  %v2226_v10 = vpop.permute.xlu1 %2225 }
 0x10b   : > { %3767 = vrot.lane.b32.xlu0 %v6996_v3, %s6928_s13  ;;  %v2240_v23 = vsel %vm2239_vm11, %v2224_v2, %v2226_v10 }
 0x10c   : > { %6733 = vmatmul.mubr.msk.bf16.vlgmr.msra.gmra.mrb[60].mxu1 %vm305_vm2, %v6471_v51  ;;  %3769 = vrot.lane.b32.xlu1 %v7004_v6, %s6928_s13  ;;  %v2251_v26 = vsel %vm309_vm1, %v2240_v23, 0 }
 0x10d   : > { %2093 = vmatpush1.bf16.msra.mxu1 %v2037_v7  ;;  %2124 = vmatprep.mubr.bf16.mxu1 %v6910_v0  ;;  %v2228_v15 = vpop.permute.xlu0 %2227 }
 0x10e   : > { %6736 = vmatprep.subr.bf16.mxu1 %v6919_v29  ;;  %v2230_v17 = vpop.permute.xlu1 %2229  ;;  %v2241_v19 = vsel %vm2239_vm11, %v2226_v10, %v2228_v15 }
 0x10f   : > { %3771 = vrot.lane.b32.xlu0 %v7011_v9, %s6928_s13  ;;  %v2242_v28 = vsel %vm2239_vm11, %v2228_v15, %v2230_v17 }
 0x110   : > { %6481 = vmatmul.mubr.msk.bf16.vlgmr.msra.gmra.mrb[64].mxu0 %vm305_vm2, %v6479_v14  ;;  %3773 = vrot.lane.b32.xlu1 %v7009_v8, %s6928_s13  ;;  %v2257_v32 = vsel %vm309_vm1, %v2242_v28, 0 }
 0x111   : > { %2134 = vmatpush1.bf16.msra.mxu0 %v2043_v16  ;;  %2165 = vmatprep.mubr.bf16.mxu0 %v6910_v0  ;;  %v2232_v20 = vpop.permute.xlu0 %2231 }
 0x112   : > { %6488 = vmatprep.subr.msk.bf16.mxu0 %vm309_vm1, %v2241_v19  ;;  %v2234_v22 = vpop.permute.xlu1 %2233  ;;  %v2243_v24 = vsel %vm2239_vm11, %v2230_v17, %v2232_v20 }
 0x113   : > { %3775 = vrot.lane.b32.xlu0 %v7016_v11, %s6928_s13  ;;  %v2244_v34 = vsel %vm2239_vm11, %v2232_v20, %v2234_v22  ;;  %v6503_v20 = vld [vmem:[%s8313_s1 + $0x2c] sm:$0xf] }
 0x114   : > { %6483 = vmatmul.mubr.msk.bf16.vlgmr.msra.gmra.mrb[64].mxu1 %vm305_vm2, %v6479_v14  ;;  %3777 = vrot.lane.b32.xlu1 %v7018_v12, %s6928_s13  ;;  %v2263_v36 = vsel %vm309_vm1, %v2244_v34, 0 }
 0x115   : > { %6737 = vmatpush3.bf16.msra.mxu1 %v2049_v21  ;;  %6738 = vmatprep.mubr.msk.bf16.mxu1 %vm6920_vm3, %v6919_v29  ;;  %v2236_v25 = vpop.permute.xlu0 %2235 }
 0x116   : > { %6490 = vmatprep.subr.msk.bf16.mxu1 %vm309_vm1, %v2243_v24  ;;  %v2238_v27 = vpop.permute.xlu1 %2237  ;;  %v2245_v30 = vsel %vm2239_vm11, %v2234_v22, %v2236_v25 }
 0x117   : > { %3983 = vrot.lane.b32.xlu0 %v6998_v4, %s6929_s16  ;;  %v6487_v4 = vld [vmem:[%s8313_s1 + $0x24] sm:$0xf]  ;;  %v2246_v38 = vsel %vm2239_vm11, %v2236_v25, %v2238_v27  ;;  %vm5322_vm11 = vcmask 359424  }
 0x118   : > { %6485 = vmatmul.mubr.msk.bf16.vlgmr.msra.gmra.mrb[68].mxu0 %vm305_vm2, %v6479_v14  ;;  %3985 = vrot.lane.b32.xlu1 %v7001_v5, %s6929_s16  ;;  %v2269_v41 = vsel %vm309_vm1, %v2246_v38, 0 }
 0x119   : > { %2272 = vmatpush1.bf16.msra.mxu0 %v2251_v26  ;;  %2303 = vmatprep.mubr.bf16.mxu0 %v6910_v0  ;;  %v2444_v31 = vpop.permute.xlu0 %2443 }
 0x11a   : > { %6492 = vmatprep.subr.msk.bf16.mxu0 %vm309_vm1, %v2245_v30  ;;  %v2446_v33 = vpop.permute.xlu1 %2445 }
 0x11b   : > { %3987 = vrot.lane.b32.xlu0 %v6996_v3, %s6929_s16  ;;  %v2460_v43 = vsel %vm2459_vm12, %v2444_v31, %v2446_v33 }
 0x11c   : > { %6739 = vmatmul.mubr.msk.bf16.vlgmr.msra.gmra.mrb[68].mxu1 %vm305_vm2, %v6479_v14  ;;  %3989 = vrot.lane.b32.xlu1 %v7004_v6, %s6929_s16  ;;  %v2471_v46 = vsel %vm309_vm1, %v2460_v43, 0 }
 0x11d   : > { %2313 = vmatpush1.bf16.msra.mxu1 %v2257_v32  ;;  %2344 = vmatprep.mubr.bf16.mxu1 %v6910_v0  ;;  %v2448_v35 = vpop.permute.xlu0 %2447 }
 0x11e   : > { %6742 = vmatprep.subr.bf16.mxu1 %v6919_v29  ;;  %v2450_v37 = vpop.permute.xlu1 %2449  ;;  %v2461_v39 = vsel %vm2459_vm12, %v2446_v33, %v2448_v35 }
 0x11f   : > { %3991 = vrot.lane.b32.xlu0 %v7011_v9, %s6929_s16  ;;  %v2462_v48 = vsel %vm2459_vm12, %v2448_v35, %v2450_v37 }
 0x120   : > { %6489 = vmatmul.mubr.msk.bf16.vlgmr.msra.gmra.mrb[72].mxu0 %vm305_vm2, %v6487_v4  ;;  %3993 = vrot.lane.b32.xlu1 %v7009_v8, %s6929_s16  ;;  %v2477_v51 = vsel %vm309_vm1, %v2462_v48, 0 }
 0x121   : > { %2354 = vmatpush1.bf16.msra.mxu0 %v2263_v36  ;;  %2385 = vmatprep.mubr.bf16.mxu0 %v6910_v0  ;;  %v2452_v40 = vpop.permute.xlu0 %2451 }
 0x122   : > { %6496 = vmatprep.subr.msk.bf16.mxu0 %vm309_vm1, %v2461_v39  ;;  %v2454_v42 = vpop.permute.xlu1 %2453  ;;  %v2463_v44 = vsel %vm2459_vm12, %v2450_v37, %v2452_v40 }
 0x123   : > { %3995 = vrot.lane.b32.xlu0 %v7016_v11, %s6929_s16  ;;  %v2464_v53 = vsel %vm2459_vm12, %v2452_v40, %v2454_v42  ;;  %v6511_v40 = vld [vmem:[%s8313_s1 + $0x30] sm:$0xf] }
 0x124   : > { %6491 = vmatmul.mubr.msk.bf16.vlgmr.msra.gmra.mrb[72].mxu1 %vm305_vm2, %v6487_v4  ;;  %3997 = vrot.lane.b32.xlu1 %v7018_v12, %s6929_s16  ;;  %v2483_v56 = vsel %vm309_vm1, %v2464_v53, 0 }
 0x125   : > { %6743 = vmatpush3.bf16.msra.mxu1 %v2269_v41  ;;  %6744 = vmatprep.mubr.msk.bf16.mxu1 %vm6920_vm3, %v6919_v29  ;;  %v2456_v45 = vpop.permute.xlu0 %2455 }
 0x126   : > { %6498 = vmatprep.subr.msk.bf16.mxu1 %vm309_vm1, %v2463_v44  ;;  %v2458_v47 = vpop.permute.xlu1 %2457  ;;  %v2465_v49 = vsel %vm2459_vm12, %v2454_v42, %v2456_v45 }
 0x127   : > { %4206 = vrot.lane.b32.xlu0 %v7001_v5, %s6930_s19  ;;  %v2466_v58 = vsel %vm2459_vm12, %v2456_v45, %v2458_v47  ;;  %vm5542_vm12 = vcmask 293888  }
 0x128   : > { %6493 = vmatmul.mubr.msk.bf16.vlgmr.msra.gmra.mrb[76].mxu0 %vm305_vm2, %v6487_v4  ;;  %4208 = vrot.lane.b32.xlu1 %v6996_v3, %s6930_s19  ;;  %v2489_v62 = vsel %vm309_vm1, %v2466_v58, 0 }
 0x129   : > { %2492 = vmatpush1.bf16.msra.mxu0 %v2471_v46  ;;  %2523 = vmatprep.mubr.bf16.mxu0 %v6910_v0  ;;  %v2664_v50 = vpop.permute.xlu0 %2663 }
 0x12a   : > { %6500 = vmatprep.subr.msk.bf16.mxu0 %vm309_vm1, %v2465_v49  ;;  %v2666_v52 = vpop.permute.xlu1 %2665 }
 0x12b   : > { %4210 = vrot.lane.b32.xlu0 %v7004_v6, %s6930_s19  ;;  %v2680_v1 = vsel %vm2679_vm13, %v2664_v50, %v2666_v52 }
 0x12c   : > { %6745 = vmatmul.mubr.msk.bf16.vlgmr.msra.gmra.mrb[76].mxu1 %vm305_vm2, %v6487_v4  ;;  %4212 = vrot.lane.b32.xlu1 %v7011_v9, %s6930_s19  ;;  %v2691_v10 = vsel %vm309_vm1, %v2680_v1, 0 }
 0x12d   : > { %2533 = vmatpush1.bf16.msra.mxu1 %v2477_v51  ;;  %2564 = vmatprep.mubr.bf16.mxu1 %v6910_v0  ;;  %v2668_v55 = vpop.permute.xlu0 %2667 }
 0x12e   : > { %6748 = vmatprep.subr.bf16.mxu1 %v6919_v29  ;;  %v2670_v57 = vpop.permute.xlu1 %2669  ;;  %v2681_v59 = vsel %vm2679_vm13, %v2666_v52, %v2668_v55 }
 0x12f   : > { %4214 = vrot.lane.b32.xlu0 %v7009_v8, %s6930_s19  ;;  %v2682_v14 = vsel %vm2679_vm13, %v2668_v55, %v2670_v57 }
 0x130   : > { %6497 = vmatmul.mubr.msk.bf16.vlgmr.msra.gmra.mrb[80].mxu0 %vm305_vm2, %v6495_v54  ;;  %4216 = vrot.lane.b32.xlu1 %v7016_v11, %s6930_s19  ;;  %v2697_v17 = vsel %vm309_vm1, %v2682_v14, 0 }
 0x131   : > { %2574 = vmatpush1.bf16.msra.mxu0 %v2483_v56  ;;  %2605 = vmatprep.mubr.bf16.mxu0 %v6910_v0  ;;  %v2672_v61 = vpop.permute.xlu0 %2671 }
 0x132   : > { %6504 = vmatprep.subr.msk.bf16.mxu0 %vm309_vm1, %v2681_v59  ;;  %v2674_v63 = vpop.permute.xlu1 %2673  ;;  %v2683_v2 = vsel %vm2679_vm13, %v2670_v57, %v2672_v61 }
 0x133   : > { %4218 = vrot.lane.b32.xlu0 %v7018_v12, %s6930_s19  ;;  %v2684_v19 = vsel %vm2679_vm13, %v2672_v61, %v2674_v63  ;;  %v6519_v61 = vld [vmem:[%s8313_s1 + $0x34] sm:$0xf] }
 0x134   : > { %6499 = vmatmul.mubr.msk.bf16.vlgmr.msra.gmra.mrb[80].mxu1 %vm305_vm2, %v6495_v54  ;;  %4220 = vrot.lane.b32.xlu1 %v7532_v60, %s6930_s19  ;;  %v2703_v22 = vsel %vm309_vm1, %v2684_v19, 0 }
 0x135   : > { %6749 = vmatpush3.bf16.msra.mxu1 %v2489_v62  ;;  %6750 = vmatprep.mubr.msk.bf16.mxu1 %vm6920_vm3, %v6919_v29  ;;  %v2676_v7 = vpop.permute.xlu0 %2675 }
 0x136   : > { %6506 = vmatprep.subr.msk.bf16.mxu1 %vm309_vm1, %v2683_v2  ;;  %v2678_v13 = vpop.permute.xlu1 %2677  ;;  %v2685_v15 = vsel %vm2679_vm13, %v2674_v63, %v2676_v7 }
 0x137   : > { %4426 = vrot.lane.b32.xlu0 %v7001_v5, %s6931_s26  ;;  %v2686_v24 = vsel %vm2679_vm13, %v2676_v7, %v2678_v13  ;;  %vm5762_vm13 = vcmask 285696  }
 0x138   : > { %6501 = vmatmul.mubr.msk.bf16.vlgmr.msra.gmra.mrb[84].mxu0 %vm305_vm2, %v6495_v54  ;;  %4428 = vrot.lane.b32.xlu1 %v6996_v3, %s6931_s26  ;;  %v2709_v27 = vsel %vm309_vm1, %v2686_v24, 0 }
 0x139   : > { %2712 = vmatpush1.bf16.msra.mxu0 %v2691_v10  ;;  %2743 = vmatprep.mubr.bf16.mxu0 %v6910_v0  ;;  %v2884_v16 = vpop.permute.xlu0 %2883 }
 0x13a   : > { %6508 = vmatprep.subr.msk.bf16.mxu0 %vm309_vm1, %v2685_v15  ;;  %v2886_v18 = vpop.permute.xlu1 %2885 }
 0x13b   : > { %4430 = vrot.lane.b32.xlu0 %v7004_v6, %s6931_s26  ;;  %v2900_v30 = vsel %vm2899_vm14, %v2884_v16, %v2886_v18 }
 0x13c   : > { %6751 = vmatmul.mubr.msk.bf16.vlgmr.msra.gmra.mrb[84].mxu1 %vm305_vm2, %v6495_v54  ;;  %4432 = vrot.lane.b32.xlu1 %v7011_v9, %s6931_s26  ;;  %v2911_v33 = vsel %vm309_vm1, %v2900_v30, 0 }
 0x13d   : > { %2753 = vmatpush1.bf16.msra.mxu1 %v2697_v17  ;;  %2784 = vmatprep.mubr.bf16.mxu1 %v6910_v0  ;;  %v2888_v21 = vpop.permute.xlu0 %2887 }
 0x13e   : > { %6754 = vmatprep.subr.bf16.mxu1 %v6919_v29  ;;  %v2890_v23 = vpop.permute.xlu1 %2889  ;;  %v2901_v25 = vsel %vm2899_vm14, %v2886_v18, %v2888_v21 }
 0x13f   : > { %4434 = vrot.lane.b32.xlu0 %v7009_v8, %s6931_s26  ;;  %v2902_v4 = vsel %vm2899_vm14, %v2888_v21, %v2890_v23 }
 0x140   : > { %6505 = vmatmul.mubr.msk.bf16.vlgmr.msra.gmra.mrb[88].mxu0 %vm305_vm2, %v6503_v20  ;;  %4436 = vrot.lane.b32.xlu1 %v7016_v11, %s6931_s26  ;;  %v2917_v37 = vsel %vm309_vm1, %v2902_v4, 0 }
 0x141   : > { %2794 = vmatpush1.bf16.msra.mxu0 %v2703_v22  ;;  %2825 = vmatprep.mubr.bf16.mxu0 %v6910_v0  ;;  %v2892_v26 = vpop.permute.xlu0 %2891 }
 0x142   : > { %6512 = vmatprep.subr.msk.bf16.mxu0 %vm309_vm1, %v2901_v25  ;;  %v2894_v28 = vpop.permute.xlu1 %2893  ;;  %v2903_v31 = vsel %vm2899_vm14, %v2890_v23, %v2892_v26 }
 0x143   : > { %4438 = vrot.lane.b32.xlu0 %v7018_v12, %s6931_s26  ;;  %v2904_v39 = vsel %vm2899_vm14, %v2892_v26, %v2894_v28 }
 0x144   : > { %6507 = vmatmul.mubr.msk.bf16.vlgmr.msra.gmra.mrb[88].mxu1 %vm305_vm2, %v6503_v20  ;;  %4440 = vrot.lane.b32.xlu1 %v7532_v60, %s6931_s26  ;;  %v2923_v42 = vsel %vm309_vm1, %v2904_v39, 0 }
 0x145   : > { %6755 = vmatpush3.bf16.msra.mxu1 %v2709_v27  ;;  %6756 = vmatprep.mubr.msk.bf16.mxu1 %vm6920_vm3, %v6919_v29  ;;  %v2896_v32 = vpop.permute.xlu0 %2895 }
 0x146   : > { %6514 = vmatprep.subr.msk.bf16.mxu1 %vm309_vm1, %v2903_v31  ;;  %v2898_v34 = vpop.permute.xlu1 %2897  ;;  %v2905_v35 = vsel %vm2899_vm14, %v2894_v28, %v2896_v32 }
 0x147   : > { %4646 = vrot.lane.b32.xlu0 %v7001_v5, %s6932_s27  ;;  %v2906_v44 = vsel %vm2899_vm14, %v2896_v32, %v2898_v34  ;;  %vm5982_vm14 = vcmask 277504  }
 0x148   : > { %6509 = vmatmul.mubr.msk.bf16.vlgmr.msra.gmra.mrb[92].mxu0 %vm305_vm2, %v6503_v20  ;;  %4648 = vrot.lane.b32.xlu1 %v6996_v3, %s6932_s27  ;;  %v2929_v47 = vsel %vm309_vm1, %v2906_v44, 0 }
 0x149   : > { %2932 = vmatpush1.bf16.msra.mxu0 %v2911_v33  ;;  %2963 = vmatprep.mubr.bf16.mxu0 %v6910_v0  ;;  %v3104_v36 = vpop.permute.xlu0 %3103 }
 0x14a   : > { %6516 = vmatprep.subr.msk.bf16.mxu0 %vm309_vm1, %v2905_v35  ;;  %v3106_v38 = vpop.permute.xlu1 %3105 }
 0x14b   : > { %4650 = vrot.lane.b32.xlu0 %v7004_v6, %s6932_s27  ;;  %v3120_v49 = vsel %vm3119_vm15, %v3104_v36, %v3106_v38 }
 0x14c   : > { %6757 = vmatmul.mubr.msk.bf16.vlgmr.msra.gmra.mrb[92].mxu1 %vm305_vm2, %v6503_v20  ;;  %4652 = vrot.lane.b32.xlu1 %v7011_v9, %s6932_s27  ;;  %v3131_v52 = vsel %vm309_vm1, %v3120_v49, 0 }
 0x14d   : > { %2973 = vmatpush1.bf16.msra.mxu1 %v2917_v37  ;;  %3004 = vmatprep.mubr.bf16.mxu1 %v6910_v0  ;;  %v3108_v41 = vpop.permute.xlu0 %3107  ;;  %v6527_v37 = vld [vmem:[%s8313_s1 + $0x38] sm:$0xf] }
 0x14e   : > { %6760 = vmatprep.subr.bf16.mxu1 %v6919_v29  ;;  %v3110_v43 = vpop.permute.xlu1 %3109  ;;  %v3121_v45 = vsel %vm3119_vm15, %v3106_v38, %v3108_v41 }
 0x14f   : > { %4654 = vrot.lane.b32.xlu0 %v7009_v8, %s6932_s27  ;;  %v3122_v54 = vsel %vm3119_vm15, %v3108_v41, %v3110_v43 }
 0x150   : > { %6513 = vmatmul.mubr.msk.bf16.vlgmr.msra.gmra.mrb[96].mxu0 %vm305_vm2, %v6511_v40  ;;  %4656 = vrot.lane.b32.xlu1 %v7016_v11, %s6932_s27  ;;  %v3137_v57 = vsel %vm309_vm1, %v3122_v54, 0 }
 0x151   : > { %3014 = vmatpush1.bf16.msra.mxu0 %v2923_v42  ;;  %3045 = vmatprep.mubr.bf16.mxu0 %v6910_v0  ;;  %v3112_v46 = vpop.permute.xlu0 %3111 }
 0x152   : > { %6520 = vmatprep.subr.msk.bf16.mxu0 %vm309_vm1, %v3121_v45  ;;  %v3114_v48 = vpop.permute.xlu1 %3113  ;;  %v3123_v50 = vsel %vm3119_vm15, %v3110_v43, %v3112_v46 }
 0x153   : > { %4658 = vrot.lane.b32.xlu0 %v7018_v12, %s6932_s27  ;;  %v3124_v59 = vsel %vm3119_vm15, %v3112_v46, %v3114_v48 }
 0x154   : > { %6515 = vmatmul.mubr.msk.bf16.vlgmr.msra.gmra.mrb[96].mxu1 %vm305_vm2, %v6511_v40  ;;  %4660 = vrot.lane.b32.xlu1 %v7532_v60, %s6932_s27  ;;  %v3143_v63 = vsel %vm309_vm1, %v3124_v59, 0 }
 0x155   : > { %6761 = vmatpush3.bf16.msra.mxu1 %v2929_v47  ;;  %6762 = vmatprep.mubr.msk.bf16.mxu1 %vm6920_vm3, %v6919_v29  ;;  %v3116_v51 = vpop.permute.xlu0 %3115 }
 0x156   : > { %6522 = vmatprep.subr.msk.bf16.mxu1 %vm309_vm1, %v3123_v50  ;;  %v3118_v53 = vpop.permute.xlu1 %3117  ;;  %v3125_v55 = vsel %vm3119_vm15, %v3114_v48, %v3116_v51 }
 0x157   : > { %4866 = vrot.lane.b32.xlu0 %v7001_v5, %s6933_s30  ;;  %v3126_v2 = vsel %vm3119_vm15, %v3116_v51, %v3118_v53 }
 0x158   : > { %6517 = vmatmul.mubr.msk.bf16.vlgmr.msra.gmra.mrb[100].mxu0 %vm305_vm2, %v6511_v40  ;;  %4868 = vrot.lane.b32.xlu1 %v6996_v3, %s6933_s30  ;;  %v3149_v13 = vsel %vm309_vm1, %v3126_v2, 0 }
 0x159   : > { %3152 = vmatpush1.bf16.msra.mxu0 %v3131_v52  ;;  %3183 = vmatprep.mubr.bf16.mxu0 %v6910_v0  ;;  %v3324_v56 = vpop.permute.xlu0 %3323 }
 0x15a   : > { %6524 = vmatprep.subr.msk.bf16.mxu0 %vm309_vm1, %v3125_v55  ;;  %v3326_v58 = vpop.permute.xlu1 %3325 }
 0x15b   : > { %4870 = vrot.lane.b32.xlu0 %v7004_v6, %s6933_s30  ;;  %v3340_v16 = vsel %vm3339_vm0, %v3324_v56, %v3326_v58 }
 0x15c   : > { %6763 = vmatmul.mubr.msk.bf16.vlgmr.msra.gmra.mrb[100].mxu1 %vm305_vm2, %v6511_v40  ;;  %4872 = vrot.lane.b32.xlu1 %v7011_v9, %s6933_s30  ;;  %v3351_v22 = vsel %vm309_vm1, %v3340_v16, 0 }
 0x15d   : > { %3193 = vmatpush1.bf16.msra.mxu1 %v3137_v57  ;;  %3224 = vmatprep.mubr.bf16.mxu1 %v6910_v0  ;;  %v3328_v62 = vpop.permute.xlu0 %3327 }
 0x15e   : > { %6766 = vmatprep.subr.bf16.mxu1 %v6919_v29  ;;  %v3330_v1 = vpop.permute.xlu1 %3329  ;;  %v3341_v7 = vsel %vm3339_vm0, %v3326_v58, %v3328_v62 }
 0x15f   : > { %4874 = vrot.lane.b32.xlu0 %v7009_v8, %s6933_s30  ;;  %v3342_v25 = vsel %vm3339_vm0, %v3328_v62, %v3330_v1 }
 0x160   : > { %6521 = vmatmul.mubr.msk.bf16.vlgmr.msra.gmra.mrb[104].mxu0 %vm305_vm2, %v6519_v61  ;;  %4876 = vrot.lane.b32.xlu1 %v7016_v11, %s6933_s30  ;;  %v3357_v32 = vsel %vm309_vm1, %v3342_v25, 0  ;;  %v7771_v25 = vld [vmem:[%s8313_s1 + $0x3c] sm:$0xf] }
 0x161   : > { %3234 = vmatpush1.bf16.msra.mxu0 %v3143_v63  ;;  %3265 = vmatprep.mubr.bf16.mxu0 %v6910_v0  ;;  %v3332_v10 = vpop.permute.xlu0 %3331 }
 0x162   : > { %6528 = vmatprep.subr.msk.bf16.mxu0 %vm309_vm1, %v3341_v7  ;;  %v3334_v14 = vpop.permute.xlu1 %3333  ;;  %v3343_v17 = vsel %vm3339_vm0, %v3330_v1, %v3332_v10 }
 0x163   : > { %v7666_v15 = vpop.f32.mrb[0].mxu0  ;;  %4878 = vrot.lane.b32.xlu0 %v7018_v12, %s6933_s30  ;;  %v3344_v4 = vsel %vm3339_vm0, %v3332_v10, %v3334_v14 }
 0x164   : > { %6523 = vmatmul.mubr.msk.bf16.vlgmr.msra.gmra.mrb[104].mxu1 %vm305_vm2, %v6519_v61  ;;  %v7673_v18 = vpop.f32.mrb[1].mxu0  ;;  %4880 = vrot.lane.b32.xlu1 %v7532_v60, %s6933_s30  ;;  %v3363_v40 = vsel %vm309_vm1, %v3344_v4, 0 }
 0x165   : > { %6767 = vmatpush3.bf16.msra.mxu1 %v3149_v13  ;;  %v369_v19 = vpop.f32.mrb[2].mxu0  ;;  %6768 = vmatprep.mubr.msk.bf16.mxu1 %vm6920_vm3, %v6919_v29  ;;  %v3336_v20 = vpop.permute.xlu0 %3335 }
 0x166   : > { %v370_v21 = vpop.f32.mrb[3].mxu0  ;;  %6530 = vmatprep.subr.msk.bf16.mxu1 %vm309_vm1, %v3343_v17  ;;  %v3338_v23 = vpop.permute.xlu1 %3337  ;;  %v3345_v26 = vsel %vm3339_vm0, %v3334_v14, %v3336_v20 }
 0x167   : > { %v7681_v24 = vpop.f32.mrb[0].mxu1  ;;  %5086 = vrot.lane.b32.xlu0 %v7001_v5, %s6934_s9  ;;  %v3346_v43 = vsel %vm3339_vm0, %v3336_v20, %v3338_v23 }
 0x168   : > { %6525 = vmatmul.mubr.msk.bf16.vlgmr.msra.gmra.mrb[108].mxu0 %vm305_vm2, %v6519_v61  ;;  %v7688_v27 = vpop.f32.mrb[1].mxu1  ;;  %5088 = vrot.lane.b32.xlu1 %v6996_v3, %s6934_s9  ;;  %v3369_v48 = vsel %vm309_vm1, %v3346_v43, 0 }
 0x169   : > { %3372 = vmatpush1.bf16.msra.mxu0 %v3351_v22  ;;  %v410_v28 = vpop.f32.mrb[2].mxu1  ;;  %3403 = vmatprep.mubr.bf16.mxu0 %v6910_v0  ;;  %v3544_v30 = vpop.permute.xlu0 %3543 }
 0x16a   : > { %v411_v31 = vpop.f32.mrb[3].mxu1  ;;  %6532 = vmatprep.subr.msk.bf16.mxu0 %vm309_vm1, %v3345_v26  ;;  %v3546_v33 = vpop.permute.xlu1 %3545 }
 0x16b   : > { %v7695_v34 = vpop.f32.mrb[4].mxu0  ;;  %5090 = vrot.lane.b32.xlu0 %v7004_v6, %s6934_s9  ;;  %v3560_v52 = vsel %vm305_vm2, %v3544_v30, %v3546_v33 }
 0x16c   : > { %6769 = vmatmul.mubr.msk.bf16.vlgmr.msra.gmra.mrb[108].mxu1 %vm305_vm2, %v6519_v61  ;;  %v7701_v35 = vpop.f32.mrb[5].mxu0  ;;  %5092 = vrot.lane.b32.xlu1 %v7011_v9, %s6934_s9  ;;  %v3571_v61 = vsel %vm309_vm1, %v3560_v52, 0 }
 0x16d   : > { %3413 = vmatpush1.bf16.msra.mxu1 %v3357_v32  ;;  %v451_v36 = vpop.f32.mrb[6].mxu0  ;;  %3444 = vmatprep.mubr.bf16.mxu1 %v6910_v0  ;;  %v3548_v38 = vpop.permute.xlu0 %3547 }
 0x16e   : > { %v452_v39 = vpop.f32.mrb[7].mxu0  ;;  %6772 = vmatprep.subr.bf16.mxu1 %v6919_v29  ;;  %v3550_v41 = vpop.permute.xlu1 %3549  ;;  %v3561_v44 = vsel %vm305_vm2, %v3546_v33, %v3548_v38 }
 0x16f   : > { %v7711_v42 = vpop.f32.mrb[4].mxu1  ;;  %5094 = vrot.lane.b32.xlu0 %v7009_v8, %s6934_s9  ;;  %v3562_v1 = vsel %vm305_vm2, %v3548_v38, %v3550_v41 }
 0x170   : > { %6529 = vmatmul.mubr.msk.bf16.vlgmr.msra.gmra.mrb[112].mxu0 %vm305_vm2, %v6527_v37  ;;  %v6692_v45 = vpop.f32.mrb[5].mxu1  ;;  %5096 = vrot.lane.b32.xlu1 %v7016_v11, %s6934_s9  ;;  %v3577_v16 = vsel %vm309_vm1, %v3562_v1, 0 }
 0x171   : > { %3454 = vmatpush1.bf16.msra.mxu0 %v3363_v40  ;;  %v491_v46 = vpop.f32.mrb[6].mxu1  ;;  %3485 = vmatprep.mubr.bf16.mxu0 %v6910_v0  ;;  %v3552_v47 = vpop.permute.xlu0 %3551 }
 0x172   : > { %v6693_v49 = vpop.f32.mrb[7].mxu1  ;;  %6536 = vmatprep.subr.msk.bf16.mxu0 %vm309_vm1, %v3561_v44  ;;  %v3554_v50 = vpop.permute.xlu1 %3553  ;;  %v3563_v53 = vsel %vm305_vm2, %v3550_v41, %v3552_v47 }
 0x173   : > { %v552_v51 = vpop.f32.mrb[8].mxu0  ;;  %5098 = vrot.lane.b32.xlu0 %v7018_v12, %s6934_s9  ;;  %v3564_v20 = vsel %vm305_vm2, %v3552_v47, %v3554_v50 }
 0x174   : > { %v7728_v54 = vadd.f32 %v552_v51, %v7666_v15  ;;  %v554_v55 = vpop.f32.mrb[9].mxu0  ;;  %6531 = vmatmul.mubr.msk.bf16.vlgmr.msra.gmra.mrb[112].mxu1 %vm305_vm2, %v6527_v37  ;;  %5100 = vrot.lane.b32.xlu1 %v7532_v60, %s6934_s9 }
 0x175   : > { %v7734_v56 = vadd.f32 %v554_v55, %v7673_v18  ;;  %6773 = vmatpush3.bf16.msra.mxu1 %v3369_v48  ;;  %v556_v57 = vpop.f32.mrb[10].mxu0  ;;  %6774 = vmatprep.mubr.msk.bf16.mxu1 %vm6920_vm3, %v6919_v29  ;;  %v3556_v58 = vpop.permute.xlu0 %3555 }
 0x176   : > { %v557_v59 = vpop.f32.mrb[11].mxu0  ;;  %6538 = vmatprep.subr.msk.bf16.mxu1 %vm309_vm1, %v3563_v53  ;;  %v3558_v62 = vpop.permute.xlu1 %3557  ;;  %v3565_v2 = vsel %vm305_vm2, %v3554_v50, %v3556_v58 }
 0x177   : > { %v593_v63 = vpop.f32.mrb[8].mxu1  ;;  %5306 = vrot.lane.b32.xlu0 %v7001_v5, %s6935_s12  ;;  %v3566_v32 = vsel %vm305_vm2, %v3556_v58, %v3558_v62 }
 0x178   : > { %v7745_v7 = vadd.f32 %v593_v63, %v7681_v24  ;;  %v595_v10 = vpop.f32.mrb[9].mxu1  ;;  %6533 = vmatmul.mubr.msk.bf16.vlgmr.msra.gmra.mrb[116].mxu0 %vm305_vm2, %v6527_v37  ;;  %5308 = vrot.lane.b32.xlu1 %v6996_v3, %s6935_s12 }
 0x179   : > { %v7751_v13 = vadd.f32 %v595_v10, %v7688_v27  ;;  %3592 = vmatpush1.bf16.msra.mxu0 %v3571_v61  ;;  %v597_v14 = vpop.f32.mrb[10].mxu1  ;;  %3623 = vmatprep.mubr.bf16.mxu0 %v6910_v0  ;;  %v3764_v15 = vpop.permute.xlu0 %3763  ;;  %v3583_v27 = vsel %vm309_vm1, %v3564_v20, 0 }
 0x17a   : > { %v598_v17 = vpop.f32.mrb[11].mxu1  ;;  %6540 = vmatprep.subr.msk.bf16.mxu0 %vm309_vm1, %v3565_v2  ;;  %v3766_v18 = vpop.permute.xlu1 %3765  ;;  %v7841_v14 = vld [vmem:[%s8313_s1 + $0x40] sm:$0xf] }
 0x17b   : > { %v634_v19 = vpop.f32.mrb[12].mxu0  ;;  %5310 = vrot.lane.b32.xlu0 %v7004_v6, %s6935_s12  ;;  %v3780_v41 = vsel %vm3779_vm4, %v3764_v15, %v3766_v18 }
 0x17c   : > { %v7760_v21 = vadd.f32 %v634_v19, %v7695_v34  ;;  %v636_v22 = vpop.f32.mrb[13].mxu0  ;;  %6775 = vmatmul.mubr.msk.bf16.vlgmr.msra.gmra.mrb[116].mxu1 %vm305_vm2, %v6527_v37  ;;  %5312 = vrot.lane.b32.xlu1 %v7011_v9, %s6935_s12  ;;  %v3589_v37 = vsel %vm309_vm1, %v3566_v32, 0  ;;  %v3791_v48 = vsel %vm309_vm1, %v3780_v41, 0 }
 0x17d   : > { %v7766_v23 = vadd.f32 %v636_v22, %v7701_v35  ;;  %3633 = vmatpush1.bf16.msra.mxu1 %v3577_v16  ;;  %v638_v24 = vpop.f32.mrb[14].mxu0  ;;  %3664 = vmatprep.mubr.bf16.mxu1 %v6910_v0  ;;  %v3768_v26 = vpop.permute.xlu0 %3767 }
 0x17e   : > { %v639_v28 = vpop.f32.mrb[15].mxu0  ;;  %6778 = vmatprep.subr.bf16.mxu1 %v6919_v29  ;;  %v3770_v30 = vpop.permute.xlu1 %3769  ;;  %v3781_v33 = vsel %vm3779_vm4, %v3766_v18, %v3768_v26 }
 0x17f   : > { %v675_v31 = vpop.f32.mrb[12].mxu1  ;;  %5314 = vrot.lane.b32.xlu0 %v7009_v8, %s6935_s12  ;;  %v3782_v52 = vsel %vm3779_vm4, %v3768_v26, %v3770_v30 }
 0x180   : > { %v7781_v34 = vadd.f32 %v675_v31, %v7711_v42  ;;  %6537 = vmatmul.mubr.msk.bf16.vlgmr.msra.gmra.mrb[120].mxu0 %vm305_vm2, %v7771_v25  ;;  %v6698_v4 = vpop.f32.mrb[13].mxu1  ;;  %5316 = vrot.lane.b32.xlu1 %v7016_v11, %s6935_s12  ;;  %v3797_v59 = vsel %vm309_vm1, %v3782_v52, 0 }
 0x181   : > { %3674 = vmatpush1.bf16.msra.mxu0 %v3583_v27  ;;  %v678_v35 = vpop.f32.mrb[14].mxu1  ;;  %3705 = vmatprep.mubr.bf16.mxu0 %v6910_v0  ;;  %v3772_v36 = vpop.permute.xlu0 %3771 }
 0x182   : > { %v6699_v38 = vpop.f32.mrb[15].mxu1  ;;  %6544 = vmatprep.subr.msk.bf16.mxu0 %vm309_vm1, %v3781_v33  ;;  %v3774_v39 = vpop.permute.xlu1 %3773  ;;  %v3783_v42 = vsel %vm3779_vm4, %v3770_v30, %v3772_v36 }
 0x183   : > { %v765_v40 = vpop.f32.mrb[16].mxu0  ;;  %5318 = vrot.lane.b32.xlu0 %v7018_v12, %s6935_s12  ;;  %v3784_v1 = vsel %vm3779_vm4, %v3772_v36, %v3774_v39 }
 0x184   : > { %v7795_v43 = vadd.f32 %v765_v40, %v7728_v54  ;;  %v767_v44 = vpop.f32.mrb[17].mxu0  ;;  %6539 = vmatmul.mubr.msk.bf16.vlgmr.msra.gmra.mrb[120].mxu1 %vm305_vm2, %v7771_v25  ;;  %5320 = vrot.lane.b32.xlu1 %v7532_v60, %s6935_s12  ;;  %v3803_v16 = vsel %vm309_vm1, %v3784_v1, 0 }
 0x185   : > { %v7802_v45 = vadd.f32 %v767_v44, %v7734_v56  ;;  %6779 = vmatpush3.bf16.msra.mxu1 %v3589_v37  ;;  %v769_v46 = vpop.f32.mrb[18].mxu0  ;;  %6780 = vmatprep.mubr.msk.bf16.mxu1 %vm6920_vm3, %v6919_v29  ;;  %v3776_v47 = vpop.permute.xlu0 %3775 }
 0x186   : > { %v770_v49 = vpop.f32.mrb[19].mxu0  ;;  %6546 = vmatprep.subr.msk.bf16.mxu1 %vm309_vm1, %v3783_v42  ;;  %v3778_v50 = vpop.permute.xlu1 %3777  ;;  %v3785_v53 = vsel %vm3779_vm4, %v3774_v39, %v3776_v47 }
 0x187   : > { %v806_v51 = vpop.f32.mrb[16].mxu1  ;;  %5526 = vrot.lane.b32.xlu0 %v7001_v5, %s6936_s15  ;;  %v3786_v20 = vsel %vm3779_vm4, %v3776_v47, %v3778_v50 }
 0x188   : > { %v7813_v54 = vadd.f32 %v806_v51, %v7745_v7  ;;  %v808_v55 = vpop.f32.mrb[17].mxu1  ;;  %6541 = vmatmul.mubr.msk.bf16.vlgmr.msra.gmra.mrb[124].mxu0 %vm305_vm2, %v7771_v25  ;;  %5528 = vrot.lane.b32.xlu1 %v6996_v3, %s6936_s15  ;;  %v3809_v26 = vsel %vm309_vm1, %v3786_v20, 0 }
 0x189   : > { %v7820_v56 = vadd.f32 %v808_v55, %v7751_v13  ;;  %3812 = vmatpush1.bf16.msra.mxu0 %v3791_v48  ;;  %v810_v57 = vpop.f32.mrb[18].mxu1  ;;  %3843 = vmatprep.mubr.bf16.mxu0 %v6910_v0  ;;  %v3984_v58 = vpop.permute.xlu0 %3983 }
 0x18a   : > { %v811_v61 = vpop.f32.mrb[19].mxu1  ;;  %6548 = vmatprep.subr.msk.bf16.mxu0 %vm309_vm1, %v3785_v53  ;;  %v3986_v62 = vpop.permute.xlu1 %3985  ;;  %v7911_v57 = vld [vmem:[%s8313_s1 + $0x44] sm:$0xf] }
 0x18b   : > { %v847_v63 = vpop.f32.mrb[20].mxu0  ;;  %5530 = vrot.lane.b32.xlu0 %v7004_v6, %s6936_s15  ;;  %v4000_v31 = vsel %vm3999_vm5, %v3984_v58, %v3986_v62 }
 0x18c   : > { %v7829_v2 = vadd.f32 %v847_v63, %v7760_v21  ;;  %v849_v7 = vpop.f32.mrb[21].mxu0  ;;  %6781 = vmatmul.mubr.msk.bf16.vlgmr.msra.gmra.mrb[124].mxu1 %vm305_vm2, %v7771_v25  ;;  %5532 = vrot.lane.b32.xlu1 %v7011_v9, %s6936_s15  ;;  %v4011_v37 = vsel %vm309_vm1, %v4000_v31, 0 }
 0x18d   : > { %v7836_v10 = vadd.f32 %v849_v7, %v7766_v23  ;;  %3853 = vmatpush1.bf16.msra.mxu1 %v3797_v59  ;;  %v851_v13 = vpop.f32.mrb[22].mxu0  ;;  %3884 = vmatprep.mubr.bf16.mxu1 %v6910_v0  ;;  %v3988_v15 = vpop.permute.xlu0 %3987 }
 0x18e   : > { %v852_v17 = vpop.f32.mrb[23].mxu0  ;;  %6784 = vmatprep.subr.bf16.mxu1 %v6919_v29  ;;  %v3990_v18 = vpop.permute.xlu1 %3989  ;;  %v4001_v21 = vsel %vm3999_vm5, %v3986_v62, %v3988_v15 }
 0x18f   : > { %v888_v19 = vpop.f32.mrb[20].mxu1  ;;  %5534 = vrot.lane.b32.xlu0 %v7009_v8, %s6936_s15  ;;  %v4002_v41 = vsel %vm3999_vm5, %v3988_v15, %v3990_v18 }
 0x190   : > { %v7851_v22 = vadd.f32 %v888_v19, %v7781_v34  ;;  %6545 = vmatmul.mubr.msk.bf16.vlgmr.msra.gmra.mrb[128].mxu0 %vm305_vm2, %v7841_v14  ;;  %v6704_v23 = vpop.f32.mrb[21].mxu1  ;;  %5536 = vrot.lane.b32.xlu1 %v7016_v11, %s6936_s15  ;;  %v4017_v48 = vsel %vm309_vm1, %v4002_v41, 0 }
 0x191   : > { %3894 = vmatpush1.bf16.msra.mxu0 %v3803_v16  ;;  %v891_v24 = vpop.f32.mrb[22].mxu1  ;;  %3925 = vmatprep.mubr.bf16.mxu0 %v6910_v0  ;;  %v3992_v25 = vpop.permute.xlu0 %3991 }
 0x192   : > { %v6705_v27 = vpop.f32.mrb[23].mxu1  ;;  %6552 = vmatprep.subr.msk.bf16.mxu0 %vm309_vm1, %v4001_v21  ;;  %v3994_v28 = vpop.permute.xlu1 %3993  ;;  %v4003_v32 = vsel %vm3999_vm5, %v3990_v18, %v3992_v25 }
 0x193   : > { %v985_v30 = vpop.f32.mrb[24].mxu0  ;;  %5538 = vrot.lane.b32.xlu0 %v7018_v12, %s6936_s15  ;;  %v4004_v52 = vsel %vm3999_vm5, %v3992_v25, %v3994_v28 }
 0x194   : > { %v7865_v33 = vadd.f32 %v985_v30, %v7795_v43  ;;  %v987_v34 = vpop.f32.mrb[25].mxu0  ;;  %6547 = vmatmul.mubr.msk.bf16.vlgmr.msra.gmra.mrb[128].mxu1 %vm305_vm2, %v7841_v14  ;;  %5540 = vrot.lane.b32.xlu1 %v7532_v60, %s6936_s15  ;;  %v4023_v59 = vsel %vm309_vm1, %v4004_v52, 0 }
 0x195   : > { %v7872_v4 = vadd.f32 %v987_v34, %v7802_v45  ;;  %6785 = vmatpush3.bf16.msra.mxu1 %v3809_v26  ;;  %v989_v35 = vpop.f32.mrb[26].mxu0  ;;  %6786 = vmatprep.mubr.msk.bf16.mxu1 %vm6920_vm3, %v6919_v29  ;;  %v3996_v36 = vpop.permute.xlu0 %3995 }
 0x196   : > { %v990_v38 = vpop.f32.mrb[27].mxu0  ;;  %6554 = vmatprep.subr.msk.bf16.mxu1 %vm309_vm1, %v4003_v32  ;;  %v3998_v39 = vpop.permute.xlu1 %3997  ;;  %v4005_v42 = vsel %vm3999_vm5, %v3994_v28, %v3996_v36 }
 0x197   : > { %v1026_v40 = vpop.f32.mrb[24].mxu1  ;;  %5746 = vrot.lane.b32.xlu0 %v7001_v5, %s6937_s18  ;;  %v4006_v1 = vsel %vm3999_vm5, %v3996_v36, %v3998_v39 }
 0x198   : > { %v7883_v43 = vadd.f32 %v1026_v40, %v7813_v54  ;;  %v1028_v44 = vpop.f32.mrb[25].mxu1  ;;  %6549 = vmatmul.mubr.msk.bf16.vlgmr.msra.gmra.mrb[132].mxu0 %vm305_vm2, %v7841_v14  ;;  %5748 = vrot.lane.b32.xlu1 %v6996_v3, %s6937_s18  ;;  %v4029_v15 = vsel %vm309_vm1, %v4006_v1, 0 }
 0x199   : > { %v7890_v45 = vadd.f32 %v1028_v44, %v7820_v56  ;;  %4032 = vmatpush1.bf16.msra.mxu0 %v4011_v37  ;;  %v1030_v46 = vpop.f32.mrb[26].mxu1  ;;  %4063 = vmatprep.mubr.bf16.mxu0 %v6910_v0  ;;  %v4207_v47 = vpop.permute.xlu0 %4206 }
 0x19a   : > { %v1031_v49 = vpop.f32.mrb[27].mxu1  ;;  %6556 = vmatprep.subr.msk.bf16.mxu0 %vm309_vm1, %v4005_v42  ;;  %v4209_v50 = vpop.permute.xlu1 %4208 }
 0x19b   : > { %v1067_v51 = vpop.f32.mrb[28].mxu0  ;;  %5750 = vrot.lane.b32.xlu0 %v7004_v6, %s6937_s18  ;;  %v4223_v19 = vsel %vm4222_vm6, %v4207_v47, %v4209_v50 }
 0x19c   : > { %v7899_v53 = vadd.f32 %v1067_v51, %v7829_v2  ;;  %v1069_v54 = vpop.f32.mrb[29].mxu0  ;;  %6787 = vmatmul.mubr.msk.bf16.vlgmr.msra.gmra.mrb[132].mxu1 %vm305_vm2, %v7841_v14  ;;  %5752 = vrot.lane.b32.xlu1 %v7011_v9, %s6937_s18  ;;  %v4234_v26 = vsel %vm309_vm1, %v4223_v19, 0 }
 0x19d   : > { %v7906_v55 = vadd.f32 %v1069_v54, %v7836_v10  ;;  %4073 = vmatpush1.bf16.msra.mxu1 %v4017_v48  ;;  %v1071_v56 = vpop.f32.mrb[30].mxu0  ;;  %4104 = vmatprep.mubr.bf16.mxu1 %v6910_v0  ;;  %v4211_v58 = vpop.permute.xlu0 %4210 }
 0x19e   : > { %v1072_v61 = vpop.f32.mrb[31].mxu0  ;;  %6790 = vmatprep.subr.bf16.mxu1 %v6919_v29  ;;  %v4213_v62 = vpop.permute.xlu1 %4212  ;;  %v4224_v2 = vsel %vm4222_vm6, %v4209_v50, %v4211_v58 }
 0x19f   : > { %v1108_v63 = vpop.f32.mrb[28].mxu1  ;;  %5754 = vrot.lane.b32.xlu0 %v7009_v8, %s6937_s18  ;;  %v4225_v31 = vsel %vm4222_vm6, %v4211_v58, %v4213_v62 }
 0x1a0   : > { %v7921_v7 = vadd.f32 %v1108_v63, %v7851_v22  ;;  %6553 = vmatmul.mubr.msk.bf16.vlgmr.msra.gmra.mrb[136].mxu0 %vm305_vm2, %v7911_v57  ;;  %v6710_v10 = vpop.f32.mrb[29].mxu1  ;;  %5756 = vrot.lane.b32.xlu1 %v7016_v11, %s6937_s18 }
 0x1a1   : > { %4114 = vmatpush1.bf16.msra.mxu0 %v4023_v59  ;;  %v1111_v13 = vpop.f32.mrb[30].mxu1  ;;  %4145 = vmatprep.mubr.bf16.mxu0 %v6910_v0  ;;  %v4215_v14 = vpop.permute.xlu0 %4214 }
 0x1a2   : > { %v6711_v16 = vpop.f32.mrb[31].mxu1  ;;  %6561 = vmatprep.subr.msk.bf16.mxu0 %vm309_vm1, %v4224_v2  ;;  %v4217_v17 = vpop.permute.xlu1 %4216  ;;  %v4226_v20 = vsel %vm4222_vm6, %v4213_v62, %v4215_v14 }
 0x1a3   : > { %v1205_v18 = vpop.f32.mrb[32].mxu0  ;;  %5758 = vrot.lane.b32.xlu0 %v7018_v12, %s6937_s18  ;;  %v4227_v40 = vsel %vm4222_vm6, %v4215_v14, %v4217_v17 }
 0x1a4   : > { %v7935_v21 = vadd.f32 %v1205_v18, %v7865_v33  ;;  %v1207_v22 = vpop.f32.mrb[33].mxu0  ;;  %6555 = vmatmul.mubr.msk.bf16.vlgmr.msra.gmra.mrb[136].mxu1 %vm305_vm2, %v7911_v57  ;;  %5760 = vrot.lane.b32.xlu1 %v7532_v60, %s6937_s18 }
 0x1a5   : > { %v7942_v23 = vadd.f32 %v1207_v22, %v7872_v4  ;;  %6791 = vmatpush3.bf16.msra.mxu1 %v4029_v15  ;;  %v1209_v24 = vpop.f32.mrb[34].mxu0  ;;  %6792 = vmatprep.mubr.msk.bf16.mxu1 %vm6920_vm3, %v6919_v29  ;;  %v4219_v25 = vpop.permute.xlu0 %4218 }
 0x1a6   : > { %v1210_v27 = vpop.f32.mrb[35].mxu0  ;;  %6563 = vmatprep.subr.msk.bf16.mxu1 %vm309_vm1, %v4226_v20  ;;  %v4221_v28 = vpop.permute.xlu1 %4220  ;;  %v4228_v32 = vsel %vm4222_vm6, %v4217_v17, %v4219_v25 }
 0x1a7   : > { %v1246_v30 = vpop.f32.mrb[32].mxu1  ;;  %5966 = vrot.lane.b32.xlu0 %v7001_v5, %s6938_s23  ;;  %v4240_v5 = vsel %vm309_vm1, %v4225_v31, 0  ;;  %v6568_v27 = vld [vmem:[%s8313_s1 + $0x4c] sm:$0xf] }
 0x1a8   : > { %v7953_v33 = vadd.f32 %v1246_v30, %v7883_v43  ;;  %v1248_v34 = vpop.f32.mrb[33].mxu1  ;;  %6557 = vmatmul.mubr.msk.bf16.vlgmr.msra.gmra.mrb[140].mxu0 %vm305_vm2, %v7911_v57  ;;  %5968 = vrot.lane.b32.xlu1 %v6996_v3, %s6938_s23 }
 0x1a9   : > { %v7960_v4 = vadd.f32 %v1248_v34, %v7890_v45  ;;  %4255 = vmatpush1.bf16.msra.mxu0 %v4234_v26  ;;  %v1250_v35 = vpop.f32.mrb[34].mxu1  ;;  %4286 = vmatprep.mubr.bf16.mxu0 %v6910_v0  ;;  %v4427_v36 = vpop.permute.xlu0 %4426  ;;  %v4246_v45 = vsel %vm309_vm1, %v4227_v40, 0 }
 0x1aa   : > { %v1251_v37 = vpop.f32.mrb[35].mxu1  ;;  %6565 = vmatprep.subr.msk.bf16.mxu0 %vm309_vm1, %v4228_v32  ;;  %v4429_v38 = vpop.permute.xlu1 %4428 }
 0x1ab   : > { %v1287_v39 = vpop.f32.mrb[36].mxu0  ;;  %5970 = vrot.lane.b32.xlu0 %v7004_v6, %s6938_s23  ;;  %v6559_v6 = vld [vmem:[%s8313_s1 + $0x48] sm:$0xf] }
 0x1ac   : > { %v7969_v3 = vadd.f32 %v1287_v39, %v7899_v53  ;;  %v1289_v41 = vpop.f32.mrb[37].mxu0  ;;  %6793 = vmatmul.mubr.msk.bf16.vlgmr.msra.gmra.mrb[140].mxu1 %vm305_vm2, %v7911_v57  ;;  %5972 = vrot.lane.b32.xlu1 %v7011_v9, %s6938_s23  ;;  %v4229_v9 = vsel %vm4222_vm6, %v4219_v25, %v4221_v28  ;;  %v4443_v57 = vsel %vm4442_vm7, %v4427_v36, %v4429_v38 }
 0x1ad   : > { %v7976_v42 = vadd.f32 %v1289_v41, %v7906_v55  ;;  %4296 = vmatpush1.bf16.msra.mxu1 %v4240_v5  ;;  %v1291_v43 = vpop.f32.mrb[38].mxu0  ;;  %4327 = vmatprep.mubr.bf16.mxu1 %v6910_v0  ;;  %v4431_v44 = vpop.permute.xlu0 %4430  ;;  %v4252_v54 = vsel %vm309_vm1, %v4229_v9, 0  ;;  %v4454_v1 = vsel %vm309_vm1, %v4443_v57, 0 }
 0x1ae   : > { %v1292_v46 = vpop.f32.mrb[39].mxu0  ;;  %6796 = vmatprep.subr.bf16.mxu1 %v6919_v29  ;;  %v4433_v47 = vpop.permute.xlu1 %4432  ;;  %v4444_v49 = vsel %vm4442_vm7, %v4429_v38, %v4431_v44 }
 0x1af   : > { %v1328_v48 = vpop.f32.mrb[36].mxu1  ;;  %5974 = vrot.lane.b32.xlu0 %v7009_v8, %s6938_s23  ;;  %v4445_v10 = vsel %vm4442_vm7, %v4431_v44, %v4433_v47 }
 0x1b0   : > { %v7989_v50 = vadd.f32 %v1328_v48, %v7921_v7  ;;  %6562 = vmatmul.mubr.msk.bf16.vlgmr.msra.gmra.mrb[144].mxu0 %vm305_vm2, %v6559_v6  ;;  %v6716_v51 = vpop.f32.mrb[37].mxu1  ;;  %5976 = vrot.lane.b32.xlu1 %v7016_v11, %s6938_s23  ;;  %v4460_v18 = vsel %vm309_vm1, %v4445_v10, 0 }
 0x1b1   : > { %4337 = vmatpush1.bf16.msra.mxu0 %v4246_v45  ;;  %v1331_v52 = vpop.f32.mrb[38].mxu1  ;;  %4368 = vmatprep.mubr.bf16.mxu0 %v6910_v0  ;;  %v4435_v53 = vpop.permute.xlu0 %4434 }
 0x1b2   : > { %v6717_v55 = vpop.f32.mrb[39].mxu1  ;;  %6569 = vmatprep.subr.msk.bf16.mxu0 %vm309_vm1, %v4444_v49  ;;  %v4437_v8 = vpop.permute.xlu1 %4436  ;;  %v4446_v58 = vsel %vm4442_vm7, %v4433_v47, %v4435_v53 }
 0x1b3   : > { %v1425_v56 = vpop.f32.mrb[40].mxu0  ;;  %5978 = vrot.lane.b32.xlu0 %v7018_v12, %s6938_s23  ;;  %v4447_v22 = vsel %vm4442_vm7, %v4435_v53, %v4437_v8 }
 0x1b4   : > { %v1554_v11 = vadd.f32 %v1425_v56, %v7935_v21  ;;  %v1427_v59 = vpop.f32.mrb[41].mxu0  ;;  %6564 = vmatmul.mubr.msk.bf16.vlgmr.msra.gmra.mrb[144].mxu1 %vm305_vm2, %v6559_v6  ;;  %5980 = vrot.lane.b32.xlu1 %v7532_v60, %s6938_s23  ;;  %v4466_v30 = vsel %vm309_vm1, %v4447_v22, 0 }
 0x1b5   : > { %v1555_v61 = vadd.f32 %v1427_v59, %v7942_v23  ;;  %6797 = vmatpush3.bf16.msra.mxu1 %v4252_v54  ;;  %v1429_v62 = vpop.f32.mrb[42].mxu0  ;;  %6798 = vmatprep.mubr.msk.bf16.mxu1 %vm6920_vm3, %v6919_v29  ;;  %v4439_v63 = vpop.permute.xlu0 %4438 }
 0x1b6   : > { %v1430_v2 = vpop.f32.mrb[43].mxu0  ;;  %6571 = vmatprep.subr.msk.bf16.mxu1 %vm309_vm1, %v4446_v58  ;;  %v4441_v12 = vpop.permute.xlu1 %4440  ;;  %v4448_v13 = vsel %vm4442_vm7, %v4437_v8, %v4439_v63 }
 0x1b7   : > { %v1466_v7 = vpop.f32.mrb[40].mxu1  ;;  %v4449_v34 = vsel %vm4442_vm7, %v4439_v63, %v4441_v12  ;;  %v6576_v2 = vld [vmem:[%s8313_s1 + $0x50] sm:$0xf] }
 0x1b8   : > { %v1556_v60 = vadd.f32 %v1466_v7, %v7953_v33  ;;  %v1468_v14 = vpop.f32.mrb[41].mxu1  ;;  %6566 = vmatmul.mubr.msk.bf16.vlgmr.msra.gmra.mrb[148].mxu0 %vm305_vm2, %v6559_v6  ;;  %v4472_v38 = vsel %vm309_vm1, %v4449_v34, 0 }
 0x1b9   : > { %v1557_v15 = vadd.f32 %v1468_v14, %v7960_v4  ;;  %4475 = vmatpush1.bf16.msra.mxu0 %v4454_v1  ;;  %v1470_v16 = vpop.f32.mrb[42].mxu1  ;;  %4506 = vmatprep.mubr.bf16.mxu0 %v6910_v0  ;;  %v4647_v17 = vpop.permute.xlu0 %4646 }
 0x1ba   : > { %v1471_v19 = vpop.f32.mrb[43].mxu1  ;;  %6573 = vmatprep.subr.msk.bf16.mxu0 %vm309_vm1, %v4448_v13  ;;  %v4649_v20 = vpop.permute.xlu1 %4648 }
 0x1bb   : > { %v1507_v21 = vpop.f32.mrb[44].mxu0  ;;  %v4663_v41 = vsel %vm4662_vm8, %v4647_v17, %v4649_v20 }
 0x1bc   : > { %v1558_v23 = vadd.f32 %v1507_v21, %v7969_v3  ;;  %v1509_v24 = vpop.f32.mrb[45].mxu0  ;;  %6799 = vmatmul.mubr.msk.bf16.vlgmr.msra.gmra.mrb[148].mxu1 %vm305_vm2, %v6559_v6  ;;  %v4674_v47 = vsel %vm309_vm1, %v4663_v41, 0 }
 0x1bd   : > { %v1559_v25 = vadd.f32 %v1509_v24, %v7976_v42  ;;  %4516 = vmatpush1.bf16.msra.mxu1 %v4460_v18  ;;  %v1511_v26 = vpop.f32.mrb[46].mxu0  ;;  %4547 = vmatprep.mubr.bf16.mxu1 %v6910_v0  ;;  %v4651_v28 = vpop.permute.xlu0 %4650 }
 0x1be   : > { %v1512_v31 = vpop.f32.mrb[47].mxu0  ;;  %6802 = vmatprep.subr.bf16.mxu1 %v6919_v29  ;;  %v4653_v32 = vpop.permute.xlu1 %4652  ;;  %v4664_v4 = vsel %vm4662_vm8, %v4649_v20, %v4651_v28 }
 0x1bf   : > { %v1548_v33 = vpop.f32.mrb[44].mxu1 }
 0x1c0   : > { %v1560_v35 = vadd.f32 %v1548_v33, %v7989_v50  ;;  %6570 = vmatmul.mubr.msk.bf16.vlgmr.msra.gmra.mrb[152].mxu0 %vm305_vm2, %v6568_v27  ;;  %v6722_v36 = vpop.f32.mrb[45].mxu1  ;;  %v4665_v50 = vsel %vm4662_vm8, %v4651_v28, %v4653_v32 }
 0x1c1   : > { %4557 = vmatpush1.bf16.msra.mxu0 %v4466_v30  ;;  %v1551_v5 = vpop.f32.mrb[46].mxu1  ;;  %4588 = vmatprep.mubr.bf16.mxu0 %v6910_v0  ;;  %v4655_v37 = vpop.permute.xlu0 %4654  ;;  %v4680_v56 = vsel %vm309_vm1, %v4665_v50, 0 }
 0x1c2   : > { %v6723_v39 = vpop.f32.mrb[47].mxu1  ;;  %6577 = vmatprep.subr.msk.bf16.mxu0 %vm309_vm1, %v4664_v4  ;;  %v4657_v40 = vpop.permute.xlu1 %4656  ;;  %v4666_v42 = vsel %vm4662_vm8, %v4653_v32, %v4655_v37 }
 0x1c3   : > { %v1645_v3 = vpop.f32.mrb[48].mxu0  ;;  %v4667_v59 = vsel %vm4662_vm8, %v4655_v37, %v4657_v40 }
 0x1c4   : > { %v1774_v43 = vadd.f32 %v1645_v3, %v1554_v11  ;;  %v1647_v6 = vpop.f32.mrb[49].mxu0  ;;  %6572 = vmatmul.mubr.msk.bf16.vlgmr.msra.gmra.mrb[152].mxu1 %vm305_vm2, %v6568_v27  ;;  %v4686_v7 = vsel %vm309_vm1, %v4667_v59, 0 }
 0x1c5   : > { %v1775_v44 = vadd.f32 %v1647_v6, %v1555_v61  ;;  %6803 = vmatpush3.bf16.msra.mxu1 %v4472_v38  ;;  %v1649_v45 = vpop.f32.mrb[50].mxu0  ;;  %6804 = vmatprep.mubr.msk.bf16.mxu1 %vm6920_vm3, %v6919_v29  ;;  %v4659_v46 = vpop.permute.xlu0 %4658 }
 0x1c6   : > { %v1650_v48 = vpop.f32.mrb[51].mxu0  ;;  %6579 = vmatprep.subr.msk.bf16.mxu1 %vm309_vm1, %v4666_v42  ;;  %v4661_v9 = vpop.permute.xlu1 %4660  ;;  %v4668_v51 = vsel %vm4662_vm8, %v4657_v40, %v4659_v46 }
 0x1c7   : > { %v1686_v49 = vpop.f32.mrb[48].mxu1  ;;  %v4669_v14 = vsel %vm4662_vm8, %v4659_v46, %v4661_v9  ;;  %v6584_v48 = vld [vmem:[%s8313_s1 + $0x54] sm:$0xf] }
 0x1c8   : > { %v1776_v52 = vadd.f32 %v1686_v49, %v1556_v60  ;;  %v1688_v53 = vpop.f32.mrb[49].mxu1  ;;  %6574 = vmatmul.mubr.msk.bf16.vlgmr.msra.gmra.mrb[156].mxu0 %vm305_vm2, %v6568_v27  ;;  %v4692_v20 = vsel %vm309_vm1, %v4669_v14, 0 }
 0x1c9   : > { %v1777_v54 = vadd.f32 %v1688_v53, %v1557_v15  ;;  %4695 = vmatpush1.bf16.msra.mxu0 %v4674_v47  ;;  %v1690_v55 = vpop.f32.mrb[50].mxu1  ;;  %4726 = vmatprep.mubr.bf16.mxu0 %v6910_v0  ;;  %v4867_v8 = vpop.permute.xlu0 %4866 }
 0x1ca   : > { %v1691_v57 = vpop.f32.mrb[51].mxu1  ;;  %6581 = vmatprep.subr.msk.bf16.mxu0 %vm309_vm1, %v4668_v51  ;;  %v4869_v58 = vpop.permute.xlu1 %4868 }
 0x1cb   : > { %v1727_v11 = vpop.f32.mrb[52].mxu0  ;;  %v4883_v24 = vsel %vm4882_vm9, %v4867_v8, %v4869_v58 }
 0x1cc   : > { %v1778_v61 = vadd.f32 %v1727_v11, %v1558_v23  ;;  %v1729_v62 = vpop.f32.mrb[53].mxu0  ;;  %6805 = vmatmul.mubr.msk.bf16.vlgmr.msra.gmra.mrb[156].mxu1 %vm305_vm2, %v6568_v27  ;;  %v4894_v32 = vsel %vm309_vm1, %v4883_v24, 0 }
 0x1cd   : > { %v1779_v63 = vadd.f32 %v1729_v62, %v1559_v25  ;;  %4736 = vmatpush1.bf16.msra.mxu1 %v4680_v56  ;;  %v1731_v1 = vpop.f32.mrb[54].mxu0  ;;  %4767 = vmatprep.mubr.bf16.mxu1 %v6910_v0  ;;  %v4871_v12 = vpop.permute.xlu0 %4870 }
 0x1ce   : > { %v1732_v10 = vpop.f32.mrb[55].mxu0  ;;  %6808 = vmatprep.subr.bf16.mxu1 %v6919_v29  ;;  %v4873_v13 = vpop.permute.xlu1 %4872  ;;  %v4884_v15 = vsel %vm4882_vm9, %v4869_v58, %v4871_v12 }
 0x1cf   : > { %v1768_v60 = vpop.f32.mrb[52].mxu1 }
 0x1d0   : > { %v1780_v16 = vadd.f32 %v1768_v60, %v1560_v35  ;;  %6578 = vmatmul.mubr.msk.bf16.vlgmr.msra.gmra.mrb[160].mxu0 %vm305_vm2, %v6576_v2  ;;  %v6728_v17 = vpop.f32.mrb[53].mxu1  ;;  %v4885_v35 = vsel %vm4882_vm9, %v4871_v12, %v4873_v13 }
 0x1d1   : > { %4777 = vmatpush1.bf16.msra.mxu0 %v4686_v7  ;;  %v1771_v18 = vpop.f32.mrb[54].mxu1  ;;  %4808 = vmatprep.mubr.bf16.mxu0 %v6910_v0  ;;  %v4875_v19 = vpop.permute.xlu0 %4874  ;;  %v4900_v3 = vsel %vm309_vm1, %v4885_v35, 0 }
 0x1d2   : > { %v6729_v21 = vpop.f32.mrb[55].mxu1  ;;  %6585 = vmatprep.subr.msk.bf16.mxu0 %vm309_vm1, %v4884_v15  ;;  %v4877_v22 = vpop.permute.xlu1 %4876  ;;  %v4886_v25 = vsel %vm4882_vm9, %v4873_v13, %v4875_v19 }
 0x1d3   : > { %v1865_v23 = vpop.f32.mrb[56].mxu0  ;;  %v4887_v6 = vsel %vm4882_vm9, %v4875_v19, %v4877_v22 }
 0x1d4   : > { %v1994_v26 = vadd.f32 %v1865_v23, %v1774_v43  ;;  %v1867_v27 = vpop.f32.mrb[57].mxu0  ;;  %6580 = vmatmul.mubr.msk.bf16.vlgmr.msra.gmra.mrb[160].mxu1 %vm305_vm2, %v6576_v2  ;;  %v4906_v49 = vsel %vm309_vm1, %v4887_v6, 0 }
 0x1d5   : > { %v1995_v28 = vadd.f32 %v1867_v27, %v1775_v44  ;;  %6809 = vmatpush3.bf16.msra.mxu1 %v4692_v20  ;;  %v1869_v30 = vpop.f32.mrb[58].mxu0  ;;  %6810 = vmatprep.mubr.msk.bf16.mxu1 %vm6920_vm3, %v6919_v29  ;;  %v4879_v31 = vpop.permute.xlu0 %4878 }
 0x1d6   : > { %v1870_v33 = vpop.f32.mrb[59].mxu0  ;;  %6587 = vmatprep.subr.msk.bf16.mxu1 %vm309_vm1, %v4886_v25  ;;  %v4881_v34 = vpop.permute.xlu1 %4880  ;;  %v4888_v36 = vsel %vm4882_vm9, %v4877_v22, %v4879_v31 }
 0x1d7   : > { %v1906_v4 = vpop.f32.mrb[56].mxu1  ;;  %v4889_v53 = vsel %vm4882_vm9, %v4879_v31, %v4881_v34  ;;  %v6592_v33 = vld [vmem:[%s8313_s1 + $0x58] sm:$0xf] }
 0x1d8   : > { %v1996_v5 = vadd.f32 %v1906_v4, %v1776_v52  ;;  %v1908_v37 = vpop.f32.mrb[57].mxu1  ;;  %6582 = vmatmul.mubr.msk.bf16.vlgmr.msra.gmra.mrb[164].mxu0 %vm305_vm2, %v6576_v2  ;;  %v4912_v58 = vsel %vm309_vm1, %v4889_v53, 0 }
 0x1d9   : > { %v1997_v38 = vadd.f32 %v1908_v37, %v1777_v54  ;;  %4915 = vmatpush1.bf16.msra.mxu0 %v4894_v32  ;;  %v1910_v39 = vpop.f32.mrb[58].mxu1  ;;  %4946 = vmatprep.mubr.bf16.mxu0 %v6910_v0  ;;  %v5087_v40 = vpop.permute.xlu0 %5086 }
 0x1da   : > { %v1911_v41 = vpop.f32.mrb[59].mxu1  ;;  %6589 = vmatprep.subr.msk.bf16.mxu0 %vm309_vm1, %v4888_v36  ;;  %v5089_v42 = vpop.permute.xlu1 %5088 }
 0x1db   : > { %v1947_v43 = vpop.f32.mrb[60].mxu0  ;;  %v5103_v62 = vsel %vm5102_vm10, %v5087_v40, %v5089_v42 }
 0x1dc   : > { %v1998_v44 = vadd.f32 %v1947_v43, %v1778_v61  ;;  %v1949_v45 = vpop.f32.mrb[61].mxu0  ;;  %6811 = vmatmul.mubr.msk.bf16.vlgmr.msra.gmra.mrb[164].mxu1 %vm305_vm2, %v6576_v2  ;;  %v5114_v13 = vsel %vm309_vm1, %v5103_v62, 0 }
 0x1dd   : > { %v1999_v46 = vadd.f32 %v1949_v45, %v1779_v63  ;;  %4956 = vmatpush1.bf16.msra.mxu1 %v4900_v3  ;;  %v1951_v47 = vpop.f32.mrb[62].mxu0  ;;  %4987 = vmatprep.mubr.bf16.mxu1 %v6910_v0  ;;  %v5091_v9 = vpop.permute.xlu0 %5090 }
 0x1de   : > { %v1952_v50 = vpop.f32.mrb[63].mxu0  ;;  %6814 = vmatprep.subr.bf16.mxu1 %v6919_v29  ;;  %v5093_v51 = vpop.permute.xlu1 %5092  ;;  %v5104_v54 = vsel %vm5102_vm10, %v5089_v42, %v5091_v9 }
 0x1df   : > { %v1988_v52 = vpop.f32.mrb[60].mxu1 }
 0x1e0   : > { %v2000_v55 = vadd.f32 %v1988_v52, %v1780_v16  ;;  %6586 = vmatmul.mubr.msk.bf16.vlgmr.msra.gmra.mrb[168].mxu0 %vm305_vm2, %v6584_v48  ;;  %v6734_v8 = vpop.f32.mrb[61].mxu1  ;;  %v5105_v16 = vsel %vm5102_vm10, %v5091_v9, %v5093_v51 }
 0x1e1   : > { %4997 = vmatpush1.bf16.msra.mxu0 %v4906_v49  ;;  %v1991_v56 = vpop.f32.mrb[62].mxu1  ;;  %5028 = vmatprep.mubr.bf16.mxu0 %v6910_v0  ;;  %v5095_v57 = vpop.permute.xlu0 %5094  ;;  %v5120_v23 = vsel %vm309_vm1, %v5105_v16, 0 }
 0x1e2   : > { %v6735_v11 = vpop.f32.mrb[63].mxu1  ;;  %6593 = vmatprep.subr.msk.bf16.mxu0 %vm309_vm1, %v5104_v54  ;;  %v5097_v59 = vpop.permute.xlu1 %5096  ;;  %v5106_v63 = vsel %vm5102_vm10, %v5093_v51, %v5095_v57 }
 0x1e3   : > { %v2085_v61 = vpop.f32.mrb[64].mxu0  ;;  %v5107_v27 = vsel %vm5102_vm10, %v5095_v57, %v5097_v59 }
 0x1e4   : > { %v2214_v1 = vadd.f32 %v2085_v61, %v1994_v26  ;;  %v2087_v2 = vpop.f32.mrb[65].mxu0  ;;  %6588 = vmatmul.mubr.msk.bf16.vlgmr.msra.gmra.mrb[168].mxu1 %vm305_vm2, %v6584_v48  ;;  %v5126_v4 = vsel %vm309_vm1, %v5107_v27, 0 }
 0x1e5   : > { %v2215_v12 = vadd.f32 %v2087_v2, %v1995_v28  ;;  %6815 = vmatpush3.bf16.msra.mxu1 %v4912_v58  ;;  %v2089_v7 = vpop.f32.mrb[66].mxu0  ;;  %6816 = vmatprep.mubr.msk.bf16.mxu1 %vm6920_vm3, %v6919_v29  ;;  %v5099_v10 = vpop.permute.xlu0 %5098 }
 0x1e6   : > { %v2090_v60 = vpop.f32.mrb[67].mxu0  ;;  %6595 = vmatprep.subr.msk.bf16.mxu1 %vm309_vm1, %v5106_v63  ;;  %v5101_v14 = vpop.permute.xlu1 %5100  ;;  %v5108_v17 = vsel %vm5102_vm10, %v5097_v59, %v5099_v10 }
 0x1e7   : > { %v2126_v15 = vpop.f32.mrb[64].mxu1  ;;  %v5109_v37 = vsel %vm5102_vm10, %v5099_v10, %v5101_v14  ;;  %v6600_v60 = vld [vmem:[%s8313_s1 + $0x5c] sm:$0xf] }
 0x1e8   : > { %v2216_v18 = vadd.f32 %v2126_v15, %v1996_v5  ;;  %v2128_v19 = vpop.f32.mrb[65].mxu1  ;;  %6590 = vmatmul.mubr.msk.bf16.vlgmr.msra.gmra.mrb[172].mxu0 %vm305_vm2, %v6584_v48  ;;  %v5132_v42 = vsel %vm309_vm1, %v5109_v37, 0 }
 0x1e9   : > { %v2217_v20 = vadd.f32 %v2128_v19, %v1997_v38  ;;  %5135 = vmatpush1.bf16.msra.mxu0 %v5114_v13  ;;  %v2130_v21 = vpop.f32.mrb[66].mxu1  ;;  %5166 = vmatprep.mubr.bf16.mxu0 %v6910_v0  ;;  %v5307_v22 = vpop.permute.xlu0 %5306 }
 0x1ea   : > { %v2131_v24 = vpop.f32.mrb[67].mxu1  ;;  %6597 = vmatprep.subr.msk.bf16.mxu0 %vm309_vm1, %v5108_v17  ;;  %v5309_v25 = vpop.permute.xlu1 %5308 }
 0x1eb   : > { %v2167_v26 = vpop.f32.mrb[68].mxu0  ;;  %v5323_v45 = vsel %vm5322_vm11, %v5307_v22, %v5309_v25 }
 0x1ec   : > { %v2218_v28 = vadd.f32 %v2167_v26, %v1998_v44  ;;  %v2169_v30 = vpop.f32.mrb[69].mxu0  ;;  %6817 = vmatmul.mubr.msk.bf16.vlgmr.msra.gmra.mrb[172].mxu1 %vm305_vm2, %v6584_v48  ;;  %v5334_v51 = vsel %vm309_vm1, %v5323_v45, 0 }
 0x1ed   : > { %v2219_v31 = vadd.f32 %v2169_v30, %v1999_v46  ;;  %5176 = vmatpush1.bf16.msra.mxu1 %v5120_v23  ;;  %v2171_v32 = vpop.f32.mrb[70].mxu0  ;;  %5207 = vmatprep.mubr.bf16.mxu1 %v6910_v0  ;;  %v5311_v34 = vpop.permute.xlu0 %5310 }
 0x1ee   : > { %v2172_v35 = vpop.f32.mrb[71].mxu0  ;;  %6820 = vmatprep.subr.bf16.mxu1 %v6919_v29  ;;  %v5313_v36 = vpop.permute.xlu1 %5312  ;;  %v5324_v38 = vsel %vm5322_vm11, %v5309_v25, %v5311_v34 }
 0x1ef   : > { %v2208_v5 = vpop.f32.mrb[68].mxu1 }
 0x1f0   : > { %v2220_v39 = vadd.f32 %v2208_v5, %v2000_v55  ;;  %6594 = vmatmul.mubr.msk.bf16.vlgmr.msra.gmra.mrb[176].mxu0 %vm305_vm2, %v6592_v33  ;;  %v6740_v40 = vpop.f32.mrb[69].mxu1  ;;  %v5325_v55 = vsel %vm5322_vm11, %v5311_v34, %v5313_v36 }
 0x1f1   : > { %5217 = vmatpush1.bf16.msra.mxu0 %v5126_v4  ;;  %v2211_v3 = vpop.f32.mrb[70].mxu1  ;;  %5248 = vmatprep.mubr.bf16.mxu0 %v6910_v0  ;;  %v5315_v41 = vpop.permute.xlu0 %5314  ;;  %v5340_v61 = vsel %vm309_vm1, %v5325_v55, 0 }
 0x1f2   : > { %v6741_v43 = vpop.f32.mrb[71].mxu1  ;;  %6601 = vmatprep.subr.msk.bf16.mxu0 %vm309_vm1, %v5324_v38  ;;  %v5317_v6 = vpop.permute.xlu1 %5316  ;;  %v5326_v46 = vsel %vm5322_vm11, %v5313_v36, %v5315_v41  ;;  %v6184_v36 = vld [vmem:[%s8314_s2] sm:$0xff] }
 0x1f3   : > { %v2305_v44 = vpop.f32.mrb[72].mxu0  ;;  %v5327_v2 = vsel %vm5322_vm11, %v5315_v41, %v5317_v6  ;;  %6187 = vperm.xlu0 %6889, %v6184_v36  }
 0x1f4   : > { %v2434_v47 = vadd.f32 %v2305_v44, %v2214_v1  ;;  %v2307_v48 = vpop.f32.mrb[73].mxu0  ;;  %6596 = vmatmul.mubr.msk.bf16.vlgmr.msra.gmra.mrb[176].mxu1 %vm305_vm2, %v6592_v33  ;;  %v5346_v15 = vsel %vm309_vm1, %v5327_v2, 0 }
 0x1f5   : > { %v2435_v9 = vadd.f32 %v2307_v48, %v2215_v12  ;;  %6821 = vmatpush3.bf16.msra.mxu1 %v5132_v42  ;;  %v2309_v49 = vpop.f32.mrb[74].mxu0  ;;  %6822 = vmatprep.mubr.msk.bf16.mxu1 %vm6920_vm3, %v6919_v29  ;;  %v5319_v50 = vpop.permute.xlu0 %5318 }
 0x1f6   : > { %v2310_v52 = vpop.f32.mrb[75].mxu0  ;;  %6603 = vmatprep.subr.msk.bf16.mxu1 %vm309_vm1, %v5326_v46  ;;  %v5321_v53 = vpop.permute.xlu1 %5320  ;;  %v5328_v8 = vsel %vm5322_vm11, %v5317_v6, %v5319_v50 }
 0x1f7   : > { %v2346_v54 = vpop.f32.mrb[72].mxu1  ;;  %v5329_v19 = vsel %vm5322_vm11, %v5319_v50, %v5321_v53  ;;  %v6608_v53 = vld [vmem:[%s8313_s1 + $0x60] sm:$0xf] }
 0x1f8   : > { %v8125_v56 = vadd.f32 %v2346_v54, %v2216_v18  ;;  %v2348_v57 = vpop.f32.mrb[73].mxu1  ;;  %6598 = vmatmul.mubr.msk.bf16.vlgmr.msra.gmra.mrb[180].mxu0 %vm305_vm2, %v6592_v33  ;;  %v5352_v25 = vsel %vm309_vm1, %v5329_v19, 0 }
 0x1f9   : > { %v2437_v58 = vadd.f32 %v2348_v57, %v2217_v20  ;;  %5355 = vmatpush1.bf16.msra.mxu0 %v5334_v51  ;;  %v2350_v11 = vpop.f32.mrb[74].mxu1  ;;  %5386 = vmatprep.mubr.bf16.mxu0 %v6910_v0  ;;  %v5527_v59 = vpop.permute.xlu0 %5526 }
 0x1fa   : > { %v2351_v62 = vpop.f32.mrb[75].mxu1  ;;  %6605 = vmatprep.subr.msk.bf16.mxu0 %vm309_vm1, %v5328_v8  ;;  %v5529_v63 = vpop.permute.xlu1 %5528 }
 0x1fb   : > { %v2387_v1 = vpop.f32.mrb[76].mxu0  ;;  %v5543_v30 = vsel %vm5542_vm12, %v5527_v59, %v5529_v63 }
 0x1fc   : > { %v8132_v12 = vadd.f32 %v2387_v1, %v2218_v28  ;;  %v2389_v7 = vpop.f32.mrb[77].mxu0  ;;  %6823 = vmatmul.mubr.msk.bf16.vlgmr.msra.gmra.mrb[180].mxu1 %vm305_vm2, %v6592_v33  ;;  %v5554_v5 = vsel %vm309_vm1, %v5543_v30, 0 }
 0x1fd   : > { %v2439_v10 = vadd.f32 %v2389_v7, %v2219_v31  ;;  %5396 = vmatpush1.bf16.msra.mxu1 %v5340_v61  ;;  %v2391_v13 = vpop.f32.mrb[78].mxu0  ;;  %5427 = vmatprep.mubr.bf16.mxu1 %v6910_v0  ;;  %v5531_v14 = vpop.permute.xlu0 %5530 }
 0x1fe   : > { %v2392_v16 = vpop.f32.mrb[79].mxu0  ;;  %6826 = vmatprep.subr.bf16.mxu1 %v6919_v29  ;;  %v5533_v17 = vpop.permute.xlu1 %5532  ;;  %v5544_v20 = vsel %vm5542_vm12, %v5529_v63, %v5531_v14 }
 0x1ff   : > { %v2428_v18 = vpop.f32.mrb[76].mxu1  ;;  %v5545_v40 = vsel %vm5542_vm12, %v5531_v14, %v5533_v17 }
 0x200   : > { %v8143_v21 = vadd.f32 %v2428_v18, %v2220_v39  ;;  %6602 = vmatmul.mubr.msk.bf16.vlgmr.msra.gmra.mrb[184].mxu0 %vm305_vm2, %v6600_v60  ;;  %v6746_v22 = vpop.f32.mrb[77].mxu1  ;;  %v5560_v45 = vsel %vm309_vm1, %v5545_v40, 0 }
 0x201   : > { %5437 = vmatpush1.bf16.msra.mxu0 %v5346_v15  ;;  %v2431_v23 = vpop.f32.mrb[78].mxu1  ;;  %5468 = vmatprep.mubr.bf16.mxu0 %v6910_v0  ;;  %v5535_v24 = vpop.permute.xlu0 %5534 }
 0x202   : > { %v6747_v26 = vpop.f32.mrb[79].mxu1  ;;  %6609 = vmatprep.subr.msk.bf16.mxu0 %vm309_vm1, %v5544_v20  ;;  %v5537_v27 = vpop.permute.xlu1 %5536  ;;  %v5546_v31 = vsel %vm5542_vm12, %v5533_v17, %v5535_v24 }
 0x203   : > { %v2525_v28 = vpop.f32.mrb[80].mxu0 }
 0x204   : > { %v8151_v32 = vadd.f32 %v2525_v28, %v2434_v47  ;;  %v2527_v33 = vpop.f32.mrb[81].mxu0  ;;  %6604 = vmatmul.mubr.msk.bf16.vlgmr.msra.gmra.mrb[184].mxu1 %vm305_vm2, %v6600_v60 }
 0x205   : > { %v2655_v34 = vadd.f32 %v2527_v33, %v2435_v9  ;;  %6827 = vmatpush3.bf16.msra.mxu1 %v5352_v25  ;;  %v2529_v4 = vpop.f32.mrb[82].mxu0  ;;  %6828 = vmatprep.mubr.msk.bf16.mxu1 %vm6920_vm3, %v6919_v29  ;;  %v5539_v35 = vpop.permute.xlu0 %5538  ;;  %v5547_v9 = vsel %vm5542_vm12, %v5535_v24, %v5537_v27 }
 0x206   : > { %v2530_v37 = vpop.f32.mrb[83].mxu0  ;;  %6611 = vmatprep.subr.msk.bf16.mxu1 %vm309_vm1, %v5546_v31  ;;  %v5541_v38 = vpop.permute.xlu1 %5540  ;;  %v5548_v3 = vsel %vm5542_vm12, %v5537_v27, %v5539_v35  ;;  %v5566_v55 = vsel %vm309_vm1, %v5547_v9, 0 }
 0x207   : > { %v2566_v39 = vpop.f32.mrb[80].mxu1  ;;  %v6616_v37 = vld [vmem:[%s8313_s1 + $0x64] sm:$0xf] }
 0x208   : > { %v2656_v41 = vadd.f32 %v2566_v39, %v8125_v56  ;;  %v2568_v42 = vpop.f32.mrb[81].mxu1  ;;  %6606 = vmatmul.mubr.msk.bf16.vlgmr.msra.gmra.mrb[188].mxu0 %vm305_vm2, %v6600_v60 }
 0x209   : > { %v2657_v43 = vadd.f32 %v2568_v42, %v2437_v58  ;;  %5575 = vmatpush1.bf16.msra.mxu0 %v5554_v5  ;;  %v2570_v6 = vpop.f32.mrb[82].mxu1  ;;  %5606 = vmatprep.mubr.bf16.mxu0 %v6910_v0  ;;  %v5747_v44 = vpop.permute.xlu0 %5746  ;;  %v5549_v58 = vsel %vm5542_vm12, %v5539_v35, %v5541_v38 }
 0x20a   : > { %v2571_v46 = vpop.f32.mrb[83].mxu1  ;;  %6613 = vmatprep.subr.msk.bf16.mxu0 %vm309_vm1, %v5548_v3  ;;  %v5749_v47 = vpop.permute.xlu1 %5748  ;;  %v5572_v1 = vsel %vm309_vm1, %v5549_v58, 0 }
 0x20b   : > { %v2607_v48 = vpop.f32.mrb[84].mxu0 }
 0x20c   : > { %v2658_v49 = vadd.f32 %v2607_v48, %v8132_v12  ;;  %v2609_v50 = vpop.f32.mrb[85].mxu0  ;;  %6829 = vmatmul.mubr.msk.bf16.vlgmr.msra.gmra.mrb[188].mxu1 %vm305_vm2, %v6600_v60 }
 0x20d   : > { %v2659_v51 = vadd.f32 %v2609_v50, %v2439_v10  ;;  %5616 = vmatpush1.bf16.msra.mxu1 %v5560_v45  ;;  %v2611_v52 = vpop.f32.mrb[86].mxu0  ;;  %5647 = vmatprep.mubr.bf16.mxu1 %v6910_v0  ;;  %v5751_v54 = vpop.permute.xlu0 %5750  ;;  %v5763_v10 = vsel %vm5762_vm13, %v5747_v44, %v5749_v47 }
 0x20e   : > { %v2612_v8 = vpop.f32.mrb[87].mxu0  ;;  %6832 = vmatprep.subr.bf16.mxu1 %v6919_v29  ;;  %v5753_v56 = vpop.permute.xlu1 %5752  ;;  %v5764_v11 = vsel %vm5762_vm13, %v5749_v47, %v5751_v54  ;;  %v5774_v18 = vsel %vm309_vm1, %v5763_v10, 0 }
 0x20f   : > { %v2648_v57 = vpop.f32.mrb[84].mxu1  ;;  %v5765_v22 = vsel %vm5762_vm13, %v5751_v54, %v5753_v56 }
 0x210   : > { %v2660_v59 = vadd.f32 %v2648_v57, %v8143_v21  ;;  %6610 = vmatmul.mubr.msk.bf16.vlgmr.msra.gmra.mrb[192].mxu0 %vm305_vm2, %v6608_v53  ;;  %v6752_v61 = vpop.f32.mrb[85].mxu1  ;;  %v5780_v30 = vsel %vm309_vm1, %v5765_v22, 0 }
 0x211   : > { %5657 = vmatpush1.bf16.msra.mxu0 %v5566_v55  ;;  %v2651_v62 = vpop.f32.mrb[86].mxu1  ;;  %5688 = vmatprep.mubr.bf16.mxu0 %v6910_v0  ;;  %v5755_v63 = vpop.permute.xlu0 %5754 }
 0x212   : > { %v6753_v2 = vpop.f32.mrb[87].mxu1  ;;  %6617 = vmatprep.subr.msk.bf16.mxu0 %vm309_vm1, %v5764_v11  ;;  %v5757_v12 = vpop.permute.xlu1 %5756  ;;  %v5766_v13 = vsel %vm5762_vm13, %v5753_v56, %v5755_v63 }
 0x213   : > { %v2745_v7 = vpop.f32.mrb[88].mxu0 }
 0x214   : > { %v2874_v60 = vadd.f32 %v2745_v7, %v8151_v32  ;;  %v2747_v14 = vpop.f32.mrb[89].mxu0  ;;  %6612 = vmatmul.mubr.msk.bf16.vlgmr.msra.gmra.mrb[192].mxu1 %vm305_vm2, %v6608_v53 }
 0x215   : > { %v2875_v15 = vadd.f32 %v2747_v14, %v2655_v34  ;;  %6833 = vmatpush3.bf16.msra.mxu1 %v5572_v1  ;;  %v2749_v16 = vpop.f32.mrb[90].mxu0  ;;  %6834 = vmatprep.mubr.msk.bf16.mxu1 %vm6920_vm3, %v6919_v29  ;;  %v5759_v17 = vpop.permute.xlu0 %5758  ;;  %v5767_v34 = vsel %vm5762_vm13, %v5755_v63, %v5757_v12 }
 0x216   : > { %v2750_v19 = vpop.f32.mrb[91].mxu0  ;;  %6619 = vmatprep.subr.msk.bf16.mxu1 %vm309_vm1, %v5766_v13  ;;  %v5761_v20 = vpop.permute.xlu1 %5760  ;;  %v5768_v23 = vsel %vm5762_vm13, %v5757_v12, %v5759_v17  ;;  %v5786_v39 = vsel %vm309_vm1, %v5767_v34, 0 }
 0x217   : > { %v2786_v21 = vpop.f32.mrb[88].mxu1  ;;  %v5769_v42 = vsel %vm5762_vm13, %v5759_v17, %v5761_v20  ;;  %v6624_v17 = vld [vmem:[%s8313_s1 + $0x68] sm:$0xf] }
 0x218   : > { %v2876_v24 = vadd.f32 %v2786_v21, %v2656_v41  ;;  %v2788_v25 = vpop.f32.mrb[89].mxu1  ;;  %6614 = vmatmul.mubr.msk.bf16.vlgmr.msra.gmra.mrb[196].mxu0 %vm305_vm2, %v6608_v53  ;;  %v5792_v47 = vsel %vm309_vm1, %v5769_v42, 0 }
 0x219   : > { %v2877_v26 = vadd.f32 %v2788_v25, %v2657_v43  ;;  %5795 = vmatpush1.bf16.msra.mxu0 %v5774_v18  ;;  %v2790_v27 = vpop.f32.mrb[90].mxu1  ;;  %5826 = vmatprep.mubr.bf16.mxu0 %v6910_v0  ;;  %v5967_v28 = vpop.permute.xlu0 %5966 }
 0x21a   : > { %v2791_v31 = vpop.f32.mrb[91].mxu1  ;;  %6621 = vmatprep.subr.msk.bf16.mxu0 %vm309_vm1, %v5768_v23  ;;  %v5969_v32 = vpop.permute.xlu1 %5968 }
 0x21b   : > { %v2827_v33 = vpop.f32.mrb[92].mxu0 }
 0x21c   : > { %v2878_v4 = vadd.f32 %v2827_v33, %v2658_v49  ;;  %v2829_v35 = vpop.f32.mrb[93].mxu0  ;;  %6835 = vmatmul.mubr.msk.bf16.vlgmr.msra.gmra.mrb[196].mxu1 %vm305_vm2, %v6608_v53  ;;  %v5983_v49 = vsel %vm5982_vm14, %v5967_v28, %v5969_v32 }
 0x21d   : > { %v2879_v36 = vadd.f32 %v2829_v35, %v2659_v51  ;;  %5836 = vmatpush1.bf16.msra.mxu1 %v5780_v30  ;;  %v2831_v5 = vpop.f32.mrb[94].mxu0  ;;  %5867 = vmatprep.mubr.bf16.mxu1 %v6910_v0  ;;  %v5971_v38 = vpop.permute.xlu0 %5970  ;;  %v5994_v56 = vsel %vm309_vm1, %v5983_v49, 0 }
 0x21e   : > { %v2832_v40 = vpop.f32.mrb[95].mxu0  ;;  %6838 = vmatprep.subr.bf16.mxu1 %v6919_v29  ;;  %v5973_v3 = vpop.permute.xlu1 %5972  ;;  %v5984_v43 = vsel %vm5982_vm14, %v5969_v32, %v5971_v38 }
 0x21f   : > { %v2868_v41 = vpop.f32.mrb[92].mxu1  ;;  %v5985_v11 = vsel %vm5982_vm14, %v5971_v38, %v5973_v3 }
 0x220   : > { %v2880_v6 = vadd.f32 %v2868_v41, %v2660_v59  ;;  %6618 = vmatmul.mubr.msk.bf16.vlgmr.msra.gmra.mrb[200].mxu0 %vm305_vm2, %v6616_v37  ;;  %v6758_v44 = vpop.f32.mrb[93].mxu1  ;;  %v6000_v2 = vsel %vm309_vm1, %v5985_v11, 0 }
 0x221   : > { %5877 = vmatpush1.bf16.msra.mxu0 %v5786_v39  ;;  %v2871_v45 = vpop.f32.mrb[94].mxu1  ;;  %5908 = vmatprep.mubr.bf16.mxu0 %v6910_v0  ;;  %v5975_v46 = vpop.permute.xlu0 %5974 }
 0x222   : > { %v6759_v48 = vpop.f32.mrb[95].mxu1  ;;  %6625 = vmatprep.subr.msk.bf16.mxu0 %vm309_vm1, %v5984_v43  ;;  %v5986_v50 = vsel %vm5982_vm14, %v5973_v3, %v5975_v46  ;;  %v5977_v53 = vpop.permute.xlu1 %5976 }
 0x223   : > { %v2965_v9 = vpop.f32.mrb[96].mxu0  ;;  %v5987_v10 = vsel %vm5982_vm14, %v5975_v46, %v5977_v53 }
 0x224   : > { %v3094_v51 = vadd.f32 %v2965_v9, %v2874_v60  ;;  %v2967_v52 = vpop.f32.mrb[97].mxu0  ;;  %6620 = vmatmul.mubr.msk.bf16.vlgmr.msra.gmra.mrb[200].mxu1 %vm305_vm2, %v6616_v37  ;;  %v6006_v18 = vsel %vm309_vm1, %v5987_v10, 0 }
 0x225   : > { %v3095_v54 = vadd.f32 %v2967_v52, %v2875_v15  ;;  %6839 = vmatpush3.bf16.msra.mxu1 %v5792_v47  ;;  %v2969_v55 = vpop.f32.mrb[98].mxu0  ;;  %6840 = vmatprep.mubr.msk.bf16.mxu1 %vm6920_vm3, %v6919_v29  ;;  %v5979_v8 = vpop.permute.xlu0 %5978 }
 0x226   : > { %v2970_v57 = vpop.f32.mrb[99].mxu0  ;;  %6627 = vmatprep.subr.msk.bf16.mxu1 %vm309_vm1, %v5986_v50  ;;  %v5988_v59 = vsel %vm5982_vm14, %v5977_v53, %v5979_v8  ;;  %v5981_v14 = vpop.permute.xlu1 %5980 }
 0x227   : > { %v3006_v58 = vpop.f32.mrb[96].mxu1  ;;  %v5989_v21 = vsel %vm5982_vm14, %v5979_v8, %v5981_v14 }
 0x228   : > { %v3096_v61 = vadd.f32 %v3006_v58, %v2876_v24  ;;  %v3008_v62 = vpop.f32.mrb[97].mxu1  ;;  %6622 = vmatmul.mubr.msk.bf16.vlgmr.msra.gmra.mrb[204].mxu0 %vm305_vm2, %v6616_v37  ;;  %v6012_v25 = vsel %vm309_vm1, %v5989_v21, 0 }
 0x229   : > { %v3097_v63 = vadd.f32 %v3008_v62, %v2877_v26  ;;  %6015 = vmatpush1.bf16.msra.mxu0 %v5994_v56  ;;  %v3010_v1 = vpop.f32.mrb[98].mxu1  ;;  %6046 = vmatprep.mubr.bf16.mxu0 %v6910_v0 }
 0x22a   : > { %v3011_v12 = vpop.f32.mrb[99].mxu1  ;;  %6629 = vmatprep.subr.msk.bf16.mxu0 %vm309_vm1, %v5988_v59 }
 0x22b   : > { %v3047_v7 = vpop.f32.mrb[100].mxu0 }
 0x22c   : > { %v3098_v13 = vadd.f32 %v3047_v7, %v2878_v4  ;;  %v3049_v60 = vpop.f32.mrb[101].mxu0  ;;  %6841 = vmatmul.mubr.msk.bf16.vlgmr.msra.gmra.mrb[204].mxu1 %vm305_vm2, %v6616_v37 }
 0x22d   : > { %v3099_v15 = vadd.f32 %v3049_v60, %v2879_v36  ;;  %6056 = vmatpush1.bf16.msra.mxu1 %v6000_v2  ;;  %v3051_v16 = vpop.f32.mrb[102].mxu0  ;;  %6087 = vmatprep.mubr.bf16.mxu1 %v6910_v0 }
 0x22e   : > { %v3052_v19 = vpop.f32.mrb[103].mxu0  ;;  %6844 = vmatprep.subr.bf16.mxu1 %v6919_v29 }
 0x22f   : > { %v3088_v20 = vpop.f32.mrb[100].mxu1 }
 0x230   : > { %v3100_v22 = vadd.f32 %v3088_v20, %v2880_v6  ;;  %6626 = vmatmul.mubr.msk.bf16.vlgmr.msra.gmra.mrb[208].mxu0 %vm305_vm2, %v6624_v17  ;;  %v6764_v23 = vpop.f32.mrb[101].mxu1 }
 0x231   : > { %6097 = vmatpush1.bf16.msra.mxu0 %v6006_v18  ;;  %v3091_v24 = vpop.f32.mrb[102].mxu1  ;;  %6128 = vmatprep.mubr.bf16.mxu0 %v6910_v0 }
 0x232   : > { %v6765_v26 = vpop.f32.mrb[103].mxu1 }
 0x233   : > { %v3185_v27 = vpop.f32.mrb[104].mxu0 }
 0x234   : > { %v3314_v28 = vadd.f32 %v3185_v27, %v3094_v51  ;;  %v3187_v30 = vpop.f32.mrb[105].mxu0  ;;  %6628 = vmatmul.mubr.msk.bf16.vlgmr.msra.gmra.mrb[208].mxu1 %vm305_vm2, %v6624_v17 }
 0x235   : > { %v3315_v31 = vadd.f32 %v3187_v30, %v3095_v54  ;;  %6845 = vmatpush3.bf16.msra.mxu1 %v6012_v25  ;;  %v3189_v32 = vpop.f32.mrb[106].mxu0  ;;  %6846 = vmatprep.mubr.msk.bf16.mxu1 %vm6920_vm3, %v6919_v29 }
 0x236   : > { %v3190_v33 = vpop.f32.mrb[107].mxu0 }
 0x237   : > { %v3226_v34 = vpop.f32.mrb[104].mxu1 }
 0x238   : > { %v3316_v4 = vadd.f32 %v3226_v34, %v3096_v61  ;;  %v3228_v35 = vpop.f32.mrb[105].mxu1  ;;  %6630 = vmatmul.mubr.msk.bf16.vlgmr.msra.gmra.mrb[212].mxu0 %vm305_vm2, %v6624_v17 }
 0x239   : > { %v3317_v0 = vadd.f32 %v3228_v35, %v3097_v63  ;;  %v3230_v36 = vpop.f32.mrb[106].mxu1 }
 0x23a   : > { %v3231_v5 = vpop.f32.mrb[107].mxu1 }
 0x23b   : > { %v3267_v37 = vpop.f32.mrb[108].mxu0 }
 0x23c   : > { %v3318_v38 = vadd.f32 %v3267_v37, %v3098_v13  ;;  %v3269_v39 = vpop.f32.mrb[109].mxu0  ;;  %6847 = vmatmul.mubr.msk.bf16.vlgmr.msra.gmra.mrb[212].mxu1 %vm305_vm2, %v6624_v17 }
 0x23d   : > { %v3319_v40 = vadd.f32 %v3269_v39, %v3099_v15  ;;  %v3271_v3 = vpop.f32.mrb[110].mxu0 }
 0x23e   : > { %v3272_v41 = vpop.f32.mrb[111].mxu0 }
 0x23f   : > { %v3308_v42 = vpop.f32.mrb[108].mxu1 }
 0x240   : > { %v3320_v43 = vadd.f32 %v3308_v42, %v3100_v22  ;;  %v6770_v29 = vpop.f32.mrb[109].mxu1 }
 0x241   : > { %v3311_v6 = vpop.f32.mrb[110].mxu1 }
 0x242   : > { %v6771_v44 = vpop.f32.mrb[111].mxu1 }
 0x243   : > { %v3405_v45 = vpop.f32.mrb[112].mxu0 }
 0x244   : > { %v3534_v46 = vadd.f32 %v3405_v45, %v3314_v28  ;;  %v3407_v47 = vpop.f32.mrb[113].mxu0 }
 0x245   : > { %v3535_v48 = vadd.f32 %v3407_v47, %v3315_v31  ;;  %v3409_v9 = vpop.f32.mrb[114].mxu0 }
 0x246   : > { %v3410_v49 = vpop.f32.mrb[115].mxu0 }
 0x247   : > { %v3446_v50 = vpop.f32.mrb[112].mxu1 }
 0x248   : > { %v3536_v51 = vadd.f32 %v3446_v50, %v3316_v4  ;;  %v3448_v52 = vpop.f32.mrb[113].mxu1 }
 0x249   : > { %v3537_v53 = vadd.f32 %v3448_v52, %v3317_v0  ;;  %v3450_v54 = vpop.f32.mrb[114].mxu1 }
 0x24a   : > { %v3451_v55 = vpop.f32.mrb[115].mxu1 }
 0x24b   : > { %v3487_v8 = vpop.f32.mrb[116].mxu0 }
 0x24c   : > { %v3538_v56 = vadd.f32 %v3487_v8, %v3318_v38  ;;  %v3489_v57 = vpop.f32.mrb[117].mxu0 }
 0x24d   : > { %v3539_v58 = vadd.f32 %v3489_v57, %v3319_v40  ;;  %v3491_v11 = vpop.f32.mrb[118].mxu0 }
 0x24e   : > { %v3492_v59 = vpop.f32.mrb[119].mxu0 }
 0x24f   : > { %v3528_v61 = vpop.f32.mrb[116].mxu1 }
 0x250   : > { %v3540_v62 = vadd.f32 %v3528_v61, %v3320_v43  ;;  %v6776_v63 = vpop.f32.mrb[117].mxu1 }
 0x251   : > { %v3531_v1 = vpop.f32.mrb[118].mxu1 }
 0x252   : > { %v6777_v2 = vpop.f32.mrb[119].mxu1 }
 0x253   : > { %v3625_v12 = vpop.f32.mrb[120].mxu0 }
 0x254   : > { %v3754_v7 = vadd.f32 %v3625_v12, %v3534_v46  ;;  %v3627_v10 = vpop.f32.mrb[121].mxu0 }
 0x255   : > { %v3755_v13 = vadd.f32 %v3627_v10, %v3535_v48  ;;  %v3629_v60 = vpop.f32.mrb[122].mxu0 }
 0x256   : > { %v3630_v14 = vpop.f32.mrb[123].mxu0 }
 0x257   : > { %v3666_v15 = vpop.f32.mrb[120].mxu1 }
 0x258   : > { %v3756_v16 = vadd.f32 %v3666_v15, %v3536_v51  ;;  %v3668_v17 = vpop.f32.mrb[121].mxu1 }
 0x259   : > { %v3757_v18 = vadd.f32 %v3668_v17, %v3537_v53  ;;  %v3670_v19 = vpop.f32.mrb[122].mxu1 }
 0x25a   : > { %v3671_v20 = vpop.f32.mrb[123].mxu1 }
 0x25b   : > { %v3707_v21 = vpop.f32.mrb[124].mxu0 }
 0x25c   : > { %v3758_v22 = vadd.f32 %v3707_v21, %v3538_v56  ;;  %v3709_v23 = vpop.f32.mrb[125].mxu0 }
 0x25d   : > { %v3759_v24 = vadd.f32 %v3709_v23, %v3539_v58  ;;  %v3711_v25 = vpop.f32.mrb[126].mxu0 }
 0x25e   : > { %v3712_v26 = vpop.f32.mrb[127].mxu0 }
 0x25f   : > { %v3748_v27 = vpop.f32.mrb[124].mxu1 }
 0x260   : > { %v3760_v28 = vadd.f32 %v3748_v27, %v3540_v62  ;;  %v6782_v30 = vpop.f32.mrb[125].mxu1 }
 0x261   : > { %v3751_v31 = vpop.f32.mrb[126].mxu1 }
 0x262   : > { %v6783_v32 = vpop.f32.mrb[127].mxu1 }
 0x263   : > { %v3845_v33 = vpop.f32.mrb[128].mxu0 }
 0x264   : > { %v3974_v34 = vadd.f32 %v3845_v33, %v3754_v7  ;;  %v3847_v4 = vpop.f32.mrb[129].mxu0 }
 0x265   : > { %v3975_v35 = vadd.f32 %v3847_v4, %v3755_v13  ;;  %v3849_v0 = vpop.f32.mrb[130].mxu0 }
 0x266   : > { %v3850_v36 = vpop.f32.mrb[131].mxu0 }
 0x267   : > { %v3886_v5 = vpop.f32.mrb[128].mxu1 }
 0x268   : > { %v3976_v37 = vadd.f32 %v3886_v5, %v3756_v16  ;;  %v3888_v38 = vpop.f32.mrb[129].mxu1 }
 0x269   : > { %v3977_v39 = vadd.f32 %v3888_v38, %v3757_v18  ;;  %v3890_v40 = vpop.f32.mrb[130].mxu1 }
 0x26a   : > { %v3891_v3 = vpop.f32.mrb[131].mxu1 }
 0x26b   : > { %v3927_v41 = vpop.f32.mrb[132].mxu0 }
 0x26c   : > { %v3978_v42 = vadd.f32 %v3927_v41, %v3758_v22  ;;  %v3929_v43 = vpop.f32.mrb[133].mxu0 }
 0x26d   : > { %v3979_v29 = vadd.f32 %v3929_v43, %v3759_v24  ;;  %v3931_v6 = vpop.f32.mrb[134].mxu0 }
 0x26e   : > { %v3932_v44 = vpop.f32.mrb[135].mxu0 }
 0x26f   : > { %v3968_v45 = vpop.f32.mrb[132].mxu1 }
 0x270   : > { %v3980_v46 = vadd.f32 %v3968_v45, %v3760_v28  ;;  %v6788_v47 = vpop.f32.mrb[133].mxu1 }
 0x271   : > { %v3971_v48 = vpop.f32.mrb[134].mxu1 }
 0x272   : > { %v6789_v9 = vpop.f32.mrb[135].mxu1 }
 0x273   : > { %v4065_v49 = vpop.f32.mrb[136].mxu0 }
 0x274   : > { %v4194_v50 = vadd.f32 %v4065_v49, %v3974_v34  ;;  %v4067_v51 = vpop.f32.mrb[137].mxu0 }
 0x275   : > { %v4195_v52 = vadd.f32 %v4067_v51, %v3975_v35  ;;  %v4069_v53 = vpop.f32.mrb[138].mxu0 }
 0x276   : > { %v4070_v54 = vpop.f32.mrb[139].mxu0 }
 0x277   : > { %v4106_v55 = vpop.f32.mrb[136].mxu1 }
 0x278   : > { %v4196_v8 = vadd.f32 %v4106_v55, %v3976_v37  ;;  %v4108_v56 = vpop.f32.mrb[137].mxu1 }
 0x279   : > { %v4197_v57 = vadd.f32 %v4108_v56, %v3977_v39  ;;  %v4110_v58 = vpop.f32.mrb[138].mxu1 }
 0x27a   : > { %v4111_v11 = vpop.f32.mrb[139].mxu1 }
 0x27b   : > { %v4147_v59 = vpop.f32.mrb[140].mxu0 }
 0x27c   : > { %v4198_v61 = vadd.f32 %v4147_v59, %v3978_v42  ;;  %v4149_v62 = vpop.f32.mrb[141].mxu0 }
 0x27d   : > { %v4199_v63 = vadd.f32 %v4149_v62, %v3979_v29  ;;  %v4151_v1 = vpop.f32.mrb[142].mxu0 }
 0x27e   : > { %v4152_v2 = vpop.f32.mrb[143].mxu0 }
 0x27f   : > { %v4188_v12 = vpop.f32.mrb[140].mxu1 }
 0x280   : > { %v4200_v7 = vadd.f32 %v4188_v12, %v3980_v46  ;;  %v6794_v10 = vpop.f32.mrb[141].mxu1 }
 0x281   : > { %v4191_v13 = vpop.f32.mrb[142].mxu1 }
 0x282   : > { %v6795_v60 = vpop.f32.mrb[143].mxu1 }
 0x283   : > { %v4288_v14 = vpop.f32.mrb[144].mxu0 }
 0x284   : > { %v4417_v15 = vadd.f32 %v4288_v14, %v4194_v50  ;;  %v4290_v16 = vpop.f32.mrb[145].mxu0 }
 0x285   : > { %v4418_v17 = vadd.f32 %v4290_v16, %v4195_v52  ;;  %v4292_v18 = vpop.f32.mrb[146].mxu0 }
 0x286   : > { %v4293_v19 = vpop.f32.mrb[147].mxu0 }
 0x287   : > { %v4329_v20 = vpop.f32.mrb[144].mxu1 }
 0x288   : > { %v4419_v21 = vadd.f32 %v4329_v20, %v4196_v8  ;;  %v4331_v22 = vpop.f32.mrb[145].mxu1 }
 0x289   : > { %v4420_v23 = vadd.f32 %v4331_v22, %v4197_v57  ;;  %v4333_v24 = vpop.f32.mrb[146].mxu1 }
 0x28a   : > { %v4334_v25 = vpop.f32.mrb[147].mxu1 }
 0x28b   : > { %v4370_v26 = vpop.f32.mrb[148].mxu0 }
 0x28c   : > { %v4421_v27 = vadd.f32 %v4370_v26, %v4198_v61  ;;  %v4372_v28 = vpop.f32.mrb[149].mxu0 }
 0x28d   : > { %v4422_v30 = vadd.f32 %v4372_v28, %v4199_v63  ;;  %v4374_v31 = vpop.f32.mrb[150].mxu0 }
 0x28e   : > { %v4375_v32 = vpop.f32.mrb[151].mxu0 }
 0x28f   : > { %v4411_v33 = vpop.f32.mrb[148].mxu1 }
 0x290   : > { %v4423_v34 = vadd.f32 %v4411_v33, %v4200_v7  ;;  %v6800_v4 = vpop.f32.mrb[149].mxu1 }
 0x291   : > { %v4414_v35 = vpop.f32.mrb[150].mxu1 }
 0x292   : > { %v6801_v0 = vpop.f32.mrb[151].mxu1 }
 0x293   : > { %v4508_v36 = vpop.f32.mrb[152].mxu0 }
 0x294   : > { %v4637_v5 = vadd.f32 %v4508_v36, %v4417_v15  ;;  %v4510_v37 = vpop.f32.mrb[153].mxu0 }
 0x295   : > { %v4638_v38 = vadd.f32 %v4510_v37, %v4418_v17  ;;  %v4512_v39 = vpop.f32.mrb[154].mxu0 }
 0x296   : > { %v4513_v40 = vpop.f32.mrb[155].mxu0 }
 0x297   : > { %v4549_v3 = vpop.f32.mrb[152].mxu1 }
 0x298   : > { %v4639_v41 = vadd.f32 %v4549_v3, %v4419_v21  ;;  %v4551_v42 = vpop.f32.mrb[153].mxu1 }
 0x299   : > { %v4640_v43 = vadd.f32 %v4551_v42, %v4420_v23  ;;  %v4553_v29 = vpop.f32.mrb[154].mxu1 }
 0x29a   : > { %v4554_v6 = vpop.f32.mrb[155].mxu1 }
 0x29b   : > { %v4590_v44 = vpop.f32.mrb[156].mxu0 }
 0x29c   : > { %v4641_v45 = vadd.f32 %v4590_v44, %v4421_v27  ;;  %v4592_v46 = vpop.f32.mrb[157].mxu0 }
 0x29d   : > { %v4642_v47 = vadd.f32 %v4592_v46, %v4422_v30  ;;  %v4594_v48 = vpop.f32.mrb[158].mxu0 }
 0x29e   : > { %v4595_v9 = vpop.f32.mrb[159].mxu0 }
 0x29f   : > { %v4631_v49 = vpop.f32.mrb[156].mxu1 }
 0x2a0   : > { %v4643_v50 = vadd.f32 %v4631_v49, %v4423_v34  ;;  %v6806_v51 = vpop.f32.mrb[157].mxu1 }
 0x2a1   : > { %v4634_v52 = vpop.f32.mrb[158].mxu1 }
 0x2a2   : > { %v6807_v53 = vpop.f32.mrb[159].mxu1 }
 0x2a3   : > { %v4728_v54 = vpop.f32.mrb[160].mxu0 }
 0x2a4   : > { %v4857_v55 = vadd.f32 %v4728_v54, %v4637_v5  ;;  %v4730_v8 = vpop.f32.mrb[161].mxu0 }
 0x2a5   : > { %v4858_v56 = vadd.f32 %v4730_v8, %v4638_v38  ;;  %v4732_v57 = vpop.f32.mrb[162].mxu0 }
 0x2a6   : > { %v4733_v58 = vpop.f32.mrb[163].mxu0 }
 0x2a7   : > { %v4769_v11 = vpop.f32.mrb[160].mxu1 }
 0x2a8   : > { %v4859_v59 = vadd.f32 %v4769_v11, %v4639_v41  ;;  %v4771_v61 = vpop.f32.mrb[161].mxu1 }
 0x2a9   : > { %v4860_v62 = vadd.f32 %v4771_v61, %v4640_v43  ;;  %v4773_v63 = vpop.f32.mrb[162].mxu1 }
 0x2aa   : > { %v4774_v1 = vpop.f32.mrb[163].mxu1 }
 0x2ab   : > { %v4810_v2 = vpop.f32.mrb[164].mxu0 }
 0x2ac   : > { %v4861_v12 = vadd.f32 %v4810_v2, %v4641_v45  ;;  %v4812_v7 = vpop.f32.mrb[165].mxu0 }
 0x2ad   : > { %v4862_v10 = vadd.f32 %v4812_v7, %v4642_v47  ;;  %v4814_v13 = vpop.f32.mrb[166].mxu0 }
 0x2ae   : > { %v4815_v60 = vpop.f32.mrb[167].mxu0 }
 0x2af   : > { %v4851_v14 = vpop.f32.mrb[164].mxu1 }
 0x2b0   : > { %v4863_v15 = vadd.f32 %v4851_v14, %v4643_v50  ;;  %v6812_v16 = vpop.f32.mrb[165].mxu1 }
 0x2b1   : > { %v4854_v17 = vpop.f32.mrb[166].mxu1 }
 0x2b2   : > { %v6813_v18 = vpop.f32.mrb[167].mxu1 }
 0x2b3   : > { %v4948_v19 = vpop.f32.mrb[168].mxu0 }
 0x2b4   : > { %v5077_v20 = vadd.f32 %v4948_v19, %v4857_v55  ;;  %v4950_v21 = vpop.f32.mrb[169].mxu0 }
 0x2b5   : > { %v5078_v22 = vadd.f32 %v4950_v21, %v4858_v56  ;;  %v4952_v23 = vpop.f32.mrb[170].mxu0 }
 0x2b6   : > { %v4953_v24 = vpop.f32.mrb[171].mxu0 }
 0x2b7   : > { %v4989_v25 = vpop.f32.mrb[168].mxu1 }
 0x2b8   : > { %v5079_v26 = vadd.f32 %v4989_v25, %v4859_v59  ;;  %v4991_v27 = vpop.f32.mrb[169].mxu1 }
 0x2b9   : > { %v5080_v28 = vadd.f32 %v4991_v27, %v4860_v62  ;;  %v4993_v30 = vpop.f32.mrb[170].mxu1 }
 0x2ba   : > { %v4994_v31 = vpop.f32.mrb[171].mxu1 }
 0x2bb   : > { %v5030_v32 = vpop.f32.mrb[172].mxu0 }
 0x2bc   : > { %v5081_v33 = vadd.f32 %v5030_v32, %v4861_v12  ;;  %v5032_v34 = vpop.f32.mrb[173].mxu0 }
 0x2bd   : > { %v5082_v4 = vadd.f32 %v5032_v34, %v4862_v10  ;;  %v5034_v35 = vpop.f32.mrb[174].mxu0 }
 0x2be   : > { %v5035_v0 = vpop.f32.mrb[175].mxu0 }
 0x2bf   : > { %v5071_v36 = vpop.f32.mrb[172].mxu1 }
 0x2c0   : > { %v5083_v5 = vadd.f32 %v5071_v36, %v4863_v15  ;;  %v6818_v37 = vpop.f32.mrb[173].mxu1 }
 0x2c1   : > { %v5074_v38 = vpop.f32.mrb[174].mxu1 }
 0x2c2   : > { %v6819_v39 = vpop.f32.mrb[175].mxu1 }
 0x2c3   : > { %v5168_v40 = vpop.f32.mrb[176].mxu0 }
 0x2c4   : > { %v5297_v3 = vadd.f32 %v5168_v40, %v5077_v20  ;;  %v5170_v41 = vpop.f32.mrb[177].mxu0 }
 0x2c5   : > { %v5298_v42 = vadd.f32 %v5170_v41, %v5078_v22  ;;  %v5172_v43 = vpop.f32.mrb[178].mxu0 }
 0x2c6   : > { %v5173_v29 = vpop.f32.mrb[179].mxu0 }
 0x2c7   : > { %v5209_v6 = vpop.f32.mrb[176].mxu1 }
 0x2c8   : > { %v5299_v44 = vadd.f32 %v5209_v6, %v5079_v26  ;;  %v5211_v45 = vpop.f32.mrb[177].mxu1 }
 0x2c9   : > { %v5300_v46 = vadd.f32 %v5211_v45, %v5080_v28  ;;  %v5213_v47 = vpop.f32.mrb[178].mxu1 }
 0x2ca   : > { %v5214_v48 = vpop.f32.mrb[179].mxu1 }
 0x2cb   : > { %v5250_v9 = vpop.f32.mrb[180].mxu0 }
 0x2cc   : > { %v5301_v49 = vadd.f32 %v5250_v9, %v5081_v33  ;;  %v5252_v50 = vpop.f32.mrb[181].mxu0 }
 0x2cd   : > { %v5302_v51 = vadd.f32 %v5252_v50, %v5082_v4  ;;  %v5254_v52 = vpop.f32.mrb[182].mxu0  ;;  %v6199_v50 = vlaneseq }
 0x2ce   : > { %v5255_v53 = vpop.f32.mrb[183].mxu0 }
 0x2cf   : > { %v5291_v54 = vpop.f32.mrb[180].mxu1 }
 0x2d0   : > { %v5303_v55 = vadd.f32 %v5291_v54, %v5083_v5  ;;  %v6824_v8 = vpop.f32.mrb[181].mxu1 }
 0x2d1   : > { %v5294_v56 = vpop.f32.mrb[182].mxu1 }
 0x2d2   : > { %v6825_v57 = vpop.f32.mrb[183].mxu1  ;;  %v8242_v56 = vshrl.u32 %v6199_v50, 7 }
 0x2d3   : > { %v5388_v58 = vpop.f32.mrb[184].mxu0 }
 0x2d4   : > { %v5517_v11 = vadd.f32 %v5388_v58, %v5297_v3  ;;  %v5390_v59 = vpop.f32.mrb[185].mxu0 }
 0x2d5   : > { %v5518_v61 = vadd.f32 %v5390_v59, %v5298_v42  ;;  %v5392_v62 = vpop.f32.mrb[186].mxu0 }
 0x2d6   : > { %v5393_v63 = vpop.f32.mrb[187].mxu0 }
 0x2d7   : > { %v5429_v1 = vpop.f32.mrb[184].mxu1  ;;  %v6201_v63 = vsub.s32 0, %v8242_v56 }
 0x2d8   : > { %v5519_v2 = vadd.f32 %v5429_v1, %v5299_v44  ;;  %v5431_v12 = vpop.f32.mrb[185].mxu1 }
 0x2d9   : > { %v5520_v7 = vadd.f32 %v5431_v12, %v5300_v46  ;;  %v5433_v10 = vpop.f32.mrb[186].mxu1  ;;  %v6205_v12 = vsub.s32 1, %v8242_v56 }
 0x2da   : > { %v5434_v13 = vpop.f32.mrb[187].mxu1 }
 0x2db   : > { %v5470_v60 = vpop.f32.mrb[188].mxu0  ;;  %v8253_v13 = vpop.permute.xlu0 %6187 }
 0x2dc   : > { %v5521_v14 = vadd.f32 %v5470_v60, %v5301_v49  ;;  %v5472_v15 = vpop.f32.mrb[189].mxu0 }
 0x2dd   : > { %v5522_v16 = vadd.f32 %v5472_v15, %v5302_v51  ;;  %v5474_v17 = vpop.f32.mrb[190].mxu0 }
 0x2de   : > { %v5475_v18 = vpop.f32.mrb[191].mxu0 }
 0x2df   : > { %v5511_v19 = vpop.f32.mrb[188].mxu1 }
 0x2e0   : > { %v5523_v20 = vadd.f32 %v5511_v19, %v5303_v55  ;;  %v6830_v21 = vpop.f32.mrb[189].mxu1 }
 0x2e1   : > { %v5514_v22 = vpop.f32.mrb[190].mxu1 }
 0x2e2   : > { %v6831_v23 = vpop.f32.mrb[191].mxu1 }
 0x2e3   : > { %v5608_v24 = vpop.f32.mrb[192].mxu0  ;;  %v6217_v23 = vsub.s32 4, %v8242_v56 }
 0x2e4   : > { %v5737_v25 = vadd.f32 %v5608_v24, %v5517_v11  ;;  %v5610_v26 = vpop.f32.mrb[193].mxu0 }
 0x2e5   : > { %v5738_v27 = vadd.f32 %v5610_v26, %v5518_v61  ;;  %v5612_v28 = vpop.f32.mrb[194].mxu0  ;;  %v6221_v26 = vsub.s32 5, %v8242_v56 }
 0x2e6   : > { %v5613_v30 = vpop.f32.mrb[195].mxu0 }
 0x2e7   : > { %v5649_v31 = vpop.f32.mrb[192].mxu1 }
 0x2e8   : > { %v5739_v32 = vadd.f32 %v5649_v31, %v5519_v2  ;;  %v5651_v33 = vpop.f32.mrb[193].mxu1  ;;  %v8250_v2 = vld [vmem:[%s8317_s5] sm:$0xff] }
 0x2e9   : > { %v5740_v34 = vadd.f32 %v5651_v33, %v5520_v7  ;;  %v5653_v4 = vpop.f32.mrb[194].mxu1  ;;  %v6202_v15 = vrot.slane %v8250_v2, %v6201_v63  ;;  %v6206_v19 = vrot.slane %v8250_v2, %v6205_v12 }
 0x2ea   : > { %v5654_v35 = vpop.f32.mrb[195].mxu1 }
 0x2eb   : > { %v5690_v0 = vpop.f32.mrb[196].mxu0 }
 0x2ec   : > { %v5741_v36 = vadd.f32 %v5690_v0, %v5521_v14  ;;  %v5692_v5 = vpop.f32.mrb[197].mxu0 }
 0x2ed   : > { %v5742_v37 = vadd.f32 %v5692_v5, %v5522_v16  ;;  %v5694_v38 = vpop.f32.mrb[198].mxu0  ;;  %v6209_v16 = vsub.s32 2, %v8242_v56 }
 0x2ee   : > { %v5695_v39 = vpop.f32.mrb[199].mxu0 }
 0x2ef   : > { %v5731_v40 = vpop.f32.mrb[196].mxu1  ;;  %v6210_v28 = vrot.slane %v8250_v2, %v6209_v16 }
 0x2f0   : > { %v5743_v3 = vadd.f32 %v5731_v40, %v5523_v20  ;;  %v6836_v41 = vpop.f32.mrb[197].mxu1  ;;  %v6213_v20 = vsub.s32 3, %v8242_v56 }
 0x2f1   : > { %v5734_v42 = vpop.f32.mrb[198].mxu1 }
 0x2f2   : > { %v6837_v43 = vpop.f32.mrb[199].mxu1  ;;  %v6214_v35 = vrot.slane %v8250_v2, %v6213_v20  ;;  %v6222_v42 = vrot.slane %v8250_v2, %v6221_v26 }
 0x2f3   : > { %v5828_v29 = vpop.f32.mrb[200].mxu0 }
 0x2f4   : > { %v5957_v6 = vadd.f32 %v5828_v29, %v5737_v25  ;;  %v5830_v44 = vpop.f32.mrb[201].mxu0 }
 0x2f5   : > { %v5958_v45 = vadd.f32 %v5830_v44, %v5738_v27  ;;  %v5832_v46 = vpop.f32.mrb[202].mxu0 }
 0x2f6   : > { %v5833_v47 = vpop.f32.mrb[203].mxu0 }
 0x2f7   : > { %v5869_v48 = vpop.f32.mrb[200].mxu1 }
 0x2f8   : > { %v5959_v9 = vadd.f32 %v5869_v48, %v5739_v32  ;;  %v5871_v49 = vpop.f32.mrb[201].mxu1 }
 0x2f9   : > { %v5960_v51 = vadd.f32 %v5871_v49, %v5740_v34  ;;  %v5873_v52 = vpop.f32.mrb[202].mxu1 }
 0x2fa   : > { %v5874_v53 = vpop.f32.mrb[203].mxu1 }
 0x2fb   : > { %v5910_v54 = vpop.f32.mrb[204].mxu0 }
 0x2fc   : > { %v5961_v55 = vadd.f32 %v5910_v54, %v5741_v36  ;;  %v5912_v8 = vpop.f32.mrb[205].mxu0 }
 0x2fd   : > { %v5962_v57 = vadd.f32 %v5912_v8, %v5742_v37  ;;  %v5914_v58 = vpop.f32.mrb[206].mxu0  ;;  %v6218_v37 = vrot.slane %v8250_v2, %v6217_v23 }
 0x2fe   : > { %v5915_v11 = vpop.f32.mrb[207].mxu0 }
 0x2ff   : > { %v5951_v59 = vpop.f32.mrb[204].mxu1 }
 0x300   : > { %v8244_v61 = vadd.f32 %v5951_v59, %v5743_v3  ;;  %v6842_v62 = vpop.f32.mrb[205].mxu1 }
 0x301   : > { %v5954_v1 = vpop.f32.mrb[206].mxu1 }
 0x302   : > { %v6843_v7 = vpop.f32.mrb[207].mxu1 }
 0x303   : > { %v6048_v10 = vpop.f32.mrb[208].mxu0 }
 0x304   : > { %v6177_v60 = vadd.f32 %v6048_v10, %v5957_v6  ;;  %v6050_v14 = vpop.f32.mrb[209].mxu0 }
 0x305   : > { %v6178_v17 = vadd.f32 %v6050_v14, %v5958_v45  ;;  %v6052_v18 = vpop.f32.mrb[210].mxu0  ;;  %v6225_v45 = vsub.s32 6, %v8242_v56 }
 0x306   : > { %v8260_v21 = vadd.f32 %v8253_v13, %v6177_v60  ;;  %v6053_v22 = vpop.f32.mrb[211].mxu0 }
 0x307   : > { %v8264_v24 = vadd.f32 %v8253_v13, %v6178_v17  ;;  %v6089_v25 = vpop.f32.mrb[208].mxu1  ;;  %v6226_v7 = vrot.slane %v8250_v2, %v6225_v45  ;;  %v6305_v2 = vld [vmem:[%s8316_s4] sm:$0xff] }
 0x308   : > { %v6179_v27 = vadd.f32 %v6089_v25, %v5959_v9  ;;  %v6234_v30 = vmul.f32 %v6202_v15, %v8260_v21  ;;  %v6250_v31 = vmul.f32 %v8260_v21, %v8260_v21  ;;  %v6091_v32 = vpop.f32.mrb[209].mxu1 }
 0x309   : > { %v6235_v33 = vmul.f32 %v6206_v19, %v8264_v24  ;;  %v6251_v34 = vmul.f32 %v8264_v24, %v8264_v24  ;;  %v6180_v4 = vadd.f32 %v6091_v32, %v5960_v51  ;;  %v6093_v0 = vpop.f32.mrb[210].mxu1 }
 0x30a   : > { %v8276_v36 = vadd.f32 %v8253_v13, %v6179_v27  ;;  %v6257_v5 = vmul.f32 %v6250_v31, %v6202_v15  ;;  %v6094_v38 = vpop.f32.mrb[211].mxu1 }
 0x30b   : > { %v6241_v39 = vadd.f32 %v6235_v33, %v6234_v30  ;;  %v6258_v40 = vmul.f32 %v6251_v34, %v6206_v19  ;;  %v8280_v3 = vadd.f32 %v8253_v13, %v6180_v4  ;;  %v6130_v41 = vpop.f32.mrb[212].mxu0 }
 0x30c   : > { %v6236_v43 = vmul.f32 %v6210_v28, %v8276_v36  ;;  %v6252_v29 = vmul.f32 %v8276_v36, %v8276_v36  ;;  %v6181_v6 = vadd.f32 %v6130_v41, %v5961_v55  ;;  %v6132_v44 = vpop.f32.mrb[213].mxu0 }
 0x30d   : > { %v6264_v46 = vadd.f32 %v6258_v40, %v6257_v5  ;;  %v6237_v47 = vmul.f32 %v6214_v35, %v8280_v3  ;;  %v6253_v48 = vmul.f32 %v8280_v3, %v8280_v3  ;;  %v6182_v9 = vadd.f32 %v6132_v44, %v5962_v57  ;;  %v6134_v49 = vpop.f32.mrb[214].mxu0 }
 0x30e   : > { %v6242_v50 = vadd.f32 %v6241_v39, %v6236_v43  ;;  %v6259_v51 = vmul.f32 %v6252_v29, %v6210_v28  ;;  %v6194_v52 = vadd.f32 %v8253_v13, %v6181_v6  ;;  %v6135_v53 = vpop.f32.mrb[215].mxu0 }
 0x30f   : > { %v6260_v54 = vmul.f32 %v6253_v48, %v6214_v35  ;;  %v6195_v8 = vadd.f32 %v8253_v13, %v6182_v9  ;;  %v6171_v55 = vpop.f32.mrb[212].mxu1 }
 0x310   : > { %v6265_v58 = vadd.f32 %v6264_v46, %v6259_v51  ;;  %v6243_v11 = vadd.f32 %v6242_v50, %v6237_v47  ;;  %v6238_v56 = vmul.f32 %v6218_v37, %v6194_v52  ;;  %v6254_v59 = vmul.f32 %v6194_v52, %v6194_v52  ;;  %v6848_v62 = vpop.f32.mrb[213].mxu1 }
 0x311   : > { %v6239_v63 = vmul.f32 %v6222_v42, %v6195_v8  ;;  %v6255_v1 = vmul.f32 %v6195_v8, %v6195_v8  ;;  %v6183_v12 = vadd.f32 %v6171_v55, %v8244_v61  ;;  %v6174_v57 = vpop.f32.mrb[214].mxu1  ;;  %v6292_v61 = vld [vmem:[%s8315_s3] sm:$0xff] }
 0x312   : > { %v6261_v10 = vmul.f32 %v6254_v59, %v6218_v37  ;;  %v6849_v60 = vpop.f32.mrb[215].mxu1  ;;  %v6244_v14 = vadd.f32 %v6243_v11, %v6238_v56  ;;  %v6266_v15 = vadd.f32 %v6265_v58, %v6260_v54 }
 0x313   : > { %v6196_v16 = vadd.f32 %v8253_v13, %v6183_v12  ;;  %v6262_v17 = vmul.f32 %v6255_v1, %v6222_v42 }
 0x314   : > { %v6245_v18 = vadd.f32 %v6244_v14, %v6239_v63  ;;  %v6267_v19 = vadd.f32 %v6266_v15, %v6261_v10 }
 0x315   : > { %v6256_v20 = vmul.f32 %v6196_v16, %v6196_v16  ;;  %v6240_v22 = vmul.f32 %v6226_v7, %v6196_v16 }
 0x316   : > { %v6268_v23 = vadd.f32 %v6267_v19, %v6262_v17 }
 0x317   : > { %v6246_v25 = vadd.f32 %v6245_v18, %v6240_v22  ;;  %v6263_v26 = vmul.f32 %v6256_v20, %v6226_v7 }
 0x319   : > { %6247 = vadd.xlane.f32.xlu1 %v6246_v25  ;;  %v6269_v27 = vadd.f32 %v6268_v23, %v6263_v26 }
 0x31b   : > { %6270 = vadd.xlane.f32.xlu0 %v6269_v27 }
 0x32a   : > { %6295 = vperm.xlu1 %6890, %v6292_v61  }
 0x331   : > { %6308 = vperm.xlu0 %6889, %v6305_v2  }
 0x3a6   : > { %v6248_v13 = vpop.xlane.xlu1 %6247 }
 0x3a7   : > { %v6249_v28 = vmul.f32 0.001953125, %v6248_v13 }
 0x3a8   : > { %v6271_v30 = vpop.xlane.xlu0 %6270 }
 0x3a9   : > { %v6272_v31 = vmul.f32 0.001953125, %v6271_v30  ;;  %v6273_v32 = vmul.f32 %v6249_v28, %v6249_v28  ;;  %v6276_v35 = vsub.f32 %v8260_v21, %v6249_v28  ;;  %v6277_v0 = vsub.f32 %v8264_v24, %v6249_v28 }
 0x3aa   : > { %v6278_v5 = vsub.f32 %v8276_v36, %v6249_v28  ;;  %v6279_v37 = vsub.f32 %v8280_v3, %v6249_v28  ;;  %v6280_v39 = vsub.f32 %v6194_v52, %v6249_v28  ;;  %v6281_v40 = vsub.f32 %v6195_v8, %v6249_v28  ;;  %v6296_v42 = vpop.permute.xlu1 %6295 }
 0x3ab   : > { %v6274_v33 = vsub.f32 %v6272_v31, %v6273_v32  ;;  %v6282_v41 = vsub.f32 %v6196_v16, %v6249_v28 }
 0x3ad   : > { %v6275_v34 = vmax.f32 %v6274_v33, 0.0 }
 0x3af   : > { %v6283_v4 = vadd.f32 1e-05, %v6275_v34 }
 0x3b0   : > { %v6309_v36 = vpop.permute.xlu0 %6308 }
 0x3b1   : > { %6900 = vrsqrt.f32 %v6283_v4 }
 0x3bb   : > { %v6901_v38 = vpop.eup %6900 }
 0x3bc   : > { %v6285_v43 = vmul.f32 %v6901_v38, %v6276_v35  ;;  %v6286_v29 = vmul.f32 %v6901_v38, %v6277_v0  ;;  %v6287_v6 = vmul.f32 %v6901_v38, %v6278_v5  ;;  %v6288_v44 = vmul.f32 %v6901_v38, %v6279_v37 }
 0x3bd   : > { %v6289_v45 = vmul.f32 %v6901_v38, %v6280_v39  ;;  %v6290_v46 = vmul.f32 %v6901_v38, %v6281_v40  ;;  %v6291_v47 = vmul.f32 %v6901_v38, %v6282_v41 }
 0x3be   : > { %v6298_v21 = vmul.f32 %v6296_v42, %v6285_v43  ;;  %v6299_v48 = vmul.f32 %v6296_v42, %v6286_v29  ;;  %v6300_v24 = vmul.f32 %v6296_v42, %v6287_v6  ;;  %v6301_v9 = vmul.f32 %v6296_v42, %v6288_v44 }
 0x3bf   : > { %v6302_v3 = vmul.f32 %v6296_v42, %v6289_v45  ;;  %v6303_v49 = vmul.f32 %v6296_v42, %v6290_v46  ;;  %v6304_v50 = vmul.f32 %v6296_v42, %v6291_v47 }
 0x3c0   : > { %v6311_v51 = vadd.f32 %v6309_v36, %v6298_v21  ;;  %v6312_v52 = vadd.f32 %v6309_v36, %v6299_v48  ;;  %v6313_v53 = vadd.f32 %v6309_v36, %v6300_v24  ;;  %v6314_v54 = vadd.f32 %v6309_v36, %v6301_v9 }
 0x3c1   : > { %v6315_v8 = vadd.f32 %v6309_v36, %v6302_v3  ;;  %v6316_v55 = vadd.f32 %v6309_v36, %v6303_v49  ;;  %v6317_v58 = vadd.f32 %v6309_v36, %v6304_v50 }
 0x3c2   : > { %vm6318_vm1 = vcmp.ge.f32.partialorder %v6311_v51, 0.0  ;;  %vm6319_vm2 = vcmp.ge.f32.partialorder %v6312_v52, 0.0  ;;  %vm6320_vm3 = vcmp.ge.f32.partialorder %v6313_v53, 0.0  ;;  %vm6321_vm15 = vcmp.ge.f32.partialorder %v6314_v54, 0.0 }
 0x3c3   : > { %vm6322_vm0 = vcmp.ge.f32.partialorder %v6315_v8, 0.0  ;;  %vm6323_vm4 = vcmp.ge.f32.partialorder %v6316_v55, 0.0  ;;  %vm6324_vm5 = vcmp.ge.f32.partialorder %v6317_v58, 0.0  ;;  %v6325_v11 = vmul.f32 0.22916667, %v6311_v51 }
 0x3c4   : > { %v6326_v56 = vmul.f32 0.22916667, %v6312_v52  ;;  %v6327_v59 = vmul.f32 0.22916667, %v6313_v53  ;;  %v6328_v62 = vmul.f32 0.22916667, %v6314_v54 }
 0x3c5   : > { %v6329_v63 = vmul.f32 0.22916667, %v6315_v8  ;;  %v6330_v1 = vmul.f32 0.22916667, %v6316_v55  ;;  %v6331_v12 = vmul.f32 0.22916667, %v6317_v58  ;;  %v6332_v57 = vsel %vm6318_vm1, %v6311_v51, %v6325_v11 }
 0x3c6   : > { %v6333_v7 = vsel %vm6319_vm2, %v6312_v52, %v6326_v56  ;;  %v6334_v10 = vsel %vm6320_vm3, %v6313_v53, %v6327_v59  ;;  %v6335_v60 = vsel %vm6321_vm15, %v6314_v54, %v6328_v62  ;;  %6339 = vst [vmem:[%s251_s7] sm:$0xff] %v6332_v57 }
 0x3c7   : > { %v6336_v14 = vsel %vm6322_vm0, %v6315_v8, %v6329_v63  ;;  %v6337_v15 = vsel %vm6323_vm4, %v6316_v55, %v6330_v1  ;;  %v6338_v16 = vsel %vm6324_vm5, %v6317_v58, %v6331_v12  ;;  %6340 = vst [vmem:[%s251_s7 + $0x8] sm:$0xff] %v6333_v7  ;;  %6341 = vst [vmem:[%s251_s7 + $0x10] sm:$0xff] %v6334_v10 }
 0x3c8   : > { %6342 = vst [vmem:[%s251_s7 + $0x18] sm:$0xff] %v6335_v60  ;;  %6343 = vst [vmem:[%s251_s7 + $0x20] sm:$0xff] %v6336_v14 }
 0x3c9   : > { %6344 = vst [vmem:[%s251_s7 + $0x28] sm:$0xff] %v6337_v15  ;;  %6345 = vst [vmem:[%s251_s7 + $0x30] sm:$0xff] %v6338_v16 }
 0x3ca PF: > { %s16_s21 = sadd.s32 1, %s6908_s21  }
 0x3cb   : > { %p13_p4 = scmp.ge.s32.totalorder %s16_s21, 4  }
 0x3cd   :  { %15 = sbr.rel (!%p13_p4) target bundleno = 1 (0x1), region = 100 }

// kernel: double_conv_block.3
= control target key start
LH: loop header
LB: loop body
LE: loop exit
PB: predicated region body
PF: predicated region fallthrough
CT: control target
= control target key end

     0   :  { %s6953_s21 = smov 0   ;;  %s8291_s0 = inlined_call_operand.vmem [shape: bf16[2,8,1152], index: 0, kind: input, shape index: {}]   ;;  %s8292_s1 = inlined_call_operand.vmem [shape: bf16[27,8,8], index: 1, kind: input, shape index: {}]   ;;  %s8293_s2 = inlined_call_operand.vmem [shape: f32[8,1], index: 2, kind: input, shape index: {}]   ;;  %s8294_s3 = inlined_call_operand.vmem [shape: f32[8,1], index: 3, kind: input, shape index: {}]   ;;  %s8295_s4 = inlined_call_operand.vmem [shape: f32[8,1], index: 4, kind: input, shape index: {}]   ;;  %s8296_s5 = inlined_call_operand.vmem [shape: f32[1,896], index: 5, kind: input, shape index: {}]   ;;  %s8297_s6 = inlined_call_operand.vmem [shape: f32[2,8,896], index: 6, kind: output, shape index: {}]  }
   0x1 LB: > { %s6380_s22 = sadd.s32 4294967295, %s6887_s21   ;;  %p6384_p0 = scmp.ge.s32.totalorder %s6887_s21, 1  ;;  %s6887_s21 = sphi %s6953_s21, %s16_s21  }
   0x2   : > { %p212_p1 = scmp.lt.s32.totalorder %s6887_s21, 3 }
   0x4   : > { %p213_p2 = pnand %p6384_p0, %p212_p1 }
   0x5   : > { %p242_p3 = scmp.lt.s32.totalorder (!%p213_p2), %s6380_s22, 1  ;;  %v6889_v0 = vmov (!%p213_p2), 0   ;;  %s6890_s27 = smov (!%p213_p2), 127   ;;  %vm297_vm0 = vcmask (!%p213_p2), 1039360   ;;  %vm309_vm1 = vcmask (!%p213_p2), 1043456   ;;  %vm305_vm2 = vcmask (!%p213_p2), 64512  }
   0x6   : > { %216 = sbr.rel (%p213_p2) target bundleno = 966 (0x3c6), region = 44  ;;  %363 = vmatprep.mubr.bf16.mxu0 (!%p213_p2), %v6889_v0  ;;  %404 = vmatprep.mubr.bf16.mxu1 (!%p213_p2), %v6889_v0  ;;  %s6891_s28 = smov (!%p213_p2), 126   ;;  %v6387_v20 = vld [vmem:[%s8292_s1 + $0x4] sm:$0xf] (!%p213_p2)  ;;  %v6898_v29 = vmov (!%p213_p2), 0.0   ;;  %vm6899_vm3 = vmmov (!%p213_p2), 0  }
   0x7   : > { %6868 = vset.pattern.permute.xlu0 (!%p213_p2), %v6889_v0  ;;  %6869 = vset.pattern.permute.xlu1 (!%p213_p2), %v6889_v0  ;;  %s6892_s29 = smov (!%p213_p2), 118   ;;  %s6893_s30 = smov (!%p213_p2), 117   ;;  %vm699_vm4 = vcmask (!%p213_p2), 1031168   ;;  %v258_v40 = vld [vmem:[%s8292_s1] sm:$0xf] (!%p213_p2)  ;;  %vm919_vm5 = vcmask (!%p213_p2), 965632  }
   0x8   : > { %s6894_s7 = smov (!%p213_p2), 116   ;;  %s6895_s8 = smov (!%p213_p2), 108   ;;  %v6410_v59 = vld [vmem:[%s8292_s1 + $0x8] sm:$0xf] (!%p213_p2)  ;;  %vm1139_vm6 = vcmask (!%p213_p2), 957440   ;;  %vm1359_vm7 = vcmask (!%p213_p2), 949248  }
   0x9   : > { %s6896_s9 = smov (!%p213_p2), 107   ;;  %s6897_s10 = smov (!%p213_p2), 106   ;;  %vm1579_vm8 = vcmask (!%p213_p2), 883712   ;;  %vm1799_vm9 = vcmask (!%p213_p2), 875520   ;;  %vm2019_vm10 = vcmask (!%p213_p2), 867328   ;;  %vm2239_vm11 = vcmask (!%p213_p2), 228352  }
   0xa   : > { %s6900_s13 = smov (!%p213_p2), 28   ;;  %s6901_s16 = smov (!%p213_p2), 27   ;;  %vm2459_vm12 = vcmask (!%p213_p2), 220160   ;;  %vm2679_vm13 = vcmask (!%p213_p2), 211968   ;;  %vm2899_vm14 = vcmask (!%p213_p2), 146432   ;;  %vm3119_vm15 = vcmask (!%p213_p2), 138240  }
   0xb   : > { %s6902_s19 = smov (!%p213_p2), 26   ;;  %s6903_s24 = smov (!%p213_p2), 18  }
   0xc   : > { %s6914_s12 = smov (!%p213_p2), 44   ;;  %s6915_s15 = smov (!%p213_p2), 36  }
   0xd   : > { %s8299_s22 = smov (!%p242_p3, %s6380_s22), 1  ;;  %s6916_s18 = smov 35  }
   0xe   : > { %s6829_s23 = smul.u32 36, %s8299_s22 }
  0x10   : > { %s6969_s26 = scalar_lea.vmem %s8291_s0, %s6829_s23  ;;  %s6917_s23 = smov 34  }
  0x11   : > { %v254_v1 = vld [vmem:[%s6969_s26 + $0x8] sm:$0xff]  ;;  %v253_v2 = vld [vmem:[%s6969_s26] sm:$0xff]  ;;  %v255_v7 = vld [vmem:[%s6969_s26 + $0x10] sm:$0xff] }
  0x12   : > { %v6975_v3 = vcombine.low %v254_v1, %v254_v1  ;;  %v6977_v4 = vcombine.low %v253_v2, %v253_v2  ;;  %v6980_v5 = vcombine.high %v253_v2, %v253_v2  ;;  %v6983_v6 = vcombine.high %v254_v1, %v254_v1  ;;  %v256_v10 = vld [vmem:[%s6969_s26 + $0x18] sm:$0xff] }
  0x13   : > { %v6988_v8 = vcombine.high %v255_v7, %v255_v7  ;;  %v6990_v9 = vcombine.low %v255_v7, %v255_v7  ;;  %v6995_v11 = vcombine.low %v256_v10, %v256_v10  ;;  %v6997_v12 = vcombine.high %v256_v10, %v256_v10 }
  0x14   : > { %285 = vrot.lane.b32.xlu1 %v6975_v3, %s6890_s27  ;;  %281 = vrot.lane.b32.xlu0 %v6977_v4, %s6890_s27  ;;  %v498_v34 = vsel %vm309_vm1, %v6977_v4, 0  ;;  %v504_v37 = vsel %vm309_vm1, %v6975_v3, 0 }
  0x15   : > { %v510_v41 = vsel %vm309_vm1, %v6990_v9, 0  ;;  %v516_v45 = vsel %vm309_vm1, %v6995_v11, 0 }
  0x18   : > { %287 = vrot.lane.b32.xlu1 %v6983_v6, %s6890_s27  ;;  %283 = vrot.lane.b32.xlu0 %v6980_v5, %s6890_s27 }
  0x1c   : > { %291 = vrot.lane.b32.xlu1 %v6988_v8, %s6890_s27  ;;  %289 = vrot.lane.b32.xlu0 %v6990_v9, %s6890_s27 }
  0x20   : > { %295 = vrot.lane.b32.xlu1 %v6997_v12, %s6890_s27  ;;  %293 = vrot.lane.b32.xlu0 %v6995_v11, %s6890_s27  ;;  %s6911_s27 = smov 54  }
  0x24   : > { %683 = vrot.lane.b32.xlu0 %v6977_v4, %s6891_s28  ;;  %685 = vrot.lane.b32.xlu1 %v6980_v5, %s6891_s28 }
  0x28   : > { %687 = vrot.lane.b32.xlu0 %v6975_v3, %s6891_s28  ;;  %689 = vrot.lane.b32.xlu1 %v6983_v6, %s6891_s28 }
  0x2c   : > { %691 = vrot.lane.b32.xlu0 %v6990_v9, %s6891_s28  ;;  %693 = vrot.lane.b32.xlu1 %v6988_v8, %s6891_s28 }
  0x30   : > { %695 = vrot.lane.b32.xlu0 %v6995_v11, %s6891_s28  ;;  %697 = vrot.lane.b32.xlu1 %v6997_v12, %s6891_s28  ;;  %s6904_s28 = smov 17  }
  0x34   : > { %903 = vrot.lane.b32.xlu0 %v6977_v4, %s6892_s29  ;;  %905 = vrot.lane.b32.xlu1 %v6980_v5, %s6892_s29 }
  0x38   : > { %907 = vrot.lane.b32.xlu0 %v6975_v3, %s6892_s29  ;;  %909 = vrot.lane.b32.xlu1 %v6983_v6, %s6892_s29 }
  0x3c   : > { %911 = vrot.lane.b32.xlu0 %v6990_v9, %s6892_s29  ;;  %913 = vrot.lane.b32.xlu1 %v6988_v8, %s6892_s29 }
  0x40   : > { %915 = vrot.lane.b32.xlu0 %v6995_v11, %s6892_s29  ;;  %917 = vrot.lane.b32.xlu1 %v6997_v12, %s6892_s29 }
  0x44   : > { %1123 = vrot.lane.b32.xlu0 %v6977_v4, %s6893_s30  ;;  %1125 = vrot.lane.b32.xlu1 %v6980_v5, %s6893_s30 }
  0x48   : > { %1127 = vrot.lane.b32.xlu0 %v6975_v3, %s6893_s30  ;;  %1129 = vrot.lane.b32.xlu1 %v6983_v6, %s6893_s30 }
  0x4c   : > { %1131 = vrot.lane.b32.xlu0 %v6990_v9, %s6893_s30  ;;  %1133 = vrot.lane.b32.xlu1 %v6988_v8, %s6893_s30 }
  0x50   : > { %1135 = vrot.lane.b32.xlu0 %v6995_v11, %s6893_s30  ;;  %1137 = vrot.lane.b32.xlu1 %v6997_v12, %s6893_s30  ;;  %s6912_s30 = smov 46  }
  0x54   : > { %1343 = vrot.lane.b32.xlu0 %v6977_v4, %s6894_s7  ;;  %1345 = vrot.lane.b32.xlu1 %v6980_v5, %s6894_s7 }
  0x58   : > { %1347 = vrot.lane.b32.xlu0 %v6975_v3, %s6894_s7  ;;  %1349 = vrot.lane.b32.xlu1 %v6983_v6, %s6894_s7 }
  0x5c   : > { %1351 = vrot.lane.b32.xlu0 %v6990_v9, %s6894_s7  ;;  %1353 = vrot.lane.b32.xlu1 %v6988_v8, %s6894_s7 }
  0x60   : > { %1355 = vrot.lane.b32.xlu0 %v6995_v11, %s6894_s7  ;;  %1357 = vrot.lane.b32.xlu1 %v6997_v12, %s6894_s7  ;;  %s6905_s7 = smov 16  }
  0x64   : > { %1563 = vrot.lane.b32.xlu0 %v6977_v4, %s6895_s8  ;;  %1565 = vrot.lane.b32.xlu1 %v6980_v5, %s6895_s8 }
  0x68   : > { %1567 = vrot.lane.b32.xlu0 %v6975_v3, %s6895_s8  ;;  %1569 = vrot.lane.b32.xlu1 %v6983_v6, %s6895_s8 }
  0x6c   : > { %1571 = vrot.lane.b32.xlu0 %v6990_v9, %s6895_s8  ;;  %1573 = vrot.lane.b32.xlu1 %v6988_v8, %s6895_s8 }
  0x70   : > { %1575 = vrot.lane.b32.xlu0 %v6995_v11, %s6895_s8  ;;  %1577 = vrot.lane.b32.xlu1 %v6997_v12, %s6895_s8 }
  0x74   : > { %1783 = vrot.lane.b32.xlu0 %v6977_v4, %s6896_s9  ;;  %1785 = vrot.lane.b32.xlu1 %v6980_v5, %s6896_s9 }
  0x78   : > { %1787 = vrot.lane.b32.xlu0 %v6975_v3, %s6896_s9  ;;  %1789 = vrot.lane.b32.xlu1 %v6983_v6, %s6896_s9 }
  0x7c   : > { %1791 = vrot.lane.b32.xlu0 %v6990_v9, %s6896_s9  ;;  %1793 = vrot.lane.b32.xlu1 %v6988_v8, %s6896_s9 }
  0x80   : > { %1795 = vrot.lane.b32.xlu0 %v6995_v11, %s6896_s9  ;;  %1797 = vrot.lane.b32.xlu1 %v6997_v12, %s6896_s9  ;;  %s6913_s9 = smov 45  }
  0x84   : > { %2003 = vrot.lane.b32.xlu0 %v6977_v4, %s6897_s10  ;;  %2005 = vrot.lane.b32.xlu1 %v6980_v5, %s6897_s10 }
  0x86   : > { %v286_v13 = vpop.permute.xlu1 %285  ;;  %v282_v14 = vpop.permute.xlu0 %281 }
  0x88   : > { %2007 = vrot.lane.b32.xlu0 %v6975_v3, %s6897_s10  ;;  %2009 = vrot.lane.b32.xlu1 %v6983_v6, %s6897_s10 }
  0x8a   : > { %v288_v15 = vpop.permute.xlu1 %287  ;;  %v284_v16 = vpop.permute.xlu0 %283 }
  0x8b   : > { %v299_v17 = vsel %vm297_vm0, %v284_v16, %v286_v13  ;;  %v298_v18 = vsel %vm297_vm0, %v282_v14, %v284_v16  ;;  %v300_v21 = vsel %vm297_vm0, %v286_v13, %v288_v15 }
  0x8c   : > { %6396 = vmatprep.subr.msk.bf16.mxu0 %vm309_vm1, %v299_v17  ;;  %v311_v19 = vsel %vm309_vm1, %v298_v18, 0  ;;  %2011 = vrot.lane.b32.xlu0 %v6990_v9, %s6897_s10  ;;  %v317_v25 = vsel %vm309_vm1, %v300_v21, 0 }
  0x8d   : > { %332 = vmatpush1.bf16.msra.mxu0 %v311_v19  ;;  %2013 = vrot.lane.b32.xlu1 %v6988_v8, %s6897_s10 }
  0x8e   : > { %v292_v22 = vpop.permute.xlu1 %291  ;;  %v290_v23 = vpop.permute.xlu0 %289 }
  0x8f   : > { %v301_v24 = vsel %vm297_vm0, %v288_v15, %v290_v23  ;;  %v302_v26 = vsel %vm297_vm0, %v290_v23, %v292_v22 }
  0x90   : > { %6397 = vmatmul.mubr.msk.bf16.vlgmr.msra.gmra.mrb[0].mxu0 %vm305_vm2, %v6387_v20  ;;  %6398 = vmatprep.subr.msk.bf16.mxu1 %vm309_vm1, %v301_v24  ;;  %v323_v32 = vsel %vm309_vm1, %v302_v26, 0  ;;  %v6418_v24 = vld [vmem:[%s8292_s1 + $0xc] sm:$0xf] }
  0x91   : > { %373 = vmatpush1.bf16.msra.mxu1 %v317_v25  ;;  %445 = vmatprep.mubr.bf16.mxu0 %v6889_v0 }
  0x92   : > { %v296_v27 = vpop.permute.xlu1 %295  ;;  %v294_v28 = vpop.permute.xlu0 %293  ;;  %6667 = vmatprep.subr.bf16.mxu1 %v6898_v29  ;;  %2015 = vrot.lane.b32.xlu0 %v6995_v11, %s6897_s10 }
  0x93   : > { %v304_v30 = vsel %vm297_vm0, %v294_v28, %v296_v27  ;;  %v303_v31 = vsel %vm297_vm0, %v292_v22, %v294_v28  ;;  %2017 = vrot.lane.b32.xlu1 %v6997_v12, %s6897_s10  ;;  %s6906_s10 = smov 8   ;;  %vm3339_vm0 = vcmask 130048  }
  0x94   : > { %6399 = vmatmul.mubr.msk.bf16.vlgmr.msra.gmra.mrb[0].mxu1 %vm305_vm2, %v6387_v20  ;;  %6400 = vmatprep.subr.msk.bf16.mxu0 %vm309_vm1, %v303_v31  ;;  %v329_v33 = vsel %vm309_vm1, %v304_v30, 0 }
  0x95   : > { %414 = vmatpush1.bf16.msra.mxu0 %v323_v32  ;;  %6668 = vmatpush3.bf16.msra.mxu1 %v329_v33 }
  0x96   : > { %6669 = vmatprep.mubr.msk.bf16.mxu1 %vm6899_vm3, %v6898_v29  ;;  %6403 = vmatprep.subr.msk.bf16.mxu0 %vm309_vm1, %v6980_v5  ;;  %v684_v35 = vpop.permute.xlu0 %683  ;;  %v686_v36 = vpop.permute.xlu1 %685 }
  0x97   : > { %2223 = vrot.lane.b32.xlu0 %v6977_v4, %s6900_s13  ;;  %6405 = vmatprep.subr.msk.bf16.mxu1 %vm309_vm1, %v6983_v6  ;;  %v700_v48 = vsel %vm699_vm4, %v684_v35, %v686_v36 }
  0x98   : > { %6401 = vmatmul.mubr.msk.bf16.vlgmr.msra.gmra.mrb[4].mxu0 %vm305_vm2, %v6387_v20  ;;  %2225 = vrot.lane.b32.xlu1 %v6980_v5, %s6900_s13  ;;  %v711_v50 = vsel %vm309_vm1, %v700_v48, 0 }
  0x99   : > { %519 = vmatpush1.bf16.msra.mxu0 %v498_v34  ;;  %550 = vmatprep.mubr.bf16.mxu0 %v6889_v0 }
  0x9a   : > { %6407 = vmatprep.subr.msk.bf16.mxu0 %vm309_vm1, %v6988_v8  ;;  %v688_v38 = vpop.permute.xlu0 %687  ;;  %v690_v39 = vpop.permute.xlu1 %689 }
  0x9b   : > { %2227 = vrot.lane.b32.xlu0 %v6975_v3, %s6900_s13  ;;  %v701_v44 = vsel %vm699_vm4, %v686_v36, %v688_v38  ;;  %v702_v53 = vsel %vm699_vm4, %v688_v38, %v690_v39 }
  0x9c   : > { %6670 = vmatmul.mubr.msk.bf16.vlgmr.msra.gmra.mrb[4].mxu1 %vm305_vm2, %v6387_v20  ;;  %2229 = vrot.lane.b32.xlu1 %v6983_v6, %s6900_s13  ;;  %v717_v55 = vsel %vm309_vm1, %v702_v53, 0 }
  0x9d   : > { %560 = vmatpush1.bf16.msra.mxu1 %v504_v37  ;;  %591 = vmatprep.mubr.bf16.mxu1 %v6889_v0 }
  0x9e   : > { %6673 = vmatprep.subr.bf16.mxu1 %v6898_v29  ;;  %v692_v42 = vpop.permute.xlu0 %691  ;;  %v694_v43 = vpop.permute.xlu1 %693 }
  0x9f   : > { %2231 = vrot.lane.b32.xlu0 %v6990_v9, %s6900_s13  ;;  %v703_v49 = vsel %vm699_vm4, %v690_v39, %v692_v42  ;;  %v704_v58 = vsel %vm699_vm4, %v692_v42, %v694_v43 }
  0xa0   : > { %6404 = vmatmul.mubr.msk.bf16.vlgmr.msra.gmra.mrb[8].mxu0 %vm305_vm2, %v258_v40  ;;  %2233 = vrot.lane.b32.xlu1 %v6988_v8, %s6900_s13  ;;  %v723_v60 = vsel %vm309_vm1, %v704_v58, 0 }
  0xa1   : > { %601 = vmatpush1.bf16.msra.mxu0 %v510_v41  ;;  %632 = vmatprep.mubr.bf16.mxu0 %v6889_v0 }
  0xa2   : > { %6411 = vmatprep.subr.msk.bf16.mxu0 %vm309_vm1, %v701_v44  ;;  %v696_v46 = vpop.permute.xlu0 %695  ;;  %v698_v47 = vpop.permute.xlu1 %697 }
  0xa3   : > { %2235 = vrot.lane.b32.xlu0 %v6995_v11, %s6900_s13  ;;  %v705_v54 = vsel %vm699_vm4, %v694_v43, %v696_v46  ;;  %v706_v63 = vsel %vm699_vm4, %v696_v46, %v698_v47  ;;  %vm3779_vm4 = vcmask 56320  }
  0xa4   : > { %6406 = vmatmul.mubr.msk.bf16.vlgmr.msra.gmra.mrb[8].mxu1 %vm305_vm2, %v258_v40  ;;  %2237 = vrot.lane.b32.xlu1 %v6997_v12, %s6900_s13  ;;  %v729_v2 = vsel %vm309_vm1, %v706_v63, 0  ;;  %s6907_s13 = smov 7  }
  0xa5   : > { %6674 = vmatpush3.bf16.msra.mxu1 %v516_v45  ;;  %6675 = vmatprep.mubr.msk.bf16.mxu1 %vm6899_vm3, %v6898_v29  ;;  %v6426_v45 = vld [vmem:[%s8292_s1 + $0x10] sm:$0xf] }
  0xa6   : > { %6413 = vmatprep.subr.msk.bf16.mxu1 %vm309_vm1, %v703_v49  ;;  %v904_v51 = vpop.permute.xlu0 %903  ;;  %v906_v52 = vpop.permute.xlu1 %905 }
  0xa7   : > { %2443 = vrot.lane.b32.xlu0 %v6977_v4, %s6901_s16  ;;  %v920_v13 = vsel %vm919_vm5, %v904_v51, %v906_v52 }
  0xa8   : > { %6408 = vmatmul.mubr.msk.bf16.vlgmr.msra.gmra.mrb[12].mxu0 %vm305_vm2, %v258_v40  ;;  %2445 = vrot.lane.b32.xlu1 %v6980_v5, %s6901_s16  ;;  %v931_v15 = vsel %vm309_vm1, %v920_v13, 0 }
  0xa9   : > { %732 = vmatpush1.bf16.msra.mxu0 %v711_v50  ;;  %763 = vmatprep.mubr.bf16.mxu0 %v6889_v0 }
  0xaa   : > { %6415 = vmatprep.subr.msk.bf16.mxu0 %vm309_vm1, %v705_v54  ;;  %v908_v56 = vpop.permute.xlu0 %907  ;;  %v910_v57 = vpop.permute.xlu1 %909 }
  0xab   : > { %2447 = vrot.lane.b32.xlu0 %v6975_v3, %s6901_s16  ;;  %v921_v1 = vsel %vm919_vm5, %v906_v52, %v908_v56  ;;  %v922_v18 = vsel %vm919_vm5, %v908_v56, %v910_v57 }
  0xac   : > { %6676 = vmatmul.mubr.msk.bf16.vlgmr.msra.gmra.mrb[12].mxu1 %vm305_vm2, %v258_v40  ;;  %2449 = vrot.lane.b32.xlu1 %v6983_v6, %s6901_s16  ;;  %v937_v20 = vsel %vm309_vm1, %v922_v18, 0 }
  0xad   : > { %773 = vmatpush1.bf16.msra.mxu1 %v717_v55  ;;  %804 = vmatprep.mubr.bf16.mxu1 %v6889_v0 }
  0xae   : > { %6679 = vmatprep.subr.bf16.mxu1 %v6898_v29  ;;  %v912_v61 = vpop.permute.xlu0 %911  ;;  %v914_v62 = vpop.permute.xlu1 %913 }
  0xaf   : > { %2451 = vrot.lane.b32.xlu0 %v6990_v9, %s6901_s16  ;;  %v923_v14 = vsel %vm919_vm5, %v910_v57, %v912_v61  ;;  %v924_v23 = vsel %vm919_vm5, %v912_v61, %v914_v62 }
  0xb0   : > { %6412 = vmatmul.mubr.msk.bf16.vlgmr.msra.gmra.mrb[16].mxu0 %vm305_vm2, %v6410_v59  ;;  %2453 = vrot.lane.b32.xlu1 %v6988_v8, %s6901_s16  ;;  %v943_v25 = vsel %vm309_vm1, %v924_v23, 0 }
  0xb1   : > { %814 = vmatpush1.bf16.msra.mxu0 %v723_v60  ;;  %845 = vmatprep.mubr.bf16.mxu0 %v6889_v0 }
  0xb2   : > { %6419 = vmatprep.subr.msk.bf16.mxu0 %vm309_vm1, %v921_v1  ;;  %v916_v7 = vpop.permute.xlu0 %915  ;;  %v918_v10 = vpop.permute.xlu1 %917 }
  0xb3   : > { %2455 = vrot.lane.b32.xlu0 %v6995_v11, %s6901_s16  ;;  %v925_v19 = vsel %vm919_vm5, %v914_v62, %v916_v7  ;;  %v926_v28 = vsel %vm919_vm5, %v916_v7, %v918_v10  ;;  %vm3999_vm5 = vcmask 48128  }
  0xb4   : > { %6414 = vmatmul.mubr.msk.bf16.vlgmr.msra.gmra.mrb[16].mxu1 %vm305_vm2, %v6410_v59  ;;  %2457 = vrot.lane.b32.xlu1 %v6997_v12, %s6901_s16  ;;  %v949_v31 = vsel %vm309_vm1, %v926_v28, 0  ;;  %s6908_s16 = smov 6  }
  0xb5   : > { %6680 = vmatpush3.bf16.msra.mxu1 %v729_v2  ;;  %6681 = vmatprep.mubr.msk.bf16.mxu1 %vm6899_vm3, %v6898_v29  ;;  %v6434_v2 = vld [vmem:[%s8292_s1 + $0x14] sm:$0xf] }
  0xb6   : > { %6421 = vmatprep.subr.msk.bf16.mxu1 %vm309_vm1, %v923_v14  ;;  %v1124_v16 = vpop.permute.xlu0 %1123  ;;  %v1126_v17 = vpop.permute.xlu1 %1125 }
  0xb7   : > { %2663 = vrot.lane.b32.xlu0 %v6977_v4, %s6902_s19  ;;  %v1140_v34 = vsel %vm1139_vm6, %v1124_v16, %v1126_v17 }
  0xb8   : > { %6416 = vmatmul.mubr.msk.bf16.vlgmr.msra.gmra.mrb[20].mxu0 %vm305_vm2, %v6410_v59  ;;  %2665 = vrot.lane.b32.xlu1 %v6980_v5, %s6902_s19  ;;  %v1151_v36 = vsel %vm309_vm1, %v1140_v34, 0 }
  0xb9   : > { %952 = vmatpush1.bf16.msra.mxu0 %v931_v15  ;;  %983 = vmatprep.mubr.bf16.mxu0 %v6889_v0 }
  0xba   : > { %6423 = vmatprep.subr.msk.bf16.mxu0 %vm309_vm1, %v925_v19  ;;  %v1128_v21 = vpop.permute.xlu0 %1127  ;;  %v1130_v22 = vpop.permute.xlu1 %1129 }
  0xbb   : > { %2667 = vrot.lane.b32.xlu0 %v6975_v3, %s6902_s19  ;;  %v1141_v30 = vsel %vm1139_vm6, %v1126_v17, %v1128_v21  ;;  %v1142_v39 = vsel %vm1139_vm6, %v1128_v21, %v1130_v22 }
  0xbc   : > { %6682 = vmatmul.mubr.msk.bf16.vlgmr.msra.gmra.mrb[20].mxu1 %vm305_vm2, %v6410_v59  ;;  %2669 = vrot.lane.b32.xlu1 %v6983_v6, %s6902_s19  ;;  %v1157_v41 = vsel %vm309_vm1, %v1142_v39, 0 }
  0xbd   : > { %993 = vmatpush1.bf16.msra.mxu1 %v937_v20  ;;  %1024 = vmatprep.mubr.bf16.mxu1 %v6889_v0 }
  0xbe   : > { %6685 = vmatprep.subr.bf16.mxu1 %v6898_v29  ;;  %v1132_v26 = vpop.permute.xlu0 %1131  ;;  %v1134_v27 = vpop.permute.xlu1 %1133 }
  0xbf   : > { %2671 = vrot.lane.b32.xlu0 %v6990_v9, %s6902_s19  ;;  %v1143_v35 = vsel %vm1139_vm6, %v1130_v22, %v1132_v26  ;;  %v1144_v44 = vsel %vm1139_vm6, %v1132_v26, %v1134_v27 }
  0xc0   : > { %6420 = vmatmul.mubr.msk.bf16.vlgmr.msra.gmra.mrb[24].mxu0 %vm305_vm2, %v6418_v24  ;;  %2673 = vrot.lane.b32.xlu1 %v6988_v8, %s6902_s19  ;;  %v1163_v46 = vsel %vm309_vm1, %v1144_v44, 0 }
  0xc1   : > { %1034 = vmatpush1.bf16.msra.mxu0 %v943_v25  ;;  %1065 = vmatprep.mubr.bf16.mxu0 %v6889_v0 }
  0xc2   : > { %6427 = vmatprep.subr.msk.bf16.mxu0 %vm309_vm1, %v1141_v30  ;;  %v1136_v32 = vpop.permute.xlu0 %1135  ;;  %v1138_v33 = vpop.permute.xlu1 %1137 }
  0xc3   : > { %2675 = vrot.lane.b32.xlu0 %v6995_v11, %s6902_s19  ;;  %v1145_v40 = vsel %vm1139_vm6, %v1134_v27, %v1136_v32  ;;  %v1146_v49 = vsel %vm1139_vm6, %v1136_v32, %v1138_v33  ;;  %vm4222_vm6 = vcmask 457728  }
  0xc4   : > { %6422 = vmatmul.mubr.msk.bf16.vlgmr.msra.gmra.mrb[24].mxu1 %vm305_vm2, %v6418_v24  ;;  %2677 = vrot.lane.b32.xlu1 %v6997_v12, %s6902_s19  ;;  %v1169_v51 = vsel %vm309_vm1, %v1146_v49, 0  ;;  %s6909_s19 = smov 56  }
  0xc5   : > { %6686 = vmatpush3.bf16.msra.mxu1 %v949_v31  ;;  %6687 = vmatprep.mubr.msk.bf16.mxu1 %vm6899_vm3, %v6898_v29  ;;  %v6442_v31 = vld [vmem:[%s8292_s1 + $0x18] sm:$0xf] }
  0xc6   : > { %6429 = vmatprep.subr.msk.bf16.mxu1 %vm309_vm1, %v1143_v35  ;;  %v1344_v37 = vpop.permute.xlu0 %1343  ;;  %v1346_v38 = vpop.permute.xlu1 %1345 }
  0xc7   : > { %2883 = vrot.lane.b32.xlu0 %v6977_v4, %s6903_s24  ;;  %v1360_v54 = vsel %vm1359_vm7, %v1344_v37, %v1346_v38 }
  0xc8   : > { %6424 = vmatmul.mubr.msk.bf16.vlgmr.msra.gmra.mrb[28].mxu0 %vm305_vm2, %v6418_v24  ;;  %2885 = vrot.lane.b32.xlu1 %v6980_v5, %s6903_s24  ;;  %v1371_v56 = vsel %vm309_vm1, %v1360_v54, 0 }
  0xc9   : > { %1172 = vmatpush1.bf16.msra.mxu0 %v1151_v36  ;;  %1203 = vmatprep.mubr.bf16.mxu0 %v6889_v0 }
  0xca   : > { %6431 = vmatprep.subr.msk.bf16.mxu0 %vm309_vm1, %v1145_v40  ;;  %v1348_v42 = vpop.permute.xlu0 %1347  ;;  %v1350_v43 = vpop.permute.xlu1 %1349 }
  0xcb   : > { %2887 = vrot.lane.b32.xlu0 %v6975_v3, %s6903_s24  ;;  %v1361_v50 = vsel %vm1359_vm7, %v1346_v38, %v1348_v42  ;;  %v1362_v59 = vsel %vm1359_vm7, %v1348_v42, %v1350_v43 }
  0xcc   : > { %6688 = vmatmul.mubr.msk.bf16.vlgmr.msra.gmra.mrb[28].mxu1 %vm305_vm2, %v6418_v24  ;;  %2889 = vrot.lane.b32.xlu1 %v6983_v6, %s6903_s24  ;;  %v1377_v61 = vsel %vm309_vm1, %v1362_v59, 0 }
  0xcd   : > { %1213 = vmatpush1.bf16.msra.mxu1 %v1157_v41  ;;  %1244 = vmatprep.mubr.bf16.mxu1 %v6889_v0 }
  0xce   : > { %6691 = vmatprep.subr.bf16.mxu1 %v6898_v29  ;;  %v1352_v47 = vpop.permute.xlu0 %1351  ;;  %v1354_v48 = vpop.permute.xlu1 %1353 }
  0xcf   : > { %2891 = vrot.lane.b32.xlu0 %v6990_v9, %s6903_s24  ;;  %v1363_v55 = vsel %vm1359_vm7, %v1350_v43, %v1352_v47  ;;  %v1364_v1 = vsel %vm1359_vm7, %v1352_v47, %v1354_v48 }
  0xd0   : > { %6428 = vmatmul.mubr.msk.bf16.vlgmr.msra.gmra.mrb[32].mxu0 %vm305_vm2, %v6426_v45  ;;  %2893 = vrot.lane.b32.xlu1 %v6988_v8, %s6903_s24  ;;  %v1383_v7 = vsel %vm309_vm1, %v1364_v1, 0 }
  0xd1   : > { %1254 = vmatpush1.bf16.msra.mxu0 %v1163_v46  ;;  %1285 = vmatprep.mubr.bf16.mxu0 %v6889_v0 }
  0xd2   : > { %6435 = vmatprep.subr.msk.bf16.mxu0 %vm309_vm1, %v1361_v50  ;;  %v1356_v52 = vpop.permute.xlu0 %1355  ;;  %v1358_v53 = vpop.permute.xlu1 %1357 }
  0xd3   : > { %2895 = vrot.lane.b32.xlu0 %v6995_v11, %s6903_s24  ;;  %v1365_v60 = vsel %vm1359_vm7, %v1354_v48, %v1356_v52  ;;  %v1366_v14 = vsel %vm1359_vm7, %v1356_v52, %v1358_v53  ;;  %vm4442_vm7 = vcmask 449536  }
  0xd4   : > { %6430 = vmatmul.mubr.msk.bf16.vlgmr.msra.gmra.mrb[32].mxu1 %vm305_vm2, %v6426_v45  ;;  %2897 = vrot.lane.b32.xlu1 %v6997_v12, %s6903_s24  ;;  %v1389_v16 = vsel %vm309_vm1, %v1366_v14, 0  ;;  %v6458_v14 = vld [vmem:[%s8292_s1 + $0x20] sm:$0xf] }
  0xd5   : > { %6692 = vmatpush3.bf16.msra.mxu1 %v1169_v51  ;;  %6693 = vmatprep.mubr.msk.bf16.mxu1 %vm6899_vm3, %v6898_v29  ;;  %v6450_v51 = vld [vmem:[%s8292_s1 + $0x1c] sm:$0xf] }
  0xd6   : > { %6437 = vmatprep.subr.msk.bf16.mxu1 %vm309_vm1, %v1363_v55  ;;  %v1564_v57 = vpop.permute.xlu0 %1563  ;;  %v1566_v58 = vpop.permute.xlu1 %1565 }
  0xd7   : > { %3103 = vrot.lane.b32.xlu0 %v6977_v4, %s6904_s28  ;;  %v1580_v19 = vsel %vm1579_vm8, %v1564_v57, %v1566_v58 }
  0xd8   : > { %6432 = vmatmul.mubr.msk.bf16.vlgmr.msra.gmra.mrb[36].mxu0 %vm305_vm2, %v6426_v45  ;;  %3105 = vrot.lane.b32.xlu1 %v6980_v5, %s6904_s28  ;;  %v1591_v21 = vsel %vm309_vm1, %v1580_v19, 0 }
  0xd9   : > { %1392 = vmatpush1.bf16.msra.mxu0 %v1371_v56  ;;  %1423 = vmatprep.mubr.bf16.mxu0 %v6889_v0 }
  0xda   : > { %6439 = vmatprep.subr.msk.bf16.mxu0 %vm309_vm1, %v1365_v60  ;;  %v1568_v62 = vpop.permute.xlu0 %1567  ;;  %v1570_v63 = vpop.permute.xlu1 %1569 }
  0xdb   : > { %3107 = vrot.lane.b32.xlu0 %v6975_v3, %s6904_s28  ;;  %v1581_v15 = vsel %vm1579_vm8, %v1566_v58, %v1568_v62  ;;  %v1582_v24 = vsel %vm1579_vm8, %v1568_v62, %v1570_v63 }
  0xdc   : > { %6694 = vmatmul.mubr.msk.bf16.vlgmr.msra.gmra.mrb[36].mxu1 %vm305_vm2, %v6426_v45  ;;  %3109 = vrot.lane.b32.xlu1 %v6983_v6, %s6904_s28  ;;  %v1597_v26 = vsel %vm309_vm1, %v1582_v24, 0 }
  0xdd   : > { %1433 = vmatpush1.bf16.msra.mxu1 %v1377_v61  ;;  %1464 = vmatprep.mubr.bf16.mxu1 %v6889_v0 }
  0xde   : > { %6697 = vmatprep.subr.bf16.mxu1 %v6898_v29  ;;  %v1572_v10 = vpop.permute.xlu0 %1571  ;;  %v1574_v13 = vpop.permute.xlu1 %1573 }
  0xdf   : > { %3111 = vrot.lane.b32.xlu0 %v6990_v9, %s6904_s28  ;;  %v1583_v20 = vsel %vm1579_vm8, %v1570_v63, %v1572_v10  ;;  %v1584_v30 = vsel %vm1579_vm8, %v1572_v10, %v1574_v13 }
  0xe0   : > { %6436 = vmatmul.mubr.msk.bf16.vlgmr.msra.gmra.mrb[40].mxu0 %vm305_vm2, %v6434_v2  ;;  %3113 = vrot.lane.b32.xlu1 %v6988_v8, %s6904_s28  ;;  %v1603_v32 = vsel %vm309_vm1, %v1584_v30, 0 }
  0xe1   : > { %1474 = vmatpush1.bf16.msra.mxu0 %v1383_v7  ;;  %1505 = vmatprep.mubr.bf16.mxu0 %v6889_v0 }
  0xe2   : > { %6443 = vmatprep.subr.msk.bf16.mxu0 %vm309_vm1, %v1581_v15  ;;  %v1576_v17 = vpop.permute.xlu0 %1575  ;;  %v1578_v18 = vpop.permute.xlu1 %1577 }
  0xe3   : > { %3115 = vrot.lane.b32.xlu0 %v6995_v11, %s6904_s28  ;;  %v1585_v25 = vsel %vm1579_vm8, %v1574_v13, %v1576_v17  ;;  %v1586_v35 = vsel %vm1579_vm8, %v1576_v17, %v1578_v18  ;;  %vm4662_vm8 = vcmask 441344  }
  0xe4   : > { %6438 = vmatmul.mubr.msk.bf16.vlgmr.msra.gmra.mrb[40].mxu1 %vm305_vm2, %v6434_v2  ;;  %3117 = vrot.lane.b32.xlu1 %v6997_v12, %s6904_s28  ;;  %v1609_v37 = vsel %vm309_vm1, %v1586_v35, 0  ;;  %s6830_s28 = smul.u32 56, %s8299_s22 }
  0xe5   : > { %6698 = vmatpush3.bf16.msra.mxu1 %v1389_v16  ;;  %6699 = vmatprep.mubr.msk.bf16.mxu1 %vm6899_vm3, %v6898_v29 }
  0xe6   : > { %6445 = vmatprep.subr.msk.bf16.mxu1 %vm309_vm1, %v1583_v20  ;;  %v1784_v22 = vpop.permute.xlu0 %1783  ;;  %v1786_v23 = vpop.permute.xlu1 %1785  ;;  %s251_s22 = scalar_lea.vmem %s8297_s6, %s6830_s28 }
  0xe7   : > { %3323 = vrot.lane.b32.xlu0 %v6977_v4, %s6905_s7  ;;  %v1800_v40 = vsel %vm1799_vm9, %v1784_v22, %v1786_v23 }
  0xe8   : > { %6440 = vmatmul.mubr.msk.bf16.vlgmr.msra.gmra.mrb[44].mxu0 %vm305_vm2, %v6434_v2  ;;  %3325 = vrot.lane.b32.xlu1 %v6980_v5, %s6905_s7  ;;  %v1811_v42 = vsel %vm309_vm1, %v1800_v40, 0 }
  0xe9   : > { %1612 = vmatpush1.bf16.msra.mxu0 %v1591_v21  ;;  %1643 = vmatprep.mubr.bf16.mxu0 %v6889_v0 }
  0xea   : > { %6447 = vmatprep.subr.msk.bf16.mxu0 %vm309_vm1, %v1585_v25  ;;  %v1788_v27 = vpop.permute.xlu0 %1787  ;;  %v1790_v28 = vpop.permute.xlu1 %1789 }
  0xeb   : > { %3327 = vrot.lane.b32.xlu0 %v6975_v3, %s6905_s7  ;;  %v1801_v36 = vsel %vm1799_vm9, %v1786_v23, %v1788_v27  ;;  %v1802_v45 = vsel %vm1799_vm9, %v1788_v27, %v1790_v28 }
  0xec   : > { %6700 = vmatmul.mubr.msk.bf16.vlgmr.msra.gmra.mrb[44].mxu1 %vm305_vm2, %v6434_v2  ;;  %3329 = vrot.lane.b32.xlu1 %v6983_v6, %s6905_s7  ;;  %v1817_v47 = vsel %vm309_vm1, %v1802_v45, 0 }
  0xed   : > { %1653 = vmatpush1.bf16.msra.mxu1 %v1597_v26  ;;  %1684 = vmatprep.mubr.bf16.mxu1 %v6889_v0 }
  0xee   : > { %6703 = vmatprep.subr.bf16.mxu1 %v6898_v29  ;;  %v1792_v33 = vpop.permute.xlu0 %1791  ;;  %v1794_v34 = vpop.permute.xlu1 %1793 }
  0xef   : > { %3331 = vrot.lane.b32.xlu0 %v6990_v9, %s6905_s7  ;;  %v1803_v41 = vsel %vm1799_vm9, %v1790_v28, %v1792_v33  ;;  %v1804_v50 = vsel %vm1799_vm9, %v1792_v33, %v1794_v34 }
  0xf0   : > { %6444 = vmatmul.mubr.msk.bf16.vlgmr.msra.gmra.mrb[48].mxu0 %vm305_vm2, %v6442_v31  ;;  %3333 = vrot.lane.b32.xlu1 %v6988_v8, %s6905_s7  ;;  %v1823_v52 = vsel %vm309_vm1, %v1804_v50, 0 }
  0xf1   : > { %1694 = vmatpush1.bf16.msra.mxu0 %v1603_v32  ;;  %1725 = vmatprep.mubr.bf16.mxu0 %v6889_v0 }
  0xf2   : > { %6451 = vmatprep.subr.msk.bf16.mxu0 %vm309_vm1, %v1801_v36  ;;  %v1796_v38 = vpop.permute.xlu0 %1795  ;;  %v1798_v39 = vpop.permute.xlu1 %1797 }
  0xf3   : > { %3335 = vrot.lane.b32.xlu0 %v6995_v11, %s6905_s7  ;;  %v1805_v46 = vsel %vm1799_vm9, %v1794_v34, %v1796_v38  ;;  %v1806_v54 = vsel %vm1799_vm9, %v1796_v38, %v1798_v39  ;;  %vm4882_vm9 = vcmask 375808  }
  0xf4   : > { %6446 = vmatmul.mubr.msk.bf16.vlgmr.msra.gmra.mrb[48].mxu1 %vm305_vm2, %v6442_v31  ;;  %3337 = vrot.lane.b32.xlu1 %v6997_v12, %s6905_s7  ;;  %v1829_v57 = vsel %vm309_vm1, %v1806_v54, 0  ;;  %v6474_v54 = vld [vmem:[%s8292_s1 + $0x28] sm:$0xf] }
  0xf5   : > { %6704 = vmatpush3.bf16.msra.mxu1 %v1609_v37  ;;  %6705 = vmatprep.mubr.msk.bf16.mxu1 %vm6899_vm3, %v6898_v29 }
  0xf6   : > { %6453 = vmatprep.subr.msk.bf16.mxu1 %vm309_vm1, %v1803_v41  ;;  %v2004_v43 = vpop.permute.xlu0 %2003  ;;  %v2006_v44 = vpop.permute.xlu1 %2005 }
  0xf7   : > { %3543 = vrot.lane.b32.xlu0 %v6977_v4, %s6906_s10  ;;  %v2020_v58 = vsel %vm2019_vm10, %v2004_v43, %v2006_v44 }
  0xf8   : > { %6448 = vmatmul.mubr.msk.bf16.vlgmr.msra.gmra.mrb[52].mxu0 %vm305_vm2, %v6442_v31  ;;  %3545 = vrot.lane.b32.xlu1 %v6980_v5, %s6906_s10  ;;  %v2031_v62 = vsel %vm309_vm1, %v2020_v58, 0 }
  0xf9   : > { %1832 = vmatpush1.bf16.msra.mxu0 %v1811_v42  ;;  %1863 = vmatprep.mubr.bf16.mxu0 %v6889_v0 }
  0xfa   : > { %6455 = vmatprep.subr.msk.bf16.mxu0 %vm309_vm1, %v1805_v46  ;;  %v2008_v48 = vpop.permute.xlu0 %2007  ;;  %v2010_v49 = vpop.permute.xlu1 %2009 }
  0xfb   : > { %3547 = vrot.lane.b32.xlu0 %v6975_v3, %s6906_s10  ;;  %v2021_v55 = vsel %vm2019_vm10, %v2006_v44, %v2008_v48  ;;  %v2022_v63 = vsel %vm2019_vm10, %v2008_v48, %v2010_v49 }
  0xfc   : > { %6706 = vmatmul.mubr.msk.bf16.vlgmr.msra.gmra.mrb[52].mxu1 %vm305_vm2, %v6442_v31  ;;  %3549 = vrot.lane.b32.xlu1 %v6983_v6, %s6906_s10  ;;  %v2037_v7 = vsel %vm309_vm1, %v2022_v63, 0 }
  0xfd   : > { %1873 = vmatpush1.bf16.msra.mxu1 %v1817_v47  ;;  %1904 = vmatprep.mubr.bf16.mxu1 %v6889_v0 }
  0xfe   : > { %6709 = vmatprep.subr.bf16.mxu1 %v6898_v29  ;;  %v2012_v53 = vpop.permute.xlu0 %2011 }
  0xff   : > { %3551 = vrot.lane.b32.xlu0 %v6990_v9, %s6906_s10  ;;  %v2014_v56 = vpop.permute.xlu1 %2013  ;;  %v2023_v59 = vsel %vm2019_vm10, %v2010_v49, %v2012_v53 }
 0x100   : > { %6452 = vmatmul.mubr.msk.bf16.vlgmr.msra.gmra.mrb[56].mxu0 %vm305_vm2, %v6450_v51  ;;  %3553 = vrot.lane.b32.xlu1 %v6988_v8, %s6906_s10  ;;  %v2024_v13 = vsel %vm2019_vm10, %v2012_v53, %v2014_v56 }
 0x101   : > { %1914 = vmatpush1.bf16.msra.mxu0 %v1823_v52  ;;  %1945 = vmatprep.mubr.bf16.mxu0 %v6889_v0  ;;  %v2043_v16 = vsel %vm309_vm1, %v2024_v13, 0 }
 0x102   : > { %6459 = vmatprep.subr.msk.bf16.mxu0 %vm309_vm1, %v2021_v55 }
 0x103   : > { %3555 = vrot.lane.b32.xlu0 %v6995_v11, %s6906_s10 }
 0x104   : > { %6454 = vmatmul.mubr.msk.bf16.vlgmr.msra.gmra.mrb[56].mxu1 %vm305_vm2, %v6450_v51  ;;  %v2016_v60 = vpop.permute.xlu0 %2015  ;;  %3557 = vrot.lane.b32.xlu1 %v6997_v12, %s6906_s10 }
 0x105   : > { %6710 = vmatpush3.bf16.msra.mxu1 %v1829_v57  ;;  %6711 = vmatprep.mubr.msk.bf16.mxu1 %vm6899_vm3, %v6898_v29  ;;  %v2018_v61 = vpop.permute.xlu1 %2017  ;;  %v2025_v1 = vsel %vm2019_vm10, %v2014_v56, %v2016_v60 }
 0x106   : > { %6461 = vmatprep.subr.msk.bf16.mxu1 %vm309_vm1, %v2023_v59  ;;  %v2026_v18 = vsel %vm2019_vm10, %v2016_v60, %v2018_v61  ;;  %v7511_v60 = vld [vmem:[%s6969_s26 + $0x20] ss:$0 sps:$4 sm:$0xff]   ;;  %s6910_s26 = smov 55   ;;  %vm5102_vm10 = vcmask 367616  }
 0x107   : > { %3763 = vrot.lane.b32.xlu0 %v6977_v4, %s6907_s13  ;;  %v2049_v21 = vsel %vm309_vm1, %v2026_v18, 0 }
 0x108   : > { %6456 = vmatmul.mubr.msk.bf16.vlgmr.msra.gmra.mrb[60].mxu0 %vm305_vm2, %v6450_v51  ;;  %3765 = vrot.lane.b32.xlu1 %v6980_v5, %s6907_s13 }
 0x109   : > { %2052 = vmatpush1.bf16.msra.mxu0 %v2031_v62  ;;  %2083 = vmatprep.mubr.bf16.mxu0 %v6889_v0  ;;  %v2224_v2 = vpop.permute.xlu0 %2223 }
 0x10a   : > { %6463 = vmatprep.subr.msk.bf16.mxu0 %vm309_vm1, %v2025_v1  ;;  %v2226_v10 = vpop.permute.xlu1 %2225 }
 0x10b   : > { %3767 = vrot.lane.b32.xlu0 %v6975_v3, %s6907_s13  ;;  %v2240_v23 = vsel %vm2239_vm11, %v2224_v2, %v2226_v10 }
 0x10c   : > { %6712 = vmatmul.mubr.msk.bf16.vlgmr.msra.gmra.mrb[60].mxu1 %vm305_vm2, %v6450_v51  ;;  %3769 = vrot.lane.b32.xlu1 %v6983_v6, %s6907_s13  ;;  %v2251_v26 = vsel %vm309_vm1, %v2240_v23, 0 }
 0x10d   : > { %2093 = vmatpush1.bf16.msra.mxu1 %v2037_v7  ;;  %2124 = vmatprep.mubr.bf16.mxu1 %v6889_v0  ;;  %v2228_v15 = vpop.permute.xlu0 %2227 }
 0x10e   : > { %6715 = vmatprep.subr.bf16.mxu1 %v6898_v29  ;;  %v2230_v17 = vpop.permute.xlu1 %2229  ;;  %v2241_v19 = vsel %vm2239_vm11, %v2226_v10, %v2228_v15 }
 0x10f   : > { %3771 = vrot.lane.b32.xlu0 %v6990_v9, %s6907_s13  ;;  %v2242_v28 = vsel %vm2239_vm11, %v2228_v15, %v2230_v17 }
 0x110   : > { %6460 = vmatmul.mubr.msk.bf16.vlgmr.msra.gmra.mrb[64].mxu0 %vm305_vm2, %v6458_v14  ;;  %3773 = vrot.lane.b32.xlu1 %v6988_v8, %s6907_s13  ;;  %v2257_v32 = vsel %vm309_vm1, %v2242_v28, 0 }
 0x111   : > { %2134 = vmatpush1.bf16.msra.mxu0 %v2043_v16  ;;  %2165 = vmatprep.mubr.bf16.mxu0 %v6889_v0  ;;  %v2232_v20 = vpop.permute.xlu0 %2231 }
 0x112   : > { %6467 = vmatprep.subr.msk.bf16.mxu0 %vm309_vm1, %v2241_v19  ;;  %v2234_v22 = vpop.permute.xlu1 %2233  ;;  %v2243_v24 = vsel %vm2239_vm11, %v2230_v17, %v2232_v20 }
 0x113   : > { %3775 = vrot.lane.b32.xlu0 %v6995_v11, %s6907_s13  ;;  %v2244_v34 = vsel %vm2239_vm11, %v2232_v20, %v2234_v22  ;;  %v6482_v20 = vld [vmem:[%s8292_s1 + $0x2c] sm:$0xf] }
 0x114   : > { %6462 = vmatmul.mubr.msk.bf16.vlgmr.msra.gmra.mrb[64].mxu1 %vm305_vm2, %v6458_v14  ;;  %3777 = vrot.lane.b32.xlu1 %v6997_v12, %s6907_s13  ;;  %v2263_v36 = vsel %vm309_vm1, %v2244_v34, 0 }
 0x115   : > { %6716 = vmatpush3.bf16.msra.mxu1 %v2049_v21  ;;  %6717 = vmatprep.mubr.msk.bf16.mxu1 %vm6899_vm3, %v6898_v29  ;;  %v2236_v25 = vpop.permute.xlu0 %2235 }
 0x116   : > { %6469 = vmatprep.subr.msk.bf16.mxu1 %vm309_vm1, %v2243_v24  ;;  %v2238_v27 = vpop.permute.xlu1 %2237  ;;  %v2245_v30 = vsel %vm2239_vm11, %v2234_v22, %v2236_v25 }
 0x117   : > { %3983 = vrot.lane.b32.xlu0 %v6977_v4, %s6908_s16  ;;  %v6466_v4 = vld [vmem:[%s8292_s1 + $0x24] sm:$0xf]  ;;  %v2246_v38 = vsel %vm2239_vm11, %v2236_v25, %v2238_v27  ;;  %vm5322_vm11 = vcmask 359424  }
 0x118   : > { %6464 = vmatmul.mubr.msk.bf16.vlgmr.msra.gmra.mrb[68].mxu0 %vm305_vm2, %v6458_v14  ;;  %3985 = vrot.lane.b32.xlu1 %v6980_v5, %s6908_s16  ;;  %v2269_v41 = vsel %vm309_vm1, %v2246_v38, 0 }
 0x119   : > { %2272 = vmatpush1.bf16.msra.mxu0 %v2251_v26  ;;  %2303 = vmatprep.mubr.bf16.mxu0 %v6889_v0  ;;  %v2444_v31 = vpop.permute.xlu0 %2443 }
 0x11a   : > { %6471 = vmatprep.subr.msk.bf16.mxu0 %vm309_vm1, %v2245_v30  ;;  %v2446_v33 = vpop.permute.xlu1 %2445 }
 0x11b   : > { %3987 = vrot.lane.b32.xlu0 %v6975_v3, %s6908_s16  ;;  %v2460_v43 = vsel %vm2459_vm12, %v2444_v31, %v2446_v33 }
 0x11c   : > { %6718 = vmatmul.mubr.msk.bf16.vlgmr.msra.gmra.mrb[68].mxu1 %vm305_vm2, %v6458_v14  ;;  %3989 = vrot.lane.b32.xlu1 %v6983_v6, %s6908_s16  ;;  %v2471_v46 = vsel %vm309_vm1, %v2460_v43, 0 }
 0x11d   : > { %2313 = vmatpush1.bf16.msra.mxu1 %v2257_v32  ;;  %2344 = vmatprep.mubr.bf16.mxu1 %v6889_v0  ;;  %v2448_v35 = vpop.permute.xlu0 %2447 }
 0x11e   : > { %6721 = vmatprep.subr.bf16.mxu1 %v6898_v29  ;;  %v2450_v37 = vpop.permute.xlu1 %2449  ;;  %v2461_v39 = vsel %vm2459_vm12, %v2446_v33, %v2448_v35 }
 0x11f   : > { %3991 = vrot.lane.b32.xlu0 %v6990_v9, %s6908_s16  ;;  %v2462_v48 = vsel %vm2459_vm12, %v2448_v35, %v2450_v37 }
 0x120   : > { %6468 = vmatmul.mubr.msk.bf16.vlgmr.msra.gmra.mrb[72].mxu0 %vm305_vm2, %v6466_v4  ;;  %3993 = vrot.lane.b32.xlu1 %v6988_v8, %s6908_s16  ;;  %v2477_v51 = vsel %vm309_vm1, %v2462_v48, 0 }
 0x121   : > { %2354 = vmatpush1.bf16.msra.mxu0 %v2263_v36  ;;  %2385 = vmatprep.mubr.bf16.mxu0 %v6889_v0  ;;  %v2452_v40 = vpop.permute.xlu0 %2451 }
 0x122   : > { %6475 = vmatprep.subr.msk.bf16.mxu0 %vm309_vm1, %v2461_v39  ;;  %v2454_v42 = vpop.permute.xlu1 %2453  ;;  %v2463_v44 = vsel %vm2459_vm12, %v2450_v37, %v2452_v40 }
 0x123   : > { %3995 = vrot.lane.b32.xlu0 %v6995_v11, %s6908_s16  ;;  %v2464_v53 = vsel %vm2459_vm12, %v2452_v40, %v2454_v42  ;;  %v6490_v40 = vld [vmem:[%s8292_s1 + $0x30] sm:$0xf] }
 0x124   : > { %6470 = vmatmul.mubr.msk.bf16.vlgmr.msra.gmra.mrb[72].mxu1 %vm305_vm2, %v6466_v4  ;;  %3997 = vrot.lane.b32.xlu1 %v6997_v12, %s6908_s16  ;;  %v2483_v56 = vsel %vm309_vm1, %v2464_v53, 0 }
 0x125   : > { %6722 = vmatpush3.bf16.msra.mxu1 %v2269_v41  ;;  %6723 = vmatprep.mubr.msk.bf16.mxu1 %vm6899_vm3, %v6898_v29  ;;  %v2456_v45 = vpop.permute.xlu0 %2455 }
 0x126   : > { %6477 = vmatprep.subr.msk.bf16.mxu1 %vm309_vm1, %v2463_v44  ;;  %v2458_v47 = vpop.permute.xlu1 %2457  ;;  %v2465_v49 = vsel %vm2459_vm12, %v2454_v42, %v2456_v45 }
 0x127   : > { %4206 = vrot.lane.b32.xlu0 %v6980_v5, %s6909_s19  ;;  %v2466_v58 = vsel %vm2459_vm12, %v2456_v45, %v2458_v47  ;;  %vm5542_vm12 = vcmask 293888  }
 0x128   : > { %6472 = vmatmul.mubr.msk.bf16.vlgmr.msra.gmra.mrb[76].mxu0 %vm305_vm2, %v6466_v4  ;;  %4208 = vrot.lane.b32.xlu1 %v6975_v3, %s6909_s19  ;;  %v2489_v62 = vsel %vm309_vm1, %v2466_v58, 0 }
 0x129   : > { %2492 = vmatpush1.bf16.msra.mxu0 %v2471_v46  ;;  %2523 = vmatprep.mubr.bf16.mxu0 %v6889_v0  ;;  %v2664_v50 = vpop.permute.xlu0 %2663 }
 0x12a   : > { %6479 = vmatprep.subr.msk.bf16.mxu0 %vm309_vm1, %v2465_v49  ;;  %v2666_v52 = vpop.permute.xlu1 %2665 }
 0x12b   : > { %4210 = vrot.lane.b32.xlu0 %v6983_v6, %s6909_s19  ;;  %v2680_v1 = vsel %vm2679_vm13, %v2664_v50, %v2666_v52 }
 0x12c   : > { %6724 = vmatmul.mubr.msk.bf16.vlgmr.msra.gmra.mrb[76].mxu1 %vm305_vm2, %v6466_v4  ;;  %4212 = vrot.lane.b32.xlu1 %v6990_v9, %s6909_s19  ;;  %v2691_v10 = vsel %vm309_vm1, %v2680_v1, 0 }
 0x12d   : > { %2533 = vmatpush1.bf16.msra.mxu1 %v2477_v51  ;;  %2564 = vmatprep.mubr.bf16.mxu1 %v6889_v0  ;;  %v2668_v55 = vpop.permute.xlu0 %2667 }
 0x12e   : > { %6727 = vmatprep.subr.bf16.mxu1 %v6898_v29  ;;  %v2670_v57 = vpop.permute.xlu1 %2669  ;;  %v2681_v59 = vsel %vm2679_vm13, %v2666_v52, %v2668_v55 }
 0x12f   : > { %4214 = vrot.lane.b32.xlu0 %v6988_v8, %s6909_s19  ;;  %v2682_v14 = vsel %vm2679_vm13, %v2668_v55, %v2670_v57 }
 0x130   : > { %6476 = vmatmul.mubr.msk.bf16.vlgmr.msra.gmra.mrb[80].mxu0 %vm305_vm2, %v6474_v54  ;;  %4216 = vrot.lane.b32.xlu1 %v6995_v11, %s6909_s19  ;;  %v2697_v17 = vsel %vm309_vm1, %v2682_v14, 0 }
 0x131   : > { %2574 = vmatpush1.bf16.msra.mxu0 %v2483_v56  ;;  %2605 = vmatprep.mubr.bf16.mxu0 %v6889_v0  ;;  %v2672_v61 = vpop.permute.xlu0 %2671 }
 0x132   : > { %6483 = vmatprep.subr.msk.bf16.mxu0 %vm309_vm1, %v2681_v59  ;;  %v2674_v63 = vpop.permute.xlu1 %2673  ;;  %v2683_v2 = vsel %vm2679_vm13, %v2670_v57, %v2672_v61 }
 0x133   : > { %4218 = vrot.lane.b32.xlu0 %v6997_v12, %s6909_s19  ;;  %v2684_v19 = vsel %vm2679_vm13, %v2672_v61, %v2674_v63  ;;  %v6498_v61 = vld [vmem:[%s8292_s1 + $0x34] sm:$0xf] }
 0x134   : > { %6478 = vmatmul.mubr.msk.bf16.vlgmr.msra.gmra.mrb[80].mxu1 %vm305_vm2, %v6474_v54  ;;  %4220 = vrot.lane.b32.xlu1 %v7511_v60, %s6909_s19  ;;  %v2703_v22 = vsel %vm309_vm1, %v2684_v19, 0 }
 0x135   : > { %6728 = vmatpush3.bf16.msra.mxu1 %v2489_v62  ;;  %6729 = vmatprep.mubr.msk.bf16.mxu1 %vm6899_vm3, %v6898_v29  ;;  %v2676_v7 = vpop.permute.xlu0 %2675 }
 0x136   : > { %6485 = vmatprep.subr.msk.bf16.mxu1 %vm309_vm1, %v2683_v2  ;;  %v2678_v13 = vpop.permute.xlu1 %2677  ;;  %v2685_v15 = vsel %vm2679_vm13, %v2674_v63, %v2676_v7 }
 0x137   : > { %4426 = vrot.lane.b32.xlu0 %v6980_v5, %s6910_s26  ;;  %v2686_v24 = vsel %vm2679_vm13, %v2676_v7, %v2678_v13  ;;  %vm5762_vm13 = vcmask 285696  }
 0x138   : > { %6480 = vmatmul.mubr.msk.bf16.vlgmr.msra.gmra.mrb[84].mxu0 %vm305_vm2, %v6474_v54  ;;  %4428 = vrot.lane.b32.xlu1 %v6975_v3, %s6910_s26  ;;  %v2709_v27 = vsel %vm309_vm1, %v2686_v24, 0 }
 0x139   : > { %2712 = vmatpush1.bf16.msra.mxu0 %v2691_v10  ;;  %2743 = vmatprep.mubr.bf16.mxu0 %v6889_v0  ;;  %v2884_v16 = vpop.permute.xlu0 %2883 }
 0x13a   : > { %6487 = vmatprep.subr.msk.bf16.mxu0 %vm309_vm1, %v2685_v15  ;;  %v2886_v18 = vpop.permute.xlu1 %2885 }
 0x13b   : > { %4430 = vrot.lane.b32.xlu0 %v6983_v6, %s6910_s26  ;;  %v2900_v30 = vsel %vm2899_vm14, %v2884_v16, %v2886_v18 }
 0x13c   : > { %6730 = vmatmul.mubr.msk.bf16.vlgmr.msra.gmra.mrb[84].mxu1 %vm305_vm2, %v6474_v54  ;;  %4432 = vrot.lane.b32.xlu1 %v6990_v9, %s6910_s26  ;;  %v2911_v33 = vsel %vm309_vm1, %v2900_v30, 0 }
 0x13d   : > { %2753 = vmatpush1.bf16.msra.mxu1 %v2697_v17  ;;  %2784 = vmatprep.mubr.bf16.mxu1 %v6889_v0  ;;  %v2888_v21 = vpop.permute.xlu0 %2887 }
 0x13e   : > { %6733 = vmatprep.subr.bf16.mxu1 %v6898_v29  ;;  %v2890_v23 = vpop.permute.xlu1 %2889  ;;  %v2901_v25 = vsel %vm2899_vm14, %v2886_v18, %v2888_v21 }
 0x13f   : > { %4434 = vrot.lane.b32.xlu0 %v6988_v8, %s6910_s26  ;;  %v2902_v4 = vsel %vm2899_vm14, %v2888_v21, %v2890_v23 }
 0x140   : > { %6484 = vmatmul.mubr.msk.bf16.vlgmr.msra.gmra.mrb[88].mxu0 %vm305_vm2, %v6482_v20  ;;  %4436 = vrot.lane.b32.xlu1 %v6995_v11, %s6910_s26  ;;  %v2917_v37 = vsel %vm309_vm1, %v2902_v4, 0 }
 0x141   : > { %2794 = vmatpush1.bf16.msra.mxu0 %v2703_v22  ;;  %2825 = vmatprep.mubr.bf16.mxu0 %v6889_v0  ;;  %v2892_v26 = vpop.permute.xlu0 %2891 }
 0x142   : > { %6491 = vmatprep.subr.msk.bf16.mxu0 %vm309_vm1, %v2901_v25  ;;  %v2894_v28 = vpop.permute.xlu1 %2893  ;;  %v2903_v31 = vsel %vm2899_vm14, %v2890_v23, %v2892_v26 }
 0x143   : > { %4438 = vrot.lane.b32.xlu0 %v6997_v12, %s6910_s26  ;;  %v2904_v39 = vsel %vm2899_vm14, %v2892_v26, %v2894_v28 }
 0x144   : > { %6486 = vmatmul.mubr.msk.bf16.vlgmr.msra.gmra.mrb[88].mxu1 %vm305_vm2, %v6482_v20  ;;  %4440 = vrot.lane.b32.xlu1 %v7511_v60, %s6910_s26  ;;  %v2923_v42 = vsel %vm309_vm1, %v2904_v39, 0 }
 0x145   : > { %6734 = vmatpush3.bf16.msra.mxu1 %v2709_v27  ;;  %6735 = vmatprep.mubr.msk.bf16.mxu1 %vm6899_vm3, %v6898_v29  ;;  %v2896_v32 = vpop.permute.xlu0 %2895 }
 0x146   : > { %6493 = vmatprep.subr.msk.bf16.mxu1 %vm309_vm1, %v2903_v31  ;;  %v2898_v34 = vpop.permute.xlu1 %2897  ;;  %v2905_v35 = vsel %vm2899_vm14, %v2894_v28, %v2896_v32 }
 0x147   : > { %4646 = vrot.lane.b32.xlu0 %v6980_v5, %s6911_s27  ;;  %v2906_v44 = vsel %vm2899_vm14, %v2896_v32, %v2898_v34  ;;  %vm5982_vm14 = vcmask 277504  }
 0x148   : > { %6488 = vmatmul.mubr.msk.bf16.vlgmr.msra.gmra.mrb[92].mxu0 %vm305_vm2, %v6482_v20  ;;  %4648 = vrot.lane.b32.xlu1 %v6975_v3, %s6911_s27  ;;  %v2929_v47 = vsel %vm309_vm1, %v2906_v44, 0 }
 0x149   : > { %2932 = vmatpush1.bf16.msra.mxu0 %v2911_v33  ;;  %2963 = vmatprep.mubr.bf16.mxu0 %v6889_v0  ;;  %v3104_v36 = vpop.permute.xlu0 %3103 }
 0x14a   : > { %6495 = vmatprep.subr.msk.bf16.mxu0 %vm309_vm1, %v2905_v35  ;;  %v3106_v38 = vpop.permute.xlu1 %3105 }
 0x14b   : > { %4650 = vrot.lane.b32.xlu0 %v6983_v6, %s6911_s27  ;;  %v3120_v49 = vsel %vm3119_vm15, %v3104_v36, %v3106_v38 }
 0x14c   : > { %6736 = vmatmul.mubr.msk.bf16.vlgmr.msra.gmra.mrb[92].mxu1 %vm305_vm2, %v6482_v20  ;;  %4652 = vrot.lane.b32.xlu1 %v6990_v9, %s6911_s27  ;;  %v3131_v52 = vsel %vm309_vm1, %v3120_v49, 0 }
 0x14d   : > { %2973 = vmatpush1.bf16.msra.mxu1 %v2917_v37  ;;  %3004 = vmatprep.mubr.bf16.mxu1 %v6889_v0  ;;  %v3108_v41 = vpop.permute.xlu0 %3107  ;;  %v6506_v37 = vld [vmem:[%s8292_s1 + $0x38] sm:$0xf] }
 0x14e   : > { %6739 = vmatprep.subr.bf16.mxu1 %v6898_v29  ;;  %v3110_v43 = vpop.permute.xlu1 %3109  ;;  %v3121_v45 = vsel %vm3119_vm15, %v3106_v38, %v3108_v41 }
 0x14f   : > { %4654 = vrot.lane.b32.xlu0 %v6988_v8, %s6911_s27  ;;  %v3122_v54 = vsel %vm3119_vm15, %v3108_v41, %v3110_v43 }
 0x150   : > { %6492 = vmatmul.mubr.msk.bf16.vlgmr.msra.gmra.mrb[96].mxu0 %vm305_vm2, %v6490_v40  ;;  %4656 = vrot.lane.b32.xlu1 %v6995_v11, %s6911_s27  ;;  %v3137_v57 = vsel %vm309_vm1, %v3122_v54, 0 }
 0x151   : > { %3014 = vmatpush1.bf16.msra.mxu0 %v2923_v42  ;;  %3045 = vmatprep.mubr.bf16.mxu0 %v6889_v0  ;;  %v3112_v46 = vpop.permute.xlu0 %3111 }
 0x152   : > { %6499 = vmatprep.subr.msk.bf16.mxu0 %vm309_vm1, %v3121_v45  ;;  %v3114_v48 = vpop.permute.xlu1 %3113  ;;  %v3123_v50 = vsel %vm3119_vm15, %v3110_v43, %v3112_v46 }
 0x153   : > { %4658 = vrot.lane.b32.xlu0 %v6997_v12, %s6911_s27  ;;  %v3124_v59 = vsel %vm3119_vm15, %v3112_v46, %v3114_v48 }
 0x154   : > { %6494 = vmatmul.mubr.msk.bf16.vlgmr.msra.gmra.mrb[96].mxu1 %vm305_vm2, %v6490_v40  ;;  %4660 = vrot.lane.b32.xlu1 %v7511_v60, %s6911_s27  ;;  %v3143_v63 = vsel %vm309_vm1, %v3124_v59, 0 }
 0x155   : > { %6740 = vmatpush3.bf16.msra.mxu1 %v2929_v47  ;;  %6741 = vmatprep.mubr.msk.bf16.mxu1 %vm6899_vm3, %v6898_v29  ;;  %v3116_v51 = vpop.permute.xlu0 %3115 }
 0x156   : > { %6501 = vmatprep.subr.msk.bf16.mxu1 %vm309_vm1, %v3123_v50  ;;  %v3118_v53 = vpop.permute.xlu1 %3117  ;;  %v3125_v55 = vsel %vm3119_vm15, %v3114_v48, %v3116_v51 }
 0x157   : > { %4866 = vrot.lane.b32.xlu0 %v6980_v5, %s6912_s30  ;;  %v3126_v2 = vsel %vm3119_vm15, %v3116_v51, %v3118_v53 }
 0x158   : > { %6496 = vmatmul.mubr.msk.bf16.vlgmr.msra.gmra.mrb[100].mxu0 %vm305_vm2, %v6490_v40  ;;  %4868 = vrot.lane.b32.xlu1 %v6975_v3, %s6912_s30  ;;  %v3149_v13 = vsel %vm309_vm1, %v3126_v2, 0 }
 0x159   : > { %3152 = vmatpush1.bf16.msra.mxu0 %v3131_v52  ;;  %3183 = vmatprep.mubr.bf16.mxu0 %v6889_v0  ;;  %v3324_v56 = vpop.permute.xlu0 %3323 }
 0x15a   : > { %6503 = vmatprep.subr.msk.bf16.mxu0 %vm309_vm1, %v3125_v55  ;;  %v3326_v58 = vpop.permute.xlu1 %3325 }
 0x15b   : > { %4870 = vrot.lane.b32.xlu0 %v6983_v6, %s6912_s30  ;;  %v3340_v16 = vsel %vm3339_vm0, %v3324_v56, %v3326_v58 }
 0x15c   : > { %6742 = vmatmul.mubr.msk.bf16.vlgmr.msra.gmra.mrb[100].mxu1 %vm305_vm2, %v6490_v40  ;;  %4872 = vrot.lane.b32.xlu1 %v6990_v9, %s6912_s30  ;;  %v3351_v22 = vsel %vm309_vm1, %v3340_v16, 0 }
 0x15d   : > { %3193 = vmatpush1.bf16.msra.mxu1 %v3137_v57  ;;  %3224 = vmatprep.mubr.bf16.mxu1 %v6889_v0  ;;  %v3328_v62 = vpop.permute.xlu0 %3327 }
 0x15e   : > { %6745 = vmatprep.subr.bf16.mxu1 %v6898_v29  ;;  %v3330_v1 = vpop.permute.xlu1 %3329  ;;  %v3341_v7 = vsel %vm3339_vm0, %v3326_v58, %v3328_v62 }
 0x15f   : > { %4874 = vrot.lane.b32.xlu0 %v6988_v8, %s6912_s30  ;;  %v3342_v25 = vsel %vm3339_vm0, %v3328_v62, %v3330_v1 }
 0x160   : > { %6500 = vmatmul.mubr.msk.bf16.vlgmr.msra.gmra.mrb[104].mxu0 %vm305_vm2, %v6498_v61  ;;  %4876 = vrot.lane.b32.xlu1 %v6995_v11, %s6912_s30  ;;  %v3357_v32 = vsel %vm309_vm1, %v3342_v25, 0  ;;  %v7750_v25 = vld [vmem:[%s8292_s1 + $0x3c] sm:$0xf] }
 0x161   : > { %3234 = vmatpush1.bf16.msra.mxu0 %v3143_v63  ;;  %3265 = vmatprep.mubr.bf16.mxu0 %v6889_v0  ;;  %v3332_v10 = vpop.permute.xlu0 %3331 }
 0x162   : > { %6507 = vmatprep.subr.msk.bf16.mxu0 %vm309_vm1, %v3341_v7  ;;  %v3334_v14 = vpop.permute.xlu1 %3333  ;;  %v3343_v17 = vsel %vm3339_vm0, %v3330_v1, %v3332_v10 }
 0x163   : > { %v7645_v15 = vpop.f32.mrb[0].mxu0  ;;  %4878 = vrot.lane.b32.xlu0 %v6997_v12, %s6912_s30  ;;  %v3344_v4 = vsel %vm3339_vm0, %v3332_v10, %v3334_v14 }
 0x164   : > { %6502 = vmatmul.mubr.msk.bf16.vlgmr.msra.gmra.mrb[104].mxu1 %vm305_vm2, %v6498_v61  ;;  %v7652_v18 = vpop.f32.mrb[1].mxu0  ;;  %4880 = vrot.lane.b32.xlu1 %v7511_v60, %s6912_s30  ;;  %v3363_v40 = vsel %vm309_vm1, %v3344_v4, 0 }
 0x165   : > { %6746 = vmatpush3.bf16.msra.mxu1 %v3149_v13  ;;  %v369_v19 = vpop.f32.mrb[2].mxu0  ;;  %6747 = vmatprep.mubr.msk.bf16.mxu1 %vm6899_vm3, %v6898_v29  ;;  %v3336_v20 = vpop.permute.xlu0 %3335 }
 0x166   : > { %v370_v21 = vpop.f32.mrb[3].mxu0  ;;  %6509 = vmatprep.subr.msk.bf16.mxu1 %vm309_vm1, %v3343_v17  ;;  %v3338_v23 = vpop.permute.xlu1 %3337  ;;  %v3345_v26 = vsel %vm3339_vm0, %v3334_v14, %v3336_v20 }
 0x167   : > { %v7660_v24 = vpop.f32.mrb[0].mxu1  ;;  %5086 = vrot.lane.b32.xlu0 %v6980_v5, %s6913_s9  ;;  %v3346_v43 = vsel %vm3339_vm0, %v3336_v20, %v3338_v23 }
 0x168   : > { %6504 = vmatmul.mubr.msk.bf16.vlgmr.msra.gmra.mrb[108].mxu0 %vm305_vm2, %v6498_v61  ;;  %v7667_v27 = vpop.f32.mrb[1].mxu1  ;;  %5088 = vrot.lane.b32.xlu1 %v6975_v3, %s6913_s9  ;;  %v3369_v48 = vsel %vm309_vm1, %v3346_v43, 0 }
 0x169   : > { %3372 = vmatpush1.bf16.msra.mxu0 %v3351_v22  ;;  %v410_v28 = vpop.f32.mrb[2].mxu1  ;;  %3403 = vmatprep.mubr.bf16.mxu0 %v6889_v0  ;;  %v3544_v30 = vpop.permute.xlu0 %3543 }
 0x16a   : > { %v411_v31 = vpop.f32.mrb[3].mxu1  ;;  %6511 = vmatprep.subr.msk.bf16.mxu0 %vm309_vm1, %v3345_v26  ;;  %v3546_v33 = vpop.permute.xlu1 %3545 }
 0x16b   : > { %v7674_v34 = vpop.f32.mrb[4].mxu0  ;;  %5090 = vrot.lane.b32.xlu0 %v6983_v6, %s6913_s9  ;;  %v3560_v52 = vsel %vm305_vm2, %v3544_v30, %v3546_v33 }
 0x16c   : > { %6748 = vmatmul.mubr.msk.bf16.vlgmr.msra.gmra.mrb[108].mxu1 %vm305_vm2, %v6498_v61  ;;  %v7680_v35 = vpop.f32.mrb[5].mxu0  ;;  %5092 = vrot.lane.b32.xlu1 %v6990_v9, %s6913_s9  ;;  %v3571_v61 = vsel %vm309_vm1, %v3560_v52, 0 }
 0x16d   : > { %3413 = vmatpush1.bf16.msra.mxu1 %v3357_v32  ;;  %v451_v36 = vpop.f32.mrb[6].mxu0  ;;  %3444 = vmatprep.mubr.bf16.mxu1 %v6889_v0  ;;  %v3548_v38 = vpop.permute.xlu0 %3547 }
 0x16e   : > { %v452_v39 = vpop.f32.mrb[7].mxu0  ;;  %6751 = vmatprep.subr.bf16.mxu1 %v6898_v29  ;;  %v3550_v41 = vpop.permute.xlu1 %3549  ;;  %v3561_v44 = vsel %vm305_vm2, %v3546_v33, %v3548_v38 }
 0x16f   : > { %v7690_v42 = vpop.f32.mrb[4].mxu1  ;;  %5094 = vrot.lane.b32.xlu0 %v6988_v8, %s6913_s9  ;;  %v3562_v1 = vsel %vm305_vm2, %v3548_v38, %v3550_v41 }
 0x170   : > { %6508 = vmatmul.mubr.msk.bf16.vlgmr.msra.gmra.mrb[112].mxu0 %vm305_vm2, %v6506_v37  ;;  %v6671_v45 = vpop.f32.mrb[5].mxu1  ;;  %5096 = vrot.lane.b32.xlu1 %v6995_v11, %s6913_s9  ;;  %v3577_v16 = vsel %vm309_vm1, %v3562_v1, 0 }
 0x171   : > { %3454 = vmatpush1.bf16.msra.mxu0 %v3363_v40  ;;  %v491_v46 = vpop.f32.mrb[6].mxu1  ;;  %3485 = vmatprep.mubr.bf16.mxu0 %v6889_v0  ;;  %v3552_v47 = vpop.permute.xlu0 %3551 }
 0x172   : > { %v6672_v49 = vpop.f32.mrb[7].mxu1  ;;  %6515 = vmatprep.subr.msk.bf16.mxu0 %vm309_vm1, %v3561_v44  ;;  %v3554_v50 = vpop.permute.xlu1 %3553  ;;  %v3563_v53 = vsel %vm305_vm2, %v3550_v41, %v3552_v47 }
 0x173   : > { %v552_v51 = vpop.f32.mrb[8].mxu0  ;;  %5098 = vrot.lane.b32.xlu0 %v6997_v12, %s6913_s9  ;;  %v3564_v20 = vsel %vm305_vm2, %v3552_v47, %v3554_v50 }
 0x174   : > { %v7707_v54 = vadd.f32 %v552_v51, %v7645_v15  ;;  %v554_v55 = vpop.f32.mrb[9].mxu0  ;;  %6510 = vmatmul.mubr.msk.bf16.vlgmr.msra.gmra.mrb[112].mxu1 %vm305_vm2, %v6506_v37  ;;  %5100 = vrot.lane.b32.xlu1 %v7511_v60, %s6913_s9 }
 0x175   : > { %v7713_v56 = vadd.f32 %v554_v55, %v7652_v18  ;;  %6752 = vmatpush3.bf16.msra.mxu1 %v3369_v48  ;;  %v556_v57 = vpop.f32.mrb[10].mxu0  ;;  %6753 = vmatprep.mubr.msk.bf16.mxu1 %vm6899_vm3, %v6898_v29  ;;  %v3556_v58 = vpop.permute.xlu0 %3555 }
 0x176   : > { %v557_v59 = vpop.f32.mrb[11].mxu0  ;;  %6517 = vmatprep.subr.msk.bf16.mxu1 %vm309_vm1, %v3563_v53  ;;  %v3558_v62 = vpop.permute.xlu1 %3557  ;;  %v3565_v2 = vsel %vm305_vm2, %v3554_v50, %v3556_v58 }
 0x177   : > { %v593_v63 = vpop.f32.mrb[8].mxu1  ;;  %5306 = vrot.lane.b32.xlu0 %v6980_v5, %s6914_s12  ;;  %v3566_v32 = vsel %vm305_vm2, %v3556_v58, %v3558_v62 }
 0x178   : > { %v7724_v7 = vadd.f32 %v593_v63, %v7660_v24  ;;  %v595_v10 = vpop.f32.mrb[9].mxu1  ;;  %6512 = vmatmul.mubr.msk.bf16.vlgmr.msra.gmra.mrb[116].mxu0 %vm305_vm2, %v6506_v37  ;;  %5308 = vrot.lane.b32.xlu1 %v6975_v3, %s6914_s12 }
 0x179   : > { %v7730_v13 = vadd.f32 %v595_v10, %v7667_v27  ;;  %3592 = vmatpush1.bf16.msra.mxu0 %v3571_v61  ;;  %v597_v14 = vpop.f32.mrb[10].mxu1  ;;  %3623 = vmatprep.mubr.bf16.mxu0 %v6889_v0  ;;  %v3764_v15 = vpop.permute.xlu0 %3763  ;;  %v3583_v27 = vsel %vm309_vm1, %v3564_v20, 0 }
 0x17a   : > { %v598_v17 = vpop.f32.mrb[11].mxu1  ;;  %6519 = vmatprep.subr.msk.bf16.mxu0 %vm309_vm1, %v3565_v2  ;;  %v3766_v18 = vpop.permute.xlu1 %3765  ;;  %v7820_v14 = vld [vmem:[%s8292_s1 + $0x40] sm:$0xf] }
 0x17b   : > { %v634_v19 = vpop.f32.mrb[12].mxu0  ;;  %5310 = vrot.lane.b32.xlu0 %v6983_v6, %s6914_s12  ;;  %v3780_v41 = vsel %vm3779_vm4, %v3764_v15, %v3766_v18 }
 0x17c   : > { %v7739_v21 = vadd.f32 %v634_v19, %v7674_v34  ;;  %v636_v22 = vpop.f32.mrb[13].mxu0  ;;  %6754 = vmatmul.mubr.msk.bf16.vlgmr.msra.gmra.mrb[116].mxu1 %vm305_vm2, %v6506_v37  ;;  %5312 = vrot.lane.b32.xlu1 %v6990_v9, %s6914_s12  ;;  %v3589_v37 = vsel %vm309_vm1, %v3566_v32, 0  ;;  %v3791_v48 = vsel %vm309_vm1, %v3780_v41, 0 }
 0x17d   : > { %v7745_v23 = vadd.f32 %v636_v22, %v7680_v35  ;;  %3633 = vmatpush1.bf16.msra.mxu1 %v3577_v16  ;;  %v638_v24 = vpop.f32.mrb[14].mxu0  ;;  %3664 = vmatprep.mubr.bf16.mxu1 %v6889_v0  ;;  %v3768_v26 = vpop.permute.xlu0 %3767 }
 0x17e   : > { %v639_v28 = vpop.f32.mrb[15].mxu0  ;;  %6757 = vmatprep.subr.bf16.mxu1 %v6898_v29  ;;  %v3770_v30 = vpop.permute.xlu1 %3769  ;;  %v3781_v33 = vsel %vm3779_vm4, %v3766_v18, %v3768_v26 }
 0x17f   : > { %v675_v31 = vpop.f32.mrb[12].mxu1  ;;  %5314 = vrot.lane.b32.xlu0 %v6988_v8, %s6914_s12  ;;  %v3782_v52 = vsel %vm3779_vm4, %v3768_v26, %v3770_v30 }
 0x180   : > { %v7760_v34 = vadd.f32 %v675_v31, %v7690_v42  ;;  %6516 = vmatmul.mubr.msk.bf16.vlgmr.msra.gmra.mrb[120].mxu0 %vm305_vm2, %v7750_v25  ;;  %v6677_v4 = vpop.f32.mrb[13].mxu1  ;;  %5316 = vrot.lane.b32.xlu1 %v6995_v11, %s6914_s12  ;;  %v3797_v59 = vsel %vm309_vm1, %v3782_v52, 0 }
 0x181   : > { %3674 = vmatpush1.bf16.msra.mxu0 %v3583_v27  ;;  %v678_v35 = vpop.f32.mrb[14].mxu1  ;;  %3705 = vmatprep.mubr.bf16.mxu0 %v6889_v0  ;;  %v3772_v36 = vpop.permute.xlu0 %3771 }
 0x182   : > { %v6678_v38 = vpop.f32.mrb[15].mxu1  ;;  %6523 = vmatprep.subr.msk.bf16.mxu0 %vm309_vm1, %v3781_v33  ;;  %v3774_v39 = vpop.permute.xlu1 %3773  ;;  %v3783_v42 = vsel %vm3779_vm4, %v3770_v30, %v3772_v36 }
 0x183   : > { %v765_v40 = vpop.f32.mrb[16].mxu0  ;;  %5318 = vrot.lane.b32.xlu0 %v6997_v12, %s6914_s12  ;;  %v3784_v1 = vsel %vm3779_vm4, %v3772_v36, %v3774_v39 }
 0x184   : > { %v7774_v43 = vadd.f32 %v765_v40, %v7707_v54  ;;  %v767_v44 = vpop.f32.mrb[17].mxu0  ;;  %6518 = vmatmul.mubr.msk.bf16.vlgmr.msra.gmra.mrb[120].mxu1 %vm305_vm2, %v7750_v25  ;;  %5320 = vrot.lane.b32.xlu1 %v7511_v60, %s6914_s12  ;;  %v3803_v16 = vsel %vm309_vm1, %v3784_v1, 0 }
 0x185   : > { %v7781_v45 = vadd.f32 %v767_v44, %v7713_v56  ;;  %6758 = vmatpush3.bf16.msra.mxu1 %v3589_v37  ;;  %v769_v46 = vpop.f32.mrb[18].mxu0  ;;  %6759 = vmatprep.mubr.msk.bf16.mxu1 %vm6899_vm3, %v6898_v29  ;;  %v3776_v47 = vpop.permute.xlu0 %3775 }
 0x186   : > { %v770_v49 = vpop.f32.mrb[19].mxu0  ;;  %6525 = vmatprep.subr.msk.bf16.mxu1 %vm309_vm1, %v3783_v42  ;;  %v3778_v50 = vpop.permute.xlu1 %3777  ;;  %v3785_v53 = vsel %vm3779_vm4, %v3774_v39, %v3776_v47 }
 0x187   : > { %v806_v51 = vpop.f32.mrb[16].mxu1  ;;  %5526 = vrot.lane.b32.xlu0 %v6980_v5, %s6915_s15  ;;  %v3786_v20 = vsel %vm3779_vm4, %v3776_v47, %v3778_v50 }
 0x188   : > { %v7792_v54 = vadd.f32 %v806_v51, %v7724_v7  ;;  %v808_v55 = vpop.f32.mrb[17].mxu1  ;;  %6520 = vmatmul.mubr.msk.bf16.vlgmr.msra.gmra.mrb[124].mxu0 %vm305_vm2, %v7750_v25  ;;  %5528 = vrot.lane.b32.xlu1 %v6975_v3, %s6915_s15  ;;  %v3809_v26 = vsel %vm309_vm1, %v3786_v20, 0 }
 0x189   : > { %v7799_v56 = vadd.f32 %v808_v55, %v7730_v13  ;;  %3812 = vmatpush1.bf16.msra.mxu0 %v3791_v48  ;;  %v810_v57 = vpop.f32.mrb[18].mxu1  ;;  %3843 = vmatprep.mubr.bf16.mxu0 %v6889_v0  ;;  %v3984_v58 = vpop.permute.xlu0 %3983 }
 0x18a   : > { %v811_v61 = vpop.f32.mrb[19].mxu1  ;;  %6527 = vmatprep.subr.msk.bf16.mxu0 %vm309_vm1, %v3785_v53  ;;  %v3986_v62 = vpop.permute.xlu1 %3985  ;;  %v7890_v57 = vld [vmem:[%s8292_s1 + $0x44] sm:$0xf] }
 0x18b   : > { %v847_v63 = vpop.f32.mrb[20].mxu0  ;;  %5530 = vrot.lane.b32.xlu0 %v6983_v6, %s6915_s15  ;;  %v4000_v31 = vsel %vm3999_vm5, %v3984_v58, %v3986_v62 }
 0x18c   : > { %v7808_v2 = vadd.f32 %v847_v63, %v7739_v21  ;;  %v849_v7 = vpop.f32.mrb[21].mxu0  ;;  %6760 = vmatmul.mubr.msk.bf16.vlgmr.msra.gmra.mrb[124].mxu1 %vm305_vm2, %v7750_v25  ;;  %5532 = vrot.lane.b32.xlu1 %v6990_v9, %s6915_s15  ;;  %v4011_v37 = vsel %vm309_vm1, %v4000_v31, 0 }
 0x18d   : > { %v7815_v10 = vadd.f32 %v849_v7, %v7745_v23  ;;  %3853 = vmatpush1.bf16.msra.mxu1 %v3797_v59  ;;  %v851_v13 = vpop.f32.mrb[22].mxu0  ;;  %3884 = vmatprep.mubr.bf16.mxu1 %v6889_v0  ;;  %v3988_v15 = vpop.permute.xlu0 %3987 }
 0x18e   : > { %v852_v17 = vpop.f32.mrb[23].mxu0  ;;  %6763 = vmatprep.subr.bf16.mxu1 %v6898_v29  ;;  %v3990_v18 = vpop.permute.xlu1 %3989  ;;  %v4001_v21 = vsel %vm3999_vm5, %v3986_v62, %v3988_v15 }
 0x18f   : > { %v888_v19 = vpop.f32.mrb[20].mxu1  ;;  %5534 = vrot.lane.b32.xlu0 %v6988_v8, %s6915_s15  ;;  %v4002_v41 = vsel %vm3999_vm5, %v3988_v15, %v3990_v18 }
 0x190   : > { %v7830_v22 = vadd.f32 %v888_v19, %v7760_v34  ;;  %6524 = vmatmul.mubr.msk.bf16.vlgmr.msra.gmra.mrb[128].mxu0 %vm305_vm2, %v7820_v14  ;;  %v6683_v23 = vpop.f32.mrb[21].mxu1  ;;  %5536 = vrot.lane.b32.xlu1 %v6995_v11, %s6915_s15  ;;  %v4017_v48 = vsel %vm309_vm1, %v4002_v41, 0 }
 0x191   : > { %3894 = vmatpush1.bf16.msra.mxu0 %v3803_v16  ;;  %v891_v24 = vpop.f32.mrb[22].mxu1  ;;  %3925 = vmatprep.mubr.bf16.mxu0 %v6889_v0  ;;  %v3992_v25 = vpop.permute.xlu0 %3991 }
 0x192   : > { %v6684_v27 = vpop.f32.mrb[23].mxu1  ;;  %6531 = vmatprep.subr.msk.bf16.mxu0 %vm309_vm1, %v4001_v21  ;;  %v3994_v28 = vpop.permute.xlu1 %3993  ;;  %v4003_v32 = vsel %vm3999_vm5, %v3990_v18, %v3992_v25 }
 0x193   : > { %v985_v30 = vpop.f32.mrb[24].mxu0  ;;  %5538 = vrot.lane.b32.xlu0 %v6997_v12, %s6915_s15  ;;  %v4004_v52 = vsel %vm3999_vm5, %v3992_v25, %v3994_v28 }
 0x194   : > { %v7844_v33 = vadd.f32 %v985_v30, %v7774_v43  ;;  %v987_v34 = vpop.f32.mrb[25].mxu0  ;;  %6526 = vmatmul.mubr.msk.bf16.vlgmr.msra.gmra.mrb[128].mxu1 %vm305_vm2, %v7820_v14  ;;  %5540 = vrot.lane.b32.xlu1 %v7511_v60, %s6915_s15  ;;  %v4023_v59 = vsel %vm309_vm1, %v4004_v52, 0 }
 0x195   : > { %v7851_v4 = vadd.f32 %v987_v34, %v7781_v45  ;;  %6764 = vmatpush3.bf16.msra.mxu1 %v3809_v26  ;;  %v989_v35 = vpop.f32.mrb[26].mxu0  ;;  %6765 = vmatprep.mubr.msk.bf16.mxu1 %vm6899_vm3, %v6898_v29  ;;  %v3996_v36 = vpop.permute.xlu0 %3995 }
 0x196   : > { %v990_v38 = vpop.f32.mrb[27].mxu0  ;;  %6533 = vmatprep.subr.msk.bf16.mxu1 %vm309_vm1, %v4003_v32  ;;  %v3998_v39 = vpop.permute.xlu1 %3997  ;;  %v4005_v42 = vsel %vm3999_vm5, %v3994_v28, %v3996_v36 }
 0x197   : > { %v1026_v40 = vpop.f32.mrb[24].mxu1  ;;  %5746 = vrot.lane.b32.xlu0 %v6980_v5, %s6916_s18  ;;  %v4006_v1 = vsel %vm3999_vm5, %v3996_v36, %v3998_v39 }
 0x198   : > { %v7862_v43 = vadd.f32 %v1026_v40, %v7792_v54  ;;  %v1028_v44 = vpop.f32.mrb[25].mxu1  ;;  %6528 = vmatmul.mubr.msk.bf16.vlgmr.msra.gmra.mrb[132].mxu0 %vm305_vm2, %v7820_v14  ;;  %5748 = vrot.lane.b32.xlu1 %v6975_v3, %s6916_s18  ;;  %v4029_v15 = vsel %vm309_vm1, %v4006_v1, 0 }
 0x199   : > { %v7869_v45 = vadd.f32 %v1028_v44, %v7799_v56  ;;  %4032 = vmatpush1.bf16.msra.mxu0 %v4011_v37  ;;  %v1030_v46 = vpop.f32.mrb[26].mxu1  ;;  %4063 = vmatprep.mubr.bf16.mxu0 %v6889_v0  ;;  %v4207_v47 = vpop.permute.xlu0 %4206 }
 0x19a   : > { %v1031_v49 = vpop.f32.mrb[27].mxu1  ;;  %6535 = vmatprep.subr.msk.bf16.mxu0 %vm309_vm1, %v4005_v42  ;;  %v4209_v50 = vpop.permute.xlu1 %4208 }
 0x19b   : > { %v1067_v51 = vpop.f32.mrb[28].mxu0  ;;  %5750 = vrot.lane.b32.xlu0 %v6983_v6, %s6916_s18  ;;  %v4223_v19 = vsel %vm4222_vm6, %v4207_v47, %v4209_v50 }
 0x19c   : > { %v7878_v53 = vadd.f32 %v1067_v51, %v7808_v2  ;;  %v1069_v54 = vpop.f32.mrb[29].mxu0  ;;  %6766 = vmatmul.mubr.msk.bf16.vlgmr.msra.gmra.mrb[132].mxu1 %vm305_vm2, %v7820_v14  ;;  %5752 = vrot.lane.b32.xlu1 %v6990_v9, %s6916_s18  ;;  %v4234_v26 = vsel %vm309_vm1, %v4223_v19, 0 }
 0x19d   : > { %v7885_v55 = vadd.f32 %v1069_v54, %v7815_v10  ;;  %4073 = vmatpush1.bf16.msra.mxu1 %v4017_v48  ;;  %v1071_v56 = vpop.f32.mrb[30].mxu0  ;;  %4104 = vmatprep.mubr.bf16.mxu1 %v6889_v0  ;;  %v4211_v58 = vpop.permute.xlu0 %4210 }
 0x19e   : > { %v1072_v61 = vpop.f32.mrb[31].mxu0  ;;  %6769 = vmatprep.subr.bf16.mxu1 %v6898_v29  ;;  %v4213_v62 = vpop.permute.xlu1 %4212  ;;  %v4224_v2 = vsel %vm4222_vm6, %v4209_v50, %v4211_v58 }
 0x19f   : > { %v1108_v63 = vpop.f32.mrb[28].mxu1  ;;  %5754 = vrot.lane.b32.xlu0 %v6988_v8, %s6916_s18  ;;  %v4225_v31 = vsel %vm4222_vm6, %v4211_v58, %v4213_v62 }
 0x1a0   : > { %v7900_v7 = vadd.f32 %v1108_v63, %v7830_v22  ;;  %6532 = vmatmul.mubr.msk.bf16.vlgmr.msra.gmra.mrb[136].mxu0 %vm305_vm2, %v7890_v57  ;;  %v6689_v10 = vpop.f32.mrb[29].mxu1  ;;  %5756 = vrot.lane.b32.xlu1 %v6995_v11, %s6916_s18 }
 0x1a1   : > { %4114 = vmatpush1.bf16.msra.mxu0 %v4023_v59  ;;  %v1111_v13 = vpop.f32.mrb[30].mxu1  ;;  %4145 = vmatprep.mubr.bf16.mxu0 %v6889_v0  ;;  %v4215_v14 = vpop.permute.xlu0 %4214 }
 0x1a2   : > { %v6690_v16 = vpop.f32.mrb[31].mxu1  ;;  %6540 = vmatprep.subr.msk.bf16.mxu0 %vm309_vm1, %v4224_v2  ;;  %v4217_v17 = vpop.permute.xlu1 %4216  ;;  %v4226_v20 = vsel %vm4222_vm6, %v4213_v62, %v4215_v14 }
 0x1a3   : > { %v1205_v18 = vpop.f32.mrb[32].mxu0  ;;  %5758 = vrot.lane.b32.xlu0 %v6997_v12, %s6916_s18  ;;  %v4227_v40 = vsel %vm4222_vm6, %v4215_v14, %v4217_v17 }
 0x1a4   : > { %v7914_v21 = vadd.f32 %v1205_v18, %v7844_v33  ;;  %v1207_v22 = vpop.f32.mrb[33].mxu0  ;;  %6534 = vmatmul.mubr.msk.bf16.vlgmr.msra.gmra.mrb[136].mxu1 %vm305_vm2, %v7890_v57  ;;  %5760 = vrot.lane.b32.xlu1 %v7511_v60, %s6916_s18 }
 0x1a5   : > { %v7921_v23 = vadd.f32 %v1207_v22, %v7851_v4  ;;  %6770 = vmatpush3.bf16.msra.mxu1 %v4029_v15  ;;  %v1209_v24 = vpop.f32.mrb[34].mxu0  ;;  %6771 = vmatprep.mubr.msk.bf16.mxu1 %vm6899_vm3, %v6898_v29  ;;  %v4219_v25 = vpop.permute.xlu0 %4218 }
 0x1a6   : > { %v1210_v27 = vpop.f32.mrb[35].mxu0  ;;  %6542 = vmatprep.subr.msk.bf16.mxu1 %vm309_vm1, %v4226_v20  ;;  %v4221_v28 = vpop.permute.xlu1 %4220  ;;  %v4228_v32 = vsel %vm4222_vm6, %v4217_v17, %v4219_v25 }
 0x1a7   : > { %v1246_v30 = vpop.f32.mrb[32].mxu1  ;;  %5966 = vrot.lane.b32.xlu0 %v6980_v5, %s6917_s23  ;;  %v4240_v5 = vsel %vm309_vm1, %v4225_v31, 0  ;;  %v6547_v27 = vld [vmem:[%s8292_s1 + $0x4c] sm:$0xf] }
 0x1a8   : > { %v7932_v33 = vadd.f32 %v1246_v30, %v7862_v43  ;;  %v1248_v34 = vpop.f32.mrb[33].mxu1  ;;  %6536 = vmatmul.mubr.msk.bf16.vlgmr.msra.gmra.mrb[140].mxu0 %vm305_vm2, %v7890_v57  ;;  %5968 = vrot.lane.b32.xlu1 %v6975_v3, %s6917_s23 }
 0x1a9   : > { %v7939_v4 = vadd.f32 %v1248_v34, %v7869_v45  ;;  %4255 = vmatpush1.bf16.msra.mxu0 %v4234_v26  ;;  %v1250_v35 = vpop.f32.mrb[34].mxu1  ;;  %4286 = vmatprep.mubr.bf16.mxu0 %v6889_v0  ;;  %v4427_v36 = vpop.permute.xlu0 %4426  ;;  %v4246_v45 = vsel %vm309_vm1, %v4227_v40, 0 }
 0x1aa   : > { %v1251_v37 = vpop.f32.mrb[35].mxu1  ;;  %6544 = vmatprep.subr.msk.bf16.mxu0 %vm309_vm1, %v4228_v32  ;;  %v4429_v38 = vpop.permute.xlu1 %4428 }
 0x1ab   : > { %v1287_v39 = vpop.f32.mrb[36].mxu0  ;;  %5970 = vrot.lane.b32.xlu0 %v6983_v6, %s6917_s23  ;;  %v6538_v6 = vld [vmem:[%s8292_s1 + $0x48] sm:$0xf] }
 0x1ac   : > { %v7948_v3 = vadd.f32 %v1287_v39, %v7878_v53  ;;  %v1289_v41 = vpop.f32.mrb[37].mxu0  ;;  %6772 = vmatmul.mubr.msk.bf16.vlgmr.msra.gmra.mrb[140].mxu1 %vm305_vm2, %v7890_v57  ;;  %5972 = vrot.lane.b32.xlu1 %v6990_v9, %s6917_s23  ;;  %v4229_v9 = vsel %vm4222_vm6, %v4219_v25, %v4221_v28  ;;  %v4443_v57 = vsel %vm4442_vm7, %v4427_v36, %v4429_v38 }
 0x1ad   : > { %v7955_v42 = vadd.f32 %v1289_v41, %v7885_v55  ;;  %4296 = vmatpush1.bf16.msra.mxu1 %v4240_v5  ;;  %v1291_v43 = vpop.f32.mrb[38].mxu0  ;;  %4327 = vmatprep.mubr.bf16.mxu1 %v6889_v0  ;;  %v4431_v44 = vpop.permute.xlu0 %4430  ;;  %v4252_v54 = vsel %vm309_vm1, %v4229_v9, 0  ;;  %v4454_v1 = vsel %vm309_vm1, %v4443_v57, 0 }
 0x1ae   : > { %v1292_v46 = vpop.f32.mrb[39].mxu0  ;;  %6775 = vmatprep.subr.bf16.mxu1 %v6898_v29  ;;  %v4433_v47 = vpop.permute.xlu1 %4432  ;;  %v4444_v49 = vsel %vm4442_vm7, %v4429_v38, %v4431_v44 }
 0x1af   : > { %v1328_v48 = vpop.f32.mrb[36].mxu1  ;;  %5974 = vrot.lane.b32.xlu0 %v6988_v8, %s6917_s23  ;;  %v4445_v10 = vsel %vm4442_vm7, %v4431_v44, %v4433_v47 }
 0x1b0   : > { %v7968_v50 = vadd.f32 %v1328_v48, %v7900_v7  ;;  %6541 = vmatmul.mubr.msk.bf16.vlgmr.msra.gmra.mrb[144].mxu0 %vm305_vm2, %v6538_v6  ;;  %v6695_v51 = vpop.f32.mrb[37].mxu1  ;;  %5976 = vrot.lane.b32.xlu1 %v6995_v11, %s6917_s23  ;;  %v4460_v18 = vsel %vm309_vm1, %v4445_v10, 0 }
 0x1b1   : > { %4337 = vmatpush1.bf16.msra.mxu0 %v4246_v45  ;;  %v1331_v52 = vpop.f32.mrb[38].mxu1  ;;  %4368 = vmatprep.mubr.bf16.mxu0 %v6889_v0  ;;  %v4435_v53 = vpop.permute.xlu0 %4434 }
 0x1b2   : > { %v6696_v55 = vpop.f32.mrb[39].mxu1  ;;  %6548 = vmatprep.subr.msk.bf16.mxu0 %vm309_vm1, %v4444_v49  ;;  %v4437_v8 = vpop.permute.xlu1 %4436  ;;  %v4446_v58 = vsel %vm4442_vm7, %v4433_v47, %v4435_v53 }
 0x1b3   : > { %v1425_v56 = vpop.f32.mrb[40].mxu0  ;;  %5978 = vrot.lane.b32.xlu0 %v6997_v12, %s6917_s23  ;;  %v4447_v22 = vsel %vm4442_vm7, %v4435_v53, %v4437_v8 }
 0x1b4   : > { %v1554_v11 = vadd.f32 %v1425_v56, %v7914_v21  ;;  %v1427_v59 = vpop.f32.mrb[41].mxu0  ;;  %6543 = vmatmul.mubr.msk.bf16.vlgmr.msra.gmra.mrb[144].mxu1 %vm305_vm2, %v6538_v6  ;;  %5980 = vrot.lane.b32.xlu1 %v7511_v60, %s6917_s23  ;;  %v4466_v30 = vsel %vm309_vm1, %v4447_v22, 0 }
 0x1b5   : > { %v1555_v61 = vadd.f32 %v1427_v59, %v7921_v23  ;;  %6776 = vmatpush3.bf16.msra.mxu1 %v4252_v54  ;;  %v1429_v62 = vpop.f32.mrb[42].mxu0  ;;  %6777 = vmatprep.mubr.msk.bf16.mxu1 %vm6899_vm3, %v6898_v29  ;;  %v4439_v63 = vpop.permute.xlu0 %4438 }
 0x1b6   : > { %v1430_v2 = vpop.f32.mrb[43].mxu0  ;;  %6550 = vmatprep.subr.msk.bf16.mxu1 %vm309_vm1, %v4446_v58  ;;  %v4441_v12 = vpop.permute.xlu1 %4440  ;;  %v4448_v13 = vsel %vm4442_vm7, %v4437_v8, %v4439_v63 }
 0x1b7   : > { %v1466_v7 = vpop.f32.mrb[40].mxu1  ;;  %v4449_v34 = vsel %vm4442_vm7, %v4439_v63, %v4441_v12  ;;  %v6555_v2 = vld [vmem:[%s8292_s1 + $0x50] sm:$0xf] }
 0x1b8   : > { %v1556_v60 = vadd.f32 %v1466_v7, %v7932_v33  ;;  %v1468_v14 = vpop.f32.mrb[41].mxu1  ;;  %6545 = vmatmul.mubr.msk.bf16.vlgmr.msra.gmra.mrb[148].mxu0 %vm305_vm2, %v6538_v6  ;;  %v4472_v38 = vsel %vm309_vm1, %v4449_v34, 0 }
 0x1b9   : > { %v1557_v15 = vadd.f32 %v1468_v14, %v7939_v4  ;;  %4475 = vmatpush1.bf16.msra.mxu0 %v4454_v1  ;;  %v1470_v16 = vpop.f32.mrb[42].mxu1  ;;  %4506 = vmatprep.mubr.bf16.mxu0 %v6889_v0  ;;  %v4647_v17 = vpop.permute.xlu0 %4646 }
 0x1ba   : > { %v1471_v19 = vpop.f32.mrb[43].mxu1  ;;  %6552 = vmatprep.subr.msk.bf16.mxu0 %vm309_vm1, %v4448_v13  ;;  %v4649_v20 = vpop.permute.xlu1 %4648 }
 0x1bb   : > { %v1507_v21 = vpop.f32.mrb[44].mxu0  ;;  %v4663_v41 = vsel %vm4662_vm8, %v4647_v17, %v4649_v20 }
 0x1bc   : > { %v1558_v23 = vadd.f32 %v1507_v21, %v7948_v3  ;;  %v1509_v24 = vpop.f32.mrb[45].mxu0  ;;  %6778 = vmatmul.mubr.msk.bf16.vlgmr.msra.gmra.mrb[148].mxu1 %vm305_vm2, %v6538_v6  ;;  %v4674_v47 = vsel %vm309_vm1, %v4663_v41, 0 }
 0x1bd   : > { %v1559_v25 = vadd.f32 %v1509_v24, %v7955_v42  ;;  %4516 = vmatpush1.bf16.msra.mxu1 %v4460_v18  ;;  %v1511_v26 = vpop.f32.mrb[46].mxu0  ;;  %4547 = vmatprep.mubr.bf16.mxu1 %v6889_v0  ;;  %v4651_v28 = vpop.permute.xlu0 %4650 }
 0x1be   : > { %v1512_v31 = vpop.f32.mrb[47].mxu0  ;;  %6781 = vmatprep.subr.bf16.mxu1 %v6898_v29  ;;  %v4653_v32 = vpop.permute.xlu1 %4652  ;;  %v4664_v4 = vsel %vm4662_vm8, %v4649_v20, %v4651_v28 }
 0x1bf   : > { %v1548_v33 = vpop.f32.mrb[44].mxu1 }
 0x1c0   : > { %v1560_v35 = vadd.f32 %v1548_v33, %v7968_v50  ;;  %6549 = vmatmul.mubr.msk.bf16.vlgmr.msra.gmra.mrb[152].mxu0 %vm305_vm2, %v6547_v27  ;;  %v6701_v36 = vpop.f32.mrb[45].mxu1  ;;  %v4665_v50 = vsel %vm4662_vm8, %v4651_v28, %v4653_v32 }
 0x1c1   : > { %4557 = vmatpush1.bf16.msra.mxu0 %v4466_v30  ;;  %v1551_v5 = vpop.f32.mrb[46].mxu1  ;;  %4588 = vmatprep.mubr.bf16.mxu0 %v6889_v0  ;;  %v4655_v37 = vpop.permute.xlu0 %4654  ;;  %v4680_v56 = vsel %vm309_vm1, %v4665_v50, 0 }
 0x1c2   : > { %v6702_v39 = vpop.f32.mrb[47].mxu1  ;;  %6556 = vmatprep.subr.msk.bf16.mxu0 %vm309_vm1, %v4664_v4  ;;  %v4657_v40 = vpop.permute.xlu1 %4656  ;;  %v4666_v42 = vsel %vm4662_vm8, %v4653_v32, %v4655_v37 }
 0x1c3   : > { %v1645_v3 = vpop.f32.mrb[48].mxu0  ;;  %v4667_v59 = vsel %vm4662_vm8, %v4655_v37, %v4657_v40 }
 0x1c4   : > { %v1774_v43 = vadd.f32 %v1645_v3, %v1554_v11  ;;  %v1647_v6 = vpop.f32.mrb[49].mxu0  ;;  %6551 = vmatmul.mubr.msk.bf16.vlgmr.msra.gmra.mrb[152].mxu1 %vm305_vm2, %v6547_v27  ;;  %v4686_v7 = vsel %vm309_vm1, %v4667_v59, 0 }
 0x1c5   : > { %v1775_v44 = vadd.f32 %v1647_v6, %v1555_v61  ;;  %6782 = vmatpush3.bf16.msra.mxu1 %v4472_v38  ;;  %v1649_v45 = vpop.f32.mrb[50].mxu0  ;;  %6783 = vmatprep.mubr.msk.bf16.mxu1 %vm6899_vm3, %v6898_v29  ;;  %v4659_v46 = vpop.permute.xlu0 %4658 }
 0x1c6   : > { %v1650_v48 = vpop.f32.mrb[51].mxu0  ;;  %6558 = vmatprep.subr.msk.bf16.mxu1 %vm309_vm1, %v4666_v42  ;;  %v4661_v9 = vpop.permute.xlu1 %4660  ;;  %v4668_v51 = vsel %vm4662_vm8, %v4657_v40, %v4659_v46 }
 0x1c7   : > { %v1686_v49 = vpop.f32.mrb[48].mxu1  ;;  %v4669_v14 = vsel %vm4662_vm8, %v4659_v46, %v4661_v9  ;;  %v6563_v48 = vld [vmem:[%s8292_s1 + $0x54] sm:$0xf] }
 0x1c8   : > { %v1776_v52 = vadd.f32 %v1686_v49, %v1556_v60  ;;  %v1688_v53 = vpop.f32.mrb[49].mxu1  ;;  %6553 = vmatmul.mubr.msk.bf16.vlgmr.msra.gmra.mrb[156].mxu0 %vm305_vm2, %v6547_v27  ;;  %v4692_v20 = vsel %vm309_vm1, %v4669_v14, 0 }
 0x1c9   : > { %v1777_v54 = vadd.f32 %v1688_v53, %v1557_v15  ;;  %4695 = vmatpush1.bf16.msra.mxu0 %v4674_v47  ;;  %v1690_v55 = vpop.f32.mrb[50].mxu1  ;;  %4726 = vmatprep.mubr.bf16.mxu0 %v6889_v0  ;;  %v4867_v8 = vpop.permute.xlu0 %4866 }
 0x1ca   : > { %v1691_v57 = vpop.f32.mrb[51].mxu1  ;;  %6560 = vmatprep.subr.msk.bf16.mxu0 %vm309_vm1, %v4668_v51  ;;  %v4869_v58 = vpop.permute.xlu1 %4868 }
 0x1cb   : > { %v1727_v11 = vpop.f32.mrb[52].mxu0  ;;  %v4883_v24 = vsel %vm4882_vm9, %v4867_v8, %v4869_v58 }
 0x1cc   : > { %v1778_v61 = vadd.f32 %v1727_v11, %v1558_v23  ;;  %v1729_v62 = vpop.f32.mrb[53].mxu0  ;;  %6784 = vmatmul.mubr.msk.bf16.vlgmr.msra.gmra.mrb[156].mxu1 %vm305_vm2, %v6547_v27  ;;  %v4894_v32 = vsel %vm309_vm1, %v4883_v24, 0 }
 0x1cd   : > { %v1779_v63 = vadd.f32 %v1729_v62, %v1559_v25  ;;  %4736 = vmatpush1.bf16.msra.mxu1 %v4680_v56  ;;  %v1731_v1 = vpop.f32.mrb[54].mxu0  ;;  %4767 = vmatprep.mubr.bf16.mxu1 %v6889_v0  ;;  %v4871_v12 = vpop.permute.xlu0 %4870 }
 0x1ce   : > { %v1732_v10 = vpop.f32.mrb[55].mxu0  ;;  %6787 = vmatprep.subr.bf16.mxu1 %v6898_v29  ;;  %v4873_v13 = vpop.permute.xlu1 %4872  ;;  %v4884_v15 = vsel %vm4882_vm9, %v4869_v58, %v4871_v12 }
 0x1cf   : > { %v1768_v60 = vpop.f32.mrb[52].mxu1 }
 0x1d0   : > { %v1780_v16 = vadd.f32 %v1768_v60, %v1560_v35  ;;  %6557 = vmatmul.mubr.msk.bf16.vlgmr.msra.gmra.mrb[160].mxu0 %vm305_vm2, %v6555_v2  ;;  %v6707_v17 = vpop.f32.mrb[53].mxu1  ;;  %v4885_v35 = vsel %vm4882_vm9, %v4871_v12, %v4873_v13 }
 0x1d1   : > { %4777 = vmatpush1.bf16.msra.mxu0 %v4686_v7  ;;  %v1771_v18 = vpop.f32.mrb[54].mxu1  ;;  %4808 = vmatprep.mubr.bf16.mxu0 %v6889_v0  ;;  %v4875_v19 = vpop.permute.xlu0 %4874  ;;  %v4900_v3 = vsel %vm309_vm1, %v4885_v35, 0 }
 0x1d2   : > { %v6708_v21 = vpop.f32.mrb[55].mxu1  ;;  %6564 = vmatprep.subr.msk.bf16.mxu0 %vm309_vm1, %v4884_v15  ;;  %v4877_v22 = vpop.permute.xlu1 %4876  ;;  %v4886_v25 = vsel %vm4882_vm9, %v4873_v13, %v4875_v19 }
 0x1d3   : > { %v1865_v23 = vpop.f32.mrb[56].mxu0  ;;  %v4887_v6 = vsel %vm4882_vm9, %v4875_v19, %v4877_v22 }
 0x1d4   : > { %v1994_v26 = vadd.f32 %v1865_v23, %v1774_v43  ;;  %v1867_v27 = vpop.f32.mrb[57].mxu0  ;;  %6559 = vmatmul.mubr.msk.bf16.vlgmr.msra.gmra.mrb[160].mxu1 %vm305_vm2, %v6555_v2  ;;  %v4906_v49 = vsel %vm309_vm1, %v4887_v6, 0 }
 0x1d5   : > { %v1995_v28 = vadd.f32 %v1867_v27, %v1775_v44  ;;  %6788 = vmatpush3.bf16.msra.mxu1 %v4692_v20  ;;  %v1869_v30 = vpop.f32.mrb[58].mxu0  ;;  %6789 = vmatprep.mubr.msk.bf16.mxu1 %vm6899_vm3, %v6898_v29  ;;  %v4879_v31 = vpop.permute.xlu0 %4878 }
 0x1d6   : > { %v1870_v33 = vpop.f32.mrb[59].mxu0  ;;  %6566 = vmatprep.subr.msk.bf16.mxu1 %vm309_vm1, %v4886_v25  ;;  %v4881_v34 = vpop.permute.xlu1 %4880  ;;  %v4888_v36 = vsel %vm4882_vm9, %v4877_v22, %v4879_v31 }
 0x1d7   : > { %v1906_v4 = vpop.f32.mrb[56].mxu1  ;;  %v4889_v53 = vsel %vm4882_vm9, %v4879_v31, %v4881_v34  ;;  %v6571_v33 = vld [vmem:[%s8292_s1 + $0x58] sm:$0xf] }
 0x1d8   : > { %v1996_v5 = vadd.f32 %v1906_v4, %v1776_v52  ;;  %v1908_v37 = vpop.f32.mrb[57].mxu1  ;;  %6561 = vmatmul.mubr.msk.bf16.vlgmr.msra.gmra.mrb[164].mxu0 %vm305_vm2, %v6555_v2  ;;  %v4912_v58 = vsel %vm309_vm1, %v4889_v53, 0 }
 0x1d9   : > { %v1997_v38 = vadd.f32 %v1908_v37, %v1777_v54  ;;  %4915 = vmatpush1.bf16.msra.mxu0 %v4894_v32  ;;  %v1910_v39 = vpop.f32.mrb[58].mxu1  ;;  %4946 = vmatprep.mubr.bf16.mxu0 %v6889_v0  ;;  %v5087_v40 = vpop.permute.xlu0 %5086 }
 0x1da   : > { %v1911_v41 = vpop.f32.mrb[59].mxu1  ;;  %6568 = vmatprep.subr.msk.bf16.mxu0 %vm309_vm1, %v4888_v36  ;;  %v5089_v42 = vpop.permute.xlu1 %5088 }
 0x1db   : > { %v1947_v43 = vpop.f32.mrb[60].mxu0  ;;  %v5103_v62 = vsel %vm5102_vm10, %v5087_v40, %v5089_v42 }
 0x1dc   : > { %v1998_v44 = vadd.f32 %v1947_v43, %v1778_v61  ;;  %v1949_v45 = vpop.f32.mrb[61].mxu0  ;;  %6790 = vmatmul.mubr.msk.bf16.vlgmr.msra.gmra.mrb[164].mxu1 %vm305_vm2, %v6555_v2  ;;  %v5114_v13 = vsel %vm309_vm1, %v5103_v62, 0 }
 0x1dd   : > { %v1999_v46 = vadd.f32 %v1949_v45, %v1779_v63  ;;  %4956 = vmatpush1.bf16.msra.mxu1 %v4900_v3  ;;  %v1951_v47 = vpop.f32.mrb[62].mxu0  ;;  %4987 = vmatprep.mubr.bf16.mxu1 %v6889_v0  ;;  %v5091_v9 = vpop.permute.xlu0 %5090 }
 0x1de   : > { %v1952_v50 = vpop.f32.mrb[63].mxu0  ;;  %6793 = vmatprep.subr.bf16.mxu1 %v6898_v29  ;;  %v5093_v51 = vpop.permute.xlu1 %5092  ;;  %v5104_v54 = vsel %vm5102_vm10, %v5089_v42, %v5091_v9 }
 0x1df   : > { %v1988_v52 = vpop.f32.mrb[60].mxu1 }
 0x1e0   : > { %v2000_v55 = vadd.f32 %v1988_v52, %v1780_v16  ;;  %6565 = vmatmul.mubr.msk.bf16.vlgmr.msra.gmra.mrb[168].mxu0 %vm305_vm2, %v6563_v48  ;;  %v6713_v8 = vpop.f32.mrb[61].mxu1  ;;  %v5105_v16 = vsel %vm5102_vm10, %v5091_v9, %v5093_v51 }
 0x1e1   : > { %4997 = vmatpush1.bf16.msra.mxu0 %v4906_v49  ;;  %v1991_v56 = vpop.f32.mrb[62].mxu1  ;;  %5028 = vmatprep.mubr.bf16.mxu0 %v6889_v0  ;;  %v5095_v57 = vpop.permute.xlu0 %5094  ;;  %v5120_v23 = vsel %vm309_vm1, %v5105_v16, 0 }
 0x1e2   : > { %v6714_v11 = vpop.f32.mrb[63].mxu1  ;;  %6572 = vmatprep.subr.msk.bf16.mxu0 %vm309_vm1, %v5104_v54  ;;  %v5097_v59 = vpop.permute.xlu1 %5096  ;;  %v5106_v63 = vsel %vm5102_vm10, %v5093_v51, %v5095_v57 }
 0x1e3   : > { %v2085_v61 = vpop.f32.mrb[64].mxu0  ;;  %v5107_v27 = vsel %vm5102_vm10, %v5095_v57, %v5097_v59 }
 0x1e4   : > { %v2214_v1 = vadd.f32 %v2085_v61, %v1994_v26  ;;  %v2087_v2 = vpop.f32.mrb[65].mxu0  ;;  %6567 = vmatmul.mubr.msk.bf16.vlgmr.msra.gmra.mrb[168].mxu1 %vm305_vm2, %v6563_v48  ;;  %v5126_v4 = vsel %vm309_vm1, %v5107_v27, 0 }
 0x1e5   : > { %v2215_v12 = vadd.f32 %v2087_v2, %v1995_v28  ;;  %6794 = vmatpush3.bf16.msra.mxu1 %v4912_v58  ;;  %v2089_v7 = vpop.f32.mrb[66].mxu0  ;;  %6795 = vmatprep.mubr.msk.bf16.mxu1 %vm6899_vm3, %v6898_v29  ;;  %v5099_v10 = vpop.permute.xlu0 %5098 }
 0x1e6   : > { %v2090_v60 = vpop.f32.mrb[67].mxu0  ;;  %6574 = vmatprep.subr.msk.bf16.mxu1 %vm309_vm1, %v5106_v63  ;;  %v5101_v14 = vpop.permute.xlu1 %5100  ;;  %v5108_v17 = vsel %vm5102_vm10, %v5097_v59, %v5099_v10 }
 0x1e7   : > { %v2126_v15 = vpop.f32.mrb[64].mxu1  ;;  %v5109_v37 = vsel %vm5102_vm10, %v5099_v10, %v5101_v14  ;;  %v6579_v60 = vld [vmem:[%s8292_s1 + $0x5c] sm:$0xf] }
 0x1e8   : > { %v2216_v18 = vadd.f32 %v2126_v15, %v1996_v5  ;;  %v2128_v19 = vpop.f32.mrb[65].mxu1  ;;  %6569 = vmatmul.mubr.msk.bf16.vlgmr.msra.gmra.mrb[172].mxu0 %vm305_vm2, %v6563_v48  ;;  %v5132_v42 = vsel %vm309_vm1, %v5109_v37, 0 }
 0x1e9   : > { %v2217_v20 = vadd.f32 %v2128_v19, %v1997_v38  ;;  %5135 = vmatpush1.bf16.msra.mxu0 %v5114_v13  ;;  %v2130_v21 = vpop.f32.mrb[66].mxu1  ;;  %5166 = vmatprep.mubr.bf16.mxu0 %v6889_v0  ;;  %v5307_v22 = vpop.permute.xlu0 %5306 }
 0x1ea   : > { %v2131_v24 = vpop.f32.mrb[67].mxu1  ;;  %6576 = vmatprep.subr.msk.bf16.mxu0 %vm309_vm1, %v5108_v17  ;;  %v5309_v25 = vpop.permute.xlu1 %5308 }
 0x1eb   : > { %v2167_v26 = vpop.f32.mrb[68].mxu0  ;;  %v5323_v45 = vsel %vm5322_vm11, %v5307_v22, %v5309_v25 }
 0x1ec   : > { %v2218_v28 = vadd.f32 %v2167_v26, %v1998_v44  ;;  %v2169_v30 = vpop.f32.mrb[69].mxu0  ;;  %6796 = vmatmul.mubr.msk.bf16.vlgmr.msra.gmra.mrb[172].mxu1 %vm305_vm2, %v6563_v48  ;;  %v5334_v51 = vsel %vm309_vm1, %v5323_v45, 0 }
 0x1ed   : > { %v2219_v31 = vadd.f32 %v2169_v30, %v1999_v46  ;;  %5176 = vmatpush1.bf16.msra.mxu1 %v5120_v23  ;;  %v2171_v32 = vpop.f32.mrb[70].mxu0  ;;  %5207 = vmatprep.mubr.bf16.mxu1 %v6889_v0  ;;  %v5311_v34 = vpop.permute.xlu0 %5310 }
 0x1ee   : > { %v2172_v35 = vpop.f32.mrb[71].mxu0  ;;  %6799 = vmatprep.subr.bf16.mxu1 %v6898_v29  ;;  %v5313_v36 = vpop.permute.xlu1 %5312  ;;  %v5324_v38 = vsel %vm5322_vm11, %v5309_v25, %v5311_v34 }
 0x1ef   : > { %v2208_v5 = vpop.f32.mrb[68].mxu1 }
 0x1f0   : > { %v2220_v39 = vadd.f32 %v2208_v5, %v2000_v55  ;;  %6573 = vmatmul.mubr.msk.bf16.vlgmr.msra.gmra.mrb[176].mxu0 %vm305_vm2, %v6571_v33  ;;  %v6719_v40 = vpop.f32.mrb[69].mxu1  ;;  %v5325_v55 = vsel %vm5322_vm11, %v5311_v34, %v5313_v36 }
 0x1f1   : > { %5217 = vmatpush1.bf16.msra.mxu0 %v5126_v4  ;;  %v2211_v3 = vpop.f32.mrb[70].mxu1  ;;  %5248 = vmatprep.mubr.bf16.mxu0 %v6889_v0  ;;  %v5315_v41 = vpop.permute.xlu0 %5314  ;;  %v5340_v61 = vsel %vm309_vm1, %v5325_v55, 0 }
 0x1f2   : > { %v6720_v43 = vpop.f32.mrb[71].mxu1  ;;  %6580 = vmatprep.subr.msk.bf16.mxu0 %vm309_vm1, %v5324_v38  ;;  %v5317_v6 = vpop.permute.xlu1 %5316  ;;  %v5326_v46 = vsel %vm5322_vm11, %v5313_v36, %v5315_v41  ;;  %v6184_v36 = vld [vmem:[%s8293_s2] sm:$0xff] }
 0x1f3   : > { %v2305_v44 = vpop.f32.mrb[72].mxu0  ;;  %v5327_v2 = vsel %vm5322_vm11, %v5315_v41, %v5317_v6  ;;  %6187 = vperm.xlu0 %6868, %v6184_v36  }
 0x1f4   : > { %v2434_v47 = vadd.f32 %v2305_v44, %v2214_v1  ;;  %v2307_v48 = vpop.f32.mrb[73].mxu0  ;;  %6575 = vmatmul.mubr.msk.bf16.vlgmr.msra.gmra.mrb[176].mxu1 %vm305_vm2, %v6571_v33  ;;  %v5346_v15 = vsel %vm309_vm1, %v5327_v2, 0 }
 0x1f5   : > { %v2435_v9 = vadd.f32 %v2307_v48, %v2215_v12  ;;  %6800 = vmatpush3.bf16.msra.mxu1 %v5132_v42  ;;  %v2309_v49 = vpop.f32.mrb[74].mxu0  ;;  %6801 = vmatprep.mubr.msk.bf16.mxu1 %vm6899_vm3, %v6898_v29  ;;  %v5319_v50 = vpop.permute.xlu0 %5318 }
 0x1f6   : > { %v2310_v52 = vpop.f32.mrb[75].mxu0  ;;  %6582 = vmatprep.subr.msk.bf16.mxu1 %vm309_vm1, %v5326_v46  ;;  %v5321_v53 = vpop.permute.xlu1 %5320  ;;  %v5328_v8 = vsel %vm5322_vm11, %v5317_v6, %v5319_v50 }
 0x1f7   : > { %v2346_v54 = vpop.f32.mrb[72].mxu1  ;;  %v5329_v19 = vsel %vm5322_vm11, %v5319_v50, %v5321_v53  ;;  %v6587_v53 = vld [vmem:[%s8292_s1 + $0x60] sm:$0xf] }
 0x1f8   : > { %v8104_v56 = vadd.f32 %v2346_v54, %v2216_v18  ;;  %v2348_v57 = vpop.f32.mrb[73].mxu1  ;;  %6577 = vmatmul.mubr.msk.bf16.vlgmr.msra.gmra.mrb[180].mxu0 %vm305_vm2, %v6571_v33  ;;  %v5352_v25 = vsel %vm309_vm1, %v5329_v19, 0 }
 0x1f9   : > { %v2437_v58 = vadd.f32 %v2348_v57, %v2217_v20  ;;  %5355 = vmatpush1.bf16.msra.mxu0 %v5334_v51  ;;  %v2350_v11 = vpop.f32.mrb[74].mxu1  ;;  %5386 = vmatprep.mubr.bf16.mxu0 %v6889_v0  ;;  %v5527_v59 = vpop.permute.xlu0 %5526 }
 0x1fa   : > { %v2351_v62 = vpop.f32.mrb[75].mxu1  ;;  %6584 = vmatprep.subr.msk.bf16.mxu0 %vm309_vm1, %v5328_v8  ;;  %v5529_v63 = vpop.permute.xlu1 %5528 }
 0x1fb   : > { %v2387_v1 = vpop.f32.mrb[76].mxu0  ;;  %v5543_v30 = vsel %vm5542_vm12, %v5527_v59, %v5529_v63 }
 0x1fc   : > { %v8111_v12 = vadd.f32 %v2387_v1, %v2218_v28  ;;  %v2389_v7 = vpop.f32.mrb[77].mxu0  ;;  %6802 = vmatmul.mubr.msk.bf16.vlgmr.msra.gmra.mrb[180].mxu1 %vm305_vm2, %v6571_v33  ;;  %v5554_v5 = vsel %vm309_vm1, %v5543_v30, 0 }
 0x1fd   : > { %v2439_v10 = vadd.f32 %v2389_v7, %v2219_v31  ;;  %5396 = vmatpush1.bf16.msra.mxu1 %v5340_v61  ;;  %v2391_v13 = vpop.f32.mrb[78].mxu0  ;;  %5427 = vmatprep.mubr.bf16.mxu1 %v6889_v0  ;;  %v5531_v14 = vpop.permute.xlu0 %5530 }
 0x1fe   : > { %v2392_v16 = vpop.f32.mrb[79].mxu0  ;;  %6805 = vmatprep.subr.bf16.mxu1 %v6898_v29  ;;  %v5533_v17 = vpop.permute.xlu1 %5532  ;;  %v5544_v20 = vsel %vm5542_vm12, %v5529_v63, %v5531_v14 }
 0x1ff   : > { %v2428_v18 = vpop.f32.mrb[76].mxu1  ;;  %v5545_v40 = vsel %vm5542_vm12, %v5531_v14, %v5533_v17 }
 0x200   : > { %v8122_v21 = vadd.f32 %v2428_v18, %v2220_v39  ;;  %6581 = vmatmul.mubr.msk.bf16.vlgmr.msra.gmra.mrb[184].mxu0 %vm305_vm2, %v6579_v60  ;;  %v6725_v22 = vpop.f32.mrb[77].mxu1  ;;  %v5560_v45 = vsel %vm309_vm1, %v5545_v40, 0 }
 0x201   : > { %5437 = vmatpush1.bf16.msra.mxu0 %v5346_v15  ;;  %v2431_v23 = vpop.f32.mrb[78].mxu1  ;;  %5468 = vmatprep.mubr.bf16.mxu0 %v6889_v0  ;;  %v5535_v24 = vpop.permute.xlu0 %5534 }
 0x202   : > { %v6726_v26 = vpop.f32.mrb[79].mxu1  ;;  %6588 = vmatprep.subr.msk.bf16.mxu0 %vm309_vm1, %v5544_v20  ;;  %v5537_v27 = vpop.permute.xlu1 %5536  ;;  %v5546_v31 = vsel %vm5542_vm12, %v5533_v17, %v5535_v24 }
 0x203   : > { %v2525_v28 = vpop.f32.mrb[80].mxu0 }
 0x204   : > { %v8130_v32 = vadd.f32 %v2525_v28, %v2434_v47  ;;  %v2527_v33 = vpop.f32.mrb[81].mxu0  ;;  %6583 = vmatmul.mubr.msk.bf16.vlgmr.msra.gmra.mrb[184].mxu1 %vm305_vm2, %v6579_v60 }
 0x205   : > { %v2655_v34 = vadd.f32 %v2527_v33, %v2435_v9  ;;  %6806 = vmatpush3.bf16.msra.mxu1 %v5352_v25  ;;  %v2529_v4 = vpop.f32.mrb[82].mxu0  ;;  %6807 = vmatprep.mubr.msk.bf16.mxu1 %vm6899_vm3, %v6898_v29  ;;  %v5539_v35 = vpop.permute.xlu0 %5538  ;;  %v5547_v9 = vsel %vm5542_vm12, %v5535_v24, %v5537_v27 }
 0x206   : > { %v2530_v37 = vpop.f32.mrb[83].mxu0  ;;  %6590 = vmatprep.subr.msk.bf16.mxu1 %vm309_vm1, %v5546_v31  ;;  %v5541_v38 = vpop.permute.xlu1 %5540  ;;  %v5548_v3 = vsel %vm5542_vm12, %v5537_v27, %v5539_v35  ;;  %v5566_v55 = vsel %vm309_vm1, %v5547_v9, 0 }
 0x207   : > { %v2566_v39 = vpop.f32.mrb[80].mxu1  ;;  %v6595_v37 = vld [vmem:[%s8292_s1 + $0x64] sm:$0xf] }
 0x208   : > { %v2656_v41 = vadd.f32 %v2566_v39, %v8104_v56  ;;  %v2568_v42 = vpop.f32.mrb[81].mxu1  ;;  %6585 = vmatmul.mubr.msk.bf16.vlgmr.msra.gmra.mrb[188].mxu0 %vm305_vm2, %v6579_v60 }
 0x209   : > { %v2657_v43 = vadd.f32 %v2568_v42, %v2437_v58  ;;  %5575 = vmatpush1.bf16.msra.mxu0 %v5554_v5  ;;  %v2570_v6 = vpop.f32.mrb[82].mxu1  ;;  %5606 = vmatprep.mubr.bf16.mxu0 %v6889_v0  ;;  %v5747_v44 = vpop.permute.xlu0 %5746  ;;  %v5549_v58 = vsel %vm5542_vm12, %v5539_v35, %v5541_v38 }
 0x20a   : > { %v2571_v46 = vpop.f32.mrb[83].mxu1  ;;  %6592 = vmatprep.subr.msk.bf16.mxu0 %vm309_vm1, %v5548_v3  ;;  %v5749_v47 = vpop.permute.xlu1 %5748  ;;  %v5572_v1 = vsel %vm309_vm1, %v5549_v58, 0 }
 0x20b   : > { %v2607_v48 = vpop.f32.mrb[84].mxu0 }
 0x20c   : > { %v2658_v49 = vadd.f32 %v2607_v48, %v8111_v12  ;;  %v2609_v50 = vpop.f32.mrb[85].mxu0  ;;  %6808 = vmatmul.mubr.msk.bf16.vlgmr.msra.gmra.mrb[188].mxu1 %vm305_vm2, %v6579_v60 }
 0x20d   : > { %v2659_v51 = vadd.f32 %v2609_v50, %v2439_v10  ;;  %5616 = vmatpush1.bf16.msra.mxu1 %v5560_v45  ;;  %v2611_v52 = vpop.f32.mrb[86].mxu0  ;;  %5647 = vmatprep.mubr.bf16.mxu1 %v6889_v0  ;;  %v5751_v54 = vpop.permute.xlu0 %5750  ;;  %v5763_v10 = vsel %vm5762_vm13, %v5747_v44, %v5749_v47 }
 0x20e   : > { %v2612_v8 = vpop.f32.mrb[87].mxu0  ;;  %6811 = vmatprep.subr.bf16.mxu1 %v6898_v29  ;;  %v5753_v56 = vpop.permute.xlu1 %5752  ;;  %v5764_v11 = vsel %vm5762_vm13, %v5749_v47, %v5751_v54  ;;  %v5774_v18 = vsel %vm309_vm1, %v5763_v10, 0 }
 0x20f   : > { %v2648_v57 = vpop.f32.mrb[84].mxu1  ;;  %v5765_v22 = vsel %vm5762_vm13, %v5751_v54, %v5753_v56 }
 0x210   : > { %v2660_v59 = vadd.f32 %v2648_v57, %v8122_v21  ;;  %6589 = vmatmul.mubr.msk.bf16.vlgmr.msra.gmra.mrb[192].mxu0 %vm305_vm2, %v6587_v53  ;;  %v6731_v61 = vpop.f32.mrb[85].mxu1  ;;  %v5780_v30 = vsel %vm309_vm1, %v5765_v22, 0 }
 0x211   : > { %5657 = vmatpush1.bf16.msra.mxu0 %v5566_v55  ;;  %v2651_v62 = vpop.f32.mrb[86].mxu1  ;;  %5688 = vmatprep.mubr.bf16.mxu0 %v6889_v0  ;;  %v5755_v63 = vpop.permute.xlu0 %5754 }
 0x212   : > { %v6732_v2 = vpop.f32.mrb[87].mxu1  ;;  %6596 = vmatprep.subr.msk.bf16.mxu0 %vm309_vm1, %v5764_v11  ;;  %v5757_v12 = vpop.permute.xlu1 %5756  ;;  %v5766_v13 = vsel %vm5762_vm13, %v5753_v56, %v5755_v63 }
 0x213   : > { %v2745_v7 = vpop.f32.mrb[88].mxu0 }
 0x214   : > { %v2874_v60 = vadd.f32 %v2745_v7, %v8130_v32  ;;  %v2747_v14 = vpop.f32.mrb[89].mxu0  ;;  %6591 = vmatmul.mubr.msk.bf16.vlgmr.msra.gmra.mrb[192].mxu1 %vm305_vm2, %v6587_v53 }
 0x215   : > { %v2875_v15 = vadd.f32 %v2747_v14, %v2655_v34  ;;  %6812 = vmatpush3.bf16.msra.mxu1 %v5572_v1  ;;  %v2749_v16 = vpop.f32.mrb[90].mxu0  ;;  %6813 = vmatprep.mubr.msk.bf16.mxu1 %vm6899_vm3, %v6898_v29  ;;  %v5759_v17 = vpop.permute.xlu0 %5758  ;;  %v5767_v34 = vsel %vm5762_vm13, %v5755_v63, %v5757_v12 }
 0x216   : > { %v2750_v19 = vpop.f32.mrb[91].mxu0  ;;  %6598 = vmatprep.subr.msk.bf16.mxu1 %vm309_vm1, %v5766_v13  ;;  %v5761_v20 = vpop.permute.xlu1 %5760  ;;  %v5768_v23 = vsel %vm5762_vm13, %v5757_v12, %v5759_v17  ;;  %v5786_v39 = vsel %vm309_vm1, %v5767_v34, 0 }
 0x217   : > { %v2786_v21 = vpop.f32.mrb[88].mxu1  ;;  %v5769_v42 = vsel %vm5762_vm13, %v5759_v17, %v5761_v20  ;;  %v6603_v17 = vld [vmem:[%s8292_s1 + $0x68] sm:$0xf] }
 0x218   : > { %v2876_v24 = vadd.f32 %v2786_v21, %v2656_v41  ;;  %v2788_v25 = vpop.f32.mrb[89].mxu1  ;;  %6593 = vmatmul.mubr.msk.bf16.vlgmr.msra.gmra.mrb[196].mxu0 %vm305_vm2, %v6587_v53  ;;  %v5792_v47 = vsel %vm309_vm1, %v5769_v42, 0 }
 0x219   : > { %v2877_v26 = vadd.f32 %v2788_v25, %v2657_v43  ;;  %5795 = vmatpush1.bf16.msra.mxu0 %v5774_v18  ;;  %v2790_v27 = vpop.f32.mrb[90].mxu1  ;;  %5826 = vmatprep.mubr.bf16.mxu0 %v6889_v0  ;;  %v5967_v28 = vpop.permute.xlu0 %5966 }
 0x21a   : > { %v2791_v31 = vpop.f32.mrb[91].mxu1  ;;  %6600 = vmatprep.subr.msk.bf16.mxu0 %vm309_vm1, %v5768_v23  ;;  %v5969_v32 = vpop.permute.xlu1 %5968 }
 0x21b   : > { %v2827_v33 = vpop.f32.mrb[92].mxu0 }
 0x21c   : > { %v2878_v4 = vadd.f32 %v2827_v33, %v2658_v49  ;;  %v2829_v35 = vpop.f32.mrb[93].mxu0  ;;  %6814 = vmatmul.mubr.msk.bf16.vlgmr.msra.gmra.mrb[196].mxu1 %vm305_vm2, %v6587_v53  ;;  %v5983_v49 = vsel %vm5982_vm14, %v5967_v28, %v5969_v32 }
 0x21d   : > { %v2879_v36 = vadd.f32 %v2829_v35, %v2659_v51  ;;  %5836 = vmatpush1.bf16.msra.mxu1 %v5780_v30  ;;  %v2831_v5 = vpop.f32.mrb[94].mxu0  ;;  %5867 = vmatprep.mubr.bf16.mxu1 %v6889_v0  ;;  %v5971_v38 = vpop.permute.xlu0 %5970  ;;  %v5994_v56 = vsel %vm309_vm1, %v5983_v49, 0 }
 0x21e   : > { %v2832_v40 = vpop.f32.mrb[95].mxu0  ;;  %6817 = vmatprep.subr.bf16.mxu1 %v6898_v29  ;;  %v5973_v3 = vpop.permute.xlu1 %5972  ;;  %v5984_v43 = vsel %vm5982_vm14, %v5969_v32, %v5971_v38 }
 0x21f   : > { %v2868_v41 = vpop.f32.mrb[92].mxu1  ;;  %v5985_v11 = vsel %vm5982_vm14, %v5971_v38, %v5973_v3 }
 0x220   : > { %v2880_v6 = vadd.f32 %v2868_v41, %v2660_v59  ;;  %6597 = vmatmul.mubr.msk.bf16.vlgmr.msra.gmra.mrb[200].mxu0 %vm305_vm2, %v6595_v37  ;;  %v6737_v44 = vpop.f32.mrb[93].mxu1  ;;  %v6000_v2 = vsel %vm309_vm1, %v5985_v11, 0 }
 0x221   : > { %5877 = vmatpush1.bf16.msra.mxu0 %v5786_v39  ;;  %v2871_v45 = vpop.f32.mrb[94].mxu1  ;;  %5908 = vmatprep.mubr.bf16.mxu0 %v6889_v0  ;;  %v5975_v46 = vpop.permute.xlu0 %5974 }
 0x222   : > { %v6738_v48 = vpop.f32.mrb[95].mxu1  ;;  %6604 = vmatprep.subr.msk.bf16.mxu0 %vm309_vm1, %v5984_v43  ;;  %v5986_v50 = vsel %vm5982_vm14, %v5973_v3, %v5975_v46  ;;  %v5977_v53 = vpop.permute.xlu1 %5976 }
 0x223   : > { %v2965_v9 = vpop.f32.mrb[96].mxu0  ;;  %v5987_v10 = vsel %vm5982_vm14, %v5975_v46, %v5977_v53 }
 0x224   : > { %v3094_v51 = vadd.f32 %v2965_v9, %v2874_v60  ;;  %v2967_v52 = vpop.f32.mrb[97].mxu0  ;;  %6599 = vmatmul.mubr.msk.bf16.vlgmr.msra.gmra.mrb[200].mxu1 %vm305_vm2, %v6595_v37  ;;  %v6006_v18 = vsel %vm309_vm1, %v5987_v10, 0 }
 0x225   : > { %v3095_v54 = vadd.f32 %v2967_v52, %v2875_v15  ;;  %6818 = vmatpush3.bf16.msra.mxu1 %v5792_v47  ;;  %v2969_v55 = vpop.f32.mrb[98].mxu0  ;;  %6819 = vmatprep.mubr.msk.bf16.mxu1 %vm6899_vm3, %v6898_v29  ;;  %v5979_v8 = vpop.permute.xlu0 %5978 }
 0x226   : > { %v2970_v57 = vpop.f32.mrb[99].mxu0  ;;  %6606 = vmatprep.subr.msk.bf16.mxu1 %vm309_vm1, %v5986_v50  ;;  %v5988_v59 = vsel %vm5982_vm14, %v5977_v53, %v5979_v8  ;;  %v5981_v14 = vpop.permute.xlu1 %5980 }
 0x227   : > { %v3006_v58 = vpop.f32.mrb[96].mxu1  ;;  %v5989_v21 = vsel %vm5982_vm14, %v5979_v8, %v5981_v14 }
 0x228   : > { %v3096_v61 = vadd.f32 %v3006_v58, %v2876_v24  ;;  %v3008_v62 = vpop.f32.mrb[97].mxu1  ;;  %6601 = vmatmul.mubr.msk.bf16.vlgmr.msra.gmra.mrb[204].mxu0 %vm305_vm2, %v6595_v37  ;;  %v6012_v25 = vsel %vm309_vm1, %v5989_v21, 0 }
 0x229   : > { %v3097_v63 = vadd.f32 %v3008_v62, %v2877_v26  ;;  %6015 = vmatpush1.bf16.msra.mxu0 %v5994_v56  ;;  %v3010_v1 = vpop.f32.mrb[98].mxu1  ;;  %6046 = vmatprep.mubr.bf16.mxu0 %v6889_v0 }
 0x22a   : > { %v3011_v12 = vpop.f32.mrb[99].mxu1  ;;  %6608 = vmatprep.subr.msk.bf16.mxu0 %vm309_vm1, %v5988_v59 }
 0x22b   : > { %v3047_v7 = vpop.f32.mrb[100].mxu0 }
 0x22c   : > { %v3098_v13 = vadd.f32 %v3047_v7, %v2878_v4  ;;  %v3049_v60 = vpop.f32.mrb[101].mxu0  ;;  %6820 = vmatmul.mubr.msk.bf16.vlgmr.msra.gmra.mrb[204].mxu1 %vm305_vm2, %v6595_v37 }
 0x22d   : > { %v3099_v15 = vadd.f32 %v3049_v60, %v2879_v36  ;;  %6056 = vmatpush1.bf16.msra.mxu1 %v6000_v2  ;;  %v3051_v16 = vpop.f32.mrb[102].mxu0  ;;  %6087 = vmatprep.mubr.bf16.mxu1 %v6889_v0 }
 0x22e   : > { %v3052_v19 = vpop.f32.mrb[103].mxu0  ;;  %6823 = vmatprep.subr.bf16.mxu1 %v6898_v29 }
 0x22f   : > { %v3088_v20 = vpop.f32.mrb[100].mxu1 }
 0x230   : > { %v3100_v22 = vadd.f32 %v3088_v20, %v2880_v6  ;;  %6605 = vmatmul.mubr.msk.bf16.vlgmr.msra.gmra.mrb[208].mxu0 %vm305_vm2, %v6603_v17  ;;  %v6743_v23 = vpop.f32.mrb[101].mxu1 }
 0x231   : > { %6097 = vmatpush1.bf16.msra.mxu0 %v6006_v18  ;;  %v3091_v24 = vpop.f32.mrb[102].mxu1  ;;  %6128 = vmatprep.mubr.bf16.mxu0 %v6889_v0 }
 0x232   : > { %v6744_v26 = vpop.f32.mrb[103].mxu1 }
 0x233   : > { %v3185_v27 = vpop.f32.mrb[104].mxu0 }
 0x234   : > { %v3314_v28 = vadd.f32 %v3185_v27, %v3094_v51  ;;  %v3187_v30 = vpop.f32.mrb[105].mxu0  ;;  %6607 = vmatmul.mubr.msk.bf16.vlgmr.msra.gmra.mrb[208].mxu1 %vm305_vm2, %v6603_v17 }
 0x235   : > { %v3315_v31 = vadd.f32 %v3187_v30, %v3095_v54  ;;  %6824 = vmatpush3.bf16.msra.mxu1 %v6012_v25  ;;  %v3189_v32 = vpop.f32.mrb[106].mxu0  ;;  %6825 = vmatprep.mubr.msk.bf16.mxu1 %vm6899_vm3, %v6898_v29 }
 0x236   : > { %v3190_v33 = vpop.f32.mrb[107].mxu0 }
 0x237   : > { %v3226_v34 = vpop.f32.mrb[104].mxu1 }
 0x238   : > { %v3316_v4 = vadd.f32 %v3226_v34, %v3096_v61  ;;  %v3228_v35 = vpop.f32.mrb[105].mxu1  ;;  %6609 = vmatmul.mubr.msk.bf16.vlgmr.msra.gmra.mrb[212].mxu0 %vm305_vm2, %v6603_v17 }
 0x239   : > { %v3317_v0 = vadd.f32 %v3228_v35, %v3097_v63  ;;  %v3230_v36 = vpop.f32.mrb[106].mxu1 }
 0x23a   : > { %v3231_v5 = vpop.f32.mrb[107].mxu1 }
 0x23b   : > { %v3267_v37 = vpop.f32.mrb[108].mxu0 }
 0x23c   : > { %v3318_v38 = vadd.f32 %v3267_v37, %v3098_v13  ;;  %v3269_v39 = vpop.f32.mrb[109].mxu0  ;;  %6826 = vmatmul.mubr.msk.bf16.vlgmr.msra.gmra.mrb[212].mxu1 %vm305_vm2, %v6603_v17 }
 0x23d   : > { %v3319_v40 = vadd.f32 %v3269_v39, %v3099_v15  ;;  %v3271_v3 = vpop.f32.mrb[110].mxu0 }
 0x23e   : > { %v3272_v41 = vpop.f32.mrb[111].mxu0 }
 0x23f   : > { %v3308_v42 = vpop.f32.mrb[108].mxu1 }
 0x240   : > { %v3320_v43 = vadd.f32 %v3308_v42, %v3100_v22  ;;  %v6749_v29 = vpop.f32.mrb[109].mxu1 }
 0x241   : > { %v3311_v6 = vpop.f32.mrb[110].mxu1 }
 0x242   : > { %v6750_v44 = vpop.f32.mrb[111].mxu1 }
 0x243   : > { %v3405_v45 = vpop.f32.mrb[112].mxu0 }
 0x244   : > { %v3534_v46 = vadd.f32 %v3405_v45, %v3314_v28  ;;  %v3407_v47 = vpop.f32.mrb[113].mxu0 }
 0x245   : > { %v3535_v48 = vadd.f32 %v3407_v47, %v3315_v31  ;;  %v3409_v9 = vpop.f32.mrb[114].mxu0 }
 0x246   : > { %v3410_v49 = vpop.f32.mrb[115].mxu0 }
 0x247   : > { %v3446_v50 = vpop.f32.mrb[112].mxu1 }
 0x248   : > { %v3536_v51 = vadd.f32 %v3446_v50, %v3316_v4  ;;  %v3448_v52 = vpop.f32.mrb[113].mxu1 }
 0x249   : > { %v3537_v53 = vadd.f32 %v3448_v52, %v3317_v0  ;;  %v3450_v54 = vpop.f32.mrb[114].mxu1 }
 0x24a   : > { %v3451_v55 = vpop.f32.mrb[115].mxu1 }
 0x24b   : > { %v3487_v8 = vpop.f32.mrb[116].mxu0 }
 0x24c   : > { %v3538_v56 = vadd.f32 %v3487_v8, %v3318_v38  ;;  %v3489_v57 = vpop.f32.mrb[117].mxu0 }
 0x24d   : > { %v3539_v58 = vadd.f32 %v3489_v57, %v3319_v40  ;;  %v3491_v11 = vpop.f32.mrb[118].mxu0 }
 0x24e   : > { %v3492_v59 = vpop.f32.mrb[119].mxu0 }
 0x24f   : > { %v3528_v61 = vpop.f32.mrb[116].mxu1 }
 0x250   : > { %v3540_v62 = vadd.f32 %v3528_v61, %v3320_v43  ;;  %v6755_v63 = vpop.f32.mrb[117].mxu1 }
 0x251   : > { %v3531_v1 = vpop.f32.mrb[118].mxu1 }
 0x252   : > { %v6756_v2 = vpop.f32.mrb[119].mxu1 }
 0x253   : > { %v3625_v12 = vpop.f32.mrb[120].mxu0 }
 0x254   : > { %v3754_v7 = vadd.f32 %v3625_v12, %v3534_v46  ;;  %v3627_v10 = vpop.f32.mrb[121].mxu0 }
 0x255   : > { %v3755_v13 = vadd.f32 %v3627_v10, %v3535_v48  ;;  %v3629_v60 = vpop.f32.mrb[122].mxu0 }
 0x256   : > { %v3630_v14 = vpop.f32.mrb[123].mxu0 }
 0x257   : > { %v3666_v15 = vpop.f32.mrb[120].mxu1 }
 0x258   : > { %v3756_v16 = vadd.f32 %v3666_v15, %v3536_v51  ;;  %v3668_v17 = vpop.f32.mrb[121].mxu1 }
 0x259   : > { %v3757_v18 = vadd.f32 %v3668_v17, %v3537_v53  ;;  %v3670_v19 = vpop.f32.mrb[122].mxu1 }
 0x25a   : > { %v3671_v20 = vpop.f32.mrb[123].mxu1 }
 0x25b   : > { %v3707_v21 = vpop.f32.mrb[124].mxu0 }
 0x25c   : > { %v3758_v22 = vadd.f32 %v3707_v21, %v3538_v56  ;;  %v3709_v23 = vpop.f32.mrb[125].mxu0 }
 0x25d   : > { %v3759_v24 = vadd.f32 %v3709_v23, %v3539_v58  ;;  %v3711_v25 = vpop.f32.mrb[126].mxu0 }
 0x25e   : > { %v3712_v26 = vpop.f32.mrb[127].mxu0 }
 0x25f   : > { %v3748_v27 = vpop.f32.mrb[124].mxu1 }
 0x260   : > { %v3760_v28 = vadd.f32 %v3748_v27, %v3540_v62  ;;  %v6761_v30 = vpop.f32.mrb[125].mxu1 }
 0x261   : > { %v3751_v31 = vpop.f32.mrb[126].mxu1 }
 0x262   : > { %v6762_v32 = vpop.f32.mrb[127].mxu1 }
 0x263   : > { %v3845_v33 = vpop.f32.mrb[128].mxu0 }
 0x264   : > { %v3974_v34 = vadd.f32 %v3845_v33, %v3754_v7  ;;  %v3847_v4 = vpop.f32.mrb[129].mxu0 }
 0x265   : > { %v3975_v35 = vadd.f32 %v3847_v4, %v3755_v13  ;;  %v3849_v0 = vpop.f32.mrb[130].mxu0 }
 0x266   : > { %v3850_v36 = vpop.f32.mrb[131].mxu0 }
 0x267   : > { %v3886_v5 = vpop.f32.mrb[128].mxu1 }
 0x268   : > { %v3976_v37 = vadd.f32 %v3886_v5, %v3756_v16  ;;  %v3888_v38 = vpop.f32.mrb[129].mxu1 }
 0x269   : > { %v3977_v39 = vadd.f32 %v3888_v38, %v3757_v18  ;;  %v3890_v40 = vpop.f32.mrb[130].mxu1 }
 0x26a   : > { %v3891_v3 = vpop.f32.mrb[131].mxu1 }
 0x26b   : > { %v3927_v41 = vpop.f32.mrb[132].mxu0 }
 0x26c   : > { %v3978_v42 = vadd.f32 %v3927_v41, %v3758_v22  ;;  %v3929_v43 = vpop.f32.mrb[133].mxu0 }
 0x26d   : > { %v3979_v29 = vadd.f32 %v3929_v43, %v3759_v24  ;;  %v3931_v6 = vpop.f32.mrb[134].mxu0 }
 0x26e   : > { %v3932_v44 = vpop.f32.mrb[135].mxu0 }
 0x26f   : > { %v3968_v45 = vpop.f32.mrb[132].mxu1 }
 0x270   : > { %v3980_v46 = vadd.f32 %v3968_v45, %v3760_v28  ;;  %v6767_v47 = vpop.f32.mrb[133].mxu1 }
 0x271   : > { %v3971_v48 = vpop.f32.mrb[134].mxu1 }
 0x272   : > { %v6768_v9 = vpop.f32.mrb[135].mxu1 }
 0x273   : > { %v4065_v49 = vpop.f32.mrb[136].mxu0 }
 0x274   : > { %v4194_v50 = vadd.f32 %v4065_v49, %v3974_v34  ;;  %v4067_v51 = vpop.f32.mrb[137].mxu0 }
 0x275   : > { %v4195_v52 = vadd.f32 %v4067_v51, %v3975_v35  ;;  %v4069_v53 = vpop.f32.mrb[138].mxu0 }
 0x276   : > { %v4070_v54 = vpop.f32.mrb[139].mxu0 }
 0x277   : > { %v4106_v55 = vpop.f32.mrb[136].mxu1 }
 0x278   : > { %v4196_v8 = vadd.f32 %v4106_v55, %v3976_v37  ;;  %v4108_v56 = vpop.f32.mrb[137].mxu1 }
 0x279   : > { %v4197_v57 = vadd.f32 %v4108_v56, %v3977_v39  ;;  %v4110_v58 = vpop.f32.mrb[138].mxu1 }
 0x27a   : > { %v4111_v11 = vpop.f32.mrb[139].mxu1 }
 0x27b   : > { %v4147_v59 = vpop.f32.mrb[140].mxu0 }
 0x27c   : > { %v4198_v61 = vadd.f32 %v4147_v59, %v3978_v42  ;;  %v4149_v62 = vpop.f32.mrb[141].mxu0 }
 0x27d   : > { %v4199_v63 = vadd.f32 %v4149_v62, %v3979_v29  ;;  %v4151_v1 = vpop.f32.mrb[142].mxu0 }
 0x27e   : > { %v4152_v2 = vpop.f32.mrb[143].mxu0 }
 0x27f   : > { %v4188_v12 = vpop.f32.mrb[140].mxu1 }
 0x280   : > { %v4200_v7 = vadd.f32 %v4188_v12, %v3980_v46  ;;  %v6773_v10 = vpop.f32.mrb[141].mxu1 }
 0x281   : > { %v4191_v13 = vpop.f32.mrb[142].mxu1 }
 0x282   : > { %v6774_v60 = vpop.f32.mrb[143].mxu1 }
 0x283   : > { %v4288_v14 = vpop.f32.mrb[144].mxu0 }
 0x284   : > { %v4417_v15 = vadd.f32 %v4288_v14, %v4194_v50  ;;  %v4290_v16 = vpop.f32.mrb[145].mxu0 }
 0x285   : > { %v4418_v17 = vadd.f32 %v4290_v16, %v4195_v52  ;;  %v4292_v18 = vpop.f32.mrb[146].mxu0 }
 0x286   : > { %v4293_v19 = vpop.f32.mrb[147].mxu0 }
 0x287   : > { %v4329_v20 = vpop.f32.mrb[144].mxu1 }
 0x288   : > { %v4419_v21 = vadd.f32 %v4329_v20, %v4196_v8  ;;  %v4331_v22 = vpop.f32.mrb[145].mxu1 }
 0x289   : > { %v4420_v23 = vadd.f32 %v4331_v22, %v4197_v57  ;;  %v4333_v24 = vpop.f32.mrb[146].mxu1 }
 0x28a   : > { %v4334_v25 = vpop.f32.mrb[147].mxu1 }
 0x28b   : > { %v4370_v26 = vpop.f32.mrb[148].mxu0 }
 0x28c   : > { %v4421_v27 = vadd.f32 %v4370_v26, %v4198_v61  ;;  %v4372_v28 = vpop.f32.mrb[149].mxu0 }
 0x28d   : > { %v4422_v30 = vadd.f32 %v4372_v28, %v4199_v63  ;;  %v4374_v31 = vpop.f32.mrb[150].mxu0 }
 0x28e   : > { %v4375_v32 = vpop.f32.mrb[151].mxu0 }
 0x28f   : > { %v4411_v33 = vpop.f32.mrb[148].mxu1 }
 0x290   : > { %v4423_v34 = vadd.f32 %v4411_v33, %v4200_v7  ;;  %v6779_v4 = vpop.f32.mrb[149].mxu1 }
 0x291   : > { %v4414_v35 = vpop.f32.mrb[150].mxu1 }
 0x292   : > { %v6780_v0 = vpop.f32.mrb[151].mxu1 }
 0x293   : > { %v4508_v36 = vpop.f32.mrb[152].mxu0 }
 0x294   : > { %v4637_v5 = vadd.f32 %v4508_v36, %v4417_v15  ;;  %v4510_v37 = vpop.f32.mrb[153].mxu0 }
 0x295   : > { %v4638_v38 = vadd.f32 %v4510_v37, %v4418_v17  ;;  %v4512_v39 = vpop.f32.mrb[154].mxu0 }
 0x296   : > { %v4513_v40 = vpop.f32.mrb[155].mxu0 }
 0x297   : > { %v4549_v3 = vpop.f32.mrb[152].mxu1 }
 0x298   : > { %v4639_v41 = vadd.f32 %v4549_v3, %v4419_v21  ;;  %v4551_v42 = vpop.f32.mrb[153].mxu1 }
 0x299   : > { %v4640_v43 = vadd.f32 %v4551_v42, %v4420_v23  ;;  %v4553_v29 = vpop.f32.mrb[154].mxu1 }
 0x29a   : > { %v4554_v6 = vpop.f32.mrb[155].mxu1 }
 0x29b   : > { %v4590_v44 = vpop.f32.mrb[156].mxu0 }
 0x29c   : > { %v4641_v45 = vadd.f32 %v4590_v44, %v4421_v27  ;;  %v4592_v46 = vpop.f32.mrb[157].mxu0 }
 0x29d   : > { %v4642_v47 = vadd.f32 %v4592_v46, %v4422_v30  ;;  %v4594_v48 = vpop.f32.mrb[158].mxu0 }
 0x29e   : > { %v4595_v9 = vpop.f32.mrb[159].mxu0 }
 0x29f   : > { %v4631_v49 = vpop.f32.mrb[156].mxu1 }
 0x2a0   : > { %v4643_v50 = vadd.f32 %v4631_v49, %v4423_v34  ;;  %v6785_v51 = vpop.f32.mrb[157].mxu1 }
 0x2a1   : > { %v4634_v52 = vpop.f32.mrb[158].mxu1 }
 0x2a2   : > { %v6786_v53 = vpop.f32.mrb[159].mxu1 }
 0x2a3   : > { %v4728_v54 = vpop.f32.mrb[160].mxu0 }
 0x2a4   : > { %v4857_v55 = vadd.f32 %v4728_v54, %v4637_v5  ;;  %v4730_v8 = vpop.f32.mrb[161].mxu0 }
 0x2a5   : > { %v4858_v56 = vadd.f32 %v4730_v8, %v4638_v38  ;;  %v4732_v57 = vpop.f32.mrb[162].mxu0 }
 0x2a6   : > { %v4733_v58 = vpop.f32.mrb[163].mxu0 }
 0x2a7   : > { %v4769_v11 = vpop.f32.mrb[160].mxu1 }
 0x2a8   : > { %v4859_v59 = vadd.f32 %v4769_v11, %v4639_v41  ;;  %v4771_v61 = vpop.f32.mrb[161].mxu1 }
 0x2a9   : > { %v4860_v62 = vadd.f32 %v4771_v61, %v4640_v43  ;;  %v4773_v63 = vpop.f32.mrb[162].mxu1 }
 0x2aa   : > { %v4774_v1 = vpop.f32.mrb[163].mxu1 }
 0x2ab   : > { %v4810_v2 = vpop.f32.mrb[164].mxu0 }
 0x2ac   : > { %v4861_v12 = vadd.f32 %v4810_v2, %v4641_v45  ;;  %v4812_v7 = vpop.f32.mrb[165].mxu0 }
 0x2ad   : > { %v4862_v10 = vadd.f32 %v4812_v7, %v4642_v47  ;;  %v4814_v13 = vpop.f32.mrb[166].mxu0 }
 0x2ae   : > { %v4815_v60 = vpop.f32.mrb[167].mxu0 }
 0x2af   : > { %v4851_v14 = vpop.f32.mrb[164].mxu1 }
 0x2b0   : > { %v4863_v15 = vadd.f32 %v4851_v14, %v4643_v50  ;;  %v6791_v16 = vpop.f32.mrb[165].mxu1 }
 0x2b1   : > { %v4854_v17 = vpop.f32.mrb[166].mxu1 }
 0x2b2   : > { %v6792_v18 = vpop.f32.mrb[167].mxu1 }
 0x2b3   : > { %v4948_v19 = vpop.f32.mrb[168].mxu0 }
 0x2b4   : > { %v5077_v20 = vadd.f32 %v4948_v19, %v4857_v55  ;;  %v4950_v21 = vpop.f32.mrb[169].mxu0 }
 0x2b5   : > { %v5078_v22 = vadd.f32 %v4950_v21, %v4858_v56  ;;  %v4952_v23 = vpop.f32.mrb[170].mxu0 }
 0x2b6   : > { %v4953_v24 = vpop.f32.mrb[171].mxu0 }
 0x2b7   : > { %v4989_v25 = vpop.f32.mrb[168].mxu1 }
 0x2b8   : > { %v5079_v26 = vadd.f32 %v4989_v25, %v4859_v59  ;;  %v4991_v27 = vpop.f32.mrb[169].mxu1 }
 0x2b9   : > { %v5080_v28 = vadd.f32 %v4991_v27, %v4860_v62  ;;  %v4993_v30 = vpop.f32.mrb[170].mxu1 }
 0x2ba   : > { %v4994_v31 = vpop.f32.mrb[171].mxu1 }
 0x2bb   : > { %v5030_v32 = vpop.f32.mrb[172].mxu0 }
 0x2bc   : > { %v5081_v33 = vadd.f32 %v5030_v32, %v4861_v12  ;;  %v5032_v34 = vpop.f32.mrb[173].mxu0 }
 0x2bd   : > { %v5082_v4 = vadd.f32 %v5032_v34, %v4862_v10  ;;  %v5034_v35 = vpop.f32.mrb[174].mxu0 }
 0x2be   : > { %v5035_v0 = vpop.f32.mrb[175].mxu0 }
 0x2bf   : > { %v5071_v36 = vpop.f32.mrb[172].mxu1 }
 0x2c0   : > { %v5083_v5 = vadd.f32 %v5071_v36, %v4863_v15  ;;  %v6797_v37 = vpop.f32.mrb[173].mxu1 }
 0x2c1   : > { %v5074_v38 = vpop.f32.mrb[174].mxu1 }
 0x2c2   : > { %v6798_v39 = vpop.f32.mrb[175].mxu1 }
 0x2c3   : > { %v5168_v40 = vpop.f32.mrb[176].mxu0 }
 0x2c4   : > { %v5297_v3 = vadd.f32 %v5168_v40, %v5077_v20  ;;  %v5170_v41 = vpop.f32.mrb[177].mxu0 }
 0x2c5   : > { %v5298_v42 = vadd.f32 %v5170_v41, %v5078_v22  ;;  %v5172_v43 = vpop.f32.mrb[178].mxu0 }
 0x2c6   : > { %v5173_v29 = vpop.f32.mrb[179].mxu0 }
 0x2c7   : > { %v5209_v6 = vpop.f32.mrb[176].mxu1 }
 0x2c8   : > { %v5299_v44 = vadd.f32 %v5209_v6, %v5079_v26  ;;  %v5211_v45 = vpop.f32.mrb[177].mxu1 }
 0x2c9   : > { %v5300_v46 = vadd.f32 %v5211_v45, %v5080_v28  ;;  %v5213_v47 = vpop.f32.mrb[178].mxu1 }
 0x2ca   : > { %v5214_v48 = vpop.f32.mrb[179].mxu1 }
 0x2cb   : > { %v5250_v9 = vpop.f32.mrb[180].mxu0 }
 0x2cc   : > { %v5301_v49 = vadd.f32 %v5250_v9, %v5081_v33  ;;  %v5252_v50 = vpop.f32.mrb[181].mxu0 }
 0x2cd   : > { %v5302_v51 = vadd.f32 %v5252_v50, %v5082_v4  ;;  %v5254_v52 = vpop.f32.mrb[182].mxu0  ;;  %v6199_v50 = vlaneseq }
 0x2ce   : > { %v5255_v53 = vpop.f32.mrb[183].mxu0 }
 0x2cf   : > { %v5291_v54 = vpop.f32.mrb[180].mxu1 }
 0x2d0   : > { %v5303_v55 = vadd.f32 %v5291_v54, %v5083_v5  ;;  %v6803_v8 = vpop.f32.mrb[181].mxu1 }
 0x2d1   : > { %v5294_v56 = vpop.f32.mrb[182].mxu1 }
 0x2d2   : > { %v6804_v57 = vpop.f32.mrb[183].mxu1  ;;  %v8221_v56 = vshrl.u32 %v6199_v50, 7 }
 0x2d3   : > { %v5388_v58 = vpop.f32.mrb[184].mxu0 }
 0x2d4   : > { %v5517_v11 = vadd.f32 %v5388_v58, %v5297_v3  ;;  %v5390_v59 = vpop.f32.mrb[185].mxu0 }
 0x2d5   : > { %v5518_v61 = vadd.f32 %v5390_v59, %v5298_v42  ;;  %v5392_v62 = vpop.f32.mrb[186].mxu0 }
 0x2d6   : > { %v5393_v63 = vpop.f32.mrb[187].mxu0 }
 0x2d7   : > { %v5429_v1 = vpop.f32.mrb[184].mxu1  ;;  %v6201_v63 = vsub.s32 0, %v8221_v56 }
 0x2d8   : > { %v5519_v2 = vadd.f32 %v5429_v1, %v5299_v44  ;;  %v5431_v12 = vpop.f32.mrb[185].mxu1 }
 0x2d9   : > { %v5520_v7 = vadd.f32 %v5431_v12, %v5300_v46  ;;  %v5433_v10 = vpop.f32.mrb[186].mxu1  ;;  %v6205_v12 = vsub.s32 1, %v8221_v56 }
 0x2da   : > { %v5434_v13 = vpop.f32.mrb[187].mxu1 }
 0x2db   : > { %v5470_v60 = vpop.f32.mrb[188].mxu0  ;;  %v8232_v13 = vpop.permute.xlu0 %6187 }
 0x2dc   : > { %v5521_v14 = vadd.f32 %v5470_v60, %v5301_v49  ;;  %v5472_v15 = vpop.f32.mrb[189].mxu0 }
 0x2dd   : > { %v5522_v16 = vadd.f32 %v5472_v15, %v5302_v51  ;;  %v5474_v17 = vpop.f32.mrb[190].mxu0 }
 0x2de   : > { %v5475_v18 = vpop.f32.mrb[191].mxu0 }
 0x2df   : > { %v5511_v19 = vpop.f32.mrb[188].mxu1 }
 0x2e0   : > { %v5523_v20 = vadd.f32 %v5511_v19, %v5303_v55  ;;  %v6809_v21 = vpop.f32.mrb[189].mxu1 }
 0x2e1   : > { %v5514_v22 = vpop.f32.mrb[190].mxu1 }
 0x2e2   : > { %v6810_v23 = vpop.f32.mrb[191].mxu1 }
 0x2e3   : > { %v5608_v24 = vpop.f32.mrb[192].mxu0  ;;  %v6217_v23 = vsub.s32 4, %v8221_v56 }
 0x2e4   : > { %v5737_v25 = vadd.f32 %v5608_v24, %v5517_v11  ;;  %v5610_v26 = vpop.f32.mrb[193].mxu0 }
 0x2e5   : > { %v5738_v27 = vadd.f32 %v5610_v26, %v5518_v61  ;;  %v5612_v28 = vpop.f32.mrb[194].mxu0  ;;  %v6221_v26 = vsub.s32 5, %v8221_v56 }
 0x2e6   : > { %v5613_v30 = vpop.f32.mrb[195].mxu0 }
 0x2e7   : > { %v5649_v31 = vpop.f32.mrb[192].mxu1 }
 0x2e8   : > { %v5739_v32 = vadd.f32 %v5649_v31, %v5519_v2  ;;  %v5651_v33 = vpop.f32.mrb[193].mxu1  ;;  %v8229_v2 = vld [vmem:[%s8296_s5] sm:$0xff] }
 0x2e9   : > { %v5740_v34 = vadd.f32 %v5651_v33, %v5520_v7  ;;  %v5653_v4 = vpop.f32.mrb[194].mxu1  ;;  %v6202_v15 = vrot.slane %v8229_v2, %v6201_v63  ;;  %v6206_v19 = vrot.slane %v8229_v2, %v6205_v12 }
 0x2ea   : > { %v5654_v35 = vpop.f32.mrb[195].mxu1 }
 0x2eb   : > { %v5690_v0 = vpop.f32.mrb[196].mxu0 }
 0x2ec   : > { %v5741_v36 = vadd.f32 %v5690_v0, %v5521_v14  ;;  %v5692_v5 = vpop.f32.mrb[197].mxu0 }
 0x2ed   : > { %v5742_v37 = vadd.f32 %v5692_v5, %v5522_v16  ;;  %v5694_v38 = vpop.f32.mrb[198].mxu0  ;;  %v6209_v16 = vsub.s32 2, %v8221_v56 }
 0x2ee   : > { %v5695_v39 = vpop.f32.mrb[199].mxu0 }
 0x2ef   : > { %v5731_v40 = vpop.f32.mrb[196].mxu1  ;;  %v6210_v28 = vrot.slane %v8229_v2, %v6209_v16 }
 0x2f0   : > { %v5743_v3 = vadd.f32 %v5731_v40, %v5523_v20  ;;  %v6815_v41 = vpop.f32.mrb[197].mxu1  ;;  %v6213_v20 = vsub.s32 3, %v8221_v56 }
 0x2f1   : > { %v5734_v42 = vpop.f32.mrb[198].mxu1 }
 0x2f2   : > { %v6816_v43 = vpop.f32.mrb[199].mxu1  ;;  %v6214_v35 = vrot.slane %v8229_v2, %v6213_v20  ;;  %v6222_v42 = vrot.slane %v8229_v2, %v6221_v26 }
 0x2f3   : > { %v5828_v29 = vpop.f32.mrb[200].mxu0 }
 0x2f4   : > { %v5957_v6 = vadd.f32 %v5828_v29, %v5737_v25  ;;  %v5830_v44 = vpop.f32.mrb[201].mxu0 }
 0x2f5   : > { %v5958_v45 = vadd.f32 %v5830_v44, %v5738_v27  ;;  %v5832_v46 = vpop.f32.mrb[202].mxu0 }
 0x2f6   : > { %v5833_v47 = vpop.f32.mrb[203].mxu0 }
 0x2f7   : > { %v5869_v48 = vpop.f32.mrb[200].mxu1 }
 0x2f8   : > { %v5959_v9 = vadd.f32 %v5869_v48, %v5739_v32  ;;  %v5871_v49 = vpop.f32.mrb[201].mxu1 }
 0x2f9   : > { %v5960_v51 = vadd.f32 %v5871_v49, %v5740_v34  ;;  %v5873_v52 = vpop.f32.mrb[202].mxu1 }
 0x2fa   : > { %v5874_v53 = vpop.f32.mrb[203].mxu1 }
 0x2fb   : > { %v5910_v54 = vpop.f32.mrb[204].mxu0 }
 0x2fc   : > { %v5961_v55 = vadd.f32 %v5910_v54, %v5741_v36  ;;  %v5912_v8 = vpop.f32.mrb[205].mxu0 }
 0x2fd   : > { %v5962_v57 = vadd.f32 %v5912_v8, %v5742_v37  ;;  %v5914_v58 = vpop.f32.mrb[206].mxu0  ;;  %v6218_v37 = vrot.slane %v8229_v2, %v6217_v23 }
 0x2fe   : > { %v5915_v11 = vpop.f32.mrb[207].mxu0 }
 0x2ff   : > { %v5951_v59 = vpop.f32.mrb[204].mxu1 }
 0x300   : > { %v8223_v61 = vadd.f32 %v5951_v59, %v5743_v3  ;;  %v6821_v62 = vpop.f32.mrb[205].mxu1 }
 0x301   : > { %v5954_v1 = vpop.f32.mrb[206].mxu1 }
 0x302   : > { %v6822_v7 = vpop.f32.mrb[207].mxu1 }
 0x303   : > { %v6048_v10 = vpop.f32.mrb[208].mxu0 }
 0x304   : > { %v6177_v60 = vadd.f32 %v6048_v10, %v5957_v6  ;;  %v6050_v14 = vpop.f32.mrb[209].mxu0 }
 0x305   : > { %v6178_v17 = vadd.f32 %v6050_v14, %v5958_v45  ;;  %v6052_v18 = vpop.f32.mrb[210].mxu0  ;;  %v6225_v45 = vsub.s32 6, %v8221_v56 }
 0x306   : > { %v8239_v21 = vadd.f32 %v8232_v13, %v6177_v60  ;;  %v6053_v22 = vpop.f32.mrb[211].mxu0 }
 0x307   : > { %v8243_v24 = vadd.f32 %v8232_v13, %v6178_v17  ;;  %v6089_v25 = vpop.f32.mrb[208].mxu1  ;;  %v6226_v7 = vrot.slane %v8229_v2, %v6225_v45  ;;  %v6305_v2 = vld [vmem:[%s8295_s4] sm:$0xff] }
 0x308   : > { %v6179_v27 = vadd.f32 %v6089_v25, %v5959_v9  ;;  %v6234_v30 = vmul.f32 %v6202_v15, %v8239_v21  ;;  %v6250_v31 = vmul.f32 %v8239_v21, %v8239_v21  ;;  %v6091_v32 = vpop.f32.mrb[209].mxu1 }
 0x309   : > { %v6235_v33 = vmul.f32 %v6206_v19, %v8243_v24  ;;  %v6251_v34 = vmul.f32 %v8243_v24, %v8243_v24  ;;  %v6180_v4 = vadd.f32 %v6091_v32, %v5960_v51  ;;  %v6093_v0 = vpop.f32.mrb[210].mxu1 }
 0x30a   : > { %v8255_v36 = vadd.f32 %v8232_v13, %v6179_v27  ;;  %v6257_v5 = vmul.f32 %v6250_v31, %v6202_v15  ;;  %v6094_v38 = vpop.f32.mrb[211].mxu1 }
 0x30b   : > { %v6241_v39 = vadd.f32 %v6235_v33, %v6234_v30  ;;  %v6258_v40 = vmul.f32 %v6251_v34, %v6206_v19  ;;  %v8259_v3 = vadd.f32 %v8232_v13, %v6180_v4  ;;  %v6130_v41 = vpop.f32.mrb[212].mxu0 }
 0x30c   : > { %v6236_v43 = vmul.f32 %v6210_v28, %v8255_v36  ;;  %v6252_v29 = vmul.f32 %v8255_v36, %v8255_v36  ;;  %v6181_v6 = vadd.f32 %v6130_v41, %v5961_v55  ;;  %v6132_v44 = vpop.f32.mrb[213].mxu0 }
 0x30d   : > { %v6264_v46 = vadd.f32 %v6258_v40, %v6257_v5  ;;  %v6237_v47 = vmul.f32 %v6214_v35, %v8259_v3  ;;  %v6253_v48 = vmul.f32 %v8259_v3, %v8259_v3  ;;  %v6182_v9 = vadd.f32 %v6132_v44, %v5962_v57  ;;  %v6134_v49 = vpop.f32.mrb[214].mxu0 }
 0x30e   : > { %v6242_v50 = vadd.f32 %v6241_v39, %v6236_v43  ;;  %v6259_v51 = vmul.f32 %v6252_v29, %v6210_v28  ;;  %v6194_v52 = vadd.f32 %v8232_v13, %v6181_v6  ;;  %v6135_v53 = vpop.f32.mrb[215].mxu0 }
 0x30f   : > { %v6260_v54 = vmul.f32 %v6253_v48, %v6214_v35  ;;  %v6195_v8 = vadd.f32 %v8232_v13, %v6182_v9  ;;  %v6171_v55 = vpop.f32.mrb[212].mxu1 }
 0x310   : > { %v6265_v58 = vadd.f32 %v6264_v46, %v6259_v51  ;;  %v6243_v11 = vadd.f32 %v6242_v50, %v6237_v47  ;;  %v6238_v56 = vmul.f32 %v6218_v37, %v6194_v52  ;;  %v6254_v59 = vmul.f32 %v6194_v52, %v6194_v52  ;;  %v6827_v62 = vpop.f32.mrb[213].mxu1 }
 0x311   : > { %v6239_v63 = vmul.f32 %v6222_v42, %v6195_v8  ;;  %v6255_v1 = vmul.f32 %v6195_v8, %v6195_v8  ;;  %v6183_v12 = vadd.f32 %v6171_v55, %v8223_v61  ;;  %v6174_v57 = vpop.f32.mrb[214].mxu1  ;;  %v6292_v61 = vld [vmem:[%s8294_s3] sm:$0xff] }
 0x312   : > { %v6261_v10 = vmul.f32 %v6254_v59, %v6218_v37  ;;  %v6828_v60 = vpop.f32.mrb[215].mxu1  ;;  %v6244_v14 = vadd.f32 %v6243_v11, %v6238_v56  ;;  %v6266_v15 = vadd.f32 %v6265_v58, %v6260_v54 }
 0x313   : > { %v6196_v16 = vadd.f32 %v8232_v13, %v6183_v12  ;;  %v6262_v17 = vmul.f32 %v6255_v1, %v6222_v42 }
 0x314   : > { %v6245_v18 = vadd.f32 %v6244_v14, %v6239_v63  ;;  %v6267_v19 = vadd.f32 %v6266_v15, %v6261_v10 }
 0x315   : > { %v6256_v20 = vmul.f32 %v6196_v16, %v6196_v16  ;;  %v6240_v22 = vmul.f32 %v6226_v7, %v6196_v16 }
 0x316   : > { %v6268_v23 = vadd.f32 %v6267_v19, %v6262_v17 }
 0x317   : > { %v6246_v25 = vadd.f32 %v6245_v18, %v6240_v22  ;;  %v6263_v26 = vmul.f32 %v6256_v20, %v6226_v7 }
 0x319   : > { %6247 = vadd.xlane.f32.xlu1 %v6246_v25  ;;  %v6269_v27 = vadd.f32 %v6268_v23, %v6263_v26 }
 0x31b   : > { %6270 = vadd.xlane.f32.xlu0 %v6269_v27 }
 0x32a   : > { %6295 = vperm.xlu1 %6869, %v6292_v61  }
 0x331   : > { %6308 = vperm.xlu0 %6868, %v6305_v2  }
 0x3a6   : > { %v6248_v13 = vpop.xlane.xlu1 %6247 }
 0x3a7   : > { %v6249_v28 = vmul.f32 0.001953125, %v6248_v13 }
 0x3a8   : > { %v6271_v30 = vpop.xlane.xlu0 %6270 }
 0x3a9   : > { %v6272_v31 = vmul.f32 0.001953125, %v6271_v30  ;;  %v6273_v32 = vmul.f32 %v6249_v28, %v6249_v28  ;;  %v6276_v35 = vsub.f32 %v8239_v21, %v6249_v28  ;;  %v6277_v0 = vsub.f32 %v8243_v24, %v6249_v28 }
 0x3aa   : > { %v6278_v5 = vsub.f32 %v8255_v36, %v6249_v28  ;;  %v6279_v37 = vsub.f32 %v8259_v3, %v6249_v28  ;;  %v6280_v39 = vsub.f32 %v6194_v52, %v6249_v28  ;;  %v6281_v40 = vsub.f32 %v6195_v8, %v6249_v28  ;;  %v6296_v42 = vpop.permute.xlu1 %6295 }
 0x3ab   : > { %v6274_v33 = vsub.f32 %v6272_v31, %v6273_v32  ;;  %v6282_v41 = vsub.f32 %v6196_v16, %v6249_v28 }
 0x3ad   : > { %v6275_v34 = vmax.f32 %v6274_v33, 0.0 }
 0x3af   : > { %v6283_v4 = vadd.f32 1e-05, %v6275_v34 }
 0x3b0   : > { %v6309_v36 = vpop.permute.xlu0 %6308 }
 0x3b1   : > { %6879 = vrsqrt.f32 %v6283_v4 }
 0x3bb   : > { %v6880_v38 = vpop.eup %6879 }
 0x3bc   : > { %v6285_v43 = vmul.f32 %v6880_v38, %v6276_v35  ;;  %v6286_v29 = vmul.f32 %v6880_v38, %v6277_v0  ;;  %v6287_v6 = vmul.f32 %v6880_v38, %v6278_v5  ;;  %v6288_v44 = vmul.f32 %v6880_v38, %v6279_v37 }
 0x3bd   : > { %v6289_v45 = vmul.f32 %v6880_v38, %v6280_v39  ;;  %v6290_v46 = vmul.f32 %v6880_v38, %v6281_v40  ;;  %v6291_v47 = vmul.f32 %v6880_v38, %v6282_v41 }
 0x3be   : > { %v6298_v21 = vmul.f32 %v6296_v42, %v6285_v43  ;;  %v6299_v48 = vmul.f32 %v6296_v42, %v6286_v29  ;;  %v6300_v24 = vmul.f32 %v6296_v42, %v6287_v6  ;;  %v6301_v9 = vmul.f32 %v6296_v42, %v6288_v44 }
 0x3bf   : > { %v6302_v3 = vmul.f32 %v6296_v42, %v6289_v45  ;;  %v6303_v49 = vmul.f32 %v6296_v42, %v6290_v46  ;;  %v6304_v50 = vmul.f32 %v6296_v42, %v6291_v47 }
 0x3c0   : > { %v6311_v51 = vadd.f32 %v6309_v36, %v6298_v21  ;;  %v6312_v52 = vadd.f32 %v6309_v36, %v6299_v48  ;;  %v6313_v53 = vadd.f32 %v6309_v36, %v6300_v24  ;;  %v6314_v54 = vadd.f32 %v6309_v36, %v6301_v9 }
 0x3c1   : > { %v6315_v8 = vadd.f32 %v6309_v36, %v6302_v3  ;;  %v6316_v55 = vadd.f32 %v6309_v36, %v6303_v49  ;;  %v6317_v58 = vadd.f32 %v6309_v36, %v6304_v50 }
 0x3c2   : > { %6318 = vst [vmem:[%s251_s22] sm:$0xff] %v6311_v51  ;;  %6319 = vst [vmem:[%s251_s22 + $0x8] sm:$0xff] %v6312_v52 }
 0x3c3   : > { %6320 = vst [vmem:[%s251_s22 + $0x10] sm:$0xff] %v6313_v53  ;;  %6321 = vst [vmem:[%s251_s22 + $0x18] sm:$0xff] %v6314_v54 }
 0x3c4   : > { %6322 = vst [vmem:[%s251_s22 + $0x20] sm:$0xff] %v6315_v8  ;;  %6323 = vst [vmem:[%s251_s22 + $0x28] sm:$0xff] %v6316_v55 }
 0x3c5   : > { %6324 = vst [vmem:[%s251_s22 + $0x30] sm:$0xff] %v6317_v58 }
 0x3c6 PF: > { %s16_s21 = sadd.s32 1, %s6887_s21  }
 0x3c7   : > { %p13_p4 = scmp.ge.s32.totalorder %s16_s21, 4  }
 0x3c9   :  { %15 = sbr.rel (!%p13_p4) target bundleno = 1 (0x1), region = 100 }

</bundles_post_ra>
